<compile_context>
chip_gen: v5e
topology: v5e:2x2
jax: 0.10.0
libtpu: 0.0.40
codegen_flags: <defaults>
</compile_context>

<pallas_src>
import functools

import jax
import jax.numpy as jnp
from jax.experimental import pallas as pl
from jax.experimental.pallas import tpu as pltpu


# ----------------------------------------------------------------------------
# Pallas kernels
# ----------------------------------------------------------------------------
def _conv_block_kernel(xb_ref, w_ref, p1_ref, p2_ref, o_ref, *, use_in):
    """One sample: 4x4/s2/p1 conv (as 2x2 conv over space-to-depth blocks)
    fused with (bias | InstanceNorm affine) + LeakyReLU(0.2).

    xb_ref : (1, Hb, Wb, 4*Cin)  padded, space-to-depth input block
    w_ref  : (4, 4*Cin, Cout)    bf16, tap-major reordered weights
    p1_ref : (1, Cout)           bias (use_in=False) or gamma (use_in=True)
    p2_ref : (1, Cout)           unused           or beta
    o_ref  : (1, Ho*Wo, Cout)
    """
    _, hb, wb, c4 = xb_ref.shape
    ho, wo = hb - 1, wb - 1
    cout = o_ref.shape[-1]

    acc = jnp.zeros((ho * wo, cout), jnp.float32)
    for qh in range(2):
        for qw in range(2):
            # contiguous VMEM slice -> (ho, wo, c4); wo is a multiple of 8 so
            # the flatten to (ho*wo, c4) is a layout-trivial merge.
            tap = xb_ref[0, qh:qh + ho, qw:qw + wo, :]
            tap = tap.reshape(ho * wo, c4).astype(jnp.bfloat16)
            acc = acc + jnp.dot(tap, w_ref[2 * qh + qw],
                                preferred_element_type=jnp.float32)

    if use_in:
        # InstanceNorm over spatial (biased var, eps=1e-5), single pass.
        m1 = jnp.mean(acc, axis=0, keepdims=True)
        m2 = jnp.mean(acc * acc, axis=0, keepdims=True)
        inv = jax.lax.rsqrt((m2 - m1 * m1) + 1e-5)
        y = (acc - m1) * inv * p1_ref[...] + p2_ref[...]
    else:
        y = acc + p1_ref[...]

    o_ref[0] = jnp.where(y > 0, y, 0.2 * y).astype(o_ref.dtype)


def _final_block_kernel(xb_ref, w_ref, g_ref, be_ref, w5_ref, b5_ref, o_ref):
    """One sample: last _block (conv + IN + LeakyReLU, output 4x4xC8) with the
    final Conv2d(C8, 1, 4, 2, 0) folded in as a multiply-reduce.

    xb_ref : (1, 5, 5, 4*Cin)   w_ref : (4, 4*Cin, C8) bf16
    g_ref, be_ref : (1, C8)     w5_ref: (4, 4, C8)      b5_ref: (1, 1)
    o_ref  : (1, 1, 1)
    """
    _, hb, wb, c4 = xb_ref.shape
    ho, wo = hb - 1, wb - 1          # 4, 4
    c8 = w_ref.shape[-1]

    # Per-output-row matmuls: avoids any non-trivial reshape (wo < 8 here).
    rows = []
    for h in range(ho):
        acc = jnp.zeros((wo, c8), jnp.float32)
        for qh in range(2):
            for qw in range(2):
                tap = xb_ref[0, h + qh, qw:qw + wo, :].astype(jnp.bfloat16)
                acc = acc + jnp.dot(tap, w_ref[2 * qh + qw],
                                    preferred_element_type=jnp.float32)
        rows.append(acc)

    # InstanceNorm statistics over all ho*wo spatial positions (per channel).
    s1 = rows[0].sum(axis=0, keepdims=True)
    s2 = (rows[0] * rows[0]).sum(axis=0, keepdims=True)
    for r in rows[1:]:
        s1 = s1 + r.sum(axis=0, keepdims=True)
        s2 = s2 + (r * r).sum(axis=0, keepdims=True)
    n_sp = ho * wo
    m1 = s1 / n_sp
    inv = jax.lax.rsqrt((s2 / n_sp - m1 * m1) + 1e-5)

    g = g_ref[...]
    be = be_ref[...]
    total = jnp.zeros((1, 1), jnp.float32)
    for h in range(ho):
        y = (rows[h] - m1) * inv * g + be
        y = jnp.where(y > 0, y, 0.2 * y)
        # folded final conv: sum over (kw, ci) of this kh row
        total = total + jnp.sum(y * w5_ref[h], axis=(0, 1), keepdims=True)

    o_ref[0] = (total + b5_ref[...]).astype(o_ref.dtype)


# ----------------------------------------------------------------------------
# Wrapper-side layout transforms (cheap, 1x data, plain XLA)
# ----------------------------------------------------------------------------
def _pad_space_to_depth(x):
    """(N, H, W, C) -> pad 1 -> 2x2 space-to-depth -> (N, H/2+1, W/2+1, 4C).

    Channel order of the output is (rh, rw, c): xb[n, i, j, rh*2C + rw*C + c]
    = x_padded[n, 2i + rh, 2j + rw, c].
    """
    n, h, w, c = x.shape
    xp = jnp.pad(x, ((0, 0), (1, 1), (1, 1), (0, 0)))
    hb, wb = (h + 2) // 2, (w + 2) // 2
    xp = xp.reshape(n, hb, 2, wb, 2, c)
    xp = jnp.transpose(xp, (0, 1, 3, 2, 4, 5))
    return xp.reshape(n, hb, wb, 4 * c)


def _prep_block_weight(w):
    """PyTorch (Cout, Cin, 4, 4) -> (4, 4*Cin, Cout) bf16, tap index 2*qh+qw,
    inner channel order (rh, rw, ci) matching _pad_space_to_depth."""
    cout, cin = w.shape[0], w.shape[1]
    w = jnp.transpose(w, (2, 3, 1, 0))               # (kh, kw, cin, cout)
    w = w.reshape(2, 2, 2, 2, cin, cout)             # (qh, rh, qw, rw, ci, co)
    w = jnp.transpose(w, (0, 2, 1, 3, 4, 5))         # (qh, qw, rh, rw, ci, co)
    return w.reshape(4, 4 * cin, cout).astype(jnp.bfloat16)


# ----------------------------------------------------------------------------
# pallas_call wrappers
# ----------------------------------------------------------------------------
def conv_block_pallas(x, w_blk, p1, p2, *, use_in):
    """Fused conv(4,2,1) + (bias | InstanceNorm) + LeakyReLU.  x: NHWC."""
    n, h, w, _ = x.shape
    cout = w_blk.shape[-1]
    ho, wo = h // 2, w // 2
    xb = _pad_space_to_depth(x)
    _, hb, wb, c4 = xb.shape

    kernel = functools.partial(_conv_block_kernel, use_in=use_in)
    out = pl.pallas_call(
        kernel,
        out_shape=jax.ShapeDtypeStruct((n, ho * wo, cout), jnp.float32),
        grid=(n,),
        in_specs=[
            pl.BlockSpec((1, hb, wb, c4), lambda i: (i, 0, 0, 0)),
            pl.BlockSpec((4, c4, cout), lambda i: (0, 0, 0)),
            pl.BlockSpec((1, cout), lambda i: (0, 0)),
            pl.BlockSpec((1, cout), lambda i: (0, 0)),
        ],
        out_specs=pl.BlockSpec((1, ho * wo, cout), lambda i: (i, 0, 0)),
        compiler_params=pltpu.CompilerParams(dimension_semantics=("parallel",)),
    )(xb, w_blk, p1, p2)
    return out.reshape(n, ho, wo, cout)


def final_block_pallas(x, w_blk, gamma, beta, w5, b5):
    """Last _block fused with the folded final Conv2d(.., 1, 4, 2, 0)."""
    n = x.shape[0]
    xb = _pad_space_to_depth(x)          # (N, 5, 5, 4*Cin)
    _, hb, wb, c4 = xb.shape
    c8 = w_blk.shape[-1]

    out = pl.pallas_call(
        _final_block_kernel,
        out_shape=jax.ShapeDtypeStruct((n, 1, 1), jnp.float32),
        grid=(n,),
        in_specs=[
            pl.BlockSpec((1, hb, wb, c4), lambda i: (i, 0, 0, 0)),
            pl.BlockSpec((4, c4, c8), lambda i: (0, 0, 0)),
            pl.BlockSpec((1, c8), lambda i: (0, 0)),
            pl.BlockSpec((1, c8), lambda i: (0, 0)),
            pl.BlockSpec((4, 4, c8), lambda i: (0, 0, 0)),
            pl.BlockSpec((1, 1), lambda i: (0, 0)),
        ],
        out_specs=pl.BlockSpec((1, 1, 1), lambda i: (i, 0, 0)),
        compiler_params=pltpu.CompilerParams(dimension_semantics=("parallel",)),
    )(xb, w_blk, gamma, beta, w5, b5)
    return out.reshape(n, 1, 1, 1)


# ----------------------------------------------------------------------------
# Parameters (stored in PyTorch layout: (Cout, Cin, kH, kW))
# ----------------------------------------------------------------------------
def init_params(key, channels_img, features_d):
    d = features_d
    specs = [("1", channels_img, d), ("2", d, 2 * d), ("3", 2 * d, 4 * d),
             ("4", 4 * d, 8 * d), ("5", 8 * d, 1)]
    params = {}
    keys = jax.random.split(key, 2 * len(specs))
    for idx, (name, cin, cout) in enumerate(specs):
        kw_, kb_ = keys[2 * idx], keys[2 * idx + 1]
        params[f"w{name}"] = 0.02 * jax.random.normal(
            kw_, (cout, cin, 4, 4), dtype=jnp.float32)
        if name in ("1", "5"):
            params[f"b{name}"] = 0.1 * jax.random.normal(kb_, (cout,),
                                                         dtype=jnp.float32)
        else:
            kg, kb2 = jax.random.split(kb_)
            params[f"g{name}"] = 1.0 + 0.1 * jax.random.normal(
                kg, (cout,), dtype=jnp.float32)
            params[f"be{name}"] = 0.1 * jax.random.normal(kb2, (cout,),
                                                          dtype=jnp.float32)
    return params


# ----------------------------------------------------------------------------
# Forward pass (mirrors nn.Sequential in Discriminator.forward)
# ----------------------------------------------------------------------------
@jax.jit
def discriminator_forward(x_nchw, params):
    x = jnp.transpose(x_nchw, (0, 2, 3, 1))                 # NCHW -> NHWC
    # Conv(cimg, d, 4, 2, 1) + bias + LeakyReLU(0.2)
    b1 = params["b1"].reshape(1, -1)
    x = conv_block_pallas(x, _prep_block_weight(params["w1"]), b1,
                          jnp.zeros_like(b1), use_in=False)
    # _block 2 and 3: Conv(no bias) + InstanceNorm(affine) + LeakyReLU
    for i in ("2", "3"):
        x = conv_block_pallas(x, _prep_block_weight(params[f"w{i}"]),
                              params[f"g{i}"].reshape(1, -1),
                              params[f"be{i}"].reshape(1, -1), use_in=True)
    # _block 4 fused with the final Conv(8d, 1, 4, 2, 0) + bias
    w5 = jnp.transpose(params["w5"], (2, 3, 1, 0)).reshape(4, 4, -1)
    out = final_block_pallas(x, _prep_block_weight(params["w4"]),
                             params["g4"].reshape(1, -1),
                             params["be4"].reshape(1, -1),
                             w5, params["b5"].reshape(1, 1))
    return out                                              # (N, 1, 1, 1) NCHW


# ----------------------------------------------------------------------------
# Pure-JAX f32 reference (for correctness check only)
# ----------------------------------------------------------------------------
@jax.jit
def _reference_forward(x_nchw, params):
    def conv(x, w, stride, pad):
        w_hwio = jnp.transpose(w, (2, 3, 1, 0))
        return jax.lax.conv_general_dilated(
            x, w_hwio, window_strides=(stride, stride),
            padding=((pad, pad), (pad, pad)),
            dimension_numbers=("NHWC", "HWIO", "NHWC"),
            precision=jax.lax.Precision.HIGHEST)

    def lrelu(x):
        return jnp.where(x > 0, x, 0.2 * x)

    def inorm(x, g, b):
        m = jnp.mean(x, axis=(1, 2), keepdims=True)
        v = jnp.mean(jnp.square(x - m), axis=(1, 2), keepdims=True)
        return (x - m) * jax.lax.rsqrt(v + 1e-5) * g + b

    x = jnp.transpose(x_nchw, (0, 2, 3, 1))
    x = lrelu(conv(x, params["w1"], 2, 1) + params["b1"])
    for i in ("2", "3", "4"):
        x = lrelu(inorm(conv(x, params[f"w{i}"], 2, 1),
                        params[f"g{i}"], params[f"be{i}"]))
    x = conv(x, params["w5"], 2, 0) + params["b5"]
    return jnp.transpose(x, (0, 3, 1, 2))


if __name__ == "__main__":
    CHANNELS_IMG = 3
    FEATURES_D = 8
    N, H, W = 2, 64, 64   # 64x64 required: 64->32->16->8->4->1

    key = jax.random.PRNGKey(0)
    k_x, k_p = jax.random.split(key)
    x = jax.random.normal(k_x, (N, CHANNELS_IMG, H, W), dtype=jnp.float32)
    params = init_params(k_p, CHANNELS_IMG, FEATURES_D)

    out = discriminator_forward(x, params)
    jax.block_until_ready(out)
    assert out.shape == (N, 1, 1, 1), out.shape

    ref = _reference_forward(x, params)
    err = float(jnp.max(jnp.abs(out - ref)))
    assert err < 5e-2, f"output mismatch vs reference (max abs err {err})"
    print("KERNEL_OK")
</pallas_src>

<mosaic_0001>
module attributes {stable_mosaic.version = 11 : i64} {
  func.func @_conv_block_kernel(%arg0: i32, %arg1: memref<1x33x33x12xf32, #tpu.memory_space<vmem>>, %arg2: memref<4x12x8xbf16, #tpu.memory_space<vmem>>, %arg3: memref<1x8xf32, #tpu.memory_space<vmem>>, %arg4: memref<1x8xf32, #tpu.memory_space<vmem>>, %arg5: memref<1x1024x8xf32, #tpu.memory_space<vmem>>) attributes {dimension_semantics = [#tpu.dimension_semantics<parallel>], iteration_bounds = array<i64: 2>, scalar_prefetch = 0 : i64, scratch_operands = 0 : i64, tpu.core_type = #tpu.core_type<tc>, window_params = [{transform_indices = @transform_0, window_bounds = array<i64: 1, 33, 33, 12>}, {pipeline_mode = #tpu.pipeline_mode<synchronous>, transform_indices = @transform_1, window_bounds = array<i64: 4, 12, 8>}, {pipeline_mode = #tpu.pipeline_mode<synchronous>, transform_indices = @transform_2, window_bounds = array<i64: 1, 8>}, {pipeline_mode = #tpu.pipeline_mode<synchronous>, transform_indices = @transform_3, window_bounds = array<i64: 1, 8>}, {transform_indices = @transform_4, window_bounds = array<i64: 1, 1024, 8>}]} {
    %cst = arith.constant 0.000000e+00 : f32
    %0 = vector.broadcast %cst : f32 to vector<1024x8xf32>
    %c0 = arith.constant 0 : index
    %c0_0 = arith.constant 0 : index
    %c0_1 = arith.constant 0 : index
    %c0_2 = arith.constant 0 : index
    %1 = vector.load %arg1[%c0, %c0_0, %c0_1, %c0_2] : memref<1x33x33x12xf32, #tpu.memory_space<vmem>>, vector<1x32x32x12xf32>
    %2 = vector.shape_cast %1 : vector<1x32x32x12xf32> to vector<32x32x12xf32>
    %3 = vector.shape_cast %2 : vector<32x32x12xf32> to vector<1024x12xf32>
    %4 = arith.truncf %3 : vector<1024x12xf32> to vector<1024x12xbf16>
    %c0_3 = arith.constant 0 : index
    %c0_4 = arith.constant 0 : index
    %c0_5 = arith.constant 0 : index
    %5 = vector.load %arg2[%c0_3, %c0_4, %c0_5] : memref<4x12x8xbf16, #tpu.memory_space<vmem>>, vector<1x12x8xbf16>
    %6 = vector.shape_cast %5 : vector<1x12x8xbf16> to vector<12x8xbf16>
    %cst_6 = arith.constant dense<0.000000e+00> : vector<1024x8xf32>
    %7 = tpu.matmul %4, %6, %cst_6 {dimension_numbers = #tpu.dot_dimension_numbers<[1], [0], [0], [1], [0, 0, 1, 1], [], []>} : vector<1024x12xbf16>, vector<12x8xbf16>, vector<1024x8xf32> -> vector<1024x8xf32>
    %8 = arith.addf %0, %7 : vector<1024x8xf32>
    %c0_7 = arith.constant 0 : index
    %c0_8 = arith.constant 0 : index
    %c1 = arith.constant 1 : index
    %c0_9 = arith.constant 0 : index
    %9 = vector.load %arg1[%c0_7, %c0_8, %c1, %c0_9] : memref<1x33x33x12xf32, #tpu.memory_space<vmem>>, vector<1x32x32x12xf32>
    %10 = vector.shape_cast %9 : vector<1x32x32x12xf32> to vector<32x32x12xf32>
    %11 = vector.shape_cast %10 : vector<32x32x12xf32> to vector<1024x12xf32>
    %12 = arith.truncf %11 : vector<1024x12xf32> to vector<1024x12xbf16>
    %c1_10 = arith.constant 1 : index
    %c0_11 = arith.constant 0 : index
    %c0_12 = arith.constant 0 : index
    %13 = vector.load %arg2[%c1_10, %c0_11, %c0_12] : memref<4x12x8xbf16, #tpu.memory_space<vmem>>, vector<1x12x8xbf16>
    %14 = vector.shape_cast %13 : vector<1x12x8xbf16> to vector<12x8xbf16>
    %cst_13 = arith.constant dense<0.000000e+00> : vector<1024x8xf32>
    %15 = tpu.matmul %12, %14, %cst_13 {dimension_numbers = #tpu.dot_dimension_numbers<[1], [0], [0], [1], [0, 0, 1, 1], [], []>} : vector<1024x12xbf16>, vector<12x8xbf16>, vector<1024x8xf32> -> vector<1024x8xf32>
    %16 = arith.addf %8, %15 : vector<1024x8xf32>
    %c0_14 = arith.constant 0 : index
    %c1_15 = arith.constant 1 : index
    %c0_16 = arith.constant 0 : index
    %c0_17 = arith.constant 0 : index
    %17 = vector.load %arg1[%c0_14, %c1_15, %c0_16, %c0_17] : memref<1x33x33x12xf32, #tpu.memory_space<vmem>>, vector<1x32x32x12xf32>
    %18 = vector.shape_cast %17 : vector<1x32x32x12xf32> to vector<32x32x12xf32>
    %19 = vector.shape_cast %18 : vector<32x32x12xf32> to vector<1024x12xf32>
    %20 = arith.truncf %19 : vector<1024x12xf32> to vector<1024x12xbf16>
    %c2 = arith.constant 2 : index
    %c0_18 = arith.constant 0 : index
    %c0_19 = arith.constant 0 : index
    %21 = vector.load %arg2[%c2, %c0_18, %c0_19] : memref<4x12x8xbf16, #tpu.memory_space<vmem>>, vector<1x12x8xbf16>
    %22 = vector.shape_cast %21 : vector<1x12x8xbf16> to vector<12x8xbf16>
    %cst_20 = arith.constant dense<0.000000e+00> : vector<1024x8xf32>
    %23 = tpu.matmul %20, %22, %cst_20 {dimension_numbers = #tpu.dot_dimension_numbers<[1], [0], [0], [1], [0, 0, 1, 1], [], []>} : vector<1024x12xbf16>, vector<12x8xbf16>, vector<1024x8xf32> -> vector<1024x8xf32>
    %24 = arith.addf %16, %23 : vector<1024x8xf32>
    %c0_21 = arith.constant 0 : index
    %c1_22 = arith.constant 1 : index
    %c1_23 = arith.constant 1 : index
    %c0_24 = arith.constant 0 : index
    %25 = vector.load %arg1[%c0_21, %c1_22, %c1_23, %c0_24] : memref<1x33x33x12xf32, #tpu.memory_space<vmem>>, vector<1x32x32x12xf32>
    %26 = vector.shape_cast %25 : vector<1x32x32x12xf32> to vector<32x32x12xf32>
    %27 = vector.shape_cast %26 : vector<32x32x12xf32> to vector<1024x12xf32>
    %28 = arith.truncf %27 : vector<1024x12xf32> to vector<1024x12xbf16>
    %c3 = arith.constant 3 : index
    %c0_25 = arith.constant 0 : index
    %c0_26 = arith.constant 0 : index
    %29 = vector.load %arg2[%c3, %c0_25, %c0_26] : memref<4x12x8xbf16, #tpu.memory_space<vmem>>, vector<1x12x8xbf16>
    %30 = vector.shape_cast %29 : vector<1x12x8xbf16> to vector<12x8xbf16>
    %cst_27 = arith.constant dense<0.000000e+00> : vector<1024x8xf32>
    %31 = tpu.matmul %28, %30, %cst_27 {dimension_numbers = #tpu.dot_dimension_numbers<[1], [0], [0], [1], [0, 0, 1, 1], [], []>} : vector<1024x12xbf16>, vector<12x8xbf16>, vector<1024x8xf32> -> vector<1024x8xf32>
    %32 = arith.addf %24, %31 : vector<1024x8xf32>
    %c0_28 = arith.constant 0 : index
    %c0_29 = arith.constant 0 : index
    %33 = vector.load %arg3[%c0_28, %c0_29] : memref<1x8xf32, #tpu.memory_space<vmem>>, vector<1x8xf32>
    %34 = vector.broadcast %33 : vector<1x8xf32> to vector<1024x8xf32>
    %35 = arith.addf %32, %34 : vector<1024x8xf32>
    %cst_30 = arith.constant 0.000000e+00 : f32
    %36 = vector.broadcast %cst_30 : f32 to vector<1024x8xf32>
    %37 = arith.cmpf ogt, %35, %36 : vector<1024x8xf32>
    %cst_31 = arith.constant 2.000000e-01 : f32
    %38 = vector.broadcast %cst_31 : f32 to vector<1024x8xf32>
    %39 = arith.mulf %38, %35 : vector<1024x8xf32>
    %40 = arith.select %37, %35, %39 : vector<1024x8xi1>, vector<1024x8xf32>
    %c0_32 = arith.constant 0 : index
    %c0_33 = arith.constant 0 : index
    %c0_34 = arith.constant 0 : index
    %41 = vector.load %arg5[%c0_32, %c0_33, %c0_34] : memref<1x1024x8xf32, #tpu.memory_space<vmem>>, vector<1x1024x8xf32>
    %42 = vector.shape_cast %41 : vector<1x1024x8xf32> to vector<1024x8xf32>
    %43 = vector.shape_cast %40 : vector<1024x8xf32> to vector<1x1024x8xf32>
    tpu.vector_store %arg5[%c0_32, %c0_33, %c0_34], %43 {strides = array<i32>} : memref<1x1024x8xf32, #tpu.memory_space<vmem>>, vector<1x1024x8xf32>,
    return
  }
  func.func @transform_0(%arg0: i32) -> (i32, i32, i32, i32) {
    %c0_i32 = arith.constant 0 : i32
    %c0_i32_0 = arith.constant 0 : i32
    %c0_i32_1 = arith.constant 0 : i32
    %c0_i32_2 = arith.constant 0 : i32
    return %arg0, %c0_i32, %c0_i32_0, %c0_i32_1 : i32, i32, i32, i32
  }
  func.func @transform_1(%arg0: i32) -> (i32, i32, i32) {
    %c0_i32 = arith.constant 0 : i32
    %c0_i32_0 = arith.constant 0 : i32
    %c0_i32_1 = arith.constant 0 : i32
    %c0_i32_2 = arith.constant 0 : i32
    return %c0_i32, %c0_i32_0, %c0_i32_1 : i32, i32, i32
  }
  func.func @transform_2(%arg0: i32) -> (i32, i32) {
    %c0_i32 = arith.constant 0 : i32
    %c0_i32_0 = arith.constant 0 : i32
    %c0_i32_1 = arith.constant 0 : i32
    return %c0_i32, %c0_i32_0 : i32, i32
  }
  func.func @transform_3(%arg0: i32) -> (i32, i32) {
    %c0_i32 = arith.constant 0 : i32
    %c0_i32_0 = arith.constant 0 : i32
    %c0_i32_1 = arith.constant 0 : i32
    return %c0_i32, %c0_i32_0 : i32, i32
  }
  func.func @transform_4(%arg0: i32) -> (i32, i32, i32) {
    %c0_i32 = arith.constant 0 : i32
    %c0_i32_0 = arith.constant 0 : i32
    %c0_i32_1 = arith.constant 0 : i32
    return %arg0, %c0_i32, %c0_i32_0 : i32, i32, i32
  }
}

module attributes {stable_mosaic.version = 11 : i64} {
  func.func @_conv_block_kernel(%arg0: i32, %arg1: memref<1x17x17x32xf32, #tpu.memory_space<vmem>>, %arg2: memref<4x32x16xbf16, #tpu.memory_space<vmem>>, %arg3: memref<1x16xf32, #tpu.memory_space<vmem>>, %arg4: memref<1x16xf32, #tpu.memory_space<vmem>>, %arg5: memref<1x256x16xf32, #tpu.memory_space<vmem>>) attributes {dimension_semantics = [#tpu.dimension_semantics<parallel>], iteration_bounds = array<i64: 2>, scalar_prefetch = 0 : i64, scratch_operands = 0 : i64, tpu.core_type = #tpu.core_type<tc>, window_params = [{transform_indices = @transform_0, window_bounds = array<i64: 1, 17, 17, 32>}, {pipeline_mode = #tpu.pipeline_mode<synchronous>, transform_indices = @transform_1, window_bounds = array<i64: 4, 32, 16>}, {pipeline_mode = #tpu.pipeline_mode<synchronous>, transform_indices = @transform_2, window_bounds = array<i64: 1, 16>}, {pipeline_mode = #tpu.pipeline_mode<synchronous>, transform_indices = @transform_3, window_bounds = array<i64: 1, 16>}, {transform_indices = @transform_4, window_bounds = array<i64: 1, 256, 16>}]} {
    %cst = arith.constant 0.000000e+00 : f32
    %0 = vector.broadcast %cst : f32 to vector<256x16xf32>
    %c0 = arith.constant 0 : index
    %c0_0 = arith.constant 0 : index
    %c0_1 = arith.constant 0 : index
    %c0_2 = arith.constant 0 : index
    %1 = vector.load %arg1[%c0, %c0_0, %c0_1, %c0_2] : memref<1x17x17x32xf32, #tpu.memory_space<vmem>>, vector<1x16x16x32xf32>
    %2 = vector.shape_cast %1 : vector<1x16x16x32xf32> to vector<16x16x32xf32>
    %3 = vector.shape_cast %2 : vector<16x16x32xf32> to vector<256x32xf32>
    %4 = arith.truncf %3 : vector<256x32xf32> to vector<256x32xbf16>
    %c0_3 = arith.constant 0 : index
    %c0_4 = arith.constant 0 : index
    %c0_5 = arith.constant 0 : index
    %5 = vector.load %arg2[%c0_3, %c0_4, %c0_5] : memref<4x32x16xbf16, #tpu.memory_space<vmem>>, vector<1x32x16xbf16>
    %6 = vector.shape_cast %5 : vector<1x32x16xbf16> to vector<32x16xbf16>
    %cst_6 = arith.constant dense<0.000000e+00> : vector<256x16xf32>
    %7 = tpu.matmul %4, %6, %cst_6 {dimension_numbers = #tpu.dot_dimension_numbers<[1], [0], [0], [1], [0, 0, 1, 1], [], []>} : vector<256x32xbf16>, vector<32x16xbf16>, vector<256x16xf32> -> vector<256x16xf32>
    %8 = arith.addf %0, %7 : vector<256x16xf32>
    %c0_7 = arith.constant 0 : index
    %c0_8 = arith.constant 0 : index
    %c1 = arith.constant 1 : index
    %c0_9 = arith.constant 0 : index
    %9 = vector.load %arg1[%c0_7, %c0_8, %c1, %c0_9] : memref<1x17x17x32xf32, #tpu.memory_space<vmem>>, vector<1x16x16x32xf32>
    %10 = vector.shape_cast %9 : vector<1x16x16x32xf32> to vector<16x16x32xf32>
    %11 = vector.shape_cast %10 : vector<16x16x32xf32> to vector<256x32xf32>
    %12 = arith.truncf %11 : vector<256x32xf32> to vector<256x32xbf16>
    %c1_10 = arith.constant 1 : index
    %c0_11 = arith.constant 0 : index
    %c0_12 = arith.constant 0 : index
    %13 = vector.load %arg2[%c1_10, %c0_11, %c0_12] : memref<4x32x16xbf16, #tpu.memory_space<vmem>>, vector<1x32x16xbf16>
    %14 = vector.shape_cast %13 : vector<1x32x16xbf16> to vector<32x16xbf16>
    %cst_13 = arith.constant dense<0.000000e+00> : vector<256x16xf32>
    %15 = tpu.matmul %12, %14, %cst_13 {dimension_numbers = #tpu.dot_dimension_numbers<[1], [0], [0], [1], [0, 0, 1, 1], [], []>} : vector<256x32xbf16>, vector<32x16xbf16>, vector<256x16xf32> -> vector<256x16xf32>
    %16 = arith.addf %8, %15 : vector<256x16xf32>
    %c0_14 = arith.constant 0 : index
    %c1_15 = arith.constant 1 : index
    %c0_16 = arith.constant 0 : index
    %c0_17 = arith.constant 0 : index
    %17 = vector.load %arg1[%c0_14, %c1_15, %c0_16, %c0_17] : memref<1x17x17x32xf32, #tpu.memory_space<vmem>>, vector<1x16x16x32xf32>
    %18 = vector.shape_cast %17 : vector<1x16x16x32xf32> to vector<16x16x32xf32>
    %19 = vector.shape_cast %18 : vector<16x16x32xf32> to vector<256x32xf32>
    %20 = arith.truncf %19 : vector<256x32xf32> to vector<256x32xbf16>
    %c2 = arith.constant 2 : index
    %c0_18 = arith.constant 0 : index
    %c0_19 = arith.constant 0 : index
    %21 = vector.load %arg2[%c2, %c0_18, %c0_19] : memref<4x32x16xbf16, #tpu.memory_space<vmem>>, vector<1x32x16xbf16>
    %22 = vector.shape_cast %21 : vector<1x32x16xbf16> to vector<32x16xbf16>
    %cst_20 = arith.constant dense<0.000000e+00> : vector<256x16xf32>
    %23 = tpu.matmul %20, %22, %cst_20 {dimension_numbers = #tpu.dot_dimension_numbers<[1], [0], [0], [1], [0, 0, 1, 1], [], []>} : vector<256x32xbf16>, vector<32x16xbf16>, vector<256x16xf32> -> vector<256x16xf32>
    %24 = arith.addf %16, %23 : vector<256x16xf32>
    %c0_21 = arith.constant 0 : index
    %c1_22 = arith.constant 1 : index
    %c1_23 = arith.constant 1 : index
    %c0_24 = arith.constant 0 : index
    %25 = vector.load %arg1[%c0_21, %c1_22, %c1_23, %c0_24] : memref<1x17x17x32xf32, #tpu.memory_space<vmem>>, vector<1x16x16x32xf32>
    %26 = vector.shape_cast %25 : vector<1x16x16x32xf32> to vector<16x16x32xf32>
    %27 = vector.shape_cast %26 : vector<16x16x32xf32> to vector<256x32xf32>
    %28 = arith.truncf %27 : vector<256x32xf32> to vector<256x32xbf16>
    %c3 = arith.constant 3 : index
    %c0_25 = arith.constant 0 : index
    %c0_26 = arith.constant 0 : index
    %29 = vector.load %arg2[%c3, %c0_25, %c0_26] : memref<4x32x16xbf16, #tpu.memory_space<vmem>>, vector<1x32x16xbf16>
    %30 = vector.shape_cast %29 : vector<1x32x16xbf16> to vector<32x16xbf16>
    %cst_27 = arith.constant dense<0.000000e+00> : vector<256x16xf32>
    %31 = tpu.matmul %28, %30, %cst_27 {dimension_numbers = #tpu.dot_dimension_numbers<[1], [0], [0], [1], [0, 0, 1, 1], [], []>} : vector<256x32xbf16>, vector<32x16xbf16>, vector<256x16xf32> -> vector<256x16xf32>
    %32 = arith.addf %24, %31 : vector<256x16xf32>
    %cst_28 = arith.constant dense<0.000000e+00> : vector<16xf32>
    %33 = vector.multi_reduction <add>, %32, %cst_28 [0] : vector<256x16xf32> to vector<16xf32>
    %34 = vector.shape_cast %33 : vector<16xf32> to vector<1x16xf32>
    %cst_29 = arith.constant 2.560000e+02 : f32
    %35 = vector.broadcast %cst_29 : f32 to vector<1x16xf32>
    %36 = arith.divf %34, %35 : vector<1x16xf32>
    %37 = arith.mulf %32, %32 : vector<256x16xf32>
    %cst_30 = arith.constant dense<0.000000e+00> : vector<16xf32>
    %38 = vector.multi_reduction <add>, %37, %cst_30 [0] : vector<256x16xf32> to vector<16xf32>
    %39 = vector.shape_cast %38 : vector<16xf32> to vector<1x16xf32>
    %cst_31 = arith.constant 2.560000e+02 : f32
    %40 = vector.broadcast %cst_31 : f32 to vector<1x16xf32>
    %41 = arith.divf %39, %40 : vector<1x16xf32>
    %42 = arith.mulf %36, %36 : vector<1x16xf32>
    %43 = arith.subf %41, %42 : vector<1x16xf32>
    %cst_32 = arith.constant 9.99999974E-6 : f32
    %44 = vector.broadcast %cst_32 : f32 to vector<1x16xf32>
    %45 = arith.addf %43, %44 : vector<1x16xf32>
    %46 = math.rsqrt %45 : vector<1x16xf32>
    %47 = vector.broadcast %36 : vector<1x16xf32> to vector<256x16xf32>
    %48 = arith.subf %32, %47 : vector<256x16xf32>
    %49 = vector.broadcast %46 : vector<1x16xf32> to vector<256x16xf32>
    %50 = arith.mulf %48, %49 : vector<256x16xf32>
    %c0_33 = arith.constant 0 : index
    %c0_34 = arith.constant 0 : index
    %51 = vector.load %arg3[%c0_33, %c0_34] : memref<1x16xf32, #tpu.memory_space<vmem>>, vector<1x16xf32>
    %52 = vector.broadcast %51 : vector<1x16xf32> to vector<256x16xf32>
    %53 = arith.mulf %50, %52 : vector<256x16xf32>
    %c0_35 = arith.constant 0 : index
    %c0_36 = arith.constant 0 : index
    %54 = vector.load %arg4[%c0_35, %c0_36] : memref<1x16xf32, #tpu.memory_space<vmem>>, vector<1x16xf32>
    %55 = vector.broadcast %54 : vector<1x16xf32> to vector<256x16xf32>
    %56 = arith.addf %53, %55 : vector<256x16xf32>
    %cst_37 = arith.constant 0.000000e+00 : f32
    %57 = vector.broadcast %cst_37 : f32 to vector<256x16xf32>
    %58 = arith.cmpf ogt, %56, %57 : vector<256x16xf32>
    %cst_38 = arith.constant 2.000000e-01 : f32
    %59 = vector.broadcast %cst_38 : f32 to vector<256x16xf32>
    %60 = arith.mulf %59, %56 : vector<256x16xf32>
    %61 = arith.select %58, %56, %60 : vector<256x16xi1>, vector<256x16xf32>
    %c0_39 = arith.constant 0 : index
    %c0_40 = arith.constant 0 : index
    %c0_41 = arith.constant 0 : index
    %62 = vector.load %arg5[%c0_39, %c0_40, %c0_41] : memref<1x256x16xf32, #tpu.memory_space<vmem>>, vector<1x256x16xf32>
    %63 = vector.shape_cast %62 : vector<1x256x16xf32> to vector<256x16xf32>
    %64 = vector.shape_cast %61 : vector<256x16xf32> to vector<1x256x16xf32>
    tpu.vector_store %arg5[%c0_39, %c0_40, %c0_41], %64 {strides = array<i32>} : memref<1x256x16xf32, #tpu.memory_space<vmem>>, vector<1x256x16xf32>,
    return
  }
  func.func @transform_0(%arg0: i32) -> (i32, i32, i32, i32) {
    %c0_i32 = arith.constant 0 : i32
    %c0_i32_0 = arith.constant 0 : i32
    %c0_i32_1 = arith.constant 0 : i32
    %c0_i32_2 = arith.constant 0 : i32
    return %arg0, %c0_i32, %c0_i32_0, %c0_i32_1 : i32, i32, i32, i32
  }
  func.func @transform_1(%arg0: i32) -> (i32, i32, i32) {
    %c0_i32 = arith.constant 0 : i32
    %c0_i32_0 = arith.constant 0 : i32
    %c0_i32_1 = arith.constant 0 : i32
    %c0_i32_2 = arith.constant 0 : i32
    return %c0_i32, %c0_i32_0, %c0_i32_1 : i32, i32, i32
  }
  func.func @transform_2(%arg0: i32) -> (i32, i32) {
    %c0_i32 = arith.constant 0 : i32
    %c0_i32_0 = arith.constant 0 : i32
    %c0_i32_1 = arith.constant 0 : i32
    return %c0_i32, %c0_i32_0 : i32, i32
  }
  func.func @transform_3(%arg0: i32) -> (i32, i32) {
    %c0_i32 = arith.constant 0 : i32
    %c0_i32_0 = arith.constant 0 : i32
    %c0_i32_1 = arith.constant 0 : i32
    return %c0_i32, %c0_i32_0 : i32, i32
  }
  func.func @transform_4(%arg0: i32) -> (i32, i32, i32) {
    %c0_i32 = arith.constant 0 : i32
    %c0_i32_0 = arith.constant 0 : i32
    %c0_i32_1 = arith.constant 0 : i32
    return %arg0, %c0_i32, %c0_i32_0 : i32, i32, i32
  }
}

module attributes {stable_mosaic.version = 11 : i64} {
  func.func @_conv_block_kernel(%arg0: i32, %arg1: memref<1x9x9x64xf32, #tpu.memory_space<vmem>>, %arg2: memref<4x64x32xbf16, #tpu.memory_space<vmem>>, %arg3: memref<1x32xf32, #tpu.memory_space<vmem>>, %arg4: memref<1x32xf32, #tpu.memory_space<vmem>>, %arg5: memref<1x64x32xf32, #tpu.memory_space<vmem>>) attributes {dimension_semantics = [#tpu.dimension_semantics<parallel>], iteration_bounds = array<i64: 2>, scalar_prefetch = 0 : i64, scratch_operands = 0 : i64, tpu.core_type = #tpu.core_type<tc>, window_params = [{transform_indices = @transform_0, window_bounds = array<i64: 1, 9, 9, 64>}, {pipeline_mode = #tpu.pipeline_mode<synchronous>, transform_indices = @transform_1, window_bounds = array<i64: 4, 64, 32>}, {pipeline_mode = #tpu.pipeline_mode<synchronous>, transform_indices = @transform_2, window_bounds = array<i64: 1, 32>}, {pipeline_mode = #tpu.pipeline_mode<synchronous>, transform_indices = @transform_3, window_bounds = array<i64: 1, 32>}, {transform_indices = @transform_4, window_bounds = array<i64: 1, 64, 32>}]} {
    %cst = arith.constant 0.000000e+00 : f32
    %0 = vector.broadcast %cst : f32 to vector<64x32xf32>
    %c0 = arith.constant 0 : index
    %c0_0 = arith.constant 0 : index
    %c0_1 = arith.constant 0 : index
    %c0_2 = arith.constant 0 : index
    %1 = vector.load %arg1[%c0, %c0_0, %c0_1, %c0_2] : memref<1x9x9x64xf32, #tpu.memory_space<vmem>>, vector<1x8x8x64xf32>
    %2 = vector.shape_cast %1 : vector<1x8x8x64xf32> to vector<8x8x64xf32>
    %3 = vector.shape_cast %2 : vector<8x8x64xf32> to vector<64x64xf32>
    %4 = arith.truncf %3 : vector<64x64xf32> to vector<64x64xbf16>
    %c0_3 = arith.constant 0 : index
    %c0_4 = arith.constant 0 : index
    %c0_5 = arith.constant 0 : index
    %5 = vector.load %arg2[%c0_3, %c0_4, %c0_5] : memref<4x64x32xbf16, #tpu.memory_space<vmem>>, vector<1x64x32xbf16>
    %6 = vector.shape_cast %5 : vector<1x64x32xbf16> to vector<64x32xbf16>
    %cst_6 = arith.constant dense<0.000000e+00> : vector<64x32xf32>
    %7 = tpu.matmul %4, %6, %cst_6 {dimension_numbers = #tpu.dot_dimension_numbers<[1], [0], [0], [1], [0, 0, 1, 1], [], []>} : vector<64x64xbf16>, vector<64x32xbf16>, vector<64x32xf32> -> vector<64x32xf32>
    %8 = arith.addf %0, %7 : vector<64x32xf32>
    %c0_7 = arith.constant 0 : index
    %c0_8 = arith.constant 0 : index
    %c1 = arith.constant 1 : index
    %c0_9 = arith.constant 0 : index
    %9 = vector.load %arg1[%c0_7, %c0_8, %c1, %c0_9] : memref<1x9x9x64xf32, #tpu.memory_space<vmem>>, vector<1x8x8x64xf32>
    %10 = vector.shape_cast %9 : vector<1x8x8x64xf32> to vector<8x8x64xf32>
    %11 = vector.shape_cast %10 : vector<8x8x64xf32> to vector<64x64xf32>
    %12 = arith.truncf %11 : vector<64x64xf32> to vector<64x64xbf16>
    %c1_10 = arith.constant 1 : index
    %c0_11 = arith.constant 0 : index
    %c0_12 = arith.constant 0 : index
    %13 = vector.load %arg2[%c1_10, %c0_11, %c0_12] : memref<4x64x32xbf16, #tpu.memory_space<vmem>>, vector<1x64x32xbf16>
    %14 = vector.shape_cast %13 : vector<1x64x32xbf16> to vector<64x32xbf16>
    %cst_13 = arith.constant dense<0.000000e+00> : vector<64x32xf32>
    %15 = tpu.matmul %12, %14, %cst_13 {dimension_numbers = #tpu.dot_dimension_numbers<[1], [0], [0], [1], [0, 0, 1, 1], [], []>} : vector<64x64xbf16>, vector<64x32xbf16>, vector<64x32xf32> -> vector<64x32xf32>
    %16 = arith.addf %8, %15 : vector<64x32xf32>
    %c0_14 = arith.constant 0 : index
    %c1_15 = arith.constant 1 : index
    %c0_16 = arith.constant 0 : index
    %c0_17 = arith.constant 0 : index
    %17 = vector.load %arg1[%c0_14, %c1_15, %c0_16, %c0_17] : memref<1x9x9x64xf32, #tpu.memory_space<vmem>>, vector<1x8x8x64xf32>
    %18 = vector.shape_cast %17 : vector<1x8x8x64xf32> to vector<8x8x64xf32>
    %19 = vector.shape_cast %18 : vector<8x8x64xf32> to vector<64x64xf32>
    %20 = arith.truncf %19 : vector<64x64xf32> to vector<64x64xbf16>
    %c2 = arith.constant 2 : index
    %c0_18 = arith.constant 0 : index
    %c0_19 = arith.constant 0 : index
    %21 = vector.load %arg2[%c2, %c0_18, %c0_19] : memref<4x64x32xbf16, #tpu.memory_space<vmem>>, vector<1x64x32xbf16>
    %22 = vector.shape_cast %21 : vector<1x64x32xbf16> to vector<64x32xbf16>
    %cst_20 = arith.constant dense<0.000000e+00> : vector<64x32xf32>
    %23 = tpu.matmul %20, %22, %cst_20 {dimension_numbers = #tpu.dot_dimension_numbers<[1], [0], [0], [1], [0, 0, 1, 1], [], []>} : vector<64x64xbf16>, vector<64x32xbf16>, vector<64x32xf32> -> vector<64x32xf32>
    %24 = arith.addf %16, %23 : vector<64x32xf32>
    %c0_21 = arith.constant 0 : index
    %c1_22 = arith.constant 1 : index
    %c1_23 = arith.constant 1 : index
    %c0_24 = arith.constant 0 : index
    %25 = vector.load %arg1[%c0_21, %c1_22, %c1_23, %c0_24] : memref<1x9x9x64xf32, #tpu.memory_space<vmem>>, vector<1x8x8x64xf32>
    %26 = vector.shape_cast %25 : vector<1x8x8x64xf32> to vector<8x8x64xf32>
    %27 = vector.shape_cast %26 : vector<8x8x64xf32> to vector<64x64xf32>
    %28 = arith.truncf %27 : vector<64x64xf32> to vector<64x64xbf16>
    %c3 = arith.constant 3 : index
    %c0_25 = arith.constant 0 : index
    %c0_26 = arith.constant 0 : index
    %29 = vector.load %arg2[%c3, %c0_25, %c0_26] : memref<4x64x32xbf16, #tpu.memory_space<vmem>>, vector<1x64x32xbf16>
    %30 = vector.shape_cast %29 : vector<1x64x32xbf16> to vector<64x32xbf16>
    %cst_27 = arith.constant dense<0.000000e+00> : vector<64x32xf32>
    %31 = tpu.matmul %28, %30, %cst_27 {dimension_numbers = #tpu.dot_dimension_numbers<[1], [0], [0], [1], [0, 0, 1, 1], [], []>} : vector<64x64xbf16>, vector<64x32xbf16>, vector<64x32xf32> -> vector<64x32xf32>
    %32 = arith.addf %24, %31 : vector<64x32xf32>
    %cst_28 = arith.constant dense<0.000000e+00> : vector<32xf32>
    %33 = vector.multi_reduction <add>, %32, %cst_28 [0] : vector<64x32xf32> to vector<32xf32>
    %34 = vector.shape_cast %33 : vector<32xf32> to vector<1x32xf32>
    %cst_29 = arith.constant 6.400000e+01 : f32
    %35 = vector.broadcast %cst_29 : f32 to vector<1x32xf32>
    %36 = arith.divf %34, %35 : vector<1x32xf32>
    %37 = arith.mulf %32, %32 : vector<64x32xf32>
    %cst_30 = arith.constant dense<0.000000e+00> : vector<32xf32>
    %38 = vector.multi_reduction <add>, %37, %cst_30 [0] : vector<64x32xf32> to vector<32xf32>
    %39 = vector.shape_cast %38 : vector<32xf32> to vector<1x32xf32>
    %cst_31 = arith.constant 6.400000e+01 : f32
    %40 = vector.broadcast %cst_31 : f32 to vector<1x32xf32>
    %41 = arith.divf %39, %40 : vector<1x32xf32>
    %42 = arith.mulf %36, %36 : vector<1x32xf32>
    %43 = arith.subf %41, %42 : vector<1x32xf32>
    %cst_32 = arith.constant 9.99999974E-6 : f32
    %44 = vector.broadcast %cst_32 : f32 to vector<1x32xf32>
    %45 = arith.addf %43, %44 : vector<1x32xf32>
    %46 = math.rsqrt %45 : vector<1x32xf32>
    %47 = vector.broadcast %36 : vector<1x32xf32> to vector<64x32xf32>
    %48 = arith.subf %32, %47 : vector<64x32xf32>
    %49 = vector.broadcast %46 : vector<1x32xf32> to vector<64x32xf32>
    %50 = arith.mulf %48, %49 : vector<64x32xf32>
    %c0_33 = arith.constant 0 : index
    %c0_34 = arith.constant 0 : index
    %51 = vector.load %arg3[%c0_33, %c0_34] : memref<1x32xf32, #tpu.memory_space<vmem>>, vector<1x32xf32>
    %52 = vector.broadcast %51 : vector<1x32xf32> to vector<64x32xf32>
    %53 = arith.mulf %50, %52 : vector<64x32xf32>
    %c0_35 = arith.constant 0 : index
    %c0_36 = arith.constant 0 : index
    %54 = vector.load %arg4[%c0_35, %c0_36] : memref<1x32xf32, #tpu.memory_space<vmem>>, vector<1x32xf32>
    %55 = vector.broadcast %54 : vector<1x32xf32> to vector<64x32xf32>
    %56 = arith.addf %53, %55 : vector<64x32xf32>
    %cst_37 = arith.constant 0.000000e+00 : f32
    %57 = vector.broadcast %cst_37 : f32 to vector<64x32xf32>
    %58 = arith.cmpf ogt, %56, %57 : vector<64x32xf32>
    %cst_38 = arith.constant 2.000000e-01 : f32
    %59 = vector.broadcast %cst_38 : f32 to vector<64x32xf32>
    %60 = arith.mulf %59, %56 : vector<64x32xf32>
    %61 = arith.select %58, %56, %60 : vector<64x32xi1>, vector<64x32xf32>
    %c0_39 = arith.constant 0 : index
    %c0_40 = arith.constant 0 : index
    %c0_41 = arith.constant 0 : index
    %62 = vector.load %arg5[%c0_39, %c0_40, %c0_41] : memref<1x64x32xf32, #tpu.memory_space<vmem>>, vector<1x64x32xf32>
    %63 = vector.shape_cast %62 : vector<1x64x32xf32> to vector<64x32xf32>
    %64 = vector.shape_cast %61 : vector<64x32xf32> to vector<1x64x32xf32>
    tpu.vector_store %arg5[%c0_39, %c0_40, %c0_41], %64 {strides = array<i32>} : memref<1x64x32xf32, #tpu.memory_space<vmem>>, vector<1x64x32xf32>,
    return
  }
  func.func @transform_0(%arg0: i32) -> (i32, i32, i32, i32) {
    %c0_i32 = arith.constant 0 : i32
    %c0_i32_0 = arith.constant 0 : i32
    %c0_i32_1 = arith.constant 0 : i32
    %c0_i32_2 = arith.constant 0 : i32
    return %arg0, %c0_i32, %c0_i32_0, %c0_i32_1 : i32, i32, i32, i32
  }
  func.func @transform_1(%arg0: i32) -> (i32, i32, i32) {
    %c0_i32 = arith.constant 0 : i32
    %c0_i32_0 = arith.constant 0 : i32
    %c0_i32_1 = arith.constant 0 : i32
    %c0_i32_2 = arith.constant 0 : i32
    return %c0_i32, %c0_i32_0, %c0_i32_1 : i32, i32, i32
  }
  func.func @transform_2(%arg0: i32) -> (i32, i32) {
    %c0_i32 = arith.constant 0 : i32
    %c0_i32_0 = arith.constant 0 : i32
    %c0_i32_1 = arith.constant 0 : i32
    return %c0_i32, %c0_i32_0 : i32, i32
  }
  func.func @transform_3(%arg0: i32) -> (i32, i32) {
    %c0_i32 = arith.constant 0 : i32
    %c0_i32_0 = arith.constant 0 : i32
    %c0_i32_1 = arith.constant 0 : i32
    return %c0_i32, %c0_i32_0 : i32, i32
  }
  func.func @transform_4(%arg0: i32) -> (i32, i32, i32) {
    %c0_i32 = arith.constant 0 : i32
    %c0_i32_0 = arith.constant 0 : i32
    %c0_i32_1 = arith.constant 0 : i32
    return %arg0, %c0_i32, %c0_i32_0 : i32, i32, i32
  }
}

module attributes {stable_mosaic.version = 11 : i64} {
  func.func @_final_block_kernel(%arg0: i32, %arg1: memref<1x5x5x128xf32, #tpu.memory_space<vmem>>, %arg2: memref<4x128x64xbf16, #tpu.memory_space<vmem>>, %arg3: memref<1x64xf32, #tpu.memory_space<vmem>>, %arg4: memref<1x64xf32, #tpu.memory_space<vmem>>, %arg5: memref<4x4x64xf32, #tpu.memory_space<vmem>>, %arg6: memref<1x1xf32, #tpu.memory_space<vmem>>, %arg7: memref<1x1x1xf32, #tpu.memory_space<vmem>>) attributes {dimension_semantics = [#tpu.dimension_semantics<parallel>], iteration_bounds = array<i64: 2>, scalar_prefetch = 0 : i64, scratch_operands = 0 : i64, tpu.core_type = #tpu.core_type<tc>, window_params = [{transform_indices = @transform_0, window_bounds = array<i64: 1, 5, 5, 128>}, {pipeline_mode = #tpu.pipeline_mode<synchronous>, transform_indices = @transform_1, window_bounds = array<i64: 4, 128, 64>}, {pipeline_mode = #tpu.pipeline_mode<synchronous>, transform_indices = @transform_2, window_bounds = array<i64: 1, 64>}, {pipeline_mode = #tpu.pipeline_mode<synchronous>, transform_indices = @transform_3, window_bounds = array<i64: 1, 64>}, {pipeline_mode = #tpu.pipeline_mode<synchronous>, transform_indices = @transform_4, window_bounds = array<i64: 4, 4, 64>}, {pipeline_mode = #tpu.pipeline_mode<synchronous>, transform_indices = @transform_5, window_bounds = array<i64: 1, 1>}, {transform_indices = @transform_6, window_bounds = array<i64: 1, 1, 1>}]} {
    %cst = arith.constant 0.000000e+00 : f32
    %0 = vector.broadcast %cst : f32 to vector<4x64xf32>
    %c0 = arith.constant 0 : index
    %c0_0 = arith.constant 0 : index
    %c0_1 = arith.constant 0 : index
    %c0_2 = arith.constant 0 : index
    %1 = vector.load %arg1[%c0, %c0_0, %c0_1, %c0_2] : memref<1x5x5x128xf32, #tpu.memory_space<vmem>>, vector<1x1x4x128xf32>
    %2 = vector.shape_cast %1 : vector<1x1x4x128xf32> to vector<4x128xf32>
    %3 = arith.truncf %2 : vector<4x128xf32> to vector<4x128xbf16>
    %c0_3 = arith.constant 0 : index
    %c0_4 = arith.constant 0 : index
    %c0_5 = arith.constant 0 : index
    %4 = vector.load %arg2[%c0_3, %c0_4, %c0_5] : memref<4x128x64xbf16, #tpu.memory_space<vmem>>, vector<1x128x64xbf16>
    %5 = vector.shape_cast %4 : vector<1x128x64xbf16> to vector<128x64xbf16>
    %cst_6 = arith.constant dense<0.000000e+00> : vector<4x64xf32>
    %6 = tpu.matmul %3, %5, %cst_6 {dimension_numbers = #tpu.dot_dimension_numbers<[1], [0], [0], [1], [0, 0, 1, 1], [], []>} : vector<4x128xbf16>, vector<128x64xbf16>, vector<4x64xf32> -> vector<4x64xf32>
    %7 = arith.addf %0, %6 : vector<4x64xf32>
    %c0_7 = arith.constant 0 : index
    %c0_8 = arith.constant 0 : index
    %c1 = arith.constant 1 : index
    %c0_9 = arith.constant 0 : index
    %8 = vector.load %arg1[%c0_7, %c0_8, %c1, %c0_9] : memref<1x5x5x128xf32, #tpu.memory_space<vmem>>, vector<1x1x4x128xf32>
    %9 = vector.shape_cast %8 : vector<1x1x4x128xf32> to vector<4x128xf32>
    %10 = arith.truncf %9 : vector<4x128xf32> to vector<4x128xbf16>
    %c1_10 = arith.constant 1 : index
    %c0_11 = arith.constant 0 : index
    %c0_12 = arith.constant 0 : index
    %11 = vector.load %arg2[%c1_10, %c0_11, %c0_12] : memref<4x128x64xbf16, #tpu.memory_space<vmem>>, vector<1x128x64xbf16>
    %12 = vector.shape_cast %11 : vector<1x128x64xbf16> to vector<128x64xbf16>
    %cst_13 = arith.constant dense<0.000000e+00> : vector<4x64xf32>
    %13 = tpu.matmul %10, %12, %cst_13 {dimension_numbers = #tpu.dot_dimension_numbers<[1], [0], [0], [1], [0, 0, 1, 1], [], []>} : vector<4x128xbf16>, vector<128x64xbf16>, vector<4x64xf32> -> vector<4x64xf32>
    %14 = arith.addf %7, %13 : vector<4x64xf32>
    %c0_14 = arith.constant 0 : index
    %c1_15 = arith.constant 1 : index
    %c0_16 = arith.constant 0 : index
    %c0_17 = arith.constant 0 : index
    %15 = vector.load %arg1[%c0_14, %c1_15, %c0_16, %c0_17] : memref<1x5x5x128xf32, #tpu.memory_space<vmem>>, vector<1x1x4x128xf32>
    %16 = vector.shape_cast %15 : vector<1x1x4x128xf32> to vector<4x128xf32>
    %17 = arith.truncf %16 : vector<4x128xf32> to vector<4x128xbf16>
    %c2 = arith.constant 2 : index
    %c0_18 = arith.constant 0 : index
    %c0_19 = arith.constant 0 : index
    %18 = vector.load %arg2[%c2, %c0_18, %c0_19] : memref<4x128x64xbf16, #tpu.memory_space<vmem>>, vector<1x128x64xbf16>
    %19 = vector.shape_cast %18 : vector<1x128x64xbf16> to vector<128x64xbf16>
    %cst_20 = arith.constant dense<0.000000e+00> : vector<4x64xf32>
    %20 = tpu.matmul %17, %19, %cst_20 {dimension_numbers = #tpu.dot_dimension_numbers<[1], [0], [0], [1], [0, 0, 1, 1], [], []>} : vector<4x128xbf16>, vector<128x64xbf16>, vector<4x64xf32> -> vector<4x64xf32>
    %21 = arith.addf %14, %20 : vector<4x64xf32>
    %c0_21 = arith.constant 0 : index
    %c1_22 = arith.constant 1 : index
    %c1_23 = arith.constant 1 : index
    %c0_24 = arith.constant 0 : index
    %22 = vector.load %arg1[%c0_21, %c1_22, %c1_23, %c0_24] : memref<1x5x5x128xf32, #tpu.memory_space<vmem>>, vector<1x1x4x128xf32>
    %23 = vector.shape_cast %22 : vector<1x1x4x128xf32> to vector<4x128xf32>
    %24 = arith.truncf %23 : vector<4x128xf32> to vector<4x128xbf16>
    %c3 = arith.constant 3 : index
    %c0_25 = arith.constant 0 : index
    %c0_26 = arith.constant 0 : index
    %25 = vector.load %arg2[%c3, %c0_25, %c0_26] : memref<4x128x64xbf16, #tpu.memory_space<vmem>>, vector<1x128x64xbf16>
    %26 = vector.shape_cast %25 : vector<1x128x64xbf16> to vector<128x64xbf16>
    %cst_27 = arith.constant dense<0.000000e+00> : vector<4x64xf32>
    %27 = tpu.matmul %24, %26, %cst_27 {dimension_numbers = #tpu.dot_dimension_numbers<[1], [0], [0], [1], [0, 0, 1, 1], [], []>} : vector<4x128xbf16>, vector<128x64xbf16>, vector<4x64xf32> -> vector<4x64xf32>
    %28 = arith.addf %21, %27 : vector<4x64xf32>
    %cst_28 = arith.constant 0.000000e+00 : f32
    %29 = vector.broadcast %cst_28 : f32 to vector<4x64xf32>
    %c0_29 = arith.constant 0 : index
    %c1_30 = arith.constant 1 : index
    %c0_31 = arith.constant 0 : index
    %c0_32 = arith.constant 0 : index
    %30 = vector.load %arg1[%c0_29, %c1_30, %c0_31, %c0_32] : memref<1x5x5x128xf32, #tpu.memory_space<vmem>>, vector<1x1x4x128xf32>
    %31 = vector.shape_cast %30 : vector<1x1x4x128xf32> to vector<4x128xf32>
    %32 = arith.truncf %31 : vector<4x128xf32> to vector<4x128xbf16>
    %c0_33 = arith.constant 0 : index
    %c0_34 = arith.constant 0 : index
    %c0_35 = arith.constant 0 : index
    %33 = vector.load %arg2[%c0_33, %c0_34, %c0_35] : memref<4x128x64xbf16, #tpu.memory_space<vmem>>, vector<1x128x64xbf16>
    %34 = vector.shape_cast %33 : vector<1x128x64xbf16> to vector<128x64xbf16>
    %cst_36 = arith.constant dense<0.000000e+00> : vector<4x64xf32>
    %35 = tpu.matmul %32, %34, %cst_36 {dimension_numbers = #tpu.dot_dimension_numbers<[1], [0], [0], [1], [0, 0, 1, 1], [], []>} : vector<4x128xbf16>, vector<128x64xbf16>, vector<4x64xf32> -> vector<4x64xf32>
    %36 = arith.addf %29, %35 : vector<4x64xf32>
    %c0_37 = arith.constant 0 : index
    %c1_38 = arith.constant 1 : index
    %c1_39 = arith.constant 1 : index
    %c0_40 = arith.constant 0 : index
    %37 = vector.load %arg1[%c0_37, %c1_38, %c1_39, %c0_40] : memref<1x5x5x128xf32, #tpu.memory_space<vmem>>, vector<1x1x4x128xf32>
    %38 = vector.shape_cast %37 : vector<1x1x4x128xf32> to vector<4x128xf32>
    %39 = arith.truncf %38 : vector<4x128xf32> to vector<4x128xbf16>
    %c1_41 = arith.constant 1 : index
    %c0_42 = arith.constant 0 : index
    %c0_43 = arith.constant 0 : index
    %40 = vector.load %arg2[%c1_41, %c0_42, %c0_43] : memref<4x128x64xbf16, #tpu.memory_space<vmem>>, vector<1x128x64xbf16>
    %41 = vector.shape_cast %40 : vector<1x128x64xbf16> to vector<128x64xbf16>
    %cst_44 = arith.constant dense<0.000000e+00> : vector<4x64xf32>
    %42 = tpu.matmul %39, %41, %cst_44 {dimension_numbers = #tpu.dot_dimension_numbers<[1], [0], [0], [1], [0, 0, 1, 1], [], []>} : vector<4x128xbf16>, vector<128x64xbf16>, vector<4x64xf32> -> vector<4x64xf32>
    %43 = arith.addf %36, %42 : vector<4x64xf32>
    %c0_45 = arith.constant 0 : index
    %c2_46 = arith.constant 2 : index
    %c0_47 = arith.constant 0 : index
    %c0_48 = arith.constant 0 : index
    %44 = vector.load %arg1[%c0_45, %c2_46, %c0_47, %c0_48] : memref<1x5x5x128xf32, #tpu.memory_space<vmem>>, vector<1x1x4x128xf32>
    %45 = vector.shape_cast %44 : vector<1x1x4x128xf32> to vector<4x128xf32>
    %46 = arith.truncf %45 : vector<4x128xf32> to vector<4x128xbf16>
    %c2_49 = arith.constant 2 : index
    %c0_50 = arith.constant 0 : index
    %c0_51 = arith.constant 0 : index
    %47 = vector.load %arg2[%c2_49, %c0_50, %c0_51] : memref<4x128x64xbf16, #tpu.memory_space<vmem>>, vector<1x128x64xbf16>
    %48 = vector.shape_cast %47 : vector<1x128x64xbf16> to vector<128x64xbf16>
    %cst_52 = arith.constant dense<0.000000e+00> : vector<4x64xf32>
    %49 = tpu.matmul %46, %48, %cst_52 {dimension_numbers = #tpu.dot_dimension_numbers<[1], [0], [0], [1], [0, 0, 1, 1], [], []>} : vector<4x128xbf16>, vector<128x64xbf16>, vector<4x64xf32> -> vector<4x64xf32>
    %50 = arith.addf %43, %49 : vector<4x64xf32>
    %c0_53 = arith.constant 0 : index
    %c2_54 = arith.constant 2 : index
    %c1_55 = arith.constant 1 : index
    %c0_56 = arith.constant 0 : index
    %51 = vector.load %arg1[%c0_53, %c2_54, %c1_55, %c0_56] : memref<1x5x5x128xf32, #tpu.memory_space<vmem>>, vector<1x1x4x128xf32>
    %52 = vector.shape_cast %51 : vector<1x1x4x128xf32> to vector<4x128xf32>
    %53 = arith.truncf %52 : vector<4x128xf32> to vector<4x128xbf16>
    %c3_57 = arith.constant 3 : index
    %c0_58 = arith.constant 0 : index
    %c0_59 = arith.constant 0 : index
    %54 = vector.load %arg2[%c3_57, %c0_58, %c0_59] : memref<4x128x64xbf16, #tpu.memory_space<vmem>>, vector<1x128x64xbf16>
    %55 = vector.shape_cast %54 : vector<1x128x64xbf16> to vector<128x64xbf16>
    %cst_60 = arith.constant dense<0.000000e+00> : vector<4x64xf32>
    %56 = tpu.matmul %53, %55, %cst_60 {dimension_numbers = #tpu.dot_dimension_numbers<[1], [0], [0], [1], [0, 0, 1, 1], [], []>} : vector<4x128xbf16>, vector<128x64xbf16>, vector<4x64xf32> -> vector<4x64xf32>
    %57 = arith.addf %50, %56 : vector<4x64xf32>
    %cst_61 = arith.constant 0.000000e+00 : f32
    %58 = vector.broadcast %cst_61 : f32 to vector<4x64xf32>
    %c0_62 = arith.constant 0 : index
    %c2_63 = arith.constant 2 : index
    %c0_64 = arith.constant 0 : index
    %c0_65 = arith.constant 0 : index
    %59 = vector.load %arg1[%c0_62, %c2_63, %c0_64, %c0_65] : memref<1x5x5x128xf32, #tpu.memory_space<vmem>>, vector<1x1x4x128xf32>
    %60 = vector.shape_cast %59 : vector<1x1x4x128xf32> to vector<4x128xf32>
    %61 = arith.truncf %60 : vector<4x128xf32> to vector<4x128xbf16>
    %c0_66 = arith.constant 0 : index
    %c0_67 = arith.constant 0 : index
    %c0_68 = arith.constant 0 : index
    %62 = vector.load %arg2[%c0_66, %c0_67, %c0_68] : memref<4x128x64xbf16, #tpu.memory_space<vmem>>, vector<1x128x64xbf16>
    %63 = vector.shape_cast %62 : vector<1x128x64xbf16> to vector<128x64xbf16>
    %cst_69 = arith.constant dense<0.000000e+00> : vector<4x64xf32>
    %64 = tpu.matmul %61, %63, %cst_69 {dimension_numbers = #tpu.dot_dimension_numbers<[1], [0], [0], [1], [0, 0, 1, 1], [], []>} : vector<4x128xbf16>, vector<128x64xbf16>, vector<4x64xf32> -> vector<4x64xf32>
    %65 = arith.addf %58, %64 : vector<4x64xf32>
    %c0_70 = arith.constant 0 : index
    %c2_71 = arith.constant 2 : index
    %c1_72 = arith.constant 1 : index
    %c0_73 = arith.constant 0 : index
    %66 = vector.load %arg1[%c0_70, %c2_71, %c1_72, %c0_73] : memref<1x5x5x128xf32, #tpu.memory_space<vmem>>, vector<1x1x4x128xf32>
    %67 = vector.shape_cast %66 : vector<1x1x4x128xf32> to vector<4x128xf32>
    %68 = arith.truncf %67 : vector<4x128xf32> to vector<4x128xbf16>
    %c1_74 = arith.constant 1 : index
    %c0_75 = arith.constant 0 : index
    %c0_76 = arith.constant 0 : index
    %69 = vector.load %arg2[%c1_74, %c0_75, %c0_76] : memref<4x128x64xbf16, #tpu.memory_space<vmem>>, vector<1x128x64xbf16>
    %70 = vector.shape_cast %69 : vector<1x128x64xbf16> to vector<128x64xbf16>
    %cst_77 = arith.constant dense<0.000000e+00> : vector<4x64xf32>
    %71 = tpu.matmul %68, %70, %cst_77 {dimension_numbers = #tpu.dot_dimension_numbers<[1], [0], [0], [1], [0, 0, 1, 1], [], []>} : vector<4x128xbf16>, vector<128x64xbf16>, vector<4x64xf32> -> vector<4x64xf32>
    %72 = arith.addf %65, %71 : vector<4x64xf32>
    %c0_78 = arith.constant 0 : index
    %c3_79 = arith.constant 3 : index
    %c0_80 = arith.constant 0 : index
    %c0_81 = arith.constant 0 : index
    %73 = vector.load %arg1[%c0_78, %c3_79, %c0_80, %c0_81] : memref<1x5x5x128xf32, #tpu.memory_space<vmem>>, vector<1x1x4x128xf32>
    %74 = vector.shape_cast %73 : vector<1x1x4x128xf32> to vector<4x128xf32>
    %75 = arith.truncf %74 : vector<4x128xf32> to vector<4x128xbf16>
    %c2_82 = arith.constant 2 : index
    %c0_83 = arith.constant 0 : index
    %c0_84 = arith.constant 0 : index
    %76 = vector.load %arg2[%c2_82, %c0_83, %c0_84] : memref<4x128x64xbf16, #tpu.memory_space<vmem>>, vector<1x128x64xbf16>
    %77 = vector.shape_cast %76 : vector<1x128x64xbf16> to vector<128x64xbf16>
    %cst_85 = arith.constant dense<0.000000e+00> : vector<4x64xf32>
    %78 = tpu.matmul %75, %77, %cst_85 {dimension_numbers = #tpu.dot_dimension_numbers<[1], [0], [0], [1], [0, 0, 1, 1], [], []>} : vector<4x128xbf16>, vector<128x64xbf16>, vector<4x64xf32> -> vector<4x64xf32>
    %79 = arith.addf %72, %78 : vector<4x64xf32>
    %c0_86 = arith.constant 0 : index
    %c3_87 = arith.constant 3 : index
    %c1_88 = arith.constant 1 : index
    %c0_89 = arith.constant 0 : index
    %80 = vector.load %arg1[%c0_86, %c3_87, %c1_88, %c0_89] : memref<1x5x5x128xf32, #tpu.memory_space<vmem>>, vector<1x1x4x128xf32>
    %81 = vector.shape_cast %80 : vector<1x1x4x128xf32> to vector<4x128xf32>
    %82 = arith.truncf %81 : vector<4x128xf32> to vector<4x128xbf16>
    %c3_90 = arith.constant 3 : index
    %c0_91 = arith.constant 0 : index
    %c0_92 = arith.constant 0 : index
    %83 = vector.load %arg2[%c3_90, %c0_91, %c0_92] : memref<4x128x64xbf16, #tpu.memory_space<vmem>>, vector<1x128x64xbf16>
    %84 = vector.shape_cast %83 : vector<1x128x64xbf16> to vector<128x64xbf16>
    %cst_93 = arith.constant dense<0.000000e+00> : vector<4x64xf32>
    %85 = tpu.matmul %82, %84, %cst_93 {dimension_numbers = #tpu.dot_dimension_numbers<[1], [0], [0], [1], [0, 0, 1, 1], [], []>} : vector<4x128xbf16>, vector<128x64xbf16>, vector<4x64xf32> -> vector<4x64xf32>
    %86 = arith.addf %79, %85 : vector<4x64xf32>
    %cst_94 = arith.constant 0.000000e+00 : f32
    %87 = vector.broadcast %cst_94 : f32 to vector<4x64xf32>
    %c0_95 = arith.constant 0 : index
    %c3_96 = arith.constant 3 : index
    %c0_97 = arith.constant 0 : index
    %c0_98 = arith.constant 0 : index
    %88 = vector.load %arg1[%c0_95, %c3_96, %c0_97, %c0_98] : memref<1x5x5x128xf32, #tpu.memory_space<vmem>>, vector<1x1x4x128xf32>
    %89 = vector.shape_cast %88 : vector<1x1x4x128xf32> to vector<4x128xf32>
    %90 = arith.truncf %89 : vector<4x128xf32> to vector<4x128xbf16>
    %c0_99 = arith.constant 0 : index
    %c0_100 = arith.constant 0 : index
    %c0_101 = arith.constant 0 : index
    %91 = vector.load %arg2[%c0_99, %c0_100, %c0_101] : memref<4x128x64xbf16, #tpu.memory_space<vmem>>, vector<1x128x64xbf16>
    %92 = vector.shape_cast %91 : vector<1x128x64xbf16> to vector<128x64xbf16>
    %cst_102 = arith.constant dense<0.000000e+00> : vector<4x64xf32>
    %93 = tpu.matmul %90, %92, %cst_102 {dimension_numbers = #tpu.dot_dimension_numbers<[1], [0], [0], [1], [0, 0, 1, 1], [], []>} : vector<4x128xbf16>, vector<128x64xbf16>, vector<4x64xf32> -> vector<4x64xf32>
    %94 = arith.addf %87, %93 : vector<4x64xf32>
    %c0_103 = arith.constant 0 : index
    %c3_104 = arith.constant 3 : index
    %c1_105 = arith.constant 1 : index
    %c0_106 = arith.constant 0 : index
    %95 = vector.load %arg1[%c0_103, %c3_104, %c1_105, %c0_106] : memref<1x5x5x128xf32, #tpu.memory_space<vmem>>, vector<1x1x4x128xf32>
    %96 = vector.shape_cast %95 : vector<1x1x4x128xf32> to vector<4x128xf32>
    %97 = arith.truncf %96 : vector<4x128xf32> to vector<4x128xbf16>
    %c1_107 = arith.constant 1 : index
    %c0_108 = arith.constant 0 : index
    %c0_109 = arith.constant 0 : index
    %98 = vector.load %arg2[%c1_107, %c0_108, %c0_109] : memref<4x128x64xbf16, #tpu.memory_space<vmem>>, vector<1x128x64xbf16>
    %99 = vector.shape_cast %98 : vector<1x128x64xbf16> to vector<128x64xbf16>
    %cst_110 = arith.constant dense<0.000000e+00> : vector<4x64xf32>
    %100 = tpu.matmul %97, %99, %cst_110 {dimension_numbers = #tpu.dot_dimension_numbers<[1], [0], [0], [1], [0, 0, 1, 1], [], []>} : vector<4x128xbf16>, vector<128x64xbf16>, vector<4x64xf32> -> vector<4x64xf32>
    %101 = arith.addf %94, %100 : vector<4x64xf32>
    %c0_111 = arith.constant 0 : index
    %c4 = arith.constant 4 : index
    %c0_112 = arith.constant 0 : index
    %c0_113 = arith.constant 0 : index
    %102 = vector.load %arg1[%c0_111, %c4, %c0_112, %c0_113] : memref<1x5x5x128xf32, #tpu.memory_space<vmem>>, vector<1x1x4x128xf32>
    %103 = vector.shape_cast %102 : vector<1x1x4x128xf32> to vector<4x128xf32>
    %104 = arith.truncf %103 : vector<4x128xf32> to vector<4x128xbf16>
    %c2_114 = arith.constant 2 : index
    %c0_115 = arith.constant 0 : index
    %c0_116 = arith.constant 0 : index
    %105 = vector.load %arg2[%c2_114, %c0_115, %c0_116] : memref<4x128x64xbf16, #tpu.memory_space<vmem>>, vector<1x128x64xbf16>
    %106 = vector.shape_cast %105 : vector<1x128x64xbf16> to vector<128x64xbf16>
    %cst_117 = arith.constant dense<0.000000e+00> : vector<4x64xf32>
    %107 = tpu.matmul %104, %106, %cst_117 {dimension_numbers = #tpu.dot_dimension_numbers<[1], [0], [0], [1], [0, 0, 1, 1], [], []>} : vector<4x128xbf16>, vector<128x64xbf16>, vector<4x64xf32> -> vector<4x64xf32>
    %108 = arith.addf %101, %107 : vector<4x64xf32>
    %c0_118 = arith.constant 0 : index
    %c4_119 = arith.constant 4 : index
    %c1_120 = arith.constant 1 : index
    %c0_121 = arith.constant 0 : index
    %109 = vector.load %arg1[%c0_118, %c4_119, %c1_120, %c0_121] : memref<1x5x5x128xf32, #tpu.memory_space<vmem>>, vector<1x1x4x128xf32>
    %110 = vector.shape_cast %109 : vector<1x1x4x128xf32> to vector<4x128xf32>
    %111 = arith.truncf %110 : vector<4x128xf32> to vector<4x128xbf16>
    %c3_122 = arith.constant 3 : index
    %c0_123 = arith.constant 0 : index
    %c0_124 = arith.constant 0 : index
    %112 = vector.load %arg2[%c3_122, %c0_123, %c0_124] : memref<4x128x64xbf16, #tpu.memory_space<vmem>>, vector<1x128x64xbf16>
    %113 = vector.shape_cast %112 : vector<1x128x64xbf16> to vector<128x64xbf16>
    %cst_125 = arith.constant dense<0.000000e+00> : vector<4x64xf32>
    %114 = tpu.matmul %111, %113, %cst_125 {dimension_numbers = #tpu.dot_dimension_numbers<[1], [0], [0], [1], [0, 0, 1, 1], [], []>} : vector<4x128xbf16>, vector<128x64xbf16>, vector<4x64xf32> -> vector<4x64xf32>
    %115 = arith.addf %108, %114 : vector<4x64xf32>
    %cst_126 = arith.constant dense<0.000000e+00> : vector<64xf32>
    %116 = vector.multi_reduction <add>, %28, %cst_126 [0] : vector<4x64xf32> to vector<64xf32>
    %117 = vector.shape_cast %116 : vector<64xf32> to vector<1x64xf32>
    %118 = arith.mulf %28, %28 : vector<4x64xf32>
    %cst_127 = arith.constant dense<0.000000e+00> : vector<64xf32>
    %119 = vector.multi_reduction <add>, %118, %cst_127 [0] : vector<4x64xf32> to vector<64xf32>
    %120 = vector.shape_cast %119 : vector<64xf32> to vector<1x64xf32>
    %cst_128 = arith.constant dense<0.000000e+00> : vector<64xf32>
    %121 = vector.multi_reduction <add>, %57, %cst_128 [0] : vector<4x64xf32> to vector<64xf32>
    %122 = vector.shape_cast %121 : vector<64xf32> to vector<1x64xf32>
    %123 = arith.addf %117, %122 : vector<1x64xf32>
    %124 = arith.mulf %57, %57 : vector<4x64xf32>
    %cst_129 = arith.constant dense<0.000000e+00> : vector<64xf32>
    %125 = vector.multi_reduction <add>, %124, %cst_129 [0] : vector<4x64xf32> to vector<64xf32>
    %126 = vector.shape_cast %125 : vector<64xf32> to vector<1x64xf32>
    %127 = arith.addf %120, %126 : vector<1x64xf32>
    %cst_130 = arith.constant dense<0.000000e+00> : vector<64xf32>
    %128 = vector.multi_reduction <add>, %86, %cst_130 [0] : vector<4x64xf32> to vector<64xf32>
    %129 = vector.shape_cast %128 : vector<64xf32> to vector<1x64xf32>
    %130 = arith.addf %123, %129 : vector<1x64xf32>
    %131 = arith.mulf %86, %86 : vector<4x64xf32>
    %cst_131 = arith.constant dense<0.000000e+00> : vector<64xf32>
    %132 = vector.multi_reduction <add>, %131, %cst_131 [0] : vector<4x64xf32> to vector<64xf32>
    %133 = vector.shape_cast %132 : vector<64xf32> to vector<1x64xf32>
    %134 = arith.addf %127, %133 : vector<1x64xf32>
    %cst_132 = arith.constant dense<0.000000e+00> : vector<64xf32>
    %135 = vector.multi_reduction <add>, %115, %cst_132 [0] : vector<4x64xf32> to vector<64xf32>
    %136 = vector.shape_cast %135 : vector<64xf32> to vector<1x64xf32>
    %137 = arith.addf %130, %136 : vector<1x64xf32>
    %138 = arith.mulf %115, %115 : vector<4x64xf32>
    %cst_133 = arith.constant dense<0.000000e+00> : vector<64xf32>
    %139 = vector.multi_reduction <add>, %138, %cst_133 [0] : vector<4x64xf32> to vector<64xf32>
    %140 = vector.shape_cast %139 : vector<64xf32> to vector<1x64xf32>
    %141 = arith.addf %134, %140 : vector<1x64xf32>
    %cst_134 = arith.constant 1.600000e+01 : f32
    %142 = vector.broadcast %cst_134 : f32 to vector<1x64xf32>
    %143 = arith.divf %137, %142 : vector<1x64xf32>
    %cst_135 = arith.constant 1.600000e+01 : f32
    %144 = vector.broadcast %cst_135 : f32 to vector<1x64xf32>
    %145 = arith.divf %141, %144 : vector<1x64xf32>
    %146 = arith.mulf %143, %143 : vector<1x64xf32>
    %147 = arith.subf %145, %146 : vector<1x64xf32>
    %cst_136 = arith.constant 9.99999974E-6 : f32
    %148 = vector.broadcast %cst_136 : f32 to vector<1x64xf32>
    %149 = arith.addf %147, %148 : vector<1x64xf32>
    %150 = math.rsqrt %149 : vector<1x64xf32>
    %c0_137 = arith.constant 0 : index
    %c0_138 = arith.constant 0 : index
    %151 = vector.load %arg3[%c0_137, %c0_138] : memref<1x64xf32, #tpu.memory_space<vmem>>, vector<1x64xf32>
    %c0_139 = arith.constant 0 : index
    %c0_140 = arith.constant 0 : index
    %152 = vector.load %arg4[%c0_139, %c0_140] : memref<1x64xf32, #tpu.memory_space<vmem>>, vector<1x64xf32>
    %cst_141 = arith.constant 0.000000e+00 : f32
    %153 = vector.broadcast %cst_141 : f32 to vector<1x1xf32>
    %154 = vector.broadcast %143 : vector<1x64xf32> to vector<4x64xf32>
    %155 = arith.subf %28, %154 : vector<4x64xf32>
    %156 = vector.broadcast %150 : vector<1x64xf32> to vector<4x64xf32>
    %157 = arith.mulf %155, %156 : vector<4x64xf32>
    %158 = vector.broadcast %151 : vector<1x64xf32> to vector<4x64xf32>
    %159 = arith.mulf %157, %158 : vector<4x64xf32>
    %160 = vector.broadcast %152 : vector<1x64xf32> to vector<4x64xf32>
    %161 = arith.addf %159, %160 : vector<4x64xf32>
    %cst_142 = arith.constant 0.000000e+00 : f32
    %162 = vector.broadcast %cst_142 : f32 to vector<4x64xf32>
    %163 = arith.cmpf ogt, %161, %162 : vector<4x64xf32>
    %cst_143 = arith.constant 2.000000e-01 : f32
    %164 = vector.broadcast %cst_143 : f32 to vector<4x64xf32>
    %165 = arith.mulf %164, %161 : vector<4x64xf32>
    %166 = arith.select %163, %161, %165 : vector<4x64xi1>, vector<4x64xf32>
    %c0_144 = arith.constant 0 : index
    %c0_145 = arith.constant 0 : index
    %c0_146 = arith.constant 0 : index
    %167 = vector.load %arg5[%c0_144, %c0_145, %c0_146] : memref<4x4x64xf32, #tpu.memory_space<vmem>>, vector<1x4x64xf32>
    %168 = vector.shape_cast %167 : vector<1x4x64xf32> to vector<4x64xf32>
    %169 = arith.mulf %166, %168 : vector<4x64xf32>
    %170 = vector.shape_cast %169 : vector<4x64xf32> to vector<1x4x64xf32>
    %cst_147 = arith.constant dense<0.000000e+00> : vector<1xf32>
    %171 = vector.multi_reduction <add>, %170, %cst_147 [1, 2] : vector<1x4x64xf32> to vector<1xf32>
    %172 = vector.shape_cast %171 : vector<1xf32> to vector<1x1x1xf32>
    %173 = vector.extract %172[0, 0, 0] : f32 from vector<1x1x1xf32>
    %174 = vector.broadcast %173 : f32 to vector<1x1xf32>
    %175 = arith.addf %153, %174 : vector<1x1xf32>
    %176 = vector.broadcast %143 : vector<1x64xf32> to vector<4x64xf32>
    %177 = arith.subf %57, %176 : vector<4x64xf32>
    %178 = vector.broadcast %150 : vector<1x64xf32> to vector<4x64xf32>
    %179 = arith.mulf %177, %178 : vector<4x64xf32>
    %180 = vector.broadcast %151 : vector<1x64xf32> to vector<4x64xf32>
    %181 = arith.mulf %179, %180 : vector<4x64xf32>
    %182 = vector.broadcast %152 : vector<1x64xf32> to vector<4x64xf32>
    %183 = arith.addf %181, %182 : vector<4x64xf32>
    %cst_148 = arith.constant 0.000000e+00 : f32
    %184 = vector.broadcast %cst_148 : f32 to vector<4x64xf32>
    %185 = arith.cmpf ogt, %183, %184 : vector<4x64xf32>
    %cst_149 = arith.constant 2.000000e-01 : f32
    %186 = vector.broadcast %cst_149 : f32 to vector<4x64xf32>
    %187 = arith.mulf %186, %183 : vector<4x64xf32>
    %188 = arith.select %185, %183, %187 : vector<4x64xi1>, vector<4x64xf32>
    %c1_150 = arith.constant 1 : index
    %c0_151 = arith.constant 0 : index
    %c0_152 = arith.constant 0 : index
    %189 = vector.load %arg5[%c1_150, %c0_151, %c0_152] : memref<4x4x64xf32, #tpu.memory_space<vmem>>, vector<1x4x64xf32>
    %190 = vector.shape_cast %189 : vector<1x4x64xf32> to vector<4x64xf32>
    %191 = arith.mulf %188, %190 : vector<4x64xf32>
    %192 = vector.shape_cast %191 : vector<4x64xf32> to vector<1x4x64xf32>
    %cst_153 = arith.constant dense<0.000000e+00> : vector<1xf32>
    %193 = vector.multi_reduction <add>, %192, %cst_153 [1, 2] : vector<1x4x64xf32> to vector<1xf32>
    %194 = vector.shape_cast %193 : vector<1xf32> to vector<1x1x1xf32>
    %195 = vector.extract %194[0, 0, 0] : f32 from vector<1x1x1xf32>
    %196 = vector.broadcast %195 : f32 to vector<1x1xf32>
    %197 = arith.addf %175, %196 : vector<1x1xf32>
    %198 = vector.broadcast %143 : vector<1x64xf32> to vector<4x64xf32>
    %199 = arith.subf %86, %198 : vector<4x64xf32>
    %200 = vector.broadcast %150 : vector<1x64xf32> to vector<4x64xf32>
    %201 = arith.mulf %199, %200 : vector<4x64xf32>
    %202 = vector.broadcast %151 : vector<1x64xf32> to vector<4x64xf32>
    %203 = arith.mulf %201, %202 : vector<4x64xf32>
    %204 = vector.broadcast %152 : vector<1x64xf32> to vector<4x64xf32>
    %205 = arith.addf %203, %204 : vector<4x64xf32>
    %cst_154 = arith.constant 0.000000e+00 : f32
    %206 = vector.broadcast %cst_154 : f32 to vector<4x64xf32>
    %207 = arith.cmpf ogt, %205, %206 : vector<4x64xf32>
    %cst_155 = arith.constant 2.000000e-01 : f32
    %208 = vector.broadcast %cst_155 : f32 to vector<4x64xf32>
    %209 = arith.mulf %208, %205 : vector<4x64xf32>
    %210 = arith.select %207, %205, %209 : vector<4x64xi1>, vector<4x64xf32>
    %c2_156 = arith.constant 2 : index
    %c0_157 = arith.constant 0 : index
    %c0_158 = arith.constant 0 : index
    %211 = vector.load %arg5[%c2_156, %c0_157, %c0_158] : memref<4x4x64xf32, #tpu.memory_space<vmem>>, vector<1x4x64xf32>
    %212 = vector.shape_cast %211 : vector<1x4x64xf32> to vector<4x64xf32>
    %213 = arith.mulf %210, %212 : vector<4x64xf32>
    %214 = vector.shape_cast %213 : vector<4x64xf32> to vector<1x4x64xf32>
    %cst_159 = arith.constant dense<0.000000e+00> : vector<1xf32>
    %215 = vector.multi_reduction <add>, %214, %cst_159 [1, 2] : vector<1x4x64xf32> to vector<1xf32>
    %216 = vector.shape_cast %215 : vector<1xf32> to vector<1x1x1xf32>
    %217 = vector.extract %216[0, 0, 0] : f32 from vector<1x1x1xf32>
    %218 = vector.broadcast %217 : f32 to vector<1x1xf32>
    %219 = arith.addf %197, %218 : vector<1x1xf32>
    %220 = vector.broadcast %143 : vector<1x64xf32> to vector<4x64xf32>
    %221 = arith.subf %115, %220 : vector<4x64xf32>
    %222 = vector.broadcast %150 : vector<1x64xf32> to vector<4x64xf32>
    %223 = arith.mulf %221, %222 : vector<4x64xf32>
    %224 = vector.broadcast %151 : vector<1x64xf32> to vector<4x64xf32>
    %225 = arith.mulf %223, %224 : vector<4x64xf32>
    %226 = vector.broadcast %152 : vector<1x64xf32> to vector<4x64xf32>
    %227 = arith.addf %225, %226 : vector<4x64xf32>
    %cst_160 = arith.constant 0.000000e+00 : f32
    %228 = vector.broadcast %cst_160 : f32 to vector<4x64xf32>
    %229 = arith.cmpf ogt, %227, %228 : vector<4x64xf32>
    %cst_161 = arith.constant 2.000000e-01 : f32
    %230 = vector.broadcast %cst_161 : f32 to vector<4x64xf32>
    %231 = arith.mulf %230, %227 : vector<4x64xf32>
    %232 = arith.select %229, %227, %231 : vector<4x64xi1>, vector<4x64xf32>
    %c3_162 = arith.constant 3 : index
    %c0_163 = arith.constant 0 : index
    %c0_164 = arith.constant 0 : index
    %233 = vector.load %arg5[%c3_162, %c0_163, %c0_164] : memref<4x4x64xf32, #tpu.memory_space<vmem>>, vector<1x4x64xf32>
    %234 = vector.shape_cast %233 : vector<1x4x64xf32> to vector<4x64xf32>
    %235 = arith.mulf %232, %234 : vector<4x64xf32>
    %236 = vector.shape_cast %235 : vector<4x64xf32> to vector<1x4x64xf32>
    %cst_165 = arith.constant dense<0.000000e+00> : vector<1xf32>
    %237 = vector.multi_reduction <add>, %236, %cst_165 [1, 2] : vector<1x4x64xf32> to vector<1xf32>
    %238 = vector.shape_cast %237 : vector<1xf32> to vector<1x1x1xf32>
    %239 = vector.extract %238[0, 0, 0] : f32 from vector<1x1x1xf32>
    %240 = vector.broadcast %239 : f32 to vector<1x1xf32>
    %241 = arith.addf %219, %240 : vector<1x1xf32>
    %c0_166 = arith.constant 0 : index
    %c0_167 = arith.constant 0 : index
    %242 = vector.load %arg6[%c0_166, %c0_167] : memref<1x1xf32, #tpu.memory_space<vmem>>, vector<1x1xf32>
    %243 = arith.addf %241, %242 : vector<1x1xf32>
    %c0_168 = arith.constant 0 : index
    %c0_169 = arith.constant 0 : index
    %c0_170 = arith.constant 0 : index
    %244 = vector.load %arg7[%c0_168, %c0_169, %c0_170] : memref<1x1x1xf32, #tpu.memory_space<vmem>>, vector<1x1x1xf32>
    %245 = vector.shape_cast %244 : vector<1x1x1xf32> to vector<1x1xf32>
    %246 = vector.shape_cast %243 : vector<1x1xf32> to vector<1x1x1xf32>
    tpu.vector_store %arg7[%c0_168, %c0_169, %c0_170], %246 {strides = array<i32>} : memref<1x1x1xf32, #tpu.memory_space<vmem>>, vector<1x1x1xf32>,
    return
  }
  func.func @transform_0(%arg0: i32) -> (i32, i32, i32, i32) {
    %c0_i32 = arith.constant 0 : i32
    %c0_i32_0 = arith.constant 0 : i32
    %c0_i32_1 = arith.constant 0 : i32
    %c0_i32_2 = arith.constant 0 : i32
    return %arg0, %c0_i32, %c0_i32_0, %c0_i32_1 : i32, i32, i32, i32
  }
  func.func @transform_1(%arg0: i32) -> (i32, i32, i32) {
    %c0_i32 = arith.constant 0 : i32
    %c0_i32_0 = arith.constant 0 : i32
    %c0_i32_1 = arith.constant 0 : i32
    %c0_i32_2 = arith.constant 0 : i32
    return %c0_i32, %c0_i32_0, %c0_i32_1 : i32, i32, i32
  }
  func.func @transform_2(%arg0: i32) -> (i32, i32) {
    %c0_i32 = arith.constant 0 : i32
    %c0_i32_0 = arith.constant 0 : i32
    %c0_i32_1 = arith.constant 0 : i32
    return %c0_i32, %c0_i32_0 : i32, i32
  }
  func.func @transform_3(%arg0: i32) -> (i32, i32) {
    %c0_i32 = arith.constant 0 : i32
    %c0_i32_0 = arith.constant 0 : i32
    %c0_i32_1 = arith.constant 0 : i32
    return %c0_i32, %c0_i32_0 : i32, i32
  }
  func.func @transform_4(%arg0: i32) -> (i32, i32, i32) {
    %c0_i32 = arith.constant 0 : i32
    %c0_i32_0 = arith.constant 0 : i32
    %c0_i32_1 = arith.constant 0 : i32
    %c0_i32_2 = arith.constant 0 : i32
    return %c0_i32, %c0_i32_0, %c0_i32_1 : i32, i32, i32
  }
  func.func @transform_5(%arg0: i32) -> (i32, i32) {
    %c0_i32 = arith.constant 0 : i32
    %c0_i32_0 = arith.constant 0 : i32
    %c0_i32_1 = arith.constant 0 : i32
    return %c0_i32, %c0_i32_0 : i32, i32
  }
  func.func @transform_6(%arg0: i32) -> (i32, i32, i32) {
    %c0_i32 = arith.constant 0 : i32
    %c0_i32_0 = arith.constant 0 : i32
    %c0_i32_1 = arith.constant 0 : i32
    return %arg0, %c0_i32, %c0_i32_0 : i32, i32, i32
  }
}

</mosaic_0001>

<bundles_post_ra>
// kernel: discriminator_forward.4
= control target key start
LH: loop header
LB: loop body
LE: loop exit
PB: predicated region body
PF: predicated region fallthrough
CT: control target
= control target key end

     0   :  { %s4648_s15 = smov 0   ;;  %s6057_s0 = inlined_call_operand.vmem [shape: f32[2,33,33,12], index: 0, kind: input, shape index: {}]   ;;  %s6058_s1 = inlined_call_operand.vmem [shape: bf16[4,12,8], index: 1, kind: input, shape index: {}]   ;;  %s6059_s2 = inlined_call_operand.vmem [shape: f32[1,8], index: 2, kind: input, shape index: {}]   ;;  %s6060_s3 = inlined_call_operand.vmem [shape: f32[1,8], index: 3, kind: input, shape index: {}]   ;;  %s6061_s4 = inlined_call_operand.vmem [shape: f32[2,1024,8], index: 4, kind: output, shape index: {}]  }
   0x1 LB: > { %s4053_s16 = sadd.s32 4294967295, %s4621_s15   ;;  %p4057_p0 = scmp.ge.s32.totalorder %s4621_s15, 1  ;;  %s4621_s15 = sphi %s4648_s15, %s14_s15  }
   0x2   : > { %p162_p1 = scmp.lt.s32.totalorder %s4621_s15, 3 }
   0x4   : > { %p163_p2 = pnand %p4057_p0, %p162_p1 }
   0x5   : > { %p188_p3 = scmp.lt.s32.totalorder (!%p163_p2), %s4053_s16, 1 }
   0x6   : > { %166 = sbr.rel (%p163_p2) target bundleno = 1180 (0x49c), region = 36 }
   0xb   : > { %v4065_v0 = vld [vmem:[%s6058_s1 + $0x8] sm:$0xf]  ;;  %v4599_v1 = vld [vmem:[%s6058_s1 + $0x8] sm:$0x30]  ;;  %vm786_vm0 = vcmask 1045504   ;;  %s6063_s16 = smov (!%p188_p3, %s4053_s16), 1 }
   0xc   : > { %v4066_v2 = vor.u32 %v4599_v1, %v4065_v0  ;;  %v4133_v3 = vld [vmem:[%s6058_s1] sm:$0xf]  ;;  %v4598_v4 = vld [vmem:[%s6058_s1] sm:$0x30]  ;;  %v4331_v5 = vld [vmem:[%s6058_s1 + $0x10] sm:$0xf] }
   0xd   : > { %v4134_v6 = vor.u32 %v4598_v4, %v4133_v3  ;;  %v4600_v7 = vld [vmem:[%s6058_s1 + $0x10] sm:$0x30]  ;;  %v4529_v8 = vld [vmem:[%s6058_s1 + $0x18] sm:$0xf]  ;;  %v4601_v9 = vld [vmem:[%s6058_s1 + $0x18] sm:$0x30] }
   0xe   : > { %v788_v10 = vsel %vm786_vm0, %v4066_v2, 0  ;;  %v4332_v11 = vor.u32 %v4600_v7, %v4331_v5  ;;  %v4530_v12 = vor.u32 %v4601_v9, %v4529_v8  ;;  %s4602_s6 = smul.u32 1320, %s6063_s16  ;;  %vm593_vm1 = vcmask 97280   ;;  %s4597_s12 = sshll.u32 %s6063_s16, 10 }
   0xf   : > { %797 = vmatpush.bf16.msra.mxu0 %v788_v10  ;;  %v1317_v13 = vsel %vm786_vm0, %v4134_v6, 0  ;;  %s4790_s17 = scalar_lea.vmem %s6061_s4, %s4597_s12  ;;  %vm3869_vm3 = vcmask 64512  }
  0x10   : > { %1326 = vmatpush.bf16.msra.mxu1 %v1317_v13  ;;  %v2042_v14 = vsel %vm786_vm0, %v4332_v11, 0  ;;  %v2894_v15 = vsel %vm786_vm0, %v4530_v12, 0  ;;  %s4690_s9 = scalar_lea.vmem %s6057_s0, %s4602_s6 }
  0x11   : > { %2051 = vmatpush.bf16.msra.mxu2 %v2042_v14  ;;  %2903 = vmatpush.bf16.msra.mxu3 %v2894_v15  ;;  %v393_v16 = vld [vmem:[%s4690_s9 + $0x1] sm:$0xff]  ;;  %v394_v17 = vld [vmem:[%s4690_s9 + $0x9] sm:$0xff]  ;;  %v4398_v26 = vld [vmem:[%s4690_s9 + $0x31] sm:$0xff] }
  0x12   : > { %v199_v18 = vld [vmem:[%s4690_s9] sm:$0xff]  ;;  %v521_v19 = vpack.c.bf16 %v394_v17, %v393_v16  ;;  %v200_v20 = vld [vmem:[%s4690_s9 + $0x8] sm:$0xff]  ;;  %v4200_v22 = vld [vmem:[%s4690_s9 + $0x30] sm:$0xff] }
  0x13   : > { %v4199_v21 = vld [vmem:[%s4690_s9 + $0x28] sm:$0xff]  ;;  %v327_v23 = vpack.c.bf16 %v200_v20, %v199_v18  ;;  %v395_v28 = vld [vmem:[%s4690_s9 + $0x11] sm:$0xff]  ;;  %v396_v29 = vld [vmem:[%s4690_s9 + $0x19] sm:$0xff] }
  0x14   : > { %v1777_v24 = vpack.c.bf16 %v4200_v22, %v4199_v21  ;;  %v4397_v25 = vld [vmem:[%s4690_s9 + $0x29] sm:$0xff]  ;;  %4067 = vmatmul.msk.bf16.vlgmr.msra.gmra.mxu0 %vm593_vm1, %v521_v19  ;;  %v202_v31 = vld [vmem:[%s4690_s9 + $0x18] sm:$0xff]  ;;  %v4202_v33 = vld [vmem:[%s4690_s9 + $0x40] sm:$0xff]  ;;  %v522_v36 = vpack.c.bf16 %v396_v29, %v395_v28 }
  0x15   : > { %v2629_v27 = vpack.c.bf16 %v4398_v26, %v4397_v25  ;;  %4135 = vmatmul.msk.bf16.vlgmr.msra.gmra.mxu1 %vm593_vm1, %v327_v23  ;;  %v201_v30 = vld [vmem:[%s4690_s9 + $0x10] sm:$0xff]  ;;  %v4201_v32 = vld [vmem:[%s4690_s9 + $0x38] sm:$0xff]  ;;  %v4400_v35 = vld [vmem:[%s4690_s9 + $0x41] sm:$0xff] }
  0x16   : > { %4333 = vmatmul.msk.bf16.vlgmr.msra.gmra.mxu2 %vm593_vm1, %v1777_v24  ;;  %v4399_v34 = vld [vmem:[%s4690_s9 + $0x39] sm:$0xff]  ;;  %v328_v37 = vpack.c.bf16 %v202_v31, %v201_v30  ;;  %v1778_v38 = vpack.c.bf16 %v4202_v33, %v4201_v32  ;;  %v4203_v40 = vld [vmem:[%s4690_s9 + $0x50] sm:$0xff]  ;;  %v4206_v47 = vld [vmem:[%s4690_s9 + $0x68] sm:$0xff] }
  0x17   : > { %4531 = vmatmul.msk.bf16.vlgmr.msra.gmra.mxu3 %vm593_vm1, %v2629_v27  ;;  %v2630_v39 = vpack.c.bf16 %v4400_v35, %v4399_v34  ;;  %v4204_v41 = vld [vmem:[%s4690_s9 + $0x58] sm:$0xff]  ;;  %v4205_v46 = vld [vmem:[%s4690_s9 + $0x60] sm:$0xff]  ;;  %v4404_v49 = vld [vmem:[%s4690_s9 + $0x69] sm:$0xff] }
  0x18   : > { %v4401_v42 = vld [vmem:[%s4690_s9 + $0x51] sm:$0xff]  ;;  %v4402_v43 = vld [vmem:[%s4690_s9 + $0x59] sm:$0xff]  ;;  %v1779_v44 = vpack.c.bf16 %v4204_v41, %v4203_v40  ;;  %v4403_v48 = vld [vmem:[%s4690_s9 + $0x61] sm:$0xff]  ;;  %v1780_v50 = vpack.c.bf16 %v4206_v47, %v4205_v46 }
  0x19   : > { %v2631_v45 = vpack.c.bf16 %v4402_v43, %v4401_v42  ;;  %v2632_v51 = vpack.c.bf16 %v4404_v49, %v4403_v48  ;;  %v4207_v52 = vld [vmem:[%s4690_s9 + $0x78] sm:$0xff]  ;;  %v4208_v53 = vld [vmem:[%s4690_s9 + $0x80] sm:$0xff]  ;;  %v4209_v58 = vld [vmem:[%s4690_s9 + $0x88] sm:$0xff] }
  0x1a   : > { %v4405_v54 = vld [vmem:[%s4690_s9 + $0x79] sm:$0xff]  ;;  %v4406_v55 = vld [vmem:[%s4690_s9 + $0x81] sm:$0xff]  ;;  %v1781_v56 = vpack.c.bf16 %v4208_v53, %v4207_v52  ;;  %v4210_v59 = vld [vmem:[%s4690_s9 + $0x90] sm:$0xff] }
  0x1b   : > { %v2633_v57 = vpack.c.bf16 %v4406_v55, %v4405_v54  ;;  %v4407_v60 = vld [vmem:[%s4690_s9 + $0x89] sm:$0xff]  ;;  %v4408_v61 = vld [vmem:[%s4690_s9 + $0x91] sm:$0xff]  ;;  %v1782_v62 = vpack.c.bf16 %v4210_v59, %v4209_v58  ;;  %v4211_v0 = vld [vmem:[%s4690_s9 + $0xa0] sm:$0xff] }
  0x1c   : > { %v2634_v63 = vpack.c.bf16 %v4408_v61, %v4407_v60  ;;  %v4212_v1 = vld [vmem:[%s4690_s9 + $0xa8] sm:$0xff]  ;;  %v4213_v6 = vld [vmem:[%s4690_s9 + $0xb0] sm:$0xff]  ;;  %v4214_v7 = vld [vmem:[%s4690_s9 + $0xb8] sm:$0xff] }
  0x1d   : > { %v4409_v2 = vld [vmem:[%s4690_s9 + $0xa1] sm:$0xff]  ;;  %v4410_v3 = vld [vmem:[%s4690_s9 + $0xa9] sm:$0xff]  ;;  %v1783_v4 = vpack.c.bf16 %v4212_v1, %v4211_v0  ;;  %v4411_v8 = vld [vmem:[%s4690_s9 + $0xb1] sm:$0xff]  ;;  %v1784_v10 = vpack.c.bf16 %v4214_v7, %v4213_v6 }
  0x1e   : > { %v2635_v5 = vpack.c.bf16 %v4410_v3, %v4409_v2  ;;  %v4412_v9 = vld [vmem:[%s4690_s9 + $0xb9] sm:$0xff]  ;;  %v4215_v12 = vld [vmem:[%s4690_s9 + $0xc8] sm:$0xff]  ;;  %v4216_v13 = vld [vmem:[%s4690_s9 + $0xd0] sm:$0xff] }
  0x1f   : > { %v2636_v11 = vpack.c.bf16 %v4412_v9, %v4411_v8  ;;  %v4413_v14 = vld [vmem:[%s4690_s9 + $0xc9] sm:$0xff]  ;;  %v4414_v15 = vld [vmem:[%s4690_s9 + $0xd1] sm:$0xff]  ;;  %v4768_v17 = vpack.c.bf16 %v4216_v13, %v4215_v12  ;;  %v4218_v30 = vld [vmem:[%s4690_s9 + $0xe0] sm:$0xff] }
  0x20   : > { %v4770_v19 = vpack.c.bf16 %v4414_v15, %v4413_v14  ;;  %v4217_v29 = vld [vmem:[%s4690_s9 + $0xd8] sm:$0xff]  ;;  %v4416_v34 = vld [vmem:[%s4690_s9 + $0xe1] sm:$0xff]  ;;  %v4219_v55 = vld [vmem:[%s4690_s9 + $0xf0] sm:$0xff] }
  0x21   : > { %v4415_v33 = vld [vmem:[%s4690_s9 + $0xd9] sm:$0xff]  ;;  %v4794_v40 = vpack.c.bf16 %v4218_v30, %v4217_v29  ;;  %v4417_v59 = vld [vmem:[%s4690_s9 + $0xf1] sm:$0xff] }
  0x22   : > { %v4798_v42 = vpack.c.bf16 %v4416_v34, %v4415_v33  ;;  %v4418_v60 = vld [vmem:[%s4690_s9 + $0xf9] sm:$0xff] }
  0x24   : > { %4068 = vmatmul.msk.bf16.gmra.mxu0 %vm593_vm1, %v522_v36 }
  0x25   : > { %4136 = vmatmul.msk.bf16.gmra.mxu1 %vm593_vm1, %v328_v37 }
  0x26   : > { %4334 = vmatmul.msk.bf16.gmra.mxu2 %vm593_vm1, %v1778_v38 }
  0x27   : > { %4532 = vmatmul.msk.bf16.gmra.mxu3 %vm593_vm1, %v2630_v39 }
  0x34   : > { %4069 = vmatmul.msk.bf16.gmra.mxu0 %vm593_vm1, %v2629_v27 }
  0x35   : > { %4137 = vmatmul.msk.bf16.gmra.mxu1 %vm593_vm1, %v1777_v24  ;;  %v4781_v24 = vld [vmem:[%s6059_s2] ss:$0 sm:$0xff] }
  0x36   : > { %4335 = vmatmul.msk.bf16.gmra.mxu2 %vm593_vm1, %v1779_v44 }
  0x37   : > { %4533 = vmatmul.msk.bf16.gmra.mxu3 %vm593_vm1, %v2631_v45 }
  0x44   : > { %4070 = vmatmul.msk.bf16.gmra.mxu0 %vm593_vm1, %v2630_v39 }
  0x45   : > { %4138 = vmatmul.msk.bf16.gmra.mxu1 %vm593_vm1, %v1778_v38 }
  0x46   : > { %4336 = vmatmul.msk.bf16.gmra.mxu2 %vm593_vm1, %v1780_v50 }
  0x47   : > { %4534 = vmatmul.msk.bf16.gmra.mxu3 %vm593_vm1, %v2632_v51 }
  0x54   : > { %4071 = vmatmul.msk.bf16.gmra.mxu0 %vm593_vm1, %v2631_v45 }
  0x55   : > { %4139 = vmatmul.msk.bf16.gmra.mxu1 %vm593_vm1, %v1779_v44 }
  0x56   : > { %4337 = vmatmul.msk.bf16.gmra.mxu2 %vm593_vm1, %v1781_v56 }
  0x57   : > { %4535 = vmatmul.msk.bf16.gmra.mxu3 %vm593_vm1, %v2633_v57 }
  0x64   : > { %4072 = vmatmul.msk.bf16.gmra.mxu0 %vm593_vm1, %v2632_v51 }
  0x65   : > { %4140 = vmatmul.msk.bf16.gmra.mxu1 %vm593_vm1, %v1780_v50 }
  0x66   : > { %4338 = vmatmul.msk.bf16.gmra.mxu2 %vm593_vm1, %v1782_v62 }
  0x67   : > { %4536 = vmatmul.msk.bf16.gmra.mxu3 %vm593_vm1, %v2634_v63 }
  0x74   : > { %4073 = vmatmul.msk.bf16.gmra.mxu0 %vm593_vm1, %v2633_v57 }
  0x75   : > { %4141 = vmatmul.msk.bf16.gmra.mxu1 %vm593_vm1, %v1781_v56  ;;  %v4220_v56 = vld [vmem:[%s4690_s9 + $0xf8] sm:$0xff] }
  0x76   : > { %4339 = vmatmul.msk.bf16.gmra.mxu2 %vm593_vm1, %v1783_v4  ;;  %v4814_v2 = vpack.c.bf16 %v4220_v56, %v4219_v55 }
  0x77   : > { %4537 = vmatmul.msk.bf16.gmra.mxu3 %vm593_vm1, %v2635_v5 }
  0x84   : > { %4074 = vmatmul.msk.bf16.gmra.mxu0 %vm593_vm1, %v2634_v63 }
  0x85   : > { %4142 = vmatmul.msk.bf16.gmra.mxu1 %vm593_vm1, %v1782_v62 }
  0x86   : > { %4340 = vmatmul.msk.bf16.gmra.mxu2 %vm593_vm1, %v1784_v10 }
  0x87   : > { %4538 = vmatmul.msk.bf16.gmra.mxu3 %vm593_vm1, %v2636_v11 }
  0x91   : > { %v799_v16 = vpop.f32.mrf.mxu0 }
  0x92   : > { %v1328_v18 = vpop.f32.mrf.mxu1 }
  0x93   : > { %v1329_v20 = vadd.f32 %v1328_v18, %v799_v16  ;;  %v4222_v18 = vld [vmem:[%s4690_s9 + $0x108] sm:$0xff] }
  0x94   : > { %4075 = vmatmul.msk.bf16.gmra.mxu0 %vm593_vm1, %v2635_v5 }
  0x95   : > { %4143 = vmatmul.msk.bf16.gmra.mxu1 %vm593_vm1, %v1783_v4  ;;  %v4818_v4 = vpack.c.bf16 %v4418_v60, %v4417_v59 }
  0x96   : > { %4341 = vmatmul.msk.bf16.gmra.mxu2 %vm593_vm1, %v4768_v17 }
  0x97   : > { %4539 = vmatmul.msk.bf16.gmra.mxu3 %vm593_vm1, %v4770_v19 }
  0x99   : > { %v2053_v21 = vpop.f32.mrf.mxu2  ;;  %v801_v25 = vpop.f32.mrf.mxu0 }
  0x9a   : > { %v2373_v22 = vadd.f32 %v2053_v21, %v1329_v20  ;;  %v2905_v23 = vpop.f32.mrf.mxu3  ;;  %v1330_v26 = vpop.f32.mrf.mxu1  ;;  %v4419_v21 = vld [vmem:[%s4690_s9 + $0x101] sm:$0xff] }
  0x9b   : > { %v1331_v32 = vadd.f32 %v1330_v26, %v801_v25 }
  0x9c   : > { %v3225_v27 = vadd.f32 %v2905_v23, %v2373_v22  ;;  %v4420_v22 = vld [vmem:[%s4690_s9 + $0x109] sm:$0xff] }
  0x9e   : > { %v3357_v28 = vadd.f32 %v4781_v24, %v3225_v27 }
  0xa0   : > { %vm3485_vm2 = vcmp.gt.f32.partialorder %v3357_v28, 0.0  ;;  %v3613_v31 = vmul.f32 0.2, %v3357_v28 }
  0xa1   : > { %v2055_v35 = vpop.f32.mrf.mxu2  ;;  %v804_v39 = vpop.f32.mrf.mxu0 }
  0xa2   : > { %v3741_v36 = vsel %vm3485_vm2, %v3357_v28, %v3613_v31  ;;  %v2374_v37 = vadd.f32 %v2055_v35, %v1331_v32  ;;  %v2907_v38 = vpop.f32.mrf.mxu3  ;;  %v1333_v41 = vpop.f32.mrf.mxu1  ;;  %v4840_v31 = vpack.c.bf16 %v4420_v22, %v4419_v21 }
  0xa3   : > { %3870 = vst.msk [vmem:[%s4790_s17] sm:$0xff] %vm3869_vm3, %v3741_v36  ;;  %v1334_v45 = vadd.f32 %v1333_v41, %v804_v39 }
  0xa4   : > { %v3226_v43 = vadd.f32 %v2907_v38, %v2374_v37  ;;  %4076 = vmatmul.msk.bf16.gmra.mxu0 %vm593_vm1, %v2636_v11 }
  0xa5   : > { %4144 = vmatmul.msk.bf16.gmra.mxu1 %vm593_vm1, %v1784_v10 }
  0xa6   : > { %v3358_v44 = vadd.f32 %v4781_v24, %v3226_v43  ;;  %4342 = vmatmul.msk.bf16.gmra.mxu2 %vm593_vm1, %v4794_v40 }
  0xa7   : > { %4540 = vmatmul.msk.bf16.gmra.mxu3 %vm593_vm1, %v4798_v42 }
  0xa8   : > { %vm3486_vm4 = vcmp.gt.f32.partialorder %v3358_v44, 0.0  ;;  %v3614_v46 = vmul.f32 0.2, %v3358_v44 }
  0xa9   : > { %v2058_v47 = vpop.f32.mrf.mxu2  ;;  %v806_v51 = vpop.f32.mrf.mxu0 }
  0xaa   : > { %v3742_v48 = vsel %vm3486_vm4, %v3358_v44, %v3614_v46  ;;  %v2375_v49 = vadd.f32 %v2058_v47, %v1334_v45  ;;  %v2910_v50 = vpop.f32.mrf.mxu3  ;;  %v1335_v52 = vpop.f32.mrf.mxu1  ;;  %v4223_v44 = vld [vmem:[%s4690_s9 + $0x118] sm:$0xff]  ;;  %v4224_v45 = vld [vmem:[%s4690_s9 + $0x120] sm:$0xff] }
  0xab   : > { %3871 = vst.msk [vmem:[%s4790_s17 + $0x8] sm:$0xff] %vm3869_vm3, %v3742_v48  ;;  %v1336_v58 = vadd.f32 %v1335_v52, %v806_v51  ;;  %v4421_v48 = vld [vmem:[%s4690_s9 + $0x119] sm:$0xff]  ;;  %v4858_v55 = vpack.c.bf16 %v4224_v45, %v4223_v44 }
  0xac   : > { %v3227_v53 = vadd.f32 %v2910_v50, %v2375_v49  ;;  %v4422_v49 = vld [vmem:[%s4690_s9 + $0x121] sm:$0xff] }
  0xae   : > { %v3359_v54 = vadd.f32 %v4781_v24, %v3227_v53 }
  0xb0   : > { %vm3487_vm5 = vcmp.gt.f32.partialorder %v3359_v54, 0.0  ;;  %v3615_v57 = vmul.f32 0.2, %v3359_v54 }
  0xb1   : > { %v2060_v61 = vpop.f32.mrf.mxu2  ;;  %v809_v1 = vpop.f32.mrf.mxu0 }
  0xb2   : > { %v3743_v62 = vsel %vm3487_vm5, %v3359_v54, %v3615_v57  ;;  %v2376_v63 = vadd.f32 %v2060_v61, %v1336_v58  ;;  %v2912_v0 = vpop.f32.mrf.mxu3  ;;  %v1338_v3 = vpop.f32.mrf.mxu1  ;;  %v4862_v57 = vpack.c.bf16 %v4422_v49, %v4421_v48 }
  0xb3   : > { %3872 = vst.msk [vmem:[%s4790_s17 + $0x10] sm:$0xff] %vm3869_vm3, %v3743_v62  ;;  %v1339_v7 = vadd.f32 %v1338_v3, %v809_v1 }
  0xb4   : > { %v3228_v5 = vadd.f32 %v2912_v0, %v2376_v63  ;;  %4077 = vmatmul.msk.bf16.gmra.mxu0 %vm593_vm1, %v4770_v19 }
  0xb5   : > { %4145 = vmatmul.msk.bf16.gmra.mxu1 %vm593_vm1, %v4768_v17  ;;  %v4221_v17 = vld [vmem:[%s4690_s9 + $0x100] sm:$0xff] }
  0xb6   : > { %v3360_v6 = vadd.f32 %v4781_v24, %v3228_v5  ;;  %4343 = vmatmul.msk.bf16.gmra.mxu2 %vm593_vm1, %v4814_v2  ;;  %v4836_v29 = vpack.c.bf16 %v4222_v18, %v4221_v17 }
  0xb7   : > { %4541 = vmatmul.msk.bf16.gmra.mxu3 %vm593_vm1, %v4818_v4 }
  0xb8   : > { %vm3488_vm6 = vcmp.gt.f32.partialorder %v3360_v6, 0.0  ;;  %v3616_v8 = vmul.f32 0.2, %v3360_v6 }
  0xb9   : > { %v2063_v9 = vpop.f32.mrf.mxu2  ;;  %v811_v13 = vpop.f32.mrf.mxu0 }
  0xba   : > { %v3744_v10 = vsel %vm3488_vm6, %v3360_v6, %v3616_v8  ;;  %v2377_v11 = vadd.f32 %v2063_v9, %v1339_v7  ;;  %v2915_v12 = vpop.f32.mrf.mxu3  ;;  %v1340_v14 = vpop.f32.mrf.mxu1  ;;  %v4225_v6 = vld [vmem:[%s4690_s9 + $0x128] sm:$0xff]  ;;  %v4226_v7 = vld [vmem:[%s4690_s9 + $0x130] sm:$0xff] }
  0xbb   : > { %3873 = vst.msk [vmem:[%s4790_s17 + $0x18] sm:$0xff] %vm3869_vm3, %v3744_v10  ;;  %v1341_v20 = vadd.f32 %v1340_v14, %v811_v13  ;;  %v4423_v10 = vld [vmem:[%s4690_s9 + $0x129] sm:$0xff]  ;;  %v4880_v17 = vpack.c.bf16 %v4226_v7, %v4225_v6 }
  0xbc   : > { %v3229_v15 = vadd.f32 %v2915_v12, %v2377_v11  ;;  %v4424_v11 = vld [vmem:[%s4690_s9 + $0x131] sm:$0xff] }
  0xbe   : > { %v3361_v16 = vadd.f32 %v4781_v24, %v3229_v15 }
  0xc0   : > { %vm3489_vm7 = vcmp.gt.f32.partialorder %v3361_v16, 0.0  ;;  %v3617_v19 = vmul.f32 0.2, %v3361_v16 }
  0xc1   : > { %v2065_v23 = vpop.f32.mrf.mxu2  ;;  %v814_v28 = vpop.f32.mrf.mxu0 }
  0xc2   : > { %v3745_v25 = vsel %vm3489_vm7, %v3361_v16, %v3617_v19  ;;  %v2378_v26 = vadd.f32 %v2065_v23, %v1341_v20  ;;  %v2917_v27 = vpop.f32.mrf.mxu3  ;;  %v1343_v30 = vpop.f32.mrf.mxu1  ;;  %v4884_v19 = vpack.c.bf16 %v4424_v11, %v4423_v10 }
  0xc3   : > { %3874 = vst.msk [vmem:[%s4790_s17 + $0x20] sm:$0xff] %vm3869_vm3, %v3745_v25  ;;  %v1344_v34 = vadd.f32 %v1343_v30, %v814_v28 }
  0xc4   : > { %v3230_v32 = vadd.f32 %v2917_v27, %v2378_v26  ;;  %4078 = vmatmul.msk.bf16.gmra.mxu0 %vm593_vm1, %v4798_v42 }
  0xc5   : > { %4146 = vmatmul.msk.bf16.gmra.mxu1 %vm593_vm1, %v4794_v40 }
  0xc6   : > { %v3362_v33 = vadd.f32 %v4781_v24, %v3230_v32  ;;  %4344 = vmatmul.msk.bf16.gmra.mxu2 %vm593_vm1, %v4836_v29 }
  0xc7   : > { %4542 = vmatmul.msk.bf16.gmra.mxu3 %vm593_vm1, %v4840_v31 }
  0xc8   : > { %vm3490_vm8 = vcmp.gt.f32.partialorder %v3362_v33, 0.0  ;;  %v3618_v35 = vmul.f32 0.2, %v3362_v33 }
  0xc9   : > { %v2068_v36 = vpop.f32.mrf.mxu2  ;;  %v816_v41 = vpop.f32.mrf.mxu0 }
  0xca   : > { %v3746_v37 = vsel %vm3490_vm8, %v3362_v33, %v3618_v35  ;;  %v2379_v38 = vadd.f32 %v2068_v36, %v1344_v34  ;;  %v2920_v39 = vpop.f32.mrf.mxu3  ;;  %v1345_v42 = vpop.f32.mrf.mxu1  ;;  %v4227_v33 = vld [vmem:[%s4690_s9 + $0x140] sm:$0xff]  ;;  %v4228_v34 = vld [vmem:[%s4690_s9 + $0x148] sm:$0xff] }
  0xcb   : > { %3875 = vst.msk [vmem:[%s4790_s17 + $0x28] sm:$0xff] %vm3869_vm3, %v3746_v37  ;;  %v1346_v47 = vadd.f32 %v1345_v42, %v816_v41  ;;  %v4425_v37 = vld [vmem:[%s4690_s9 + $0x141] sm:$0xff]  ;;  %v4902_v44 = vpack.c.bf16 %v4228_v34, %v4227_v33 }
  0xcc   : > { %v3231_v40 = vadd.f32 %v2920_v39, %v2379_v38  ;;  %v4426_v38 = vld [vmem:[%s4690_s9 + $0x149] sm:$0xff] }
  0xce   : > { %v3363_v43 = vadd.f32 %v4781_v24, %v3231_v40 }
  0xd0   : > { %vm3491_vm9 = vcmp.gt.f32.partialorder %v3363_v43, 0.0  ;;  %v3619_v46 = vmul.f32 0.2, %v3363_v43 }
  0xd1   : > { %v2070_v50 = vpop.f32.mrf.mxu2  ;;  %v819_v54 = vpop.f32.mrf.mxu0 }
  0xd2   : > { %v3747_v51 = vsel %vm3491_vm9, %v3363_v43, %v3619_v46  ;;  %v2380_v52 = vadd.f32 %v2070_v50, %v1346_v47  ;;  %v2922_v53 = vpop.f32.mrf.mxu3  ;;  %v1348_v56 = vpop.f32.mrf.mxu1  ;;  %v4906_v46 = vpack.c.bf16 %v4426_v38, %v4425_v37 }
  0xd3   : > { %3876 = vst.msk [vmem:[%s4790_s17 + $0x30] sm:$0xff] %vm3869_vm3, %v3747_v51  ;;  %v1349_v60 = vadd.f32 %v1348_v56, %v819_v54 }
  0xd4   : > { %v3232_v58 = vadd.f32 %v2922_v53, %v2380_v52  ;;  %4079 = vmatmul.msk.bf16.gmra.mxu0 %vm593_vm1, %v4818_v4 }
  0xd5   : > { %4147 = vmatmul.msk.bf16.gmra.mxu1 %vm593_vm1, %v4814_v2 }
  0xd6   : > { %v3364_v59 = vadd.f32 %v4781_v24, %v3232_v58  ;;  %4345 = vmatmul.msk.bf16.gmra.mxu2 %vm593_vm1, %v4858_v55 }
  0xd7   : > { %4543 = vmatmul.msk.bf16.gmra.mxu3 %vm593_vm1, %v4862_v57 }
  0xd8   : > { %vm3492_vm10 = vcmp.gt.f32.partialorder %v3364_v59, 0.0  ;;  %v3620_v61 = vmul.f32 0.2, %v3364_v59 }
  0xd9   : > { %v2073_v62 = vpop.f32.mrf.mxu2  ;;  %v821_v3 = vpop.f32.mrf.mxu0 }
  0xda   : > { %v3748_v63 = vsel %vm3492_vm10, %v3364_v59, %v3620_v61  ;;  %v2381_v0 = vadd.f32 %v2073_v62, %v1349_v60  ;;  %v2925_v1 = vpop.f32.mrf.mxu3  ;;  %v1350_v4 = vpop.f32.mrf.mxu1  ;;  %v4229_v59 = vld [vmem:[%s4690_s9 + $0x150] sm:$0xff]  ;;  %v4230_v60 = vld [vmem:[%s4690_s9 + $0x158] sm:$0xff] }
  0xdb   : > { %3877 = vst.msk [vmem:[%s4790_s17 + $0x38] sm:$0xff] %vm3869_vm3, %v3748_v63  ;;  %v1351_v9 = vadd.f32 %v1350_v4, %v821_v3  ;;  %v4427_v63 = vld [vmem:[%s4690_s9 + $0x151] sm:$0xff]  ;;  %v4924_v6 = vpack.c.bf16 %v4230_v60, %v4229_v59 }
  0xdc   : > { %v3233_v2 = vadd.f32 %v2925_v1, %v2381_v0  ;;  %v4428_v0 = vld [vmem:[%s4690_s9 + $0x159] sm:$0xff] }
  0xde   : > { %v3365_v5 = vadd.f32 %v4781_v24, %v3233_v2 }
  0xe0   : > { %vm3493_vm11 = vcmp.gt.f32.partialorder %v3365_v5, 0.0  ;;  %v3621_v8 = vmul.f32 0.2, %v3365_v5 }
  0xe1   : > { %v2075_v12 = vpop.f32.mrf.mxu2  ;;  %v824_v16 = vpop.f32.mrf.mxu0 }
  0xe2   : > { %v3749_v13 = vsel %vm3493_vm11, %v3365_v5, %v3621_v8  ;;  %v2382_v14 = vadd.f32 %v2075_v12, %v1351_v9  ;;  %v2927_v15 = vpop.f32.mrf.mxu3  ;;  %v1353_v18 = vpop.f32.mrf.mxu1  ;;  %v4928_v8 = vpack.c.bf16 %v4428_v0, %v4427_v63 }
  0xe3   : > { %3878 = vst.msk [vmem:[%s4790_s17 + $0x40] sm:$0xff] %vm3869_vm3, %v3749_v13  ;;  %v1354_v22 = vadd.f32 %v1353_v18, %v824_v16 }
  0xe4   : > { %v3234_v20 = vadd.f32 %v2927_v15, %v2382_v14  ;;  %4080 = vmatmul.msk.bf16.gmra.mxu0 %vm593_vm1, %v4840_v31 }
  0xe5   : > { %4148 = vmatmul.msk.bf16.gmra.mxu1 %vm593_vm1, %v4836_v29 }
  0xe6   : > { %v3366_v21 = vadd.f32 %v4781_v24, %v3234_v20  ;;  %4346 = vmatmul.msk.bf16.gmra.mxu2 %vm593_vm1, %v4880_v17 }
  0xe7   : > { %4544 = vmatmul.msk.bf16.gmra.mxu3 %vm593_vm1, %v4884_v19 }
  0xe8   : > { %vm3494_vm12 = vcmp.gt.f32.partialorder %v3366_v21, 0.0  ;;  %v3622_v23 = vmul.f32 0.2, %v3366_v21 }
  0xe9   : > { %v2078_v25 = vpop.f32.mrf.mxu2  ;;  %v826_v30 = vpop.f32.mrf.mxu0 }
  0xea   : > { %v3750_v26 = vsel %vm3494_vm12, %v3366_v21, %v3622_v23  ;;  %v2383_v27 = vadd.f32 %v2078_v25, %v1354_v22  ;;  %v2930_v28 = vpop.f32.mrf.mxu3  ;;  %v1355_v31 = vpop.f32.mrf.mxu1  ;;  %v4231_v21 = vld [vmem:[%s4690_s9 + $0x168] sm:$0xff]  ;;  %v4232_v22 = vld [vmem:[%s4690_s9 + $0x170] sm:$0xff] }
  0xeb   : > { %3879 = vst.msk [vmem:[%s4790_s17 + $0x48] sm:$0xff] %vm3869_vm3, %v3750_v26  ;;  %v1356_v36 = vadd.f32 %v1355_v31, %v826_v30  ;;  %v4429_v26 = vld [vmem:[%s4690_s9 + $0x169] sm:$0xff]  ;;  %v4946_v33 = vpack.c.bf16 %v4232_v22, %v4231_v21 }
  0xec   : > { %v3235_v29 = vadd.f32 %v2930_v28, %v2383_v27  ;;  %v4430_v27 = vld [vmem:[%s4690_s9 + $0x171] sm:$0xff] }
  0xee   : > { %v3367_v32 = vadd.f32 %v4781_v24, %v3235_v29 }
  0xf0   : > { %vm3495_vm13 = vcmp.gt.f32.partialorder %v3367_v32, 0.0  ;;  %v3623_v35 = vmul.f32 0.2, %v3367_v32 }
  0xf1   : > { %v2080_v39 = vpop.f32.mrf.mxu2  ;;  %v829_v43 = vpop.f32.mrf.mxu0 }
  0xf2   : > { %v3751_v41 = vsel %vm3495_vm13, %v3367_v32, %v3623_v35  ;;  %v2384_v42 = vadd.f32 %v2080_v39, %v1356_v36  ;;  %v2932_v40 = vpop.f32.mrf.mxu3  ;;  %v1358_v45 = vpop.f32.mrf.mxu1  ;;  %v4950_v35 = vpack.c.bf16 %v4430_v27, %v4429_v26 }
  0xf3   : > { %3880 = vst.msk [vmem:[%s4790_s17 + $0x50] sm:$0xff] %vm3869_vm3, %v3751_v41  ;;  %v1359_v49 = vadd.f32 %v1358_v45, %v829_v43 }
  0xf4   : > { %v3236_v47 = vadd.f32 %v2932_v40, %v2384_v42  ;;  %4081 = vmatmul.msk.bf16.gmra.mxu0 %vm593_vm1, %v4862_v57 }
  0xf5   : > { %4149 = vmatmul.msk.bf16.gmra.mxu1 %vm593_vm1, %v4858_v55 }
  0xf6   : > { %v3368_v48 = vadd.f32 %v4781_v24, %v3236_v47  ;;  %4347 = vmatmul.msk.bf16.gmra.mxu2 %vm593_vm1, %v4902_v44 }
  0xf7   : > { %4545 = vmatmul.msk.bf16.gmra.mxu3 %vm593_vm1, %v4906_v46 }
  0xf8   : > { %vm3496_vm14 = vcmp.gt.f32.partialorder %v3368_v48, 0.0  ;;  %v3624_v50 = vmul.f32 0.2, %v3368_v48 }
  0xf9   : > { %v2083_v51 = vpop.f32.mrf.mxu2  ;;  %v831_v56 = vpop.f32.mrf.mxu0 }
  0xfa   : > { %v3752_v52 = vsel %vm3496_vm14, %v3368_v48, %v3624_v50  ;;  %v2385_v53 = vadd.f32 %v2083_v51, %v1359_v49  ;;  %v2935_v54 = vpop.f32.mrf.mxu3  ;;  %v1360_v57 = vpop.f32.mrf.mxu1  ;;  %v4233_v48 = vld [vmem:[%s4690_s9 + $0x178] sm:$0xff]  ;;  %v4234_v49 = vld [vmem:[%s4690_s9 + $0x180] sm:$0xff] }
  0xfb   : > { %3881 = vst.msk [vmem:[%s4790_s17 + $0x58] sm:$0xff] %vm3869_vm3, %v3752_v52  ;;  %v1361_v62 = vadd.f32 %v1360_v57, %v831_v56  ;;  %v4431_v52 = vld [vmem:[%s4690_s9 + $0x179] sm:$0xff]  ;;  %v4968_v59 = vpack.c.bf16 %v4234_v49, %v4233_v48 }
  0xfc   : > { %v3237_v55 = vadd.f32 %v2935_v54, %v2385_v53  ;;  %v4432_v53 = vld [vmem:[%s4690_s9 + $0x181] sm:$0xff] }
  0xfe   : > { %v3369_v58 = vadd.f32 %v4781_v24, %v3237_v55 }
 0x100   : > { %vm3497_vm15 = vcmp.gt.f32.partialorder %v3369_v58, 0.0  ;;  %v3625_v61 = vmul.f32 0.2, %v3369_v58 }
 0x101   : > { %v2085_v1 = vpop.f32.mrf.mxu2  ;;  %v834_v5 = vpop.f32.mrf.mxu0 }
 0x102   : > { %v3753_v3 = vsel %vm3497_vm15, %v3369_v58, %v3625_v61  ;;  %v2386_v4 = vadd.f32 %v2085_v1, %v1361_v62  ;;  %v2937_v2 = vpop.f32.mrf.mxu3  ;;  %v1363_v7 = vpop.f32.mrf.mxu1  ;;  %v4972_v61 = vpack.c.bf16 %v4432_v53, %v4431_v52 }
 0x103   : > { %3882 = vst.msk [vmem:[%s4790_s17 + $0x60] sm:$0xff] %vm3869_vm3, %v3753_v3  ;;  %v1364_v11 = vadd.f32 %v1363_v7, %v834_v5 }
 0x104   : > { %v3238_v9 = vadd.f32 %v2937_v2, %v2386_v4  ;;  %4082 = vmatmul.msk.bf16.gmra.mxu0 %vm593_vm1, %v4884_v19 }
 0x105   : > { %4150 = vmatmul.msk.bf16.gmra.mxu1 %vm593_vm1, %v4880_v17 }
 0x106   : > { %v3370_v10 = vadd.f32 %v4781_v24, %v3238_v9  ;;  %4348 = vmatmul.msk.bf16.gmra.mxu2 %vm593_vm1, %v4924_v6 }
 0x107   : > { %4546 = vmatmul.msk.bf16.gmra.mxu3 %vm593_vm1, %v4928_v8 }
 0x108   : > { %vm3498_vm0 = vcmp.gt.f32.partialorder %v3370_v10, 0.0  ;;  %v3626_v12 = vmul.f32 0.2, %v3370_v10 }
 0x109   : > { %v2088_v13 = vpop.f32.mrf.mxu2  ;;  %v836_v18 = vpop.f32.mrf.mxu0 }
 0x10a   : > { %v3754_v14 = vsel %vm3498_vm0, %v3370_v10, %v3626_v12  ;;  %v2387_v15 = vadd.f32 %v2088_v13, %v1364_v11  ;;  %v2940_v16 = vpop.f32.mrf.mxu3  ;;  %v1365_v19 = vpop.f32.mrf.mxu1  ;;  %v4235_v10 = vld [vmem:[%s4690_s9 + $0x190] sm:$0xff]  ;;  %v4236_v11 = vld [vmem:[%s4690_s9 + $0x198] sm:$0xff] }
 0x10b   : > { %3883 = vst.msk [vmem:[%s4790_s17 + $0x68] sm:$0xff] %vm3869_vm3, %v3754_v14  ;;  %v1366_v25 = vadd.f32 %v1365_v19, %v836_v18  ;;  %v4433_v14 = vld [vmem:[%s4690_s9 + $0x191] sm:$0xff]  ;;  %v4990_v21 = vpack.c.bf16 %v4236_v11, %v4235_v10 }
 0x10c   : > { %v3239_v17 = vadd.f32 %v2940_v16, %v2387_v15  ;;  %v4434_v15 = vld [vmem:[%s4690_s9 + $0x199] sm:$0xff] }
 0x10e   : > { %v3371_v20 = vadd.f32 %v4781_v24, %v3239_v17 }
 0x110   : > { %vm3499_vm2 = vcmp.gt.f32.partialorder %v3371_v20, 0.0  ;;  %v3627_v23 = vmul.f32 0.2, %v3371_v20 }
 0x111   : > { %v2090_v28 = vpop.f32.mrf.mxu2  ;;  %v839_v32 = vpop.f32.mrf.mxu0 }
 0x112   : > { %v3755_v30 = vsel %vm3499_vm2, %v3371_v20, %v3627_v23  ;;  %v2388_v31 = vadd.f32 %v2090_v28, %v1366_v25  ;;  %v2942_v29 = vpop.f32.mrf.mxu3  ;;  %v1368_v34 = vpop.f32.mrf.mxu1  ;;  %v4994_v23 = vpack.c.bf16 %v4434_v15, %v4433_v14 }
 0x113   : > { %3884 = vst.msk [vmem:[%s4790_s17 + $0x70] sm:$0xff] %vm3869_vm3, %v3755_v30  ;;  %v1369_v38 = vadd.f32 %v1368_v34, %v839_v32 }
 0x114   : > { %v3240_v36 = vadd.f32 %v2942_v29, %v2388_v31  ;;  %4083 = vmatmul.msk.bf16.gmra.mxu0 %vm593_vm1, %v4906_v46 }
 0x115   : > { %4151 = vmatmul.msk.bf16.gmra.mxu1 %vm593_vm1, %v4902_v44 }
 0x116   : > { %v3372_v37 = vadd.f32 %v4781_v24, %v3240_v36  ;;  %4349 = vmatmul.msk.bf16.gmra.mxu2 %vm593_vm1, %v4946_v33 }
 0x117   : > { %4547 = vmatmul.msk.bf16.gmra.mxu3 %vm593_vm1, %v4950_v35 }
 0x118   : > { %vm3500_vm4 = vcmp.gt.f32.partialorder %v3372_v37, 0.0  ;;  %v3628_v39 = vmul.f32 0.2, %v3372_v37 }
 0x119   : > { %v2093_v41 = vpop.f32.mrf.mxu2  ;;  %v841_v45 = vpop.f32.mrf.mxu0 }
 0x11a   : > { %v3756_v42 = vsel %vm3500_vm4, %v3372_v37, %v3628_v39  ;;  %v2389_v40 = vadd.f32 %v2093_v41, %v1369_v38  ;;  %v2945_v43 = vpop.f32.mrf.mxu3  ;;  %v1370_v46 = vpop.f32.mrf.mxu1  ;;  %v4237_v37 = vld [vmem:[%s4690_s9 + $0x1a0] sm:$0xff]  ;;  %v4238_v38 = vld [vmem:[%s4690_s9 + $0x1a8] sm:$0xff] }
 0x11b   : > { %3885 = vst.msk [vmem:[%s4790_s17 + $0x78] sm:$0xff] %vm3869_vm3, %v3756_v42  ;;  %v1371_v51 = vadd.f32 %v1370_v46, %v841_v45  ;;  %v4435_v42 = vld [vmem:[%s4690_s9 + $0x1a1] sm:$0xff]  ;;  %v5012_v48 = vpack.c.bf16 %v4238_v38, %v4237_v37 }
 0x11c   : > { %v3241_v44 = vadd.f32 %v2945_v43, %v2389_v40  ;;  %v4436_v40 = vld [vmem:[%s4690_s9 + $0x1a9] sm:$0xff] }
 0x11e   : > { %v3373_v47 = vadd.f32 %v4781_v24, %v3241_v44 }
 0x120   : > { %vm3501_vm5 = vcmp.gt.f32.partialorder %v3373_v47, 0.0  ;;  %v3629_v50 = vmul.f32 0.2, %v3373_v47 }
 0x121   : > { %v2095_v54 = vpop.f32.mrf.mxu2  ;;  %v844_v58 = vpop.f32.mrf.mxu0 }
 0x122   : > { %v3757_v56 = vsel %vm3501_vm5, %v3373_v47, %v3629_v50  ;;  %v2390_v57 = vadd.f32 %v2095_v54, %v1371_v51  ;;  %v2947_v55 = vpop.f32.mrf.mxu3  ;;  %v1373_v60 = vpop.f32.mrf.mxu1  ;;  %v5016_v50 = vpack.c.bf16 %v4436_v40, %v4435_v42 }
 0x123   : > { %3886 = vst.msk [vmem:[%s4790_s17 + $0x80] sm:$0xff] %vm3869_vm3, %v3757_v56  ;;  %v1374_v0 = vadd.f32 %v1373_v60, %v844_v58 }
 0x124   : > { %v3242_v62 = vadd.f32 %v2947_v55, %v2390_v57  ;;  %4084 = vmatmul.msk.bf16.gmra.mxu0 %vm593_vm1, %v4928_v8 }
 0x125   : > { %4152 = vmatmul.msk.bf16.gmra.mxu1 %vm593_vm1, %v4924_v6 }
 0x126   : > { %v3374_v63 = vadd.f32 %v4781_v24, %v3242_v62  ;;  %4350 = vmatmul.msk.bf16.gmra.mxu2 %vm593_vm1, %v4968_v59 }
 0x127   : > { %4548 = vmatmul.msk.bf16.gmra.mxu3 %vm593_vm1, %v4972_v61 }
 0x128   : > { %vm3502_vm6 = vcmp.gt.f32.partialorder %v3374_v63, 0.0  ;;  %v3630_v1 = vmul.f32 0.2, %v3374_v63 }
 0x129   : > { %v2098_v3 = vpop.f32.mrf.mxu2  ;;  %v846_v7 = vpop.f32.mrf.mxu0 }
 0x12a   : > { %v3758_v4 = vsel %vm3502_vm6, %v3374_v63, %v3630_v1  ;;  %v2391_v2 = vadd.f32 %v2098_v3, %v1374_v0  ;;  %v2950_v5 = vpop.f32.mrf.mxu3  ;;  %v1375_v8 = vpop.f32.mrf.mxu1  ;;  %v4239_v63 = vld [vmem:[%s4690_s9 + $0x1b8] sm:$0xff]  ;;  %v4240_v0 = vld [vmem:[%s4690_s9 + $0x1c0] sm:$0xff] }
 0x12b   : > { %3887 = vst.msk [vmem:[%s4790_s17 + $0x88] sm:$0xff] %vm3869_vm3, %v3758_v4  ;;  %v1376_v13 = vadd.f32 %v1375_v8, %v846_v7  ;;  %v4437_v4 = vld [vmem:[%s4690_s9 + $0x1b9] sm:$0xff]  ;;  %v5034_v10 = vpack.c.bf16 %v4240_v0, %v4239_v63 }
 0x12c   : > { %v3243_v6 = vadd.f32 %v2950_v5, %v2391_v2  ;;  %v4438_v2 = vld [vmem:[%s4690_s9 + $0x1c1] sm:$0xff] }
 0x12e   : > { %v3375_v9 = vadd.f32 %v4781_v24, %v3243_v6 }
 0x130   : > { %vm3503_vm7 = vcmp.gt.f32.partialorder %v3375_v9, 0.0  ;;  %v3631_v12 = vmul.f32 0.2, %v3375_v9 }
 0x131   : > { %v2100_v16 = vpop.f32.mrf.mxu2  ;;  %v849_v20 = vpop.f32.mrf.mxu0 }
 0x132   : > { %v3759_v18 = vsel %vm3503_vm7, %v3375_v9, %v3631_v12  ;;  %v2392_v19 = vadd.f32 %v2100_v16, %v1376_v13  ;;  %v2952_v17 = vpop.f32.mrf.mxu3  ;;  %v1378_v22 = vpop.f32.mrf.mxu1  ;;  %v5038_v12 = vpack.c.bf16 %v4438_v2, %v4437_v4 }
 0x133   : > { %3888 = vst.msk [vmem:[%s4790_s17 + $0x90] sm:$0xff] %vm3869_vm3, %v3759_v18  ;;  %v1379_v27 = vadd.f32 %v1378_v22, %v849_v20 }
 0x134   : > { %v3244_v25 = vadd.f32 %v2952_v17, %v2392_v19  ;;  %4085 = vmatmul.msk.bf16.gmra.mxu0 %vm593_vm1, %v4950_v35 }
 0x135   : > { %4153 = vmatmul.msk.bf16.gmra.mxu1 %vm593_vm1, %v4946_v33 }
 0x136   : > { %v3376_v26 = vadd.f32 %v4781_v24, %v3244_v25  ;;  %4351 = vmatmul.msk.bf16.gmra.mxu2 %vm593_vm1, %v4990_v21 }
 0x137   : > { %4549 = vmatmul.msk.bf16.gmra.mxu3 %vm593_vm1, %v4994_v23 }
 0x138   : > { %vm3504_vm8 = vcmp.gt.f32.partialorder %v3376_v26, 0.0  ;;  %v3632_v28 = vmul.f32 0.2, %v3376_v26 }
 0x139   : > { %v2103_v30 = vpop.f32.mrf.mxu2  ;;  %v851_v34 = vpop.f32.mrf.mxu0 }
 0x13a   : > { %v3760_v31 = vsel %vm3504_vm8, %v3376_v26, %v3632_v28  ;;  %v2393_v29 = vadd.f32 %v2103_v30, %v1379_v27  ;;  %v2955_v32 = vpop.f32.mrf.mxu3  ;;  %v1380_v35 = vpop.f32.mrf.mxu1  ;;  %v4241_v26 = vld [vmem:[%s4690_s9 + $0x1c8] sm:$0xff]  ;;  %v4242_v27 = vld [vmem:[%s4690_s9 + $0x1d0] sm:$0xff] }
 0x13b   : > { %3889 = vst.msk [vmem:[%s4790_s17 + $0x98] sm:$0xff] %vm3869_vm3, %v3760_v31  ;;  %v1381_v41 = vadd.f32 %v1380_v35, %v851_v34  ;;  %v4439_v31 = vld [vmem:[%s4690_s9 + $0x1c9] sm:$0xff]  ;;  %v5056_v37 = vpack.c.bf16 %v4242_v27, %v4241_v26 }
 0x13c   : > { %v3245_v33 = vadd.f32 %v2955_v32, %v2393_v29  ;;  %v4440_v29 = vld [vmem:[%s4690_s9 + $0x1d1] sm:$0xff] }
 0x13e   : > { %v3377_v36 = vadd.f32 %v4781_v24, %v3245_v33 }
 0x140   : > { %vm3505_vm9 = vcmp.gt.f32.partialorder %v3377_v36, 0.0  ;;  %v3633_v39 = vmul.f32 0.2, %v3377_v36 }
 0x141   : > { %v2105_v43 = vpop.f32.mrf.mxu2  ;;  %v854_v47 = vpop.f32.mrf.mxu0 }
 0x142   : > { %v3761_v45 = vsel %vm3505_vm9, %v3377_v36, %v3633_v39  ;;  %v2394_v46 = vadd.f32 %v2105_v43, %v1381_v41  ;;  %v2957_v44 = vpop.f32.mrf.mxu3  ;;  %v1383_v49 = vpop.f32.mrf.mxu1  ;;  %v5060_v39 = vpack.c.bf16 %v4440_v29, %v4439_v31 }
 0x143   : > { %3890 = vst.msk [vmem:[%s4790_s17 + $0xa0] sm:$0xff] %vm3869_vm3, %v3761_v45  ;;  %v1384_v53 = vadd.f32 %v1383_v49, %v854_v47 }
 0x144   : > { %v3246_v51 = vadd.f32 %v2957_v44, %v2394_v46  ;;  %4086 = vmatmul.msk.bf16.gmra.mxu0 %vm593_vm1, %v4972_v61 }
 0x145   : > { %4154 = vmatmul.msk.bf16.gmra.mxu1 %vm593_vm1, %v4968_v59 }
 0x146   : > { %v3378_v52 = vadd.f32 %v4781_v24, %v3246_v51  ;;  %4352 = vmatmul.msk.bf16.gmra.mxu2 %vm593_vm1, %v5012_v48 }
 0x147   : > { %4550 = vmatmul.msk.bf16.gmra.mxu3 %vm593_vm1, %v5016_v50 }
 0x148   : > { %vm3506_vm10 = vcmp.gt.f32.partialorder %v3378_v52, 0.0  ;;  %v3634_v54 = vmul.f32 0.2, %v3378_v52 }
 0x149   : > { %v2108_v56 = vpop.f32.mrf.mxu2  ;;  %v856_v60 = vpop.f32.mrf.mxu0 }
 0x14a   : > { %v3762_v57 = vsel %vm3506_vm10, %v3378_v52, %v3634_v54  ;;  %v2395_v55 = vadd.f32 %v2108_v56, %v1384_v53  ;;  %v2960_v58 = vpop.f32.mrf.mxu3  ;;  %v1385_v61 = vpop.f32.mrf.mxu1  ;;  %v4243_v52 = vld [vmem:[%s4690_s9 + $0x1e0] sm:$0xff]  ;;  %v4244_v53 = vld [vmem:[%s4690_s9 + $0x1e8] sm:$0xff] }
 0x14b   : > { %3891 = vst.msk [vmem:[%s4790_s17 + $0xa8] sm:$0xff] %vm3869_vm3, %v3762_v57  ;;  %v1386_v3 = vadd.f32 %v1385_v61, %v856_v60  ;;  %v4441_v57 = vld [vmem:[%s4690_s9 + $0x1e1] sm:$0xff]  ;;  %v5078_v63 = vpack.c.bf16 %v4244_v53, %v4243_v52 }
 0x14c   : > { %v3247_v59 = vadd.f32 %v2960_v58, %v2395_v55  ;;  %v4442_v55 = vld [vmem:[%s4690_s9 + $0x1e9] sm:$0xff] }
 0x14e   : > { %v3379_v62 = vadd.f32 %v4781_v24, %v3247_v59 }
 0x150   : > { %vm3507_vm11 = vcmp.gt.f32.partialorder %v3379_v62, 0.0  ;;  %v3635_v1 = vmul.f32 0.2, %v3379_v62 }
 0x151   : > { %v2110_v5 = vpop.f32.mrf.mxu2  ;;  %v859_v9 = vpop.f32.mrf.mxu0 }
 0x152   : > { %v3763_v7 = vsel %vm3507_vm11, %v3379_v62, %v3635_v1  ;;  %v2396_v8 = vadd.f32 %v2110_v5, %v1386_v3  ;;  %v2962_v6 = vpop.f32.mrf.mxu3  ;;  %v1388_v11 = vpop.f32.mrf.mxu1  ;;  %v5082_v1 = vpack.c.bf16 %v4442_v55, %v4441_v57 }
 0x153   : > { %3892 = vst.msk [vmem:[%s4790_s17 + $0xb0] sm:$0xff] %vm3869_vm3, %v3763_v7  ;;  %v1389_v15 = vadd.f32 %v1388_v11, %v859_v9 }
 0x154   : > { %v3248_v13 = vadd.f32 %v2962_v6, %v2396_v8  ;;  %4087 = vmatmul.msk.bf16.gmra.mxu0 %vm593_vm1, %v4994_v23 }
 0x155   : > { %4155 = vmatmul.msk.bf16.gmra.mxu1 %vm593_vm1, %v4990_v21 }
 0x156   : > { %v3380_v14 = vadd.f32 %v4781_v24, %v3248_v13  ;;  %4353 = vmatmul.msk.bf16.gmra.mxu2 %vm593_vm1, %v5034_v10 }
 0x157   : > { %4551 = vmatmul.msk.bf16.gmra.mxu3 %vm593_vm1, %v5038_v12 }
 0x158   : > { %vm3508_vm12 = vcmp.gt.f32.partialorder %v3380_v14, 0.0  ;;  %v3636_v16 = vmul.f32 0.2, %v3380_v14 }
 0x159   : > { %v2113_v18 = vpop.f32.mrf.mxu2  ;;  %v861_v22 = vpop.f32.mrf.mxu0 }
 0x15a   : > { %v3764_v19 = vsel %vm3508_vm12, %v3380_v14, %v3636_v16  ;;  %v2397_v17 = vadd.f32 %v2113_v18, %v1389_v15  ;;  %v2965_v20 = vpop.f32.mrf.mxu3  ;;  %v1390_v23 = vpop.f32.mrf.mxu1  ;;  %v4245_v14 = vld [vmem:[%s4690_s9 + $0x1f0] sm:$0xff]  ;;  %v4246_v15 = vld [vmem:[%s4690_s9 + $0x1f8] sm:$0xff] }
 0x15b   : > { %3893 = vst.msk [vmem:[%s4790_s17 + $0xb8] sm:$0xff] %vm3869_vm3, %v3764_v19  ;;  %v1391_v30 = vadd.f32 %v1390_v23, %v861_v22  ;;  %v4443_v19 = vld [vmem:[%s4690_s9 + $0x1f1] sm:$0xff]  ;;  %v5100_v26 = vpack.c.bf16 %v4246_v15, %v4245_v14 }
 0x15c   : > { %v3249_v21 = vadd.f32 %v2965_v20, %v2397_v17  ;;  %v4444_v17 = vld [vmem:[%s4690_s9 + $0x1f9] sm:$0xff] }
 0x15e   : > { %v3381_v25 = vadd.f32 %v4781_v24, %v3249_v21 }
 0x160   : > { %vm3509_vm13 = vcmp.gt.f32.partialorder %v3381_v25, 0.0  ;;  %v3637_v28 = vmul.f32 0.2, %v3381_v25 }
 0x161   : > { %v2115_v32 = vpop.f32.mrf.mxu2  ;;  %v864_v36 = vpop.f32.mrf.mxu0 }
 0x162   : > { %v3765_v34 = vsel %vm3509_vm13, %v3381_v25, %v3637_v28  ;;  %v2398_v35 = vadd.f32 %v2115_v32, %v1391_v30  ;;  %v2967_v33 = vpop.f32.mrf.mxu3  ;;  %v1393_v38 = vpop.f32.mrf.mxu1  ;;  %v5104_v28 = vpack.c.bf16 %v4444_v17, %v4443_v19 }
 0x163   : > { %3894 = vst.msk [vmem:[%s4790_s17 + $0xc0] sm:$0xff] %vm3869_vm3, %v3765_v34  ;;  %v1394_v40 = vadd.f32 %v1393_v38, %v864_v36 }
 0x164   : > { %v3250_v41 = vadd.f32 %v2967_v33, %v2398_v35  ;;  %4088 = vmatmul.msk.bf16.gmra.mxu0 %vm593_vm1, %v5016_v50 }
 0x165   : > { %4156 = vmatmul.msk.bf16.gmra.mxu1 %vm593_vm1, %v5012_v48 }
 0x166   : > { %v3382_v42 = vadd.f32 %v4781_v24, %v3250_v41  ;;  %4354 = vmatmul.msk.bf16.gmra.mxu2 %vm593_vm1, %v5056_v37 }
 0x167   : > { %4552 = vmatmul.msk.bf16.gmra.mxu3 %vm593_vm1, %v5060_v39 }
 0x168   : > { %vm3510_vm14 = vcmp.gt.f32.partialorder %v3382_v42, 0.0  ;;  %v3638_v43 = vmul.f32 0.2, %v3382_v42 }
 0x169   : > { %v2118_v45 = vpop.f32.mrf.mxu2  ;;  %v866_v49 = vpop.f32.mrf.mxu0 }
 0x16a   : > { %v3766_v46 = vsel %vm3510_vm14, %v3382_v42, %v3638_v43  ;;  %v2399_v44 = vadd.f32 %v2118_v45, %v1394_v40  ;;  %v2970_v47 = vpop.f32.mrf.mxu3  ;;  %v1395_v50 = vpop.f32.mrf.mxu1  ;;  %v4247_v42 = vld [vmem:[%s4690_s9 + $0x208] sm:$0xff]  ;;  %v4248_v40 = vld [vmem:[%s4690_s9 + $0x210] sm:$0xff] }
 0x16b   : > { %3895 = vst.msk [vmem:[%s4790_s17 + $0xc8] sm:$0xff] %vm3869_vm3, %v3766_v46  ;;  %v1396_v56 = vadd.f32 %v1395_v50, %v866_v49  ;;  %v4445_v46 = vld [vmem:[%s4690_s9 + $0x209] sm:$0xff]  ;;  %v5127_v52 = vpack.c.bf16 %v4248_v40, %v4247_v42 }
 0x16c   : > { %v3251_v48 = vadd.f32 %v2970_v47, %v2399_v44  ;;  %v4446_v44 = vld [vmem:[%s4690_s9 + $0x211] sm:$0xff] }
 0x16e   : > { %v3383_v51 = vadd.f32 %v4781_v24, %v3251_v48 }
 0x170   : > { %vm3511_vm15 = vcmp.gt.f32.partialorder %v3383_v51, 0.0  ;;  %v3639_v54 = vmul.f32 0.2, %v3383_v51 }
 0x171   : > { %v2120_v58 = vpop.f32.mrf.mxu2  ;;  %v869_v62 = vpop.f32.mrf.mxu0 }
 0x172   : > { %v3767_v60 = vsel %vm3511_vm15, %v3383_v51, %v3639_v54  ;;  %v2400_v61 = vadd.f32 %v2120_v58, %v1396_v56  ;;  %v2972_v59 = vpop.f32.mrf.mxu3  ;;  %v1398_v0 = vpop.f32.mrf.mxu1  ;;  %v5131_v54 = vpack.c.bf16 %v4446_v44, %v4445_v46 }
 0x173   : > { %3896 = vst.msk [vmem:[%s4790_s17 + $0xd0] sm:$0xff] %vm3869_vm3, %v3767_v60  ;;  %v1399_v2 = vadd.f32 %v1398_v0, %v869_v62 }
 0x174   : > { %v3252_v3 = vadd.f32 %v2972_v59, %v2400_v61  ;;  %4089 = vmatmul.msk.bf16.gmra.mxu0 %vm593_vm1, %v5038_v12 }
 0x175   : > { %4157 = vmatmul.msk.bf16.gmra.mxu1 %vm593_vm1, %v5034_v10 }
 0x176   : > { %v3384_v4 = vadd.f32 %v4781_v24, %v3252_v3  ;;  %4355 = vmatmul.msk.bf16.gmra.mxu2 %vm593_vm1, %v5078_v63 }
 0x177   : > { %4553 = vmatmul.msk.bf16.gmra.mxu3 %vm593_vm1, %v5082_v1 }
 0x178   : > { %vm3512_vm0 = vcmp.gt.f32.partialorder %v3384_v4, 0.0  ;;  %v3640_v5 = vmul.f32 0.2, %v3384_v4 }
 0x179   : > { %v2123_v7 = vpop.f32.mrf.mxu2  ;;  %v871_v11 = vpop.f32.mrf.mxu0 }
 0x17a   : > { %v3768_v8 = vsel %vm3512_vm0, %v3384_v4, %v3640_v5  ;;  %v2401_v6 = vadd.f32 %v2123_v7, %v1399_v2  ;;  %v2975_v9 = vpop.f32.mrf.mxu3  ;;  %v1400_v12 = vpop.f32.mrf.mxu1  ;;  %v4249_v4 = vld [vmem:[%s4690_s9 + $0x218] sm:$0xff]  ;;  %v4250_v2 = vld [vmem:[%s4690_s9 + $0x220] sm:$0xff] }
 0x17b   : > { %3897 = vst.msk [vmem:[%s4790_s17 + $0xd8] sm:$0xff] %vm3869_vm3, %v3768_v8  ;;  %v1401_v18 = vadd.f32 %v1400_v12, %v871_v11  ;;  %v4447_v8 = vld [vmem:[%s4690_s9 + $0x219] sm:$0xff]  ;;  %v5149_v14 = vpack.c.bf16 %v4250_v2, %v4249_v4 }
 0x17c   : > { %v3253_v10 = vadd.f32 %v2975_v9, %v2401_v6  ;;  %v4448_v6 = vld [vmem:[%s4690_s9 + $0x221] sm:$0xff] }
 0x17e   : > { %v3385_v13 = vadd.f32 %v4781_v24, %v3253_v10 }
 0x180   : > { %vm3513_vm2 = vcmp.gt.f32.partialorder %v3385_v13, 0.0  ;;  %v3641_v16 = vmul.f32 0.2, %v3385_v13 }
 0x181   : > { %v2125_v20 = vpop.f32.mrf.mxu2  ;;  %v874_v25 = vpop.f32.mrf.mxu0 }
 0x182   : > { %v3769_v22 = vsel %vm3513_vm2, %v3385_v13, %v3641_v16  ;;  %v2402_v23 = vadd.f32 %v2125_v20, %v1401_v18  ;;  %v2977_v21 = vpop.f32.mrf.mxu3  ;;  %v1403_v27 = vpop.f32.mrf.mxu1  ;;  %v5153_v16 = vpack.c.bf16 %v4448_v6, %v4447_v8 }
 0x183   : > { %3898 = vst.msk [vmem:[%s4790_s17 + $0xe0] sm:$0xff] %vm3869_vm3, %v3769_v22  ;;  %v1404_v29 = vadd.f32 %v1403_v27, %v874_v25 }
 0x184   : > { %v3254_v30 = vadd.f32 %v2977_v21, %v2402_v23  ;;  %4090 = vmatmul.msk.bf16.gmra.mxu0 %vm593_vm1, %v5060_v39  ;;  %v5120_v39 = vld [vmem:[%s6059_s2] ss:$0 sm:$0xff] }
 0x185   : > { %4158 = vmatmul.msk.bf16.gmra.mxu1 %vm593_vm1, %v5056_v37 }
 0x186   : > { %v3386_v31 = vadd.f32 %v4781_v24, %v3254_v30  ;;  %4356 = vmatmul.msk.bf16.gmra.mxu2 %vm593_vm1, %v5100_v26 }
 0x187   : > { %4554 = vmatmul.msk.bf16.gmra.mxu3 %vm593_vm1, %v5104_v28 }
 0x188   : > { %vm3514_vm4 = vcmp.gt.f32.partialorder %v3386_v31, 0.0  ;;  %v3642_v32 = vmul.f32 0.2, %v3386_v31 }
 0x189   : > { %v2128_v34 = vpop.f32.mrf.mxu2  ;;  %v876_v36 = vpop.f32.mrf.mxu0 }
 0x18a   : > { %v3770_v35 = vsel %vm3514_vm4, %v3386_v31, %v3642_v32  ;;  %v2403_v33 = vadd.f32 %v2128_v34, %v1404_v29  ;;  %v2980_v24 = vpop.f32.mrf.mxu3  ;;  %v1405_v38 = vpop.f32.mrf.mxu1  ;;  %v4251_v31 = vld [vmem:[%s4690_s9 + $0x230] sm:$0xff]  ;;  %v4252_v29 = vld [vmem:[%s4690_s9 + $0x238] sm:$0xff] }
 0x18b   : > { %3899 = vst.msk [vmem:[%s4790_s17 + $0xe8] sm:$0xff] %vm3869_vm3, %v3770_v35  ;;  %v1406_v45 = vadd.f32 %v1405_v38, %v876_v36  ;;  %v4449_v35 = vld [vmem:[%s4690_s9 + $0x231] sm:$0xff]  ;;  %v5171_v42 = vpack.c.bf16 %v4252_v29, %v4251_v31 }
 0x18c   : > { %v3255_v37 = vadd.f32 %v2980_v24, %v2403_v33  ;;  %v4450_v33 = vld [vmem:[%s4690_s9 + $0x239] sm:$0xff] }
 0x18e   : > { %v3387_v41 = vadd.f32 %v5120_v39, %v3255_v37 }
 0x190   : > { %vm3515_vm5 = vcmp.gt.f32.partialorder %v3387_v41, 0.0  ;;  %v3643_v43 = vmul.f32 0.2, %v3387_v41 }
 0x191   : > { %v2130_v47 = vpop.f32.mrf.mxu2  ;;  %v879_v51 = vpop.f32.mrf.mxu0 }
 0x192   : > { %v3771_v49 = vsel %vm3515_vm5, %v3387_v41, %v3643_v43  ;;  %v2404_v50 = vadd.f32 %v2130_v47, %v1406_v45  ;;  %v2982_v48 = vpop.f32.mrf.mxu3  ;;  %v1408_v53 = vpop.f32.mrf.mxu1  ;;  %v5175_v43 = vpack.c.bf16 %v4450_v33, %v4449_v35 }
 0x193   : > { %3900 = vst.msk [vmem:[%s4790_s17 + $0xf0] sm:$0xff] %vm3869_vm3, %v3771_v49  ;;  %v1409_v55 = vadd.f32 %v1408_v53, %v879_v51 }
 0x194   : > { %v3256_v56 = vadd.f32 %v2982_v48, %v2404_v50  ;;  %4091 = vmatmul.msk.bf16.gmra.mxu0 %vm593_vm1, %v5082_v1 }
 0x195   : > { %4159 = vmatmul.msk.bf16.gmra.mxu1 %vm593_vm1, %v5078_v63 }
 0x196   : > { %v3388_v57 = vadd.f32 %v5120_v39, %v3256_v56  ;;  %4357 = vmatmul.msk.bf16.gmra.mxu2 %vm593_vm1, %v5127_v52 }
 0x197   : > { %4555 = vmatmul.msk.bf16.gmra.mxu3 %vm593_vm1, %v5131_v54 }
 0x198   : > { %vm3516_vm6 = vcmp.gt.f32.partialorder %v3388_v57, 0.0  ;;  %v3644_v58 = vmul.f32 0.2, %v3388_v57 }
 0x199   : > { %v2133_v60 = vpop.f32.mrf.mxu2  ;;  %v881_v0 = vpop.f32.mrf.mxu0 }
 0x19a   : > { %v3772_v61 = vsel %vm3516_vm6, %v3388_v57, %v3644_v58  ;;  %v2405_v59 = vadd.f32 %v2133_v60, %v1409_v55  ;;  %v2985_v62 = vpop.f32.mrf.mxu3  ;;  %v1410_v1 = vpop.f32.mrf.mxu1  ;;  %v4253_v57 = vld [vmem:[%s4690_s9 + $0x240] sm:$0xff]  ;;  %v4254_v55 = vld [vmem:[%s4690_s9 + $0x248] sm:$0xff] }
 0x19b   : > { %3901 = vst.msk [vmem:[%s4790_s17 + $0xf8] sm:$0xff] %vm3869_vm3, %v3772_v61  ;;  %v1411_v7 = vadd.f32 %v1410_v1, %v881_v0  ;;  %v4451_v61 = vld [vmem:[%s4690_s9 + $0x241] sm:$0xff]  ;;  %v5193_v4 = vpack.c.bf16 %v4254_v55, %v4253_v57 }
 0x19c   : > { %v3257_v63 = vadd.f32 %v2985_v62, %v2405_v59  ;;  %v4452_v59 = vld [vmem:[%s4690_s9 + $0x249] sm:$0xff] }
 0x19e   : > { %v3389_v3 = vadd.f32 %v5120_v39, %v3257_v63 }
 0x1a0   : > { %vm3517_vm7 = vcmp.gt.f32.partialorder %v3389_v3, 0.0  ;;  %v3645_v5 = vmul.f32 0.2, %v3389_v3 }
 0x1a1   : > { %v2135_v9 = vpop.f32.mrf.mxu2  ;;  %v884_v13 = vpop.f32.mrf.mxu0 }
 0x1a2   : > { %v3773_v11 = vsel %vm3517_vm7, %v3389_v3, %v3645_v5  ;;  %v2406_v12 = vadd.f32 %v2135_v9, %v1411_v7  ;;  %v2987_v10 = vpop.f32.mrf.mxu3  ;;  %v1413_v15 = vpop.f32.mrf.mxu1  ;;  %v5197_v5 = vpack.c.bf16 %v4452_v59, %v4451_v61 }
 0x1a3   : > { %3902 = vst.msk [vmem:[%s4790_s17 + $0x100] sm:$0xff] %vm3869_vm3, %v3773_v11  ;;  %v1414_v17 = vadd.f32 %v1413_v15, %v884_v13 }
 0x1a4   : > { %v3258_v18 = vadd.f32 %v2987_v10, %v2406_v12  ;;  %4092 = vmatmul.msk.bf16.gmra.mxu0 %vm593_vm1, %v5104_v28 }
 0x1a5   : > { %4160 = vmatmul.msk.bf16.gmra.mxu1 %vm593_vm1, %v5100_v26 }
 0x1a6   : > { %v3390_v19 = vadd.f32 %v5120_v39, %v3258_v18  ;;  %4358 = vmatmul.msk.bf16.gmra.mxu2 %vm593_vm1, %v5149_v14 }
 0x1a7   : > { %4556 = vmatmul.msk.bf16.gmra.mxu3 %vm593_vm1, %v5153_v16 }
 0x1a8   : > { %vm3518_vm8 = vcmp.gt.f32.partialorder %v3390_v19, 0.0  ;;  %v3646_v20 = vmul.f32 0.2, %v3390_v19 }
 0x1a9   : > { %v2138_v22 = vpop.f32.mrf.mxu2  ;;  %v886_v27 = vpop.f32.mrf.mxu0 }
 0x1aa   : > { %v3774_v23 = vsel %vm3518_vm8, %v3390_v19, %v3646_v20  ;;  %v2407_v21 = vadd.f32 %v2138_v22, %v1414_v17  ;;  %v2990_v25 = vpop.f32.mrf.mxu3  ;;  %v1415_v28 = vpop.f32.mrf.mxu1  ;;  %v4255_v19 = vld [vmem:[%s4690_s9 + $0x258] sm:$0xff]  ;;  %v4256_v17 = vld [vmem:[%s4690_s9 + $0x260] sm:$0xff] }
 0x1ab   : > { %3903 = vst.msk [vmem:[%s4790_s17 + $0x108] sm:$0xff] %vm3869_vm3, %v3774_v23  ;;  %v1416_v34 = vadd.f32 %v1415_v28, %v886_v27  ;;  %v4453_v23 = vld [vmem:[%s4690_s9 + $0x259] sm:$0xff]  ;;  %v5215_v31 = vpack.c.bf16 %v4256_v17, %v4255_v19 }
 0x1ac   : > { %v3259_v26 = vadd.f32 %v2990_v25, %v2407_v21  ;;  %v4454_v21 = vld [vmem:[%s4690_s9 + $0x261] sm:$0xff] }
 0x1ae   : > { %v3391_v30 = vadd.f32 %v5120_v39, %v3259_v26 }
 0x1b0   : > { %vm3519_vm9 = vcmp.gt.f32.partialorder %v3391_v30, 0.0  ;;  %v3647_v32 = vmul.f32 0.2, %v3391_v30 }
 0x1b1   : > { %v2140_v24 = vpop.f32.mrf.mxu2  ;;  %v889_v41 = vpop.f32.mrf.mxu0 }
 0x1b2   : > { %v3775_v36 = vsel %vm3519_vm9, %v3391_v30, %v3647_v32  ;;  %v2408_v38 = vadd.f32 %v2140_v24, %v1416_v34  ;;  %v2992_v37 = vpop.f32.mrf.mxu3  ;;  %v1418_v40 = vpop.f32.mrf.mxu1  ;;  %v5219_v32 = vpack.c.bf16 %v4454_v21, %v4453_v23 }
 0x1b3   : > { %3904 = vst.msk [vmem:[%s4790_s17 + $0x110] sm:$0xff] %vm3869_vm3, %v3775_v36  ;;  %v1419_v44 = vadd.f32 %v1418_v40, %v889_v41 }
 0x1b4   : > { %v3260_v45 = vadd.f32 %v2992_v37, %v2408_v38  ;;  %4093 = vmatmul.msk.bf16.gmra.mxu0 %vm593_vm1, %v5131_v54 }
 0x1b5   : > { %4161 = vmatmul.msk.bf16.gmra.mxu1 %vm593_vm1, %v5127_v52 }
 0x1b6   : > { %v3392_v46 = vadd.f32 %v5120_v39, %v3260_v45  ;;  %4359 = vmatmul.msk.bf16.gmra.mxu2 %vm593_vm1, %v5171_v42 }
 0x1b7   : > { %4557 = vmatmul.msk.bf16.gmra.mxu3 %vm593_vm1, %v5175_v43 }
 0x1b8   : > { %vm3520_vm10 = vcmp.gt.f32.partialorder %v3392_v46, 0.0  ;;  %v3648_v47 = vmul.f32 0.2, %v3392_v46 }
 0x1b9   : > { %v2143_v49 = vpop.f32.mrf.mxu2  ;;  %v891_v53 = vpop.f32.mrf.mxu0 }
 0x1ba   : > { %v3776_v50 = vsel %vm3520_vm10, %v3392_v46, %v3648_v47  ;;  %v2409_v48 = vadd.f32 %v2143_v49, %v1419_v44  ;;  %v2995_v51 = vpop.f32.mrf.mxu3  ;;  %v1420_v54 = vpop.f32.mrf.mxu1  ;;  %v4257_v46 = vld [vmem:[%s4690_s9 + $0x268] sm:$0xff]  ;;  %v4258_v44 = vld [vmem:[%s4690_s9 + $0x270] sm:$0xff] }
 0x1bb   : > { %3905 = vst.msk [vmem:[%s4790_s17 + $0x118] sm:$0xff] %vm3869_vm3, %v3776_v50  ;;  %v1421_v60 = vadd.f32 %v1420_v54, %v891_v53  ;;  %v4455_v50 = vld [vmem:[%s4690_s9 + $0x269] sm:$0xff]  ;;  %v5237_v57 = vpack.c.bf16 %v4258_v44, %v4257_v46 }
 0x1bc   : > { %v3261_v52 = vadd.f32 %v2995_v51, %v2409_v48  ;;  %v4456_v48 = vld [vmem:[%s4690_s9 + $0x271] sm:$0xff] }
 0x1be   : > { %v3393_v56 = vadd.f32 %v5120_v39, %v3261_v52 }
 0x1c0   : > { %vm3521_vm11 = vcmp.gt.f32.partialorder %v3393_v56, 0.0  ;;  %v3649_v58 = vmul.f32 0.2, %v3393_v56 }
 0x1c1   : > { %v2145_v62 = vpop.f32.mrf.mxu2  ;;  %v894_v3 = vpop.f32.mrf.mxu0 }
 0x1c2   : > { %v3777_v0 = vsel %vm3521_vm11, %v3393_v56, %v3649_v58  ;;  %v2410_v1 = vadd.f32 %v2145_v62, %v1421_v60  ;;  %v2997_v63 = vpop.f32.mrf.mxu3  ;;  %v1423_v2 = vpop.f32.mrf.mxu1  ;;  %v5241_v58 = vpack.c.bf16 %v4456_v48, %v4455_v50 }
 0x1c3   : > { %3906 = vst.msk [vmem:[%s4790_s17 + $0x120] sm:$0xff] %vm3869_vm3, %v3777_v0  ;;  %v1424_v6 = vadd.f32 %v1423_v2, %v894_v3 }
 0x1c4   : > { %v3262_v7 = vadd.f32 %v2997_v63, %v2410_v1  ;;  %4094 = vmatmul.msk.bf16.gmra.mxu0 %vm593_vm1, %v5153_v16 }
 0x1c5   : > { %4162 = vmatmul.msk.bf16.gmra.mxu1 %vm593_vm1, %v5149_v14 }
 0x1c6   : > { %v3394_v8 = vadd.f32 %v5120_v39, %v3262_v7  ;;  %4360 = vmatmul.msk.bf16.gmra.mxu2 %vm593_vm1, %v5193_v4 }
 0x1c7   : > { %4558 = vmatmul.msk.bf16.gmra.mxu3 %vm593_vm1, %v5197_v5 }
 0x1c8   : > { %vm3522_vm12 = vcmp.gt.f32.partialorder %v3394_v8, 0.0  ;;  %v3650_v9 = vmul.f32 0.2, %v3394_v8 }
 0x1c9   : > { %v2148_v11 = vpop.f32.mrf.mxu2  ;;  %v896_v15 = vpop.f32.mrf.mxu0 }
 0x1ca   : > { %v3778_v12 = vsel %vm3522_vm12, %v3394_v8, %v3650_v9  ;;  %v2411_v10 = vadd.f32 %v2148_v11, %v1424_v6  ;;  %v3000_v13 = vpop.f32.mrf.mxu3  ;;  %v1425_v16 = vpop.f32.mrf.mxu1  ;;  %v4259_v8 = vld [vmem:[%s4690_s9 + $0x280] sm:$0xff]  ;;  %v4260_v6 = vld [vmem:[%s4690_s9 + $0x288] sm:$0xff] }
 0x1cb   : > { %3907 = vst.msk [vmem:[%s4790_s17 + $0x128] sm:$0xff] %vm3869_vm3, %v3778_v12  ;;  %v1426_v22 = vadd.f32 %v1425_v16, %v896_v15  ;;  %v4457_v12 = vld [vmem:[%s4690_s9 + $0x281] sm:$0xff]  ;;  %v5259_v19 = vpack.c.bf16 %v4260_v6, %v4259_v8 }
 0x1cc   : > { %v3263_v14 = vadd.f32 %v3000_v13, %v2411_v10  ;;  %v4458_v10 = vld [vmem:[%s4690_s9 + $0x289] sm:$0xff] }
 0x1ce   : > { %v3395_v18 = vadd.f32 %v5120_v39, %v3263_v14 }
 0x1d0   : > { %vm3523_vm13 = vcmp.gt.f32.partialorder %v3395_v18, 0.0  ;;  %v3651_v20 = vmul.f32 0.2, %v3395_v18 }
 0x1d1   : > { %v2150_v25 = vpop.f32.mrf.mxu2  ;;  %v899_v30 = vpop.f32.mrf.mxu0 }
 0x1d2   : > { %v3779_v27 = vsel %vm3523_vm13, %v3395_v18, %v3651_v20  ;;  %v2412_v28 = vadd.f32 %v2150_v25, %v1426_v22  ;;  %v3002_v26 = vpop.f32.mrf.mxu3  ;;  %v1428_v29 = vpop.f32.mrf.mxu1  ;;  %v5263_v20 = vpack.c.bf16 %v4458_v10, %v4457_v12 }
 0x1d3   : > { %3908 = vst.msk [vmem:[%s4790_s17 + $0x130] sm:$0xff] %vm3869_vm3, %v3779_v27  ;;  %v1429_v33 = vadd.f32 %v1428_v29, %v899_v30 }
 0x1d4   : > { %v3264_v34 = vadd.f32 %v3002_v26, %v2412_v28  ;;  %4095 = vmatmul.msk.bf16.gmra.mxu0 %vm593_vm1, %v5175_v43 }
 0x1d5   : > { %4163 = vmatmul.msk.bf16.gmra.mxu1 %vm593_vm1, %v5171_v42 }
 0x1d6   : > { %v3396_v35 = vadd.f32 %v5120_v39, %v3264_v34  ;;  %4361 = vmatmul.msk.bf16.gmra.mxu2 %vm593_vm1, %v5215_v31 }
 0x1d7   : > { %4559 = vmatmul.msk.bf16.gmra.mxu3 %vm593_vm1, %v5219_v32 }
 0x1d8   : > { %vm3524_vm14 = vcmp.gt.f32.partialorder %v3396_v35, 0.0  ;;  %v3652_v24 = vmul.f32 0.2, %v3396_v35 }
 0x1d9   : > { %v2153_v36 = vpop.f32.mrf.mxu2  ;;  %v901_v40 = vpop.f32.mrf.mxu0 }
 0x1da   : > { %v3780_v38 = vsel %vm3524_vm14, %v3396_v35, %v3652_v24  ;;  %v2413_v37 = vadd.f32 %v2153_v36, %v1429_v33  ;;  %v3005_v41 = vpop.f32.mrf.mxu3  ;;  %v1430_v43 = vpop.f32.mrf.mxu1  ;;  %v4261_v35 = vld [vmem:[%s4690_s9 + $0x290] sm:$0xff]  ;;  %v4262_v33 = vld [vmem:[%s4690_s9 + $0x298] sm:$0xff] }
 0x1db   : > { %3909 = vst.msk [vmem:[%s4790_s17 + $0x138] sm:$0xff] %vm3869_vm3, %v3780_v38  ;;  %v1431_v49 = vadd.f32 %v1430_v43, %v901_v40  ;;  %v4459_v38 = vld [vmem:[%s4690_s9 + $0x291] sm:$0xff]  ;;  %v5281_v46 = vpack.c.bf16 %v4262_v33, %v4261_v35 }
 0x1dc   : > { %v3265_v42 = vadd.f32 %v3005_v41, %v2413_v37  ;;  %v4460_v37 = vld [vmem:[%s4690_s9 + $0x299] sm:$0xff] }
 0x1de   : > { %v3397_v45 = vadd.f32 %v5120_v39, %v3265_v42 }
 0x1e0   : > { %vm3525_vm15 = vcmp.gt.f32.partialorder %v3397_v45, 0.0  ;;  %v3653_v47 = vmul.f32 0.2, %v3397_v45 }
 0x1e1   : > { %v2155_v51 = vpop.f32.mrf.mxu2  ;;  %v904_v56 = vpop.f32.mrf.mxu0 }
 0x1e2   : > { %v3781_v53 = vsel %vm3525_vm15, %v3397_v45, %v3653_v47  ;;  %v2414_v54 = vadd.f32 %v2155_v51, %v1431_v49  ;;  %v3007_v52 = vpop.f32.mrf.mxu3  ;;  %v1433_v55 = vpop.f32.mrf.mxu1  ;;  %v5285_v47 = vpack.c.bf16 %v4460_v37, %v4459_v38 }
 0x1e3   : > { %3910 = vst.msk [vmem:[%s4790_s17 + $0x140] sm:$0xff] %vm3869_vm3, %v3781_v53  ;;  %v1434_v59 = vadd.f32 %v1433_v55, %v904_v56 }
 0x1e4   : > { %v3266_v60 = vadd.f32 %v3007_v52, %v2414_v54  ;;  %4096 = vmatmul.msk.bf16.gmra.mxu0 %vm593_vm1, %v5197_v5 }
 0x1e5   : > { %4164 = vmatmul.msk.bf16.gmra.mxu1 %vm593_vm1, %v5193_v4 }
 0x1e6   : > { %v3398_v61 = vadd.f32 %v5120_v39, %v3266_v60  ;;  %4362 = vmatmul.msk.bf16.gmra.mxu2 %vm593_vm1, %v5237_v57 }
 0x1e7   : > { %4560 = vmatmul.msk.bf16.gmra.mxu3 %vm593_vm1, %v5241_v58 }
 0x1e8   : > { %vm3526_vm0 = vcmp.gt.f32.partialorder %v3398_v61, 0.0  ;;  %v3654_v62 = vmul.f32 0.2, %v3398_v61 }
 0x1e9   : > { %v2158_v0 = vpop.f32.mrf.mxu2  ;;  %v906_v2 = vpop.f32.mrf.mxu0 }
 0x1ea   : > { %v3782_v1 = vsel %vm3526_vm0, %v3398_v61, %v3654_v62  ;;  %v2415_v63 = vadd.f32 %v2158_v0, %v1434_v59  ;;  %v3010_v3 = vpop.f32.mrf.mxu3  ;;  %v1435_v5 = vpop.f32.mrf.mxu1  ;;  %v4263_v61 = vld [vmem:[%s4690_s9 + $0x2a8] sm:$0xff]  ;;  %v4264_v59 = vld [vmem:[%s4690_s9 + $0x2b0] sm:$0xff] }
 0x1eb   : > { %3911 = vst.msk [vmem:[%s4790_s17 + $0x148] sm:$0xff] %vm3869_vm3, %v3782_v1  ;;  %v1436_v11 = vadd.f32 %v1435_v5, %v906_v2  ;;  %v4461_v1 = vld [vmem:[%s4690_s9 + $0x2a9] sm:$0xff]  ;;  %v5303_v8 = vpack.c.bf16 %v4264_v59, %v4263_v61 }
 0x1ec   : > { %v3267_v4 = vadd.f32 %v3010_v3, %v2415_v63  ;;  %v4462_v63 = vld [vmem:[%s4690_s9 + $0x2b1] sm:$0xff] }
 0x1ee   : > { %v3399_v7 = vadd.f32 %v5120_v39, %v3267_v4 }
 0x1f0   : > { %vm3527_vm2 = vcmp.gt.f32.partialorder %v3399_v7, 0.0  ;;  %v3655_v9 = vmul.f32 0.2, %v3399_v7 }
 0x1f1   : > { %v2160_v13 = vpop.f32.mrf.mxu2  ;;  %v909_v18 = vpop.f32.mrf.mxu0 }
 0x1f2   : > { %v3783_v15 = vsel %vm3527_vm2, %v3399_v7, %v3655_v9  ;;  %v2416_v16 = vadd.f32 %v2160_v13, %v1436_v11  ;;  %v3012_v14 = vpop.f32.mrf.mxu3  ;;  %v1438_v17 = vpop.f32.mrf.mxu1  ;;  %v5307_v9 = vpack.c.bf16 %v4462_v63, %v4461_v1 }
 0x1f3   : > { %3912 = vst.msk [vmem:[%s4790_s17 + $0x150] sm:$0xff] %vm3869_vm3, %v3783_v15  ;;  %v1439_v21 = vadd.f32 %v1438_v17, %v909_v18 }
 0x1f4   : > { %v3268_v22 = vadd.f32 %v3012_v14, %v2416_v16  ;;  %4097 = vmatmul.msk.bf16.gmra.mxu0 %vm593_vm1, %v5219_v32 }
 0x1f5   : > { %4165 = vmatmul.msk.bf16.gmra.mxu1 %vm593_vm1, %v5215_v31 }
 0x1f6   : > { %v3400_v23 = vadd.f32 %v5120_v39, %v3268_v22  ;;  %4363 = vmatmul.msk.bf16.gmra.mxu2 %vm593_vm1, %v5259_v19 }
 0x1f7   : > { %4561 = vmatmul.msk.bf16.gmra.mxu3 %vm593_vm1, %v5263_v20 }
 0x1f8   : > { %vm3528_vm4 = vcmp.gt.f32.partialorder %v3400_v23, 0.0  ;;  %v3656_v25 = vmul.f32 0.2, %v3400_v23 }
 0x1f9   : > { %v2163_v27 = vpop.f32.mrf.mxu2  ;;  %v911_v29 = vpop.f32.mrf.mxu0 }
 0x1fa   : > { %v3784_v28 = vsel %vm3528_vm4, %v3400_v23, %v3656_v25  ;;  %v2417_v26 = vadd.f32 %v2163_v27, %v1439_v21  ;;  %v3015_v30 = vpop.f32.mrf.mxu3  ;;  %v1440_v32 = vpop.f32.mrf.mxu1  ;;  %v4265_v23 = vld [vmem:[%s4690_s9 + $0x2b8] sm:$0xff]  ;;  %v4266_v21 = vld [vmem:[%s4690_s9 + $0x2c0] sm:$0xff] }
 0x1fb   : > { %3913 = vst.msk [vmem:[%s4790_s17 + $0x158] sm:$0xff] %vm3869_vm3, %v3784_v28  ;;  %v1441_v36 = vadd.f32 %v1440_v32, %v911_v29  ;;  %v4463_v28 = vld [vmem:[%s4690_s9 + $0x2b9] sm:$0xff]  ;;  %v5325_v35 = vpack.c.bf16 %v4266_v21, %v4265_v23 }
 0x1fc   : > { %v3269_v31 = vadd.f32 %v3015_v30, %v2417_v26  ;;  %v4464_v26 = vld [vmem:[%s4690_s9 + $0x2c1] sm:$0xff] }
 0x1fe   : > { %v3401_v34 = vadd.f32 %v5120_v39, %v3269_v31 }
 0x200   : > { %vm3529_vm5 = vcmp.gt.f32.partialorder %v3401_v34, 0.0  ;;  %v3657_v24 = vmul.f32 0.2, %v3401_v34 }
 0x201   : > { %v2165_v41 = vpop.f32.mrf.mxu2  ;;  %v914_v45 = vpop.f32.mrf.mxu0 }
 0x202   : > { %v3785_v40 = vsel %vm3529_vm5, %v3401_v34, %v3657_v24  ;;  %v2418_v43 = vadd.f32 %v2165_v41, %v1441_v36  ;;  %v3017_v42 = vpop.f32.mrf.mxu3  ;;  %v1443_v44 = vpop.f32.mrf.mxu1  ;;  %v5329_v24 = vpack.c.bf16 %v4464_v26, %v4463_v28 }
 0x203   : > { %3914 = vst.msk [vmem:[%s4790_s17 + $0x160] sm:$0xff] %vm3869_vm3, %v3785_v40  ;;  %v1444_v48 = vadd.f32 %v1443_v44, %v914_v45 }
 0x204   : > { %v3270_v49 = vadd.f32 %v3017_v42, %v2418_v43  ;;  %4098 = vmatmul.msk.bf16.gmra.mxu0 %vm593_vm1, %v5241_v58 }
 0x205   : > { %4166 = vmatmul.msk.bf16.gmra.mxu1 %vm593_vm1, %v5237_v57 }
 0x206   : > { %v3402_v50 = vadd.f32 %v5120_v39, %v3270_v49  ;;  %4364 = vmatmul.msk.bf16.gmra.mxu2 %vm593_vm1, %v5281_v46 }
 0x207   : > { %4562 = vmatmul.msk.bf16.gmra.mxu3 %vm593_vm1, %v5285_v47 }
 0x208   : > { %vm3530_vm6 = vcmp.gt.f32.partialorder %v3402_v50, 0.0  ;;  %v3658_v51 = vmul.f32 0.2, %v3402_v50 }
 0x209   : > { %v2168_v53 = vpop.f32.mrf.mxu2  ;;  %v916_v55 = vpop.f32.mrf.mxu0 }
 0x20a   : > { %v3786_v54 = vsel %vm3530_vm6, %v3402_v50, %v3658_v51  ;;  %v2419_v52 = vadd.f32 %v2168_v53, %v1444_v48  ;;  %v3020_v56 = vpop.f32.mrf.mxu3  ;;  %v1445_v58 = vpop.f32.mrf.mxu1  ;;  %v4267_v50 = vld [vmem:[%s4690_s9 + $0x2d0] sm:$0xff]  ;;  %v4268_v48 = vld [vmem:[%s4690_s9 + $0x2d8] sm:$0xff] }
 0x20b   : > { %3915 = vst.msk [vmem:[%s4790_s17 + $0x168] sm:$0xff] %vm3869_vm3, %v3786_v54  ;;  %v1446_v0 = vadd.f32 %v1445_v58, %v916_v55  ;;  %v4465_v54 = vld [vmem:[%s4690_s9 + $0x2d1] sm:$0xff]  ;;  %v5347_v61 = vpack.c.bf16 %v4268_v48, %v4267_v50 }
 0x20c   : > { %v3271_v57 = vadd.f32 %v3020_v56, %v2419_v52  ;;  %v4466_v52 = vld [vmem:[%s4690_s9 + $0x2d9] sm:$0xff] }
 0x20e   : > { %v3403_v60 = vadd.f32 %v5120_v39, %v3271_v57 }
 0x210   : > { %vm3531_vm7 = vcmp.gt.f32.partialorder %v3403_v60, 0.0  ;;  %v3659_v62 = vmul.f32 0.2, %v3403_v60 }
 0x211   : > { %v2170_v3 = vpop.f32.mrf.mxu2  ;;  %v919_v7 = vpop.f32.mrf.mxu0 }
 0x212   : > { %v3787_v2 = vsel %vm3531_vm7, %v3403_v60, %v3659_v62  ;;  %v2420_v5 = vadd.f32 %v2170_v3, %v1446_v0  ;;  %v3022_v4 = vpop.f32.mrf.mxu3  ;;  %v1448_v6 = vpop.f32.mrf.mxu1  ;;  %v5351_v62 = vpack.c.bf16 %v4466_v52, %v4465_v54 }
 0x213   : > { %3916 = vst.msk [vmem:[%s4790_s17 + $0x170] sm:$0xff] %vm3869_vm3, %v3787_v2  ;;  %v1449_v10 = vadd.f32 %v1448_v6, %v919_v7 }
 0x214   : > { %v3272_v11 = vadd.f32 %v3022_v4, %v2420_v5  ;;  %4099 = vmatmul.msk.bf16.gmra.mxu0 %vm593_vm1, %v5263_v20 }
 0x215   : > { %4167 = vmatmul.msk.bf16.gmra.mxu1 %vm593_vm1, %v5259_v19 }
 0x216   : > { %v3404_v12 = vadd.f32 %v5120_v39, %v3272_v11  ;;  %4365 = vmatmul.msk.bf16.gmra.mxu2 %vm593_vm1, %v5303_v8 }
 0x217   : > { %4563 = vmatmul.msk.bf16.gmra.mxu3 %vm593_vm1, %v5307_v9 }
 0x218   : > { %vm3532_vm8 = vcmp.gt.f32.partialorder %v3404_v12, 0.0  ;;  %v3660_v13 = vmul.f32 0.2, %v3404_v12 }
 0x219   : > { %v2173_v15 = vpop.f32.mrf.mxu2  ;;  %v921_v17 = vpop.f32.mrf.mxu0 }
 0x21a   : > { %v3788_v16 = vsel %vm3532_vm8, %v3404_v12, %v3660_v13  ;;  %v2421_v14 = vadd.f32 %v2173_v15, %v1449_v10  ;;  %v3025_v18 = vpop.f32.mrf.mxu3  ;;  %v1450_v20 = vpop.f32.mrf.mxu1  ;;  %v4269_v12 = vld [vmem:[%s4690_s9 + $0x2e0] sm:$0xff]  ;;  %v4270_v10 = vld [vmem:[%s4690_s9 + $0x2e8] sm:$0xff] }
 0x21b   : > { %3917 = vst.msk [vmem:[%s4790_s17 + $0x178] sm:$0xff] %vm3869_vm3, %v3788_v16  ;;  %v1451_v27 = vadd.f32 %v1450_v20, %v921_v17  ;;  %v4467_v16 = vld [vmem:[%s4690_s9 + $0x2e1] sm:$0xff]  ;;  %v5369_v23 = vpack.c.bf16 %v4270_v10, %v4269_v12 }
 0x21c   : > { %v3273_v19 = vadd.f32 %v3025_v18, %v2421_v14  ;;  %v4468_v14 = vld [vmem:[%s4690_s9 + $0x2e9] sm:$0xff] }
 0x21e   : > { %v3405_v22 = vadd.f32 %v5120_v39, %v3273_v19 }
 0x220   : > { %vm3533_vm9 = vcmp.gt.f32.partialorder %v3405_v22, 0.0  ;;  %v3661_v25 = vmul.f32 0.2, %v3405_v22 }
 0x221   : > { %v2175_v30 = vpop.f32.mrf.mxu2  ;;  %v924_v34 = vpop.f32.mrf.mxu0 }
 0x222   : > { %v3789_v29 = vsel %vm3533_vm9, %v3405_v22, %v3661_v25  ;;  %v2422_v32 = vadd.f32 %v2175_v30, %v1451_v27  ;;  %v3027_v31 = vpop.f32.mrf.mxu3  ;;  %v1453_v33 = vpop.f32.mrf.mxu1  ;;  %v5373_v25 = vpack.c.bf16 %v4468_v14, %v4467_v16 }
 0x223   : > { %3918 = vst.msk [vmem:[%s4790_s17 + $0x180] sm:$0xff] %vm3869_vm3, %v3789_v29  ;;  %v1454_v37 = vadd.f32 %v1453_v33, %v924_v34 }
 0x224   : > { %v3274_v36 = vadd.f32 %v3027_v31, %v2422_v32  ;;  %4100 = vmatmul.msk.bf16.gmra.mxu0 %vm593_vm1, %v5285_v47 }
 0x225   : > { %4168 = vmatmul.msk.bf16.gmra.mxu1 %vm593_vm1, %v5281_v46 }
 0x226   : > { %v3406_v38 = vadd.f32 %v5120_v39, %v3274_v36  ;;  %4366 = vmatmul.msk.bf16.gmra.mxu2 %vm593_vm1, %v5325_v35 }
 0x227   : > { %4564 = vmatmul.msk.bf16.gmra.mxu3 %vm593_vm1, %v5329_v24 }
 0x228   : > { %vm3534_vm10 = vcmp.gt.f32.partialorder %v3406_v38, 0.0  ;;  %v3662_v41 = vmul.f32 0.2, %v3406_v38 }
 0x229   : > { %v2178_v40 = vpop.f32.mrf.mxu2  ;;  %v926_v44 = vpop.f32.mrf.mxu0 }
 0x22a   : > { %v3790_v43 = vsel %vm3534_vm10, %v3406_v38, %v3662_v41  ;;  %v2423_v42 = vadd.f32 %v2178_v40, %v1454_v37  ;;  %v3030_v45 = vpop.f32.mrf.mxu3  ;;  %v1455_v47 = vpop.f32.mrf.mxu1  ;;  %v4271_v38 = vld [vmem:[%s4690_s9 + $0x2f8] sm:$0xff]  ;;  %v4272_v37 = vld [vmem:[%s4690_s9 + $0x300] sm:$0xff] }
 0x22b   : > { %3919 = vst.msk [vmem:[%s4790_s17 + $0x188] sm:$0xff] %vm3869_vm3, %v3790_v43  ;;  %v1456_v53 = vadd.f32 %v1455_v47, %v926_v44  ;;  %v4469_v43 = vld [vmem:[%s4690_s9 + $0x2f9] sm:$0xff]  ;;  %v5391_v50 = vpack.c.bf16 %v4272_v37, %v4271_v38 }
 0x22c   : > { %v3275_v46 = vadd.f32 %v3030_v45, %v2423_v42  ;;  %v4470_v42 = vld [vmem:[%s4690_s9 + $0x301] sm:$0xff] }
 0x22e   : > { %v3407_v49 = vadd.f32 %v5120_v39, %v3275_v46 }
 0x230   : > { %vm3535_vm11 = vcmp.gt.f32.partialorder %v3407_v49, 0.0  ;;  %v3663_v51 = vmul.f32 0.2, %v3407_v49 }
 0x231   : > { %v2180_v56 = vpop.f32.mrf.mxu2  ;;  %v929_v60 = vpop.f32.mrf.mxu0 }
 0x232   : > { %v3791_v55 = vsel %vm3535_vm11, %v3407_v49, %v3663_v51  ;;  %v2424_v58 = vadd.f32 %v2180_v56, %v1456_v53  ;;  %v3032_v57 = vpop.f32.mrf.mxu3  ;;  %v1458_v59 = vpop.f32.mrf.mxu1  ;;  %v5395_v51 = vpack.c.bf16 %v4470_v42, %v4469_v43 }
 0x233   : > { %3920 = vst.msk [vmem:[%s4790_s17 + $0x190] sm:$0xff] %vm3869_vm3, %v3791_v55  ;;  %v1459_v63 = vadd.f32 %v1458_v59, %v929_v60 }
 0x234   : > { %v3276_v0 = vadd.f32 %v3032_v57, %v2424_v58  ;;  %4101 = vmatmul.msk.bf16.gmra.mxu0 %vm593_vm1, %v5307_v9 }
 0x235   : > { %4169 = vmatmul.msk.bf16.gmra.mxu1 %vm593_vm1, %v5303_v8 }
 0x236   : > { %v3408_v1 = vadd.f32 %v5120_v39, %v3276_v0  ;;  %4367 = vmatmul.msk.bf16.gmra.mxu2 %vm593_vm1, %v5347_v61 }
 0x237   : > { %4565 = vmatmul.msk.bf16.gmra.mxu3 %vm593_vm1, %v5351_v62 }
 0x238   : > { %vm3536_vm12 = vcmp.gt.f32.partialorder %v3408_v1, 0.0  ;;  %v3664_v3 = vmul.f32 0.2, %v3408_v1 }
 0x239   : > { %v2183_v2 = vpop.f32.mrf.mxu2  ;;  %v931_v6 = vpop.f32.mrf.mxu0 }
 0x23a   : > { %v3792_v5 = vsel %vm3536_vm12, %v3408_v1, %v3664_v3  ;;  %v2425_v4 = vadd.f32 %v2183_v2, %v1459_v63  ;;  %v3035_v7 = vpop.f32.mrf.mxu3  ;;  %v1460_v9 = vpop.f32.mrf.mxu1  ;;  %v4273_v1 = vld [vmem:[%s4690_s9 + $0x308] sm:$0xff]  ;;  %v4274_v63 = vld [vmem:[%s4690_s9 + $0x310] sm:$0xff] }
 0x23b   : > { %3921 = vst.msk [vmem:[%s4790_s17 + $0x198] sm:$0xff] %vm3869_vm3, %v3792_v5  ;;  %v1461_v15 = vadd.f32 %v1460_v9, %v931_v6  ;;  %v4471_v5 = vld [vmem:[%s4690_s9 + $0x309] sm:$0xff]  ;;  %v5413_v12 = vpack.c.bf16 %v4274_v63, %v4273_v1 }
 0x23c   : > { %v3277_v8 = vadd.f32 %v3035_v7, %v2425_v4  ;;  %v4472_v4 = vld [vmem:[%s4690_s9 + $0x311] sm:$0xff] }
 0x23e   : > { %v3409_v11 = vadd.f32 %v5120_v39, %v3277_v8 }
 0x240   : > { %vm3537_vm13 = vcmp.gt.f32.partialorder %v3409_v11, 0.0  ;;  %v3665_v13 = vmul.f32 0.2, %v3409_v11 }
 0x241   : > { %v2185_v18 = vpop.f32.mrf.mxu2  ;;  %v934_v22 = vpop.f32.mrf.mxu0 }
 0x242   : > { %v3793_v17 = vsel %vm3537_vm13, %v3409_v11, %v3665_v13  ;;  %v2426_v20 = vadd.f32 %v2185_v18, %v1461_v15  ;;  %v3037_v19 = vpop.f32.mrf.mxu3  ;;  %v1463_v21 = vpop.f32.mrf.mxu1  ;;  %v5417_v13 = vpack.c.bf16 %v4472_v4, %v4471_v5 }
 0x243   : > { %3922 = vst.msk [vmem:[%s4790_s17 + $0x1a0] sm:$0xff] %vm3869_vm3, %v3793_v17  ;;  %v1464_v26 = vadd.f32 %v1463_v21, %v934_v22 }
 0x244   : > { %v3278_v27 = vadd.f32 %v3037_v19, %v2426_v20  ;;  %4102 = vmatmul.msk.bf16.gmra.mxu0 %vm593_vm1, %v5329_v24 }
 0x245   : > { %4170 = vmatmul.msk.bf16.gmra.mxu1 %vm593_vm1, %v5325_v35 }
 0x246   : > { %v3410_v28 = vadd.f32 %v5120_v39, %v3278_v27  ;;  %4368 = vmatmul.msk.bf16.gmra.mxu2 %vm593_vm1, %v5369_v23 }
 0x247   : > { %4566 = vmatmul.msk.bf16.gmra.mxu3 %vm593_vm1, %v5373_v25 }
 0x248   : > { %vm3538_vm14 = vcmp.gt.f32.partialorder %v3410_v28, 0.0  ;;  %v3666_v30 = vmul.f32 0.2, %v3410_v28 }
 0x249   : > { %v2188_v29 = vpop.f32.mrf.mxu2  ;;  %v936_v33 = vpop.f32.mrf.mxu0 }
 0x24a   : > { %v3794_v32 = vsel %vm3538_vm14, %v3410_v28, %v3666_v30  ;;  %v2427_v31 = vadd.f32 %v2188_v29, %v1464_v26  ;;  %v3040_v34 = vpop.f32.mrf.mxu3  ;;  %v1465_v24 = vpop.f32.mrf.mxu1  ;;  %v4275_v28 = vld [vmem:[%s4690_s9 + $0x320] sm:$0xff]  ;;  %v4276_v26 = vld [vmem:[%s4690_s9 + $0x328] sm:$0xff] }
 0x24b   : > { %3923 = vst.msk [vmem:[%s4790_s17 + $0x1a8] sm:$0xff] %vm3869_vm3, %v3794_v32  ;;  %v1466_v40 = vadd.f32 %v1465_v24, %v936_v33  ;;  %v4473_v32 = vld [vmem:[%s4690_s9 + $0x321] sm:$0xff]  ;;  %v5435_v38 = vpack.c.bf16 %v4276_v26, %v4275_v28 }
 0x24c   : > { %v3279_v35 = vadd.f32 %v3040_v34, %v2427_v31  ;;  %v4474_v31 = vld [vmem:[%s4690_s9 + $0x329] sm:$0xff] }
 0x24e   : > { %v3411_v36 = vadd.f32 %v5120_v39, %v3279_v35 }
 0x250   : > { %vm3539_vm15 = vcmp.gt.f32.partialorder %v3411_v36, 0.0  ;;  %v3667_v41 = vmul.f32 0.2, %v3411_v36 }
 0x251   : > { %v2190_v45 = vpop.f32.mrf.mxu2  ;;  %v939_v49 = vpop.f32.mrf.mxu0 }
 0x252   : > { %v3795_v44 = vsel %vm3539_vm15, %v3411_v36, %v3667_v41  ;;  %v2428_v47 = vadd.f32 %v2190_v45, %v1466_v40  ;;  %v3042_v46 = vpop.f32.mrf.mxu3  ;;  %v1468_v48 = vpop.f32.mrf.mxu1  ;;  %v5439_v41 = vpack.c.bf16 %v4474_v31, %v4473_v32 }
 0x253   : > { %3924 = vst.msk [vmem:[%s4790_s17 + $0x1b0] sm:$0xff] %vm3869_vm3, %v3795_v44  ;;  %v1469_v52 = vadd.f32 %v1468_v48, %v939_v49 }
 0x254   : > { %v3280_v53 = vadd.f32 %v3042_v46, %v2428_v47  ;;  %4103 = vmatmul.msk.bf16.gmra.mxu0 %vm593_vm1, %v5351_v62 }
 0x255   : > { %4171 = vmatmul.msk.bf16.gmra.mxu1 %vm593_vm1, %v5347_v61 }
 0x256   : > { %v3412_v54 = vadd.f32 %v5120_v39, %v3280_v53  ;;  %4369 = vmatmul.msk.bf16.gmra.mxu2 %vm593_vm1, %v5391_v50 }
 0x257   : > { %4567 = vmatmul.msk.bf16.gmra.mxu3 %vm593_vm1, %v5395_v51 }
 0x258   : > { %vm3540_vm0 = vcmp.gt.f32.partialorder %v3412_v54, 0.0  ;;  %v3668_v56 = vmul.f32 0.2, %v3412_v54 }
 0x259   : > { %v2193_v55 = vpop.f32.mrf.mxu2  ;;  %v941_v59 = vpop.f32.mrf.mxu0 }
 0x25a   : > { %v3796_v58 = vsel %vm3540_vm0, %v3412_v54, %v3668_v56  ;;  %v2429_v57 = vadd.f32 %v2193_v55, %v1469_v52  ;;  %v3045_v60 = vpop.f32.mrf.mxu3  ;;  %v1470_v62 = vpop.f32.mrf.mxu1  ;;  %v4277_v54 = vld [vmem:[%s4690_s9 + $0x330] sm:$0xff]  ;;  %v4278_v52 = vld [vmem:[%s4690_s9 + $0x338] sm:$0xff] }
 0x25b   : > { %3925 = vst.msk [vmem:[%s4790_s17 + $0x1b8] sm:$0xff] %vm3869_vm3, %v3796_v58  ;;  %v1471_v2 = vadd.f32 %v1470_v62, %v941_v59  ;;  %v4475_v58 = vld [vmem:[%s4690_s9 + $0x331] sm:$0xff]  ;;  %v5457_v1 = vpack.c.bf16 %v4278_v52, %v4277_v54 }
 0x25c   : > { %v3281_v61 = vadd.f32 %v3045_v60, %v2429_v57  ;;  %v4476_v57 = vld [vmem:[%s4690_s9 + $0x339] sm:$0xff] }
 0x25e   : > { %v3413_v0 = vadd.f32 %v5120_v39, %v3281_v61 }
 0x260   : > { %vm3541_vm2 = vcmp.gt.f32.partialorder %v3413_v0, 0.0  ;;  %v3669_v3 = vmul.f32 0.2, %v3413_v0 }
 0x261   : > { %v2195_v7 = vpop.f32.mrf.mxu2  ;;  %v944_v11 = vpop.f32.mrf.mxu0 }
 0x262   : > { %v3797_v6 = vsel %vm3541_vm2, %v3413_v0, %v3669_v3  ;;  %v2430_v9 = vadd.f32 %v2195_v7, %v1471_v2  ;;  %v3047_v8 = vpop.f32.mrf.mxu3  ;;  %v1473_v10 = vpop.f32.mrf.mxu1  ;;  %v5461_v3 = vpack.c.bf16 %v4476_v57, %v4475_v58  ;;  %v5468_v2 = vld [vmem:[%s6059_s2] ss:$0 sm:$0xff] }
 0x263   : > { %3926 = vst.msk [vmem:[%s4790_s17 + $0x1c0] sm:$0xff] %vm3869_vm3, %v3797_v6  ;;  %v1474_v14 = vadd.f32 %v1473_v10, %v944_v11 }
 0x264   : > { %v3282_v15 = vadd.f32 %v3047_v8, %v2430_v9  ;;  %4104 = vmatmul.msk.bf16.gmra.mxu0 %vm593_vm1, %v5373_v25 }
 0x265   : > { %4172 = vmatmul.msk.bf16.gmra.mxu1 %vm593_vm1, %v5369_v23 }
 0x266   : > { %v3414_v16 = vadd.f32 %v5120_v39, %v3282_v15  ;;  %4370 = vmatmul.msk.bf16.gmra.mxu2 %vm593_vm1, %v5413_v12 }
 0x267   : > { %4568 = vmatmul.msk.bf16.gmra.mxu3 %vm593_vm1, %v5417_v13 }
 0x268   : > { %vm3542_vm4 = vcmp.gt.f32.partialorder %v3414_v16, 0.0  ;;  %v3670_v18 = vmul.f32 0.2, %v3414_v16 }
 0x269   : > { %v2198_v17 = vpop.f32.mrf.mxu2  ;;  %v946_v21 = vpop.f32.mrf.mxu0 }
 0x26a   : > { %v3798_v20 = vsel %vm3542_vm4, %v3414_v16, %v3670_v18  ;;  %v2431_v19 = vadd.f32 %v2198_v17, %v1474_v14  ;;  %v3050_v22 = vpop.f32.mrf.mxu3  ;;  %v1475_v25 = vpop.f32.mrf.mxu1  ;;  %v4279_v16 = vld [vmem:[%s4690_s9 + $0x348] sm:$0xff]  ;;  %v4280_v14 = vld [vmem:[%s4690_s9 + $0x350] sm:$0xff] }
 0x26b   : > { %3927 = vst.msk [vmem:[%s4790_s17 + $0x1c8] sm:$0xff] %vm3869_vm3, %v3798_v20  ;;  %v1476_v29 = vadd.f32 %v1475_v25, %v946_v21  ;;  %v4477_v20 = vld [vmem:[%s4690_s9 + $0x349] sm:$0xff]  ;;  %v5484_v28 = vpack.c.bf16 %v4280_v14, %v4279_v16 }
 0x26c   : > { %v3283_v23 = vadd.f32 %v3050_v22, %v2431_v19  ;;  %v4478_v19 = vld [vmem:[%s4690_s9 + $0x351] sm:$0xff] }
 0x26e   : > { %v3415_v27 = vadd.f32 %v5120_v39, %v3283_v23 }
 0x270   : > { %vm3543_vm5 = vcmp.gt.f32.partialorder %v3415_v27, 0.0  ;;  %v3671_v30 = vmul.f32 0.2, %v3415_v27 }
 0x271   : > { %v2200_v34 = vpop.f32.mrf.mxu2  ;;  %v949_v36 = vpop.f32.mrf.mxu0 }
 0x272   : > { %v3799_v33 = vsel %vm3543_vm5, %v3415_v27, %v3671_v30  ;;  %v2432_v24 = vadd.f32 %v2200_v34, %v1476_v29  ;;  %v3052_v35 = vpop.f32.mrf.mxu3  ;;  %v1478_v37 = vpop.f32.mrf.mxu1  ;;  %v5488_v30 = vpack.c.bf16 %v4478_v19, %v4477_v20 }
 0x273   : > { %3928 = vst.msk [vmem:[%s4790_s17 + $0x1d0] sm:$0xff] %vm3869_vm3, %v3799_v33  ;;  %v1479_v42 = vadd.f32 %v1478_v37, %v949_v36 }
 0x274   : > { %v3284_v40 = vadd.f32 %v3052_v35, %v2432_v24  ;;  %4105 = vmatmul.msk.bf16.gmra.mxu0 %vm593_vm1, %v5395_v51 }
 0x275   : > { %4173 = vmatmul.msk.bf16.gmra.mxu1 %vm593_vm1, %v5391_v50 }
 0x276   : > { %v3416_v43 = vadd.f32 %v5120_v39, %v3284_v40  ;;  %4371 = vmatmul.msk.bf16.gmra.mxu2 %vm593_vm1, %v5435_v38 }
 0x277   : > { %4569 = vmatmul.msk.bf16.gmra.mxu3 %vm593_vm1, %v5439_v41 }
 0x278   : > { %vm3544_vm6 = vcmp.gt.f32.partialorder %v3416_v43, 0.0  ;;  %v3672_v45 = vmul.f32 0.2, %v3416_v43 }
 0x279   : > { %v2203_v44 = vpop.f32.mrf.mxu2  ;;  %v951_v48 = vpop.f32.mrf.mxu0 }
 0x27a   : > { %v3800_v47 = vsel %vm3544_vm6, %v3416_v43, %v3672_v45  ;;  %v2433_v46 = vadd.f32 %v2203_v44, %v1479_v42  ;;  %v3055_v49 = vpop.f32.mrf.mxu3  ;;  %v1480_v51 = vpop.f32.mrf.mxu1  ;;  %v4281_v43 = vld [vmem:[%s4690_s9 + $0x358] sm:$0xff]  ;;  %v4282_v42 = vld [vmem:[%s4690_s9 + $0x360] sm:$0xff] }
 0x27b   : > { %3929 = vst.msk [vmem:[%s4790_s17 + $0x1d8] sm:$0xff] %vm3869_vm3, %v3800_v47  ;;  %v1481_v55 = vadd.f32 %v1480_v51, %v951_v48  ;;  %v4479_v47 = vld [vmem:[%s4690_s9 + $0x359] sm:$0xff]  ;;  %v5506_v54 = vpack.c.bf16 %v4282_v42, %v4281_v43 }
 0x27c   : > { %v3285_v50 = vadd.f32 %v3055_v49, %v2433_v46  ;;  %v4480_v46 = vld [vmem:[%s4690_s9 + $0x361] sm:$0xff] }
 0x27e   : > { %v3417_v53 = vadd.f32 %v5120_v39, %v3285_v50 }
 0x280   : > { %vm3545_vm7 = vcmp.gt.f32.partialorder %v3417_v53, 0.0  ;;  %v3673_v56 = vmul.f32 0.2, %v3417_v53 }
 0x281   : > { %v2205_v60 = vpop.f32.mrf.mxu2  ;;  %v954_v0 = vpop.f32.mrf.mxu0 }
 0x282   : > { %v3801_v59 = vsel %vm3545_vm7, %v3417_v53, %v3673_v56  ;;  %v2434_v62 = vadd.f32 %v2205_v60, %v1481_v55  ;;  %v3057_v61 = vpop.f32.mrf.mxu3  ;;  %v1483_v63 = vpop.f32.mrf.mxu1  ;;  %v5510_v56 = vpack.c.bf16 %v4480_v46, %v4479_v47 }
 0x283   : > { %3930 = vst.msk [vmem:[%s4790_s17 + $0x1e0] sm:$0xff] %vm3869_vm3, %v3801_v59  ;;  %v1484_v4 = vadd.f32 %v1483_v63, %v954_v0 }
 0x284   : > { %v3286_v39 = vadd.f32 %v3057_v61, %v2434_v62  ;;  %4106 = vmatmul.msk.bf16.gmra.mxu0 %vm593_vm1, %v5417_v13 }
 0x285   : > { %4174 = vmatmul.msk.bf16.gmra.mxu1 %vm593_vm1, %v5413_v12 }
 0x286   : > { %v3418_v5 = vadd.f32 %v5468_v2, %v3286_v39  ;;  %4372 = vmatmul.msk.bf16.gmra.mxu2 %vm593_vm1, %v5457_v1 }
 0x287   : > { %4570 = vmatmul.msk.bf16.gmra.mxu3 %vm593_vm1, %v5461_v3 }
 0x288   : > { %vm3546_vm8 = vcmp.gt.f32.partialorder %v3418_v5, 0.0  ;;  %v3674_v7 = vmul.f32 0.2, %v3418_v5 }
 0x289   : > { %v2208_v6 = vpop.f32.mrf.mxu2  ;;  %v956_v10 = vpop.f32.mrf.mxu0 }
 0x28a   : > { %v3802_v9 = vsel %vm3546_vm8, %v3418_v5, %v3674_v7  ;;  %v2435_v8 = vadd.f32 %v2208_v6, %v1484_v4  ;;  %v3060_v11 = vpop.f32.mrf.mxu3  ;;  %v1485_v13 = vpop.f32.mrf.mxu1  ;;  %v4283_v5 = vld [vmem:[%s4690_s9 + $0x370] sm:$0xff]  ;;  %v4284_v4 = vld [vmem:[%s4690_s9 + $0x378] sm:$0xff] }
 0x28b   : > { %3931 = vst.msk [vmem:[%s4790_s17 + $0x1e8] sm:$0xff] %vm3869_vm3, %v3802_v9  ;;  %v1486_v17 = vadd.f32 %v1485_v13, %v956_v10  ;;  %v4481_v9 = vld [vmem:[%s4690_s9 + $0x371] sm:$0xff]  ;;  %v5528_v16 = vpack.c.bf16 %v4284_v4, %v4283_v5 }
 0x28c   : > { %v3287_v12 = vadd.f32 %v3060_v11, %v2435_v8  ;;  %v4482_v8 = vld [vmem:[%s4690_s9 + $0x379] sm:$0xff] }
 0x28e   : > { %v3419_v15 = vadd.f32 %v5468_v2, %v3287_v12 }
 0x290   : > { %vm3547_vm9 = vcmp.gt.f32.partialorder %v3419_v15, 0.0  ;;  %v3675_v18 = vmul.f32 0.2, %v3419_v15 }
 0x291   : > { %v2210_v22 = vpop.f32.mrf.mxu2  ;;  %v959_v27 = vpop.f32.mrf.mxu0 }
 0x292   : > { %v3803_v21 = vsel %vm3547_vm9, %v3419_v15, %v3675_v18  ;;  %v2436_v25 = vadd.f32 %v2210_v22, %v1486_v17  ;;  %v3062_v23 = vpop.f32.mrf.mxu3  ;;  %v1488_v26 = vpop.f32.mrf.mxu1  ;;  %v5532_v18 = vpack.c.bf16 %v4482_v8, %v4481_v9 }
 0x293   : > { %3932 = vst.msk [vmem:[%s4790_s17 + $0x1f0] sm:$0xff] %vm3869_vm3, %v3803_v21  ;;  %v1489_v31 = vadd.f32 %v1488_v26, %v959_v27 }
 0x294   : > { %v3288_v29 = vadd.f32 %v3062_v23, %v2436_v25  ;;  %4107 = vmatmul.msk.bf16.gmra.mxu0 %vm593_vm1, %v5439_v41 }
 0x295   : > { %4175 = vmatmul.msk.bf16.gmra.mxu1 %vm593_vm1, %v5435_v38 }
 0x296   : > { %v3420_v32 = vadd.f32 %v5468_v2, %v3288_v29  ;;  %4373 = vmatmul.msk.bf16.gmra.mxu2 %vm593_vm1, %v5484_v28 }
 0x297   : > { %4571 = vmatmul.msk.bf16.gmra.mxu3 %vm593_vm1, %v5488_v30 }
 0x298   : > { %vm3548_vm10 = vcmp.gt.f32.partialorder %v3420_v32, 0.0  ;;  %v3676_v34 = vmul.f32 0.2, %v3420_v32 }
 0x299   : > { %v2213_v33 = vpop.f32.mrf.mxu2  ;;  %v961_v37 = vpop.f32.mrf.mxu0 }
 0x29a   : > { %v3804_v24 = vsel %vm3548_vm10, %v3420_v32, %v3676_v34  ;;  %v2437_v35 = vadd.f32 %v2213_v33, %v1489_v31  ;;  %v3065_v36 = vpop.f32.mrf.mxu3  ;;  %v1490_v41 = vpop.f32.mrf.mxu1  ;;  %v4285_v32 = vld [vmem:[%s4690_s9 + $0x380] sm:$0xff]  ;;  %v4286_v31 = vld [vmem:[%s4690_s9 + $0x388] sm:$0xff] }
 0x29b   : > { %3933 = vst.msk [vmem:[%s4790_s17 + $0x1f8] sm:$0xff] %vm3869_vm3, %v3804_v24  ;;  %v1491_v44 = vadd.f32 %v1490_v41, %v961_v37  ;;  %v4483_v24 = vld [vmem:[%s4690_s9 + $0x381] sm:$0xff]  ;;  %v5550_v43 = vpack.c.bf16 %v4286_v31, %v4285_v32 }
 0x29c   : > { %v3289_v38 = vadd.f32 %v3065_v36, %v2437_v35  ;;  %v4484_v35 = vld [vmem:[%s4690_s9 + $0x389] sm:$0xff] }
 0x29e   : > { %v3421_v40 = vadd.f32 %v5468_v2, %v3289_v38 }
 0x2a0   : > { %vm3549_vm11 = vcmp.gt.f32.partialorder %v3421_v40, 0.0  ;;  %v3677_v45 = vmul.f32 0.2, %v3421_v40 }
 0x2a1   : > { %v2215_v49 = vpop.f32.mrf.mxu2  ;;  %v964_v53 = vpop.f32.mrf.mxu0 }
 0x2a2   : > { %v3805_v48 = vsel %vm3549_vm11, %v3421_v40, %v3677_v45  ;;  %v2438_v51 = vadd.f32 %v2215_v49, %v1491_v44  ;;  %v3067_v50 = vpop.f32.mrf.mxu3  ;;  %v1493_v52 = vpop.f32.mrf.mxu1  ;;  %v5554_v45 = vpack.c.bf16 %v4484_v35, %v4483_v24 }
 0x2a3   : > { %3934 = vst.msk [vmem:[%s4790_s17 + $0x200] sm:$0xff] %vm3869_vm3, %v3805_v48  ;;  %v1494_v57 = vadd.f32 %v1493_v52, %v964_v53 }
 0x2a4   : > { %v3290_v55 = vadd.f32 %v3067_v50, %v2438_v51  ;;  %4108 = vmatmul.msk.bf16.gmra.mxu0 %vm593_vm1, %v5461_v3 }
 0x2a5   : > { %4176 = vmatmul.msk.bf16.gmra.mxu1 %vm593_vm1, %v5457_v1 }
 0x2a6   : > { %v3422_v58 = vadd.f32 %v5468_v2, %v3290_v55  ;;  %4374 = vmatmul.msk.bf16.gmra.mxu2 %vm593_vm1, %v5506_v54 }
 0x2a7   : > { %4572 = vmatmul.msk.bf16.gmra.mxu3 %vm593_vm1, %v5510_v56 }
 0x2a8   : > { %vm3550_vm12 = vcmp.gt.f32.partialorder %v3422_v58, 0.0  ;;  %v3678_v60 = vmul.f32 0.2, %v3422_v58 }
 0x2a9   : > { %v2218_v59 = vpop.f32.mrf.mxu2  ;;  %v966_v63 = vpop.f32.mrf.mxu0 }
 0x2aa   : > { %v3806_v62 = vsel %vm3550_vm12, %v3422_v58, %v3678_v60  ;;  %v2439_v61 = vadd.f32 %v2218_v59, %v1494_v57  ;;  %v3070_v0 = vpop.f32.mrf.mxu3  ;;  %v1495_v3 = vpop.f32.mrf.mxu1  ;;  %v4287_v58 = vld [vmem:[%s4690_s9 + $0x398] sm:$0xff]  ;;  %v4288_v57 = vld [vmem:[%s4690_s9 + $0x3a0] sm:$0xff] }
 0x2ab   : > { %3935 = vst.msk [vmem:[%s4790_s17 + $0x208] sm:$0xff] %vm3869_vm3, %v3806_v62  ;;  %v1496_v6 = vadd.f32 %v1495_v3, %v966_v63  ;;  %v4485_v62 = vld [vmem:[%s4690_s9 + $0x399] sm:$0xff]  ;;  %v5572_v5 = vpack.c.bf16 %v4288_v57, %v4287_v58 }
 0x2ac   : > { %v3291_v1 = vadd.f32 %v3070_v0, %v2439_v61  ;;  %v4486_v61 = vld [vmem:[%s4690_s9 + $0x3a1] sm:$0xff] }
 0x2ae   : > { %v3423_v39 = vadd.f32 %v5468_v2, %v3291_v1 }
 0x2b0   : > { %vm3551_vm13 = vcmp.gt.f32.partialorder %v3423_v39, 0.0  ;;  %v3679_v7 = vmul.f32 0.2, %v3423_v39 }
 0x2b1   : > { %v2220_v11 = vpop.f32.mrf.mxu2  ;;  %v969_v15 = vpop.f32.mrf.mxu0 }
 0x2b2   : > { %v3807_v10 = vsel %vm3551_vm13, %v3423_v39, %v3679_v7  ;;  %v2440_v13 = vadd.f32 %v2220_v11, %v1496_v6  ;;  %v3072_v12 = vpop.f32.mrf.mxu3  ;;  %v1498_v14 = vpop.f32.mrf.mxu1  ;;  %v5576_v7 = vpack.c.bf16 %v4486_v61, %v4485_v62 }
 0x2b3   : > { %3936 = vst.msk [vmem:[%s4790_s17 + $0x210] sm:$0xff] %vm3869_vm3, %v3807_v10  ;;  %v1499_v19 = vadd.f32 %v1498_v14, %v969_v15 }
 0x2b4   : > { %v3292_v17 = vadd.f32 %v3072_v12, %v2440_v13  ;;  %4109 = vmatmul.msk.bf16.gmra.mxu0 %vm593_vm1, %v5488_v30 }
 0x2b5   : > { %4177 = vmatmul.msk.bf16.gmra.mxu1 %vm593_vm1, %v5484_v28 }
 0x2b6   : > { %v3424_v20 = vadd.f32 %v5468_v2, %v3292_v17  ;;  %4375 = vmatmul.msk.bf16.gmra.mxu2 %vm593_vm1, %v5528_v16 }
 0x2b7   : > { %4573 = vmatmul.msk.bf16.gmra.mxu3 %vm593_vm1, %v5532_v18 }
 0x2b8   : > { %vm3552_vm14 = vcmp.gt.f32.partialorder %v3424_v20, 0.0  ;;  %v3680_v22 = vmul.f32 0.2, %v3424_v20 }
 0x2b9   : > { %v2223_v21 = vpop.f32.mrf.mxu2  ;;  %v971_v26 = vpop.f32.mrf.mxu0 }
 0x2ba   : > { %v3808_v25 = vsel %vm3552_vm14, %v3424_v20, %v3680_v22  ;;  %v2441_v23 = vadd.f32 %v2223_v21, %v1499_v19  ;;  %v3075_v27 = vpop.f32.mrf.mxu3  ;;  %v1500_v30 = vpop.f32.mrf.mxu1  ;;  %v4289_v20 = vld [vmem:[%s4690_s9 + $0x3a8] sm:$0xff]  ;;  %v4290_v19 = vld [vmem:[%s4690_s9 + $0x3b0] sm:$0xff] }
 0x2bb   : > { %3937 = vst.msk [vmem:[%s4790_s17 + $0x218] sm:$0xff] %vm3869_vm3, %v3808_v25  ;;  %v1501_v33 = vadd.f32 %v1500_v30, %v971_v26  ;;  %v4487_v25 = vld [vmem:[%s4690_s9 + $0x3a9] sm:$0xff]  ;;  %v5594_v32 = vpack.c.bf16 %v4290_v19, %v4289_v20 }
 0x2bc   : > { %v3293_v28 = vadd.f32 %v3075_v27, %v2441_v23  ;;  %v4488_v23 = vld [vmem:[%s4690_s9 + $0x3b1] sm:$0xff] }
 0x2be   : > { %v3425_v29 = vadd.f32 %v5468_v2, %v3293_v28 }
 0x2c0   : > { %vm3553_vm15 = vcmp.gt.f32.partialorder %v3425_v29, 0.0  ;;  %v3681_v34 = vmul.f32 0.2, %v3425_v29 }
 0x2c1   : > { %v2225_v36 = vpop.f32.mrf.mxu2  ;;  %v974_v40 = vpop.f32.mrf.mxu0 }
 0x2c2   : > { %v3809_v37 = vsel %vm3553_vm15, %v3425_v29, %v3681_v34  ;;  %v2442_v41 = vadd.f32 %v2225_v36, %v1501_v33  ;;  %v3077_v38 = vpop.f32.mrf.mxu3  ;;  %v1503_v42 = vpop.f32.mrf.mxu1  ;;  %v5598_v34 = vpack.c.bf16 %v4488_v23, %v4487_v25 }
 0x2c3   : > { %3938 = vst.msk [vmem:[%s4790_s17 + $0x220] sm:$0xff] %vm3869_vm3, %v3809_v37  ;;  %v1504_v46 = vadd.f32 %v1503_v42, %v974_v40 }
 0x2c4   : > { %v3294_v44 = vadd.f32 %v3077_v38, %v2442_v41  ;;  %4110 = vmatmul.msk.bf16.gmra.mxu0 %vm593_vm1, %v5510_v56 }
 0x2c5   : > { %4178 = vmatmul.msk.bf16.gmra.mxu1 %vm593_vm1, %v5506_v54 }
 0x2c6   : > { %v3426_v47 = vadd.f32 %v5468_v2, %v3294_v44  ;;  %4376 = vmatmul.msk.bf16.gmra.mxu2 %vm593_vm1, %v5550_v43 }
 0x2c7   : > { %4574 = vmatmul.msk.bf16.gmra.mxu3 %vm593_vm1, %v5554_v45 }
 0x2c8   : > { %vm3554_vm0 = vcmp.gt.f32.partialorder %v3426_v47, 0.0  ;;  %v3682_v49 = vmul.f32 0.2, %v3426_v47 }
 0x2c9   : > { %v2228_v48 = vpop.f32.mrf.mxu2  ;;  %v976_v52 = vpop.f32.mrf.mxu0 }
 0x2ca   : > { %v3810_v51 = vsel %vm3554_vm0, %v3426_v47, %v3682_v49  ;;  %v2443_v50 = vadd.f32 %v2228_v48, %v1504_v46  ;;  %v3080_v53 = vpop.f32.mrf.mxu3  ;;  %v1505_v56 = vpop.f32.mrf.mxu1  ;;  %v4291_v47 = vld [vmem:[%s4690_s9 + $0x3c0] sm:$0xff]  ;;  %v4292_v46 = vld [vmem:[%s4690_s9 + $0x3c8] sm:$0xff] }
 0x2cb   : > { %3939 = vst.msk [vmem:[%s4790_s17 + $0x228] sm:$0xff] %vm3869_vm3, %v3810_v51  ;;  %v1506_v59 = vadd.f32 %v1505_v56, %v976_v52  ;;  %v4489_v51 = vld [vmem:[%s4690_s9 + $0x3c1] sm:$0xff]  ;;  %v5616_v58 = vpack.c.bf16 %v4292_v46, %v4291_v47 }
 0x2cc   : > { %v3295_v54 = vadd.f32 %v3080_v53, %v2443_v50  ;;  %v4490_v50 = vld [vmem:[%s4690_s9 + $0x3c9] sm:$0xff] }
 0x2ce   : > { %v3427_v55 = vadd.f32 %v5468_v2, %v3295_v54 }
 0x2d0   : > { %vm3555_vm2 = vcmp.gt.f32.partialorder %v3427_v55, 0.0  ;;  %v3683_v60 = vmul.f32 0.2, %v3427_v55 }
 0x2d1   : > { %v2230_v0 = vpop.f32.mrf.mxu2  ;;  %v979_v39 = vpop.f32.mrf.mxu0 }
 0x2d2   : > { %v3811_v63 = vsel %vm3555_vm2, %v3427_v55, %v3683_v60  ;;  %v2444_v3 = vadd.f32 %v2230_v0, %v1506_v59  ;;  %v3082_v1 = vpop.f32.mrf.mxu3  ;;  %v1508_v4 = vpop.f32.mrf.mxu1  ;;  %v5620_v60 = vpack.c.bf16 %v4490_v50, %v4489_v51 }
 0x2d3   : > { %3940 = vst.msk [vmem:[%s4790_s17 + $0x230] sm:$0xff] %vm3869_vm3, %v3811_v63  ;;  %v1509_v8 = vadd.f32 %v1508_v4, %v979_v39 }
 0x2d4   : > { %v3296_v6 = vadd.f32 %v3082_v1, %v2444_v3  ;;  %4111 = vmatmul.msk.bf16.gmra.mxu0 %vm593_vm1, %v5532_v18 }
 0x2d5   : > { %4179 = vmatmul.msk.bf16.gmra.mxu1 %vm593_vm1, %v5528_v16 }
 0x2d6   : > { %v3428_v9 = vadd.f32 %v5468_v2, %v3296_v6  ;;  %4377 = vmatmul.msk.bf16.gmra.mxu2 %vm593_vm1, %v5572_v5 }
 0x2d7   : > { %4575 = vmatmul.msk.bf16.gmra.mxu3 %vm593_vm1, %v5576_v7 }
 0x2d8   : > { %vm3556_vm4 = vcmp.gt.f32.partialorder %v3428_v9, 0.0  ;;  %v3684_v11 = vmul.f32 0.2, %v3428_v9 }
 0x2d9   : > { %v2233_v10 = vpop.f32.mrf.mxu2  ;;  %v981_v14 = vpop.f32.mrf.mxu0 }
 0x2da   : > { %v3812_v13 = vsel %vm3556_vm4, %v3428_v9, %v3684_v11  ;;  %v2445_v12 = vadd.f32 %v2233_v10, %v1509_v8  ;;  %v3085_v15 = vpop.f32.mrf.mxu3  ;;  %v1510_v18 = vpop.f32.mrf.mxu1  ;;  %v4293_v9 = vld [vmem:[%s4690_s9 + $0x3d0] sm:$0xff]  ;;  %v4294_v8 = vld [vmem:[%s4690_s9 + $0x3d8] sm:$0xff] }
 0x2db   : > { %3941 = vst.msk [vmem:[%s4790_s17 + $0x238] sm:$0xff] %vm3869_vm3, %v3812_v13  ;;  %v1511_v21 = vadd.f32 %v1510_v18, %v981_v14  ;;  %v4491_v13 = vld [vmem:[%s4690_s9 + $0x3d1] sm:$0xff]  ;;  %v5638_v20 = vpack.c.bf16 %v4294_v8, %v4293_v9 }
 0x2dc   : > { %v3297_v16 = vadd.f32 %v3085_v15, %v2445_v12  ;;  %v4492_v12 = vld [vmem:[%s4690_s9 + $0x3d9] sm:$0xff] }
 0x2de   : > { %v3429_v17 = vadd.f32 %v5468_v2, %v3297_v16 }
 0x2e0   : > { %vm3557_vm5 = vcmp.gt.f32.partialorder %v3429_v17, 0.0  ;;  %v3685_v22 = vmul.f32 0.2, %v3429_v17 }
 0x2e1   : > { %v2235_v27 = vpop.f32.mrf.mxu2  ;;  %v984_v29 = vpop.f32.mrf.mxu0 }
 0x2e2   : > { %v3813_v26 = vsel %vm3557_vm5, %v3429_v17, %v3685_v22  ;;  %v2446_v30 = vadd.f32 %v2235_v27, %v1511_v21  ;;  %v3087_v28 = vpop.f32.mrf.mxu3  ;;  %v1513_v31 = vpop.f32.mrf.mxu1  ;;  %v5642_v22 = vpack.c.bf16 %v4492_v12, %v4491_v13 }
 0x2e3   : > { %3942 = vst.msk [vmem:[%s4790_s17 + $0x240] sm:$0xff] %vm3869_vm3, %v3813_v26  ;;  %v1514_v35 = vadd.f32 %v1513_v31, %v984_v29 }
 0x2e4   : > { %v3298_v33 = vadd.f32 %v3087_v28, %v2446_v30  ;;  %4112 = vmatmul.msk.bf16.gmra.mxu0 %vm593_vm1, %v5554_v45 }
 0x2e5   : > { %4180 = vmatmul.msk.bf16.gmra.mxu1 %vm593_vm1, %v5550_v43 }
 0x2e6   : > { %v3430_v24 = vadd.f32 %v5468_v2, %v3298_v33  ;;  %4378 = vmatmul.msk.bf16.gmra.mxu2 %vm593_vm1, %v5594_v32 }
 0x2e7   : > { %4576 = vmatmul.msk.bf16.gmra.mxu3 %vm593_vm1, %v5598_v34 }
 0x2e8   : > { %vm3558_vm6 = vcmp.gt.f32.partialorder %v3430_v24, 0.0  ;;  %v3686_v36 = vmul.f32 0.2, %v3430_v24 }
 0x2e9   : > { %v2238_v37 = vpop.f32.mrf.mxu2  ;;  %v986_v42 = vpop.f32.mrf.mxu0 }
 0x2ea   : > { %v3814_v41 = vsel %vm3558_vm6, %v3430_v24, %v3686_v36  ;;  %v2447_v38 = vadd.f32 %v2238_v37, %v1514_v35  ;;  %v3090_v40 = vpop.f32.mrf.mxu3  ;;  %v1515_v45 = vpop.f32.mrf.mxu1  ;;  %v4295_v24 = vld [vmem:[%s4690_s9 + $0x3e8] sm:$0xff]  ;;  %v4296_v35 = vld [vmem:[%s4690_s9 + $0x3f0] sm:$0xff] }
 0x2eb   : > { %3943 = vst.msk [vmem:[%s4790_s17 + $0x248] sm:$0xff] %vm3869_vm3, %v3814_v41  ;;  %v1516_v48 = vadd.f32 %v1515_v45, %v986_v42  ;;  %v4493_v41 = vld [vmem:[%s4690_s9 + $0x3e9] sm:$0xff]  ;;  %v5660_v47 = vpack.c.bf16 %v4296_v35, %v4295_v24 }
 0x2ec   : > { %v3299_v43 = vadd.f32 %v3090_v40, %v2447_v38  ;;  %v4494_v38 = vld [vmem:[%s4690_s9 + $0x3f1] sm:$0xff] }
 0x2ee   : > { %v3431_v44 = vadd.f32 %v5468_v2, %v3299_v43 }
 0x2f0   : > { %vm3559_vm7 = vcmp.gt.f32.partialorder %v3431_v44, 0.0  ;;  %v3687_v49 = vmul.f32 0.2, %v3431_v44 }
 0x2f1   : > { %v2240_v53 = vpop.f32.mrf.mxu2  ;;  %v989_v55 = vpop.f32.mrf.mxu0 }
 0x2f2   : > { %v3815_v52 = vsel %vm3559_vm7, %v3431_v44, %v3687_v49  ;;  %v2448_v56 = vadd.f32 %v2240_v53, %v1516_v48  ;;  %v3092_v54 = vpop.f32.mrf.mxu3  ;;  %v1518_v57 = vpop.f32.mrf.mxu1  ;;  %v5664_v49 = vpack.c.bf16 %v4494_v38, %v4493_v41 }
 0x2f3   : > { %3944 = vst.msk [vmem:[%s4790_s17 + $0x250] sm:$0xff] %vm3869_vm3, %v3815_v52  ;;  %v1519_v61 = vadd.f32 %v1518_v57, %v989_v55 }
 0x2f4   : > { %v3300_v59 = vadd.f32 %v3092_v54, %v2448_v56  ;;  %4113 = vmatmul.msk.bf16.gmra.mxu0 %vm593_vm1, %v5576_v7 }
 0x2f5   : > { %4181 = vmatmul.msk.bf16.gmra.mxu1 %vm593_vm1, %v5572_v5 }
 0x2f6   : > { %v3432_v62 = vadd.f32 %v5468_v2, %v3300_v59  ;;  %4379 = vmatmul.msk.bf16.gmra.mxu2 %vm593_vm1, %v5616_v58 }
 0x2f7   : > { %4577 = vmatmul.msk.bf16.gmra.mxu3 %vm593_vm1, %v5620_v60 }
 0x2f8   : > { %vm3560_vm8 = vcmp.gt.f32.partialorder %v3432_v62, 0.0  ;;  %v3688_v0 = vmul.f32 0.2, %v3432_v62 }
 0x2f9   : > { %v2243_v63 = vpop.f32.mrf.mxu2  ;;  %v991_v4 = vpop.f32.mrf.mxu0 }
 0x2fa   : > { %v3816_v3 = vsel %vm3560_vm8, %v3432_v62, %v3688_v0  ;;  %v2449_v1 = vadd.f32 %v2243_v63, %v1519_v61  ;;  %v3095_v39 = vpop.f32.mrf.mxu3  ;;  %v1520_v7 = vpop.f32.mrf.mxu1  ;;  %v4297_v62 = vld [vmem:[%s4690_s9 + $0x3f8] sm:$0xff]  ;;  %v4298_v61 = vld [vmem:[%s4690_s9 + $0x400] sm:$0xff] }
 0x2fb   : > { %3945 = vst.msk [vmem:[%s4790_s17 + $0x258] sm:$0xff] %vm3869_vm3, %v3816_v3  ;;  %v1521_v10 = vadd.f32 %v1520_v7, %v991_v4  ;;  %v4495_v3 = vld [vmem:[%s4690_s9 + $0x3f9] sm:$0xff]  ;;  %v5682_v9 = vpack.c.bf16 %v4298_v61, %v4297_v62 }
 0x2fc   : > { %v3301_v5 = vadd.f32 %v3095_v39, %v2449_v1  ;;  %v4496_v1 = vld [vmem:[%s4690_s9 + $0x401] sm:$0xff] }
 0x2fe   : > { %v3433_v6 = vadd.f32 %v5468_v2, %v3301_v5 }
 0x300   : > { %vm3561_vm9 = vcmp.gt.f32.partialorder %v3433_v6, 0.0  ;;  %v3689_v11 = vmul.f32 0.2, %v3433_v6 }
 0x301   : > { %v2245_v15 = vpop.f32.mrf.mxu2  ;;  %v994_v17 = vpop.f32.mrf.mxu0 }
 0x302   : > { %v3817_v14 = vsel %vm3561_vm9, %v3433_v6, %v3689_v11  ;;  %v2450_v18 = vadd.f32 %v2245_v15, %v1521_v10  ;;  %v3097_v16 = vpop.f32.mrf.mxu3  ;;  %v1523_v19 = vpop.f32.mrf.mxu1  ;;  %v5686_v11 = vpack.c.bf16 %v4496_v1, %v4495_v3 }
 0x303   : > { %3946 = vst.msk [vmem:[%s4790_s17 + $0x260] sm:$0xff] %vm3869_vm3, %v3817_v14  ;;  %v1524_v23 = vadd.f32 %v1523_v19, %v994_v17 }
 0x304   : > { %v3302_v21 = vadd.f32 %v3097_v16, %v2450_v18  ;;  %4114 = vmatmul.msk.bf16.gmra.mxu0 %vm593_vm1, %v5598_v34 }
 0x305   : > { %4182 = vmatmul.msk.bf16.gmra.mxu1 %vm593_vm1, %v5594_v32 }
 0x306   : > { %v3434_v25 = vadd.f32 %v5468_v2, %v3302_v21  ;;  %4380 = vmatmul.msk.bf16.gmra.mxu2 %vm593_vm1, %v5638_v20 }
 0x307   : > { %4578 = vmatmul.msk.bf16.gmra.mxu3 %vm593_vm1, %v5642_v22 }
 0x308   : > { %vm3562_vm10 = vcmp.gt.f32.partialorder %v3434_v25, 0.0  ;;  %v3690_v27 = vmul.f32 0.2, %v3434_v25 }
 0x309   : > { %v2248_v26 = vpop.f32.mrf.mxu2  ;;  %v996_v31 = vpop.f32.mrf.mxu0 }
 0x30a   : > { %v3818_v30 = vsel %vm3562_vm10, %v3434_v25, %v3690_v27  ;;  %v2451_v28 = vadd.f32 %v2248_v26, %v1524_v23  ;;  %v3100_v29 = vpop.f32.mrf.mxu3  ;;  %v1525_v34 = vpop.f32.mrf.mxu1  ;;  %v4299_v25 = vld [vmem:[%s4690_s9 + $0x410] sm:$0xff]  ;;  %v4300_v23 = vld [vmem:[%s4690_s9 + $0x418] sm:$0xff] }
 0x30b   : > { %3947 = vst.msk [vmem:[%s4790_s17 + $0x268] sm:$0xff] %vm3869_vm3, %v3818_v30  ;;  %v1526_v37 = vadd.f32 %v1525_v34, %v996_v31  ;;  %v4497_v30 = vld [vmem:[%s4690_s9 + $0x411] sm:$0xff]  ;;  %v5704_v24 = vpack.c.bf16 %v4300_v23, %v4299_v25 }
 0x30c   : > { %v3303_v32 = vadd.f32 %v3100_v29, %v2451_v28  ;;  %v4498_v28 = vld [vmem:[%s4690_s9 + $0x419] sm:$0xff] }
 0x30e   : > { %v3435_v33 = vadd.f32 %v5468_v2, %v3303_v32 }
 0x310   : > { %vm3563_vm11 = vcmp.gt.f32.partialorder %v3435_v33, 0.0  ;;  %v3691_v36 = vmul.f32 0.2, %v3435_v33 }
 0x311   : > { %v2250_v40 = vpop.f32.mrf.mxu2  ;;  %v999_v44 = vpop.f32.mrf.mxu0 }
 0x312   : > { %v3819_v42 = vsel %vm3563_vm11, %v3435_v33, %v3691_v36  ;;  %v2452_v45 = vadd.f32 %v2250_v40, %v1526_v37  ;;  %v3102_v43 = vpop.f32.mrf.mxu3  ;;  %v1528_v46 = vpop.f32.mrf.mxu1  ;;  %v5708_v36 = vpack.c.bf16 %v4498_v28, %v4497_v30 }
 0x313   : > { %3948 = vst.msk [vmem:[%s4790_s17 + $0x270] sm:$0xff] %vm3869_vm3, %v3819_v42  ;;  %v1529_v50 = vadd.f32 %v1528_v46, %v999_v44 }
 0x314   : > { %v3304_v48 = vadd.f32 %v3102_v43, %v2452_v45  ;;  %4115 = vmatmul.msk.bf16.gmra.mxu0 %vm593_vm1, %v5620_v60 }
 0x315   : > { %4183 = vmatmul.msk.bf16.gmra.mxu1 %vm593_vm1, %v5616_v58 }
 0x316   : > { %v3436_v51 = vadd.f32 %v5468_v2, %v3304_v48  ;;  %4381 = vmatmul.msk.bf16.gmra.mxu2 %vm593_vm1, %v5660_v47 }
 0x317   : > { %4579 = vmatmul.msk.bf16.gmra.mxu3 %vm593_vm1, %v5664_v49 }
 0x318   : > { %vm3564_vm12 = vcmp.gt.f32.partialorder %v3436_v51, 0.0  ;;  %v3692_v53 = vmul.f32 0.2, %v3436_v51 }
 0x319   : > { %v2253_v52 = vpop.f32.mrf.mxu2  ;;  %v1001_v57 = vpop.f32.mrf.mxu0 }
 0x31a   : > { %v3820_v56 = vsel %vm3564_vm12, %v3436_v51, %v3692_v53  ;;  %v2453_v54 = vadd.f32 %v2253_v52, %v1529_v50  ;;  %v3105_v55 = vpop.f32.mrf.mxu3  ;;  %v1530_v60 = vpop.f32.mrf.mxu1  ;;  %v4301_v51 = vld [vmem:[%s4690_s9 + $0x420] sm:$0xff]  ;;  %v4302_v50 = vld [vmem:[%s4690_s9 + $0x428] sm:$0xff] }
 0x31b   : > { %3949 = vst.msk [vmem:[%s4790_s17 + $0x278] sm:$0xff] %vm3869_vm3, %v3820_v56  ;;  %v1531_v63 = vadd.f32 %v1530_v60, %v1001_v57  ;;  %v4499_v56 = vld [vmem:[%s4690_s9 + $0x421] sm:$0xff]  ;;  %v5726_v62 = vpack.c.bf16 %v4302_v50, %v4301_v51 }
 0x31c   : > { %v3305_v58 = vadd.f32 %v3105_v55, %v2453_v54  ;;  %v4500_v54 = vld [vmem:[%s4690_s9 + $0x429] sm:$0xff] }
 0x31e   : > { %v3437_v59 = vadd.f32 %v5468_v2, %v3305_v58 }
 0x320   : > { %vm3565_vm13 = vcmp.gt.f32.partialorder %v3437_v59, 0.0  ;;  %v3693_v0 = vmul.f32 0.2, %v3437_v59 }
 0x321   : > { %v2255_v39 = vpop.f32.mrf.mxu2  ;;  %v1004_v6 = vpop.f32.mrf.mxu0 }
 0x322   : > { %v3821_v4 = vsel %vm3565_vm13, %v3437_v59, %v3693_v0  ;;  %v2454_v7 = vadd.f32 %v2255_v39, %v1531_v63  ;;  %v3107_v5 = vpop.f32.mrf.mxu3  ;;  %v1533_v8 = vpop.f32.mrf.mxu1  ;;  %v5730_v0 = vpack.c.bf16 %v4500_v54, %v4499_v56 }
 0x323   : > { %3950 = vst.msk [vmem:[%s4790_s17 + $0x280] sm:$0xff] %vm3869_vm3, %v3821_v4  ;;  %v1534_v12 = vadd.f32 %v1533_v8, %v1004_v6 }
 0x324   : > { %v3306_v10 = vadd.f32 %v3107_v5, %v2454_v7  ;;  %4116 = vmatmul.msk.bf16.gmra.mxu0 %vm593_vm1, %v5642_v22 }
 0x325   : > { %4184 = vmatmul.msk.bf16.gmra.mxu1 %vm593_vm1, %v5638_v20 }
 0x326   : > { %v3438_v13 = vadd.f32 %v5468_v2, %v3306_v10  ;;  %4382 = vmatmul.msk.bf16.gmra.mxu2 %vm593_vm1, %v5682_v9 }
 0x327   : > { %4580 = vmatmul.msk.bf16.gmra.mxu3 %vm593_vm1, %v5686_v11 }
 0x328   : > { %vm3566_vm14 = vcmp.gt.f32.partialorder %v3438_v13, 0.0  ;;  %v3694_v15 = vmul.f32 0.2, %v3438_v13 }
 0x329   : > { %v2258_v14 = vpop.f32.mrf.mxu2  ;;  %v1006_v19 = vpop.f32.mrf.mxu0 }
 0x32a   : > { %v3822_v18 = vsel %vm3566_vm14, %v3438_v13, %v3694_v15  ;;  %v2455_v16 = vadd.f32 %v2258_v14, %v1534_v12  ;;  %v3110_v17 = vpop.f32.mrf.mxu3  ;;  %v1535_v22 = vpop.f32.mrf.mxu1  ;;  %v4303_v13 = vld [vmem:[%s4690_s9 + $0x438] sm:$0xff]  ;;  %v4304_v12 = vld [vmem:[%s4690_s9 + $0x440] sm:$0xff] }
 0x32b   : > { %3951 = vst.msk [vmem:[%s4790_s17 + $0x288] sm:$0xff] %vm3869_vm3, %v3822_v18  ;;  %v1536_v26 = vadd.f32 %v1535_v22, %v1006_v19  ;;  %v4501_v18 = vld [vmem:[%s4690_s9 + $0x439] sm:$0xff]  ;;  %v5748_v25 = vpack.c.bf16 %v4304_v12, %v4303_v13 }
 0x32c   : > { %v3307_v20 = vadd.f32 %v3110_v17, %v2455_v16  ;;  %v4502_v16 = vld [vmem:[%s4690_s9 + $0x441] sm:$0xff] }
 0x32e   : > { %v3439_v21 = vadd.f32 %v5468_v2, %v3307_v20 }
 0x330   : > { %vm3567_vm15 = vcmp.gt.f32.partialorder %v3439_v21, 0.0  ;;  %v3695_v27 = vmul.f32 0.2, %v3439_v21 }
 0x331   : > { %v2260_v29 = vpop.f32.mrf.mxu2  ;;  %v1009_v33 = vpop.f32.mrf.mxu0 }
 0x332   : > { %v3823_v31 = vsel %vm3567_vm15, %v3439_v21, %v3695_v27  ;;  %v2456_v34 = vadd.f32 %v2260_v29, %v1536_v26  ;;  %v3112_v32 = vpop.f32.mrf.mxu3  ;;  %v1538_v35 = vpop.f32.mrf.mxu1  ;;  %v5752_v27 = vpack.c.bf16 %v4502_v16, %v4501_v18 }
 0x333   : > { %3952 = vst.msk [vmem:[%s4790_s17 + $0x290] sm:$0xff] %vm3869_vm3, %v3823_v31  ;;  %v1539_v38 = vadd.f32 %v1538_v35, %v1009_v33 }
 0x334   : > { %v3308_v37 = vadd.f32 %v3112_v32, %v2456_v34  ;;  %4117 = vmatmul.msk.bf16.gmra.mxu0 %vm593_vm1, %v5664_v49 }
 0x335   : > { %4185 = vmatmul.msk.bf16.gmra.mxu1 %vm593_vm1, %v5660_v47 }
 0x336   : > { %v3440_v41 = vadd.f32 %v5468_v2, %v3308_v37  ;;  %4383 = vmatmul.msk.bf16.gmra.mxu2 %vm593_vm1, %v5704_v24 }
 0x337   : > { %4581 = vmatmul.msk.bf16.gmra.mxu3 %vm593_vm1, %v5708_v36 }
 0x338   : > { %vm3568_vm0 = vcmp.gt.f32.partialorder %v3440_v41, 0.0  ;;  %v3696_v40 = vmul.f32 0.2, %v3440_v41 }
 0x339   : > { %v2263_v42 = vpop.f32.mrf.mxu2  ;;  %v1011_v46 = vpop.f32.mrf.mxu0 }
 0x33a   : > { %v3824_v45 = vsel %vm3568_vm0, %v3440_v41, %v3696_v40  ;;  %v2457_v43 = vadd.f32 %v2263_v42, %v1539_v38  ;;  %v3115_v44 = vpop.f32.mrf.mxu3  ;;  %v1540_v49 = vpop.f32.mrf.mxu1  ;;  %v4305_v41 = vld [vmem:[%s4690_s9 + $0x448] sm:$0xff]  ;;  %v4306_v38 = vld [vmem:[%s4690_s9 + $0x450] sm:$0xff] }
 0x33b   : > { %3953 = vst.msk [vmem:[%s4790_s17 + $0x298] sm:$0xff] %vm3869_vm3, %v3824_v45  ;;  %v1541_v52 = vadd.f32 %v1540_v49, %v1011_v46  ;;  %v4503_v45 = vld [vmem:[%s4690_s9 + $0x449] sm:$0xff]  ;;  %v5770_v51 = vpack.c.bf16 %v4306_v38, %v4305_v41 }
 0x33c   : > { %v3309_v47 = vadd.f32 %v3115_v44, %v2457_v43  ;;  %v4504_v43 = vld [vmem:[%s4690_s9 + $0x451] sm:$0xff] }
 0x33e   : > { %v3441_v48 = vadd.f32 %v5468_v2, %v3309_v47 }
 0x340   : > { %vm3569_vm2 = vcmp.gt.f32.partialorder %v3441_v48, 0.0  ;;  %v3697_v53 = vmul.f32 0.2, %v3441_v48 }
 0x341   : > { %v2265_v55 = vpop.f32.mrf.mxu2  ;;  %v1014_v59 = vpop.f32.mrf.mxu0 }
 0x342   : > { %v3825_v57 = vsel %vm3569_vm2, %v3441_v48, %v3697_v53  ;;  %v2458_v60 = vadd.f32 %v2265_v55, %v1541_v52  ;;  %v3117_v58 = vpop.f32.mrf.mxu3  ;;  %v1543_v61 = vpop.f32.mrf.mxu1  ;;  %v5774_v53 = vpack.c.bf16 %v4504_v43, %v4503_v45 }
 0x343   : > { %3954 = vst.msk [vmem:[%s4790_s17 + $0x2a0] sm:$0xff] %vm3869_vm3, %v3825_v57  ;;  %v1544_v1 = vadd.f32 %v1543_v61, %v1014_v59 }
 0x344   : > { %v3310_v63 = vadd.f32 %v3117_v58, %v2458_v60  ;;  %4118 = vmatmul.msk.bf16.gmra.mxu0 %vm593_vm1, %v5686_v11 }
 0x345   : > { %4186 = vmatmul.msk.bf16.gmra.mxu1 %vm593_vm1, %v5682_v9 }
 0x346   : > { %v3442_v3 = vadd.f32 %v5468_v2, %v3310_v63  ;;  %4384 = vmatmul.msk.bf16.gmra.mxu2 %vm593_vm1, %v5726_v62 }
 0x347   : > { %4582 = vmatmul.msk.bf16.gmra.mxu3 %vm593_vm1, %v5730_v0 }
 0x348   : > { %vm3570_vm4 = vcmp.gt.f32.partialorder %v3442_v3, 0.0  ;;  %v3698_v39 = vmul.f32 0.2, %v3442_v3 }
 0x349   : > { %v2268_v4 = vpop.f32.mrf.mxu2  ;;  %v1016_v8 = vpop.f32.mrf.mxu0 }
 0x34a   : > { %v3826_v7 = vsel %vm3570_vm4, %v3442_v3, %v3698_v39  ;;  %v2459_v5 = vadd.f32 %v2268_v4, %v1544_v1  ;;  %v3120_v6 = vpop.f32.mrf.mxu3  ;;  %v1545_v11 = vpop.f32.mrf.mxu1  ;;  %v4307_v3 = vld [vmem:[%s4690_s9 + $0x460] sm:$0xff]  ;;  %v4308_v1 = vld [vmem:[%s4690_s9 + $0x468] sm:$0xff] }
 0x34b   : > { %3955 = vst.msk [vmem:[%s4790_s17 + $0x2a8] sm:$0xff] %vm3869_vm3, %v3826_v7  ;;  %v1546_v14 = vadd.f32 %v1545_v11, %v1016_v8  ;;  %v4505_v7 = vld [vmem:[%s4690_s9 + $0x461] sm:$0xff]  ;;  %v5792_v13 = vpack.c.bf16 %v4308_v1, %v4307_v3 }
 0x34c   : > { %v3311_v9 = vadd.f32 %v3120_v6, %v2459_v5  ;;  %v4506_v5 = vld [vmem:[%s4690_s9 + $0x469] sm:$0xff] }
 0x34e   : > { %v3443_v10 = vadd.f32 %v5468_v2, %v3311_v9 }
 0x350   : > { %vm3571_vm5 = vcmp.gt.f32.partialorder %v3443_v10, 0.0  ;;  %v3699_v15 = vmul.f32 0.2, %v3443_v10 }
 0x351   : > { %v2270_v17 = vpop.f32.mrf.mxu2  ;;  %v1019_v21 = vpop.f32.mrf.mxu0 }
 0x352   : > { %v3827_v19 = vsel %vm3571_vm5, %v3443_v10, %v3699_v15  ;;  %v2460_v22 = vadd.f32 %v2270_v17, %v1546_v14  ;;  %v3122_v20 = vpop.f32.mrf.mxu3  ;;  %v1548_v23 = vpop.f32.mrf.mxu1  ;;  %v5796_v15 = vpack.c.bf16 %v4506_v5, %v4505_v7 }
 0x353   : > { %3956 = vst.msk [vmem:[%s4790_s17 + $0x2b0] sm:$0xff] %vm3869_vm3, %v3827_v19  ;;  %v1549_v28 = vadd.f32 %v1548_v23, %v1019_v21 }
 0x354   : > { %v3312_v26 = vadd.f32 %v3122_v20, %v2460_v22  ;;  %4119 = vmatmul.msk.bf16.gmra.mxu0 %vm593_vm1, %v5708_v36 }
 0x355   : > { %4187 = vmatmul.msk.bf16.gmra.mxu1 %vm593_vm1, %v5704_v24 }
 0x356   : > { %v3444_v30 = vadd.f32 %v5468_v2, %v3312_v26  ;;  %4385 = vmatmul.msk.bf16.gmra.mxu2 %vm593_vm1, %v5748_v25 }
 0x357   : > { %4583 = vmatmul.msk.bf16.gmra.mxu3 %vm593_vm1, %v5752_v27 }
 0x358   : > { %vm3572_vm6 = vcmp.gt.f32.partialorder %v3444_v30, 0.0  ;;  %v3700_v29 = vmul.f32 0.2, %v3444_v30 }
 0x359   : > { %v2273_v31 = vpop.f32.mrf.mxu2  ;;  %v1021_v35 = vpop.f32.mrf.mxu0 }
 0x35a   : > { %v3828_v34 = vsel %vm3572_vm6, %v3444_v30, %v3700_v29  ;;  %v2461_v32 = vadd.f32 %v2273_v31, %v1549_v28  ;;  %v3125_v33 = vpop.f32.mrf.mxu3  ;;  %v1550_v36 = vpop.f32.mrf.mxu1  ;;  %v4309_v30 = vld [vmem:[%s4690_s9 + $0x470] sm:$0xff]  ;;  %v4310_v28 = vld [vmem:[%s4690_s9 + $0x478] sm:$0xff] }
 0x35b   : > { %3957 = vst.msk [vmem:[%s4790_s17 + $0x2b8] sm:$0xff] %vm3869_vm3, %v3828_v34  ;;  %v1551_v42 = vadd.f32 %v1550_v36, %v1021_v35  ;;  %v4507_v34 = vld [vmem:[%s4690_s9 + $0x471] sm:$0xff]  ;;  %v5819_v41 = vpack.c.bf16 %v4310_v28, %v4309_v30 }
 0x35c   : > { %v3313_v24 = vadd.f32 %v3125_v33, %v2461_v32  ;;  %v4508_v32 = vld [vmem:[%s4690_s9 + $0x479] sm:$0xff] }
 0x35e   : > { %v3445_v37 = vadd.f32 %v5468_v2, %v3313_v24 }
 0x360   : > { %vm3573_vm7 = vcmp.gt.f32.partialorder %v3445_v37, 0.0  ;;  %v3701_v40 = vmul.f32 0.2, %v3445_v37 }
 0x361   : > { %v2275_v44 = vpop.f32.mrf.mxu2  ;;  %v1024_v48 = vpop.f32.mrf.mxu0 }
 0x362   : > { %v3829_v46 = vsel %vm3573_vm7, %v3445_v37, %v3701_v40  ;;  %v2462_v49 = vadd.f32 %v2275_v44, %v1551_v42  ;;  %v3127_v47 = vpop.f32.mrf.mxu3  ;;  %v1553_v50 = vpop.f32.mrf.mxu1  ;;  %v5823_v40 = vpack.c.bf16 %v4508_v32, %v4507_v34 }
 0x363   : > { %3958 = vst.msk [vmem:[%s4790_s17 + $0x2c0] sm:$0xff] %vm3869_vm3, %v3829_v46  ;;  %v1554_v54 = vadd.f32 %v1553_v50, %v1024_v48 }
 0x364   : > { %v3314_v52 = vadd.f32 %v3127_v47, %v2462_v49  ;;  %4120 = vmatmul.msk.bf16.gmra.mxu0 %vm593_vm1, %v5730_v0 }
 0x365   : > { %4188 = vmatmul.msk.bf16.gmra.mxu1 %vm593_vm1, %v5726_v62 }
 0x366   : > { %v3446_v56 = vadd.f32 %v5468_v2, %v3314_v52  ;;  %4386 = vmatmul.msk.bf16.gmra.mxu2 %vm593_vm1, %v5770_v51 }
 0x367   : > { %4584 = vmatmul.msk.bf16.gmra.mxu3 %vm593_vm1, %v5774_v53 }
 0x368   : > { %vm3574_vm8 = vcmp.gt.f32.partialorder %v3446_v56, 0.0  ;;  %v3702_v55 = vmul.f32 0.2, %v3446_v56 }
 0x369   : > { %v2278_v57 = vpop.f32.mrf.mxu2  ;;  %v1026_v61 = vpop.f32.mrf.mxu0 }
 0x36a   : > { %v3830_v60 = vsel %vm3574_vm8, %v3446_v56, %v3702_v55  ;;  %v2463_v58 = vadd.f32 %v2278_v57, %v1554_v54  ;;  %v3130_v59 = vpop.f32.mrf.mxu3  ;;  %v1555_v0 = vpop.f32.mrf.mxu1  ;;  %v4311_v56 = vld [vmem:[%s4690_s9 + $0x488] sm:$0xff]  ;;  %v4312_v54 = vld [vmem:[%s4690_s9 + $0x490] sm:$0xff] }
 0x36b   : > { %3959 = vst.msk [vmem:[%s4790_s17 + $0x2c8] sm:$0xff] %vm3869_vm3, %v3830_v60  ;;  %v1556_v4 = vadd.f32 %v1555_v0, %v1026_v61  ;;  %v4509_v60 = vld [vmem:[%s4690_s9 + $0x489] sm:$0xff]  ;;  %v5841_v3 = vpack.c.bf16 %v4312_v54, %v4311_v56 }
 0x36c   : > { %v3315_v62 = vadd.f32 %v3130_v59, %v2463_v58  ;;  %v4510_v58 = vld [vmem:[%s4690_s9 + $0x491] sm:$0xff] }
 0x36e   : > { %v3447_v63 = vadd.f32 %v5468_v2, %v3315_v62 }
 0x370   : > { %vm3575_vm9 = vcmp.gt.f32.partialorder %v3447_v63, 0.0  ;;  %v3703_v39 = vmul.f32 0.2, %v3447_v63 }
 0x371   : > { %v2280_v6 = vpop.f32.mrf.mxu2  ;;  %v1029_v10 = vpop.f32.mrf.mxu0 }
 0x372   : > { %v3831_v8 = vsel %vm3575_vm9, %v3447_v63, %v3703_v39  ;;  %v2464_v11 = vadd.f32 %v2280_v6, %v1556_v4  ;;  %v3132_v9 = vpop.f32.mrf.mxu3  ;;  %v1558_v12 = vpop.f32.mrf.mxu1  ;;  %v5845_v39 = vpack.c.bf16 %v4510_v58, %v4509_v60 }
 0x373   : > { %3960 = vst.msk [vmem:[%s4790_s17 + $0x2d0] sm:$0xff] %vm3869_vm3, %v3831_v8  ;;  %v1559_v16 = vadd.f32 %v1558_v12, %v1029_v10 }
 0x374   : > { %v3316_v14 = vadd.f32 %v3132_v9, %v2464_v11  ;;  %4121 = vmatmul.msk.bf16.gmra.mxu0 %vm593_vm1, %v5752_v27  ;;  %v5812_v27 = vld [vmem:[%s6059_s2] ss:$0 sm:$0xff] }
 0x375   : > { %4189 = vmatmul.msk.bf16.gmra.mxu1 %vm593_vm1, %v5748_v25 }
 0x376   : > { %v3448_v18 = vadd.f32 %v5468_v2, %v3316_v14  ;;  %4387 = vmatmul.msk.bf16.gmra.mxu2 %vm593_vm1, %v5792_v13 }
 0x377   : > { %4585 = vmatmul.msk.bf16.gmra.mxu3 %vm593_vm1, %v5796_v15 }
 0x378   : > { %vm3576_vm10 = vcmp.gt.f32.partialorder %v3448_v18, 0.0  ;;  %v3704_v17 = vmul.f32 0.2, %v3448_v18 }
 0x379   : > { %v2283_v19 = vpop.f32.mrf.mxu2  ;;  %v1031_v21 = vpop.f32.mrf.mxu0 }
 0x37a   : > { %v3832_v22 = vsel %vm3576_vm10, %v3448_v18, %v3704_v17  ;;  %v2465_v20 = vadd.f32 %v2283_v19, %v1559_v16  ;;  %v3135_v2 = vpop.f32.mrf.mxu3  ;;  %v1560_v23 = vpop.f32.mrf.mxu1  ;;  %v4313_v18 = vld [vmem:[%s4690_s9 + $0x498] sm:$0xff]  ;;  %v4314_v16 = vld [vmem:[%s4690_s9 + $0x4a0] sm:$0xff] }
 0x37b   : > { %3961 = vst.msk [vmem:[%s4790_s17 + $0x2d8] sm:$0xff] %vm3869_vm3, %v3832_v22  ;;  %v1561_v31 = vadd.f32 %v1560_v23, %v1031_v21  ;;  %v4511_v22 = vld [vmem:[%s4690_s9 + $0x499] sm:$0xff]  ;;  %v5863_v30 = vpack.c.bf16 %v4314_v16, %v4313_v18 }
 0x37c   : > { %v3317_v25 = vadd.f32 %v3135_v2, %v2465_v20  ;;  %v4512_v20 = vld [vmem:[%s4690_s9 + $0x4a1] sm:$0xff] }
 0x37e   : > { %v3449_v26 = vadd.f32 %v5812_v27, %v3317_v25 }
 0x380   : > { %vm3577_vm11 = vcmp.gt.f32.partialorder %v3449_v26, 0.0  ;;  %v3705_v29 = vmul.f32 0.2, %v3449_v26 }
 0x381   : > { %v2285_v33 = vpop.f32.mrf.mxu2  ;;  %v1034_v37 = vpop.f32.mrf.mxu0 }
 0x382   : > { %v3833_v35 = vsel %vm3577_vm11, %v3449_v26, %v3705_v29  ;;  %v2466_v36 = vadd.f32 %v2285_v33, %v1561_v31  ;;  %v3137_v24 = vpop.f32.mrf.mxu3  ;;  %v1563_v38 = vpop.f32.mrf.mxu1  ;;  %v5867_v29 = vpack.c.bf16 %v4512_v20, %v4511_v22 }
 0x383   : > { %3962 = vst.msk [vmem:[%s4790_s17 + $0x2e0] sm:$0xff] %vm3869_vm3, %v3833_v35  ;;  %v1564_v43 = vadd.f32 %v1563_v38, %v1034_v37 }
 0x384   : > { %v3318_v42 = vadd.f32 %v3137_v24, %v2466_v36  ;;  %4122 = vmatmul.msk.bf16.gmra.mxu0 %vm593_vm1, %v5774_v53 }
 0x385   : > { %4190 = vmatmul.msk.bf16.gmra.mxu1 %vm593_vm1, %v5770_v51 }
 0x386   : > { %v3450_v45 = vadd.f32 %v5812_v27, %v3318_v42  ;;  %4388 = vmatmul.msk.bf16.gmra.mxu2 %vm593_vm1, %v5819_v41 }
 0x387   : > { %4586 = vmatmul.msk.bf16.gmra.mxu3 %vm593_vm1, %v5823_v40 }
 0x388   : > { %vm3578_vm12 = vcmp.gt.f32.partialorder %v3450_v45, 0.0  ;;  %v3706_v44 = vmul.f32 0.2, %v3450_v45 }
 0x389   : > { %v2288_v46 = vpop.f32.mrf.mxu2  ;;  %v1036_v50 = vpop.f32.mrf.mxu0 }
 0x38a   : > { %v3834_v49 = vsel %vm3578_vm12, %v3450_v45, %v3706_v44  ;;  %v2467_v47 = vadd.f32 %v2288_v46, %v1564_v43  ;;  %v3140_v48 = vpop.f32.mrf.mxu3  ;;  %v1565_v53 = vpop.f32.mrf.mxu1  ;;  %v4315_v45 = vld [vmem:[%s4690_s9 + $0x4b0] sm:$0xff]  ;;  %v4316_v43 = vld [vmem:[%s4690_s9 + $0x4b8] sm:$0xff] }
 0x38b   : > { %3963 = vst.msk [vmem:[%s4790_s17 + $0x2e8] sm:$0xff] %vm3869_vm3, %v3834_v49  ;;  %v1566_v57 = vadd.f32 %v1565_v53, %v1036_v50  ;;  %v4513_v49 = vld [vmem:[%s4690_s9 + $0x4b1] sm:$0xff]  ;;  %v5885_v56 = vpack.c.bf16 %v4316_v43, %v4315_v45 }
 0x38c   : > { %v3319_v51 = vadd.f32 %v3140_v48, %v2467_v47  ;;  %v4514_v47 = vld [vmem:[%s4690_s9 + $0x4b9] sm:$0xff] }
 0x38e   : > { %v3451_v52 = vadd.f32 %v5812_v27, %v3319_v51 }
 0x390   : > { %vm3579_vm13 = vcmp.gt.f32.partialorder %v3451_v52, 0.0  ;;  %v3707_v55 = vmul.f32 0.2, %v3451_v52 }
 0x391   : > { %v2290_v59 = vpop.f32.mrf.mxu2  ;;  %v1039_v63 = vpop.f32.mrf.mxu0 }
 0x392   : > { %v3835_v61 = vsel %vm3579_vm13, %v3451_v52, %v3707_v55  ;;  %v2468_v0 = vadd.f32 %v2290_v59, %v1566_v57  ;;  %v3142_v62 = vpop.f32.mrf.mxu3  ;;  %v1568_v1 = vpop.f32.mrf.mxu1  ;;  %v5889_v55 = vpack.c.bf16 %v4514_v47, %v4513_v49 }
 0x393   : > { %3964 = vst.msk [vmem:[%s4790_s17 + $0x2f0] sm:$0xff] %vm3869_vm3, %v3835_v61  ;;  %v1569_v5 = vadd.f32 %v1568_v1, %v1039_v63 }
 0x394   : > { %v3320_v4 = vadd.f32 %v3142_v62, %v2468_v0  ;;  %4123 = vmatmul.msk.bf16.gmra.mxu0 %vm593_vm1, %v5796_v15 }
 0x395   : > { %4191 = vmatmul.msk.bf16.gmra.mxu1 %vm593_vm1, %v5792_v13 }
 0x396   : > { %v3452_v7 = vadd.f32 %v5812_v27, %v3320_v4  ;;  %4389 = vmatmul.msk.bf16.gmra.mxu2 %vm593_vm1, %v5841_v3 }
 0x397   : > { %4587 = vmatmul.msk.bf16.gmra.mxu3 %vm593_vm1, %v5845_v39 }
 0x398   : > { %vm3580_vm14 = vcmp.gt.f32.partialorder %v3452_v7, 0.0  ;;  %v3708_v6 = vmul.f32 0.2, %v3452_v7 }
 0x399   : > { %v2293_v8 = vpop.f32.mrf.mxu2  ;;  %v1041_v12 = vpop.f32.mrf.mxu0 }
 0x39a   : > { %v3836_v11 = vsel %vm3580_vm14, %v3452_v7, %v3708_v6  ;;  %v2469_v9 = vadd.f32 %v2293_v8, %v1569_v5  ;;  %v3145_v10 = vpop.f32.mrf.mxu3  ;;  %v1570_v15 = vpop.f32.mrf.mxu1  ;;  %v4317_v7 = vld [vmem:[%s4690_s9 + $0x4c0] sm:$0xff]  ;;  %v4318_v5 = vld [vmem:[%s4690_s9 + $0x4c8] sm:$0xff] }
 0x39b   : > { %3965 = vst.msk [vmem:[%s4790_s17 + $0x2f8] sm:$0xff] %vm3869_vm3, %v3836_v11  ;;  %v1571_v19 = vadd.f32 %v1570_v15, %v1041_v12  ;;  %v4515_v11 = vld [vmem:[%s4690_s9 + $0x4c1] sm:$0xff]  ;;  %v5907_v18 = vpack.c.bf16 %v4318_v5, %v4317_v7 }
 0x39c   : > { %v3321_v13 = vadd.f32 %v3145_v10, %v2469_v9  ;;  %v4516_v9 = vld [vmem:[%s4690_s9 + $0x4c9] sm:$0xff] }
 0x39e   : > { %v3453_v14 = vadd.f32 %v5812_v27, %v3321_v13 }
 0x3a0   : > { %vm3581_vm15 = vcmp.gt.f32.partialorder %v3453_v14, 0.0  ;;  %v3709_v17 = vmul.f32 0.2, %v3453_v14 }
 0x3a1   : > { %v2295_v2 = vpop.f32.mrf.mxu2  ;;  %v1044_v26 = vpop.f32.mrf.mxu0 }
 0x3a2   : > { %v3837_v21 = vsel %vm3581_vm15, %v3453_v14, %v3709_v17  ;;  %v2470_v23 = vadd.f32 %v2295_v2, %v1571_v19  ;;  %v3147_v25 = vpop.f32.mrf.mxu3  ;;  %v1573_v28 = vpop.f32.mrf.mxu1  ;;  %v5911_v17 = vpack.c.bf16 %v4516_v9, %v4515_v11 }
 0x3a3   : > { %3966 = vst.msk [vmem:[%s4790_s17 + $0x300] sm:$0xff] %vm3869_vm3, %v3837_v21  ;;  %v1574_v32 = vadd.f32 %v1573_v28, %v1044_v26 }
 0x3a4   : > { %v3322_v31 = vadd.f32 %v3147_v25, %v2470_v23  ;;  %4124 = vmatmul.msk.bf16.gmra.mxu0 %vm593_vm1, %v5823_v40 }
 0x3a5   : > { %4192 = vmatmul.msk.bf16.gmra.mxu1 %vm593_vm1, %v5819_v41 }
 0x3a6   : > { %v3454_v34 = vadd.f32 %v5812_v27, %v3322_v31  ;;  %4390 = vmatmul.msk.bf16.gmra.mxu2 %vm593_vm1, %v5863_v30 }
 0x3a7   : > { %4588 = vmatmul.msk.bf16.gmra.mxu3 %vm593_vm1, %v5867_v29 }
 0x3a8   : > { %vm3582_vm0 = vcmp.gt.f32.partialorder %v3454_v34, 0.0  ;;  %v3710_v33 = vmul.f32 0.2, %v3454_v34 }
 0x3a9   : > { %v2298_v35 = vpop.f32.mrf.mxu2  ;;  %v1046_v38 = vpop.f32.mrf.mxu0 }
 0x3aa   : > { %v3838_v36 = vsel %vm3582_vm0, %v3454_v34, %v3710_v33  ;;  %v2471_v24 = vadd.f32 %v2298_v35, %v1574_v32  ;;  %v3150_v37 = vpop.f32.mrf.mxu3  ;;  %v1575_v40 = vpop.f32.mrf.mxu1  ;;  %v4319_v34 = vld [vmem:[%s4690_s9 + $0x4d8] sm:$0xff]  ;;  %v4320_v32 = vld [vmem:[%s4690_s9 + $0x4e0] sm:$0xff] }
 0x3ab   : > { %3967 = vst.msk [vmem:[%s4790_s17 + $0x308] sm:$0xff] %vm3869_vm3, %v3838_v36  ;;  %v1576_v46 = vadd.f32 %v1575_v40, %v1046_v38  ;;  %v4517_v36 = vld [vmem:[%s4690_s9 + $0x4d9] sm:$0xff]  ;;  %v5929_v45 = vpack.c.bf16 %v4320_v32, %v4319_v34 }
 0x3ac   : > { %v3323_v41 = vadd.f32 %v3150_v37, %v2471_v24  ;;  %v4518_v24 = vld [vmem:[%s4690_s9 + $0x4e1] sm:$0xff] }
 0x3ae   : > { %v3455_v42 = vadd.f32 %v5812_v27, %v3323_v41 }
 0x3b0   : > { %vm3583_vm2 = vcmp.gt.f32.partialorder %v3455_v42, 0.0  ;;  %v3711_v44 = vmul.f32 0.2, %v3455_v42 }
 0x3b1   : > { %v2300_v48 = vpop.f32.mrf.mxu2  ;;  %v1049_v52 = vpop.f32.mrf.mxu0 }
 0x3b2   : > { %v3839_v50 = vsel %vm3583_vm2, %v3455_v42, %v3711_v44  ;;  %v2472_v53 = vadd.f32 %v2300_v48, %v1576_v46  ;;  %v3152_v51 = vpop.f32.mrf.mxu3  ;;  %v1578_v54 = vpop.f32.mrf.mxu1  ;;  %v5933_v44 = vpack.c.bf16 %v4518_v24, %v4517_v36 }
 0x3b3   : > { %3968 = vst.msk [vmem:[%s4790_s17 + $0x310] sm:$0xff] %vm3869_vm3, %v3839_v50  ;;  %v1579_v58 = vadd.f32 %v1578_v54, %v1049_v52 }
 0x3b4   : > { %v3324_v57 = vadd.f32 %v3152_v51, %v2472_v53  ;;  %4125 = vmatmul.msk.bf16.gmra.mxu0 %vm593_vm1, %v5845_v39 }
 0x3b5   : > { %4193 = vmatmul.msk.bf16.gmra.mxu1 %vm593_vm1, %v5841_v3 }
 0x3b6   : > { %v3456_v60 = vadd.f32 %v5812_v27, %v3324_v57  ;;  %4391 = vmatmul.msk.bf16.gmra.mxu2 %vm593_vm1, %v5885_v56 }
 0x3b7   : > { %4589 = vmatmul.msk.bf16.gmra.mxu3 %vm593_vm1, %v5889_v55 }
 0x3b8   : > { %vm3584_vm4 = vcmp.gt.f32.partialorder %v3456_v60, 0.0  ;;  %v3712_v59 = vmul.f32 0.2, %v3456_v60 }
 0x3b9   : > { %v2303_v61 = vpop.f32.mrf.mxu2  ;;  %v1051_v1 = vpop.f32.mrf.mxu0 }
 0x3ba   : > { %v3840_v0 = vsel %vm3584_vm4, %v3456_v60, %v3712_v59  ;;  %v2473_v62 = vadd.f32 %v2303_v61, %v1579_v58  ;;  %v3155_v63 = vpop.f32.mrf.mxu3  ;;  %v1580_v39 = vpop.f32.mrf.mxu1  ;;  %v4321_v60 = vld [vmem:[%s4690_s9 + $0x4e8] sm:$0xff]  ;;  %v4322_v58 = vld [vmem:[%s4690_s9 + $0x4f0] sm:$0xff] }
 0x3bb   : > { %3969 = vst.msk [vmem:[%s4790_s17 + $0x318] sm:$0xff] %vm3869_vm3, %v3840_v0  ;;  %v1581_v8 = vadd.f32 %v1580_v39, %v1051_v1  ;;  %v4519_v0 = vld [vmem:[%s4690_s9 + $0x4e9] sm:$0xff]  ;;  %v5951_v7 = vpack.c.bf16 %v4322_v58, %v4321_v60 }
 0x3bc   : > { %v3325_v3 = vadd.f32 %v3155_v63, %v2473_v62  ;;  %v4520_v62 = vld [vmem:[%s4690_s9 + $0x4f1] sm:$0xff] }
 0x3be   : > { %v3457_v4 = vadd.f32 %v5812_v27, %v3325_v3 }
 0x3c0   : > { %vm3585_vm5 = vcmp.gt.f32.partialorder %v3457_v4, 0.0  ;;  %v3713_v6 = vmul.f32 0.2, %v3457_v4 }
 0x3c1   : > { %v2305_v10 = vpop.f32.mrf.mxu2  ;;  %v1054_v14 = vpop.f32.mrf.mxu0 }
 0x3c2   : > { %v3841_v12 = vsel %vm3585_vm5, %v3457_v4, %v3713_v6  ;;  %v2474_v15 = vadd.f32 %v2305_v10, %v1581_v8  ;;  %v3157_v13 = vpop.f32.mrf.mxu3  ;;  %v1583_v16 = vpop.f32.mrf.mxu1  ;;  %v5955_v6 = vpack.c.bf16 %v4520_v62, %v4519_v0 }
 0x3c3   : > { %3970 = vst.msk [vmem:[%s4790_s17 + $0x320] sm:$0xff] %vm3869_vm3, %v3841_v12  ;;  %v1584_v20 = vadd.f32 %v1583_v16, %v1054_v14 }
 0x3c4   : > { %v3326_v19 = vadd.f32 %v3157_v13, %v2474_v15  ;;  %4126 = vmatmul.msk.bf16.gmra.mxu0 %vm593_vm1, %v5867_v29 }
 0x3c5   : > { %4194 = vmatmul.msk.bf16.gmra.mxu1 %vm593_vm1, %v5863_v30 }
 0x3c6   : > { %v3458_v22 = vadd.f32 %v5812_v27, %v3326_v19  ;;  %4392 = vmatmul.msk.bf16.gmra.mxu2 %vm593_vm1, %v5907_v18 }
 0x3c7   : > { %4590 = vmatmul.msk.bf16.gmra.mxu3 %vm593_vm1, %v5911_v17 }
 0x3c8   : > { %vm3586_vm6 = vcmp.gt.f32.partialorder %v3458_v22, 0.0  ;;  %v3714_v2 = vmul.f32 0.2, %v3458_v22 }
 0x3c9   : > { %v2308_v21 = vpop.f32.mrf.mxu2  ;;  %v1056_v28 = vpop.f32.mrf.mxu0 }
 0x3ca   : > { %v3842_v23 = vsel %vm3586_vm6, %v3458_v22, %v3714_v2  ;;  %v2475_v25 = vadd.f32 %v2308_v21, %v1584_v20  ;;  %v3160_v26 = vpop.f32.mrf.mxu3  ;;  %v1585_v29 = vpop.f32.mrf.mxu1  ;;  %v4323_v22 = vld [vmem:[%s4690_s9 + $0x500] sm:$0xff]  ;;  %v4324_v20 = vld [vmem:[%s4690_s9 + $0x508] sm:$0xff] }
 0x3cb   : > { %3971 = vst.msk [vmem:[%s4790_s17 + $0x328] sm:$0xff] %vm3869_vm3, %v3842_v23  ;;  %v1586_v35 = vadd.f32 %v1585_v29, %v1056_v28  ;;  %v4521_v23 = vld [vmem:[%s4690_s9 + $0x501] sm:$0xff]  ;;  %v1839_v34 = vpack.c.bf16 %v4324_v20, %v4323_v22 }
 0x3cc   : > { %v3327_v30 = vadd.f32 %v3160_v26, %v2475_v25  ;;  %v4522_v25 = vld [vmem:[%s4690_s9 + $0x509] sm:$0xff] }
 0x3ce   : > { %v3459_v31 = vadd.f32 %v5812_v27, %v3327_v30 }
 0x3d0   : > { %vm3587_vm7 = vcmp.gt.f32.partialorder %v3459_v31, 0.0  ;;  %v3715_v33 = vmul.f32 0.2, %v3459_v31 }
 0x3d1   : > { %v2310_v37 = vpop.f32.mrf.mxu2  ;;  %v1059_v42 = vpop.f32.mrf.mxu0 }
 0x3d2   : > { %v3843_v38 = vsel %vm3587_vm7, %v3459_v31, %v3715_v33  ;;  %v2476_v40 = vadd.f32 %v2310_v37, %v1586_v35  ;;  %v3162_v41 = vpop.f32.mrf.mxu3  ;;  %v1588_v43 = vpop.f32.mrf.mxu1  ;;  %v2691_v33 = vpack.c.bf16 %v4522_v25, %v4521_v23 }
 0x3d3   : > { %3972 = vst.msk [vmem:[%s4790_s17 + $0x330] sm:$0xff] %vm3869_vm3, %v3843_v38  ;;  %v1589_v47 = vadd.f32 %v1588_v43, %v1059_v42 }
 0x3d4   : > { %v3328_v46 = vadd.f32 %v3162_v41, %v2476_v40  ;;  %4127 = vmatmul.msk.bf16.gmra.mxu0 %vm593_vm1, %v5889_v55 }
 0x3d5   : > { %4195 = vmatmul.msk.bf16.gmra.mxu1 %vm593_vm1, %v5885_v56 }
 0x3d6   : > { %v3460_v49 = vadd.f32 %v5812_v27, %v3328_v46  ;;  %4393 = vmatmul.msk.bf16.gmra.mxu2 %vm593_vm1, %v5929_v45 }
 0x3d7   : > { %4591 = vmatmul.msk.bf16.gmra.mxu3 %vm593_vm1, %v5933_v44 }
 0x3d8   : > { %vm3588_vm8 = vcmp.gt.f32.partialorder %v3460_v49, 0.0  ;;  %v3716_v48 = vmul.f32 0.2, %v3460_v49 }
 0x3d9   : > { %v2313_v50 = vpop.f32.mrf.mxu2  ;;  %v1061_v54 = vpop.f32.mrf.mxu0 }
 0x3da   : > { %v3844_v53 = vsel %vm3588_vm8, %v3460_v49, %v3716_v48  ;;  %v2477_v51 = vadd.f32 %v2313_v50, %v1589_v47  ;;  %v3165_v52 = vpop.f32.mrf.mxu3  ;;  %v1590_v55 = vpop.f32.mrf.mxu1  ;;  %v4325_v49 = vld [vmem:[%s4690_s9 + $0x510] sm:$0xff]  ;;  %v4326_v47 = vld [vmem:[%s4690_s9 + $0x518] sm:$0xff] }
 0x3db   : > { %3973 = vst.msk [vmem:[%s4790_s17 + $0x338] sm:$0xff] %vm3869_vm3, %v3844_v53  ;;  %v1591_v61 = vadd.f32 %v1590_v55, %v1061_v54  ;;  %v4523_v53 = vld [vmem:[%s4690_s9 + $0x511] sm:$0xff]  ;;  %v1840_v60 = vpack.c.bf16 %v4326_v47, %v4325_v49 }
 0x3dc   : > { %v3329_v56 = vadd.f32 %v3165_v52, %v2477_v51  ;;  %v4524_v51 = vld [vmem:[%s4690_s9 + $0x519] sm:$0xff] }
 0x3de   : > { %v3461_v57 = vadd.f32 %v5812_v27, %v3329_v56 }
 0x3e0   : > { %vm3589_vm9 = vcmp.gt.f32.partialorder %v3461_v57, 0.0  ;;  %v3717_v59 = vmul.f32 0.2, %v3461_v57 }
 0x3e1   : > { %v2315_v63 = vpop.f32.mrf.mxu2  ;;  %v1064_v4 = vpop.f32.mrf.mxu0 }
 0x3e2   : > { %v3845_v1 = vsel %vm3589_vm9, %v3461_v57, %v3717_v59  ;;  %v2478_v39 = vadd.f32 %v2315_v63, %v1591_v61  ;;  %v3167_v3 = vpop.f32.mrf.mxu3  ;;  %v1593_v5 = vpop.f32.mrf.mxu1  ;;  %v2692_v59 = vpack.c.bf16 %v4524_v51, %v4523_v53 }
 0x3e3   : > { %3974 = vst.msk [vmem:[%s4790_s17 + $0x340] sm:$0xff] %vm3869_vm3, %v3845_v1  ;;  %v1594_v9 = vadd.f32 %v1593_v5, %v1064_v4 }
 0x3e4   : > { %v3330_v8 = vadd.f32 %v3167_v3, %v2478_v39  ;;  %4128 = vmatmul.msk.bf16.gmra.mxu0 %vm593_vm1, %v5911_v17 }
 0x3e5   : > { %4196 = vmatmul.msk.bf16.gmra.mxu1 %vm593_vm1, %v5907_v18 }
 0x3e6   : > { %v3462_v11 = vadd.f32 %v5812_v27, %v3330_v8  ;;  %4394 = vmatmul.msk.bf16.gmra.mxu2 %vm593_vm1, %v5951_v7 }
 0x3e7   : > { %4592 = vmatmul.msk.bf16.gmra.mxu3 %vm593_vm1, %v5955_v6 }
 0x3e8   : > { %vm3590_vm10 = vcmp.gt.f32.partialorder %v3462_v11, 0.0  ;;  %v3718_v10 = vmul.f32 0.2, %v3462_v11 }
 0x3e9   : > { %v2318_v12 = vpop.f32.mrf.mxu2  ;;  %v1066_v16 = vpop.f32.mrf.mxu0 }
 0x3ea   : > { %v3846_v15 = vsel %vm3590_vm10, %v3462_v11, %v3718_v10  ;;  %v2479_v13 = vadd.f32 %v2318_v12, %v1594_v9  ;;  %v3170_v14 = vpop.f32.mrf.mxu3  ;;  %v1595_v17 = vpop.f32.mrf.mxu1 }
 0x3eb   : > { %3975 = vst.msk [vmem:[%s4790_s17 + $0x348] sm:$0xff] %vm3869_vm3, %v3846_v15  ;;  %v1596_v21 = vadd.f32 %v1595_v17, %v1066_v16 }
 0x3ec   : > { %v3331_v18 = vadd.f32 %v3170_v14, %v2479_v13 }
 0x3ee   : > { %v3463_v19 = vadd.f32 %v5812_v27, %v3331_v18 }
 0x3f0   : > { %vm3591_vm11 = vcmp.gt.f32.partialorder %v3463_v19, 0.0  ;;  %v3719_v2 = vmul.f32 0.2, %v3463_v19 }
 0x3f1   : > { %v2320_v26 = vpop.f32.mrf.mxu2  ;;  %v1069_v31 = vpop.f32.mrf.mxu0 }
 0x3f2   : > { %v3847_v28 = vsel %vm3591_vm11, %v3463_v19, %v3719_v2  ;;  %v2480_v29 = vadd.f32 %v2320_v26, %v1596_v21  ;;  %v3172_v30 = vpop.f32.mrf.mxu3  ;;  %v1598_v32 = vpop.f32.mrf.mxu1 }
 0x3f3   : > { %3976 = vst.msk [vmem:[%s4790_s17 + $0x350] sm:$0xff] %vm3869_vm3, %v3847_v28  ;;  %v1599_v24 = vadd.f32 %v1598_v32, %v1069_v31 }
 0x3f4   : > { %v3332_v35 = vadd.f32 %v3172_v30, %v2480_v29  ;;  %4129 = vmatmul.msk.bf16.gmra.mxu0 %vm593_vm1, %v5933_v44 }
 0x3f5   : > { %4197 = vmatmul.msk.bf16.gmra.mxu1 %vm593_vm1, %v5929_v45 }
 0x3f6   : > { %v3464_v36 = vadd.f32 %v5812_v27, %v3332_v35  ;;  %4395 = vmatmul.msk.bf16.gmra.mxu2 %vm593_vm1, %v1839_v34 }
 0x3f7   : > { %4593 = vmatmul.msk.bf16.gmra.mxu3 %vm593_vm1, %v2691_v33 }
 0x3f8   : > { %vm3592_vm12 = vcmp.gt.f32.partialorder %v3464_v36, 0.0  ;;  %v3720_v37 = vmul.f32 0.2, %v3464_v36 }
 0x3f9   : > { %v2323_v38 = vpop.f32.mrf.mxu2  ;;  %v1071_v43 = vpop.f32.mrf.mxu0 }
 0x3fa   : > { %v3848_v40 = vsel %vm3592_vm12, %v3464_v36, %v3720_v37  ;;  %v2481_v41 = vadd.f32 %v2323_v38, %v1599_v24  ;;  %v3175_v42 = vpop.f32.mrf.mxu3  ;;  %v1600_v44 = vpop.f32.mrf.mxu1 }
 0x3fb   : > { %3977 = vst.msk [vmem:[%s4790_s17 + $0x358] sm:$0xff] %vm3869_vm3, %v3848_v40  ;;  %v1601_v50 = vadd.f32 %v1600_v44, %v1071_v43 }
 0x3fc   : > { %v3333_v46 = vadd.f32 %v3175_v42, %v2481_v41 }
 0x3fe   : > { %v3465_v45 = vadd.f32 %v5812_v27, %v3333_v46 }
 0x400   : > { %vm3593_vm13 = vcmp.gt.f32.partialorder %v3465_v45, 0.0  ;;  %v3721_v48 = vmul.f32 0.2, %v3465_v45 }
 0x401   : > { %v2325_v52 = vpop.f32.mrf.mxu2  ;;  %v1074_v57 = vpop.f32.mrf.mxu0 }
 0x402   : > { %v3849_v54 = vsel %vm3593_vm13, %v3465_v45, %v3721_v48  ;;  %v2482_v55 = vadd.f32 %v2325_v52, %v1601_v50  ;;  %v3177_v56 = vpop.f32.mrf.mxu3  ;;  %v1603_v58 = vpop.f32.mrf.mxu1 }
 0x403   : > { %3978 = vst.msk [vmem:[%s4790_s17 + $0x360] sm:$0xff] %vm3869_vm3, %v3849_v54  ;;  %v1604_v62 = vadd.f32 %v1603_v58, %v1074_v57 }
 0x404   : > { %v3334_v61 = vadd.f32 %v3177_v56, %v2482_v55  ;;  %4130 = vmatmul.msk.bf16.gmra.mxu0 %vm593_vm1, %v5955_v6 }
 0x405   : > { %4198 = vmatmul.msk.bf16.gmra.mxu1 %vm593_vm1, %v5951_v7 }
 0x406   : > { %v3466_v0 = vadd.f32 %v5812_v27, %v3334_v61  ;;  %4396 = vmatmul.msk.bf16.gmra.mxu2 %vm593_vm1, %v1840_v60 }
 0x407   : > { %4594 = vmatmul.msk.bf16.gmra.mxu3 %vm593_vm1, %v2692_v59 }
 0x408   : > { %vm3594_vm14 = vcmp.gt.f32.partialorder %v3466_v0, 0.0  ;;  %v3722_v63 = vmul.f32 0.2, %v3466_v0 }
 0x409   : > { %v2328_v1 = vpop.f32.mrf.mxu2  ;;  %v1076_v5 = vpop.f32.mrf.mxu0 }
 0x40a   : > { %v3850_v39 = vsel %vm3594_vm14, %v3466_v0, %v3722_v63  ;;  %v2483_v3 = vadd.f32 %v2328_v1, %v1604_v62  ;;  %v3180_v4 = vpop.f32.mrf.mxu3  ;;  %v1605_v6 = vpop.f32.mrf.mxu1 }
 0x40b   : > { %3979 = vst.msk [vmem:[%s4790_s17 + $0x368] sm:$0xff] %vm3869_vm3, %v3850_v39  ;;  %v1606_v9 = vadd.f32 %v1605_v6, %v1076_v5 }
 0x40c   : > { %v3335_v8 = vadd.f32 %v3180_v4, %v2483_v3 }
 0x40e   : > { %v3467_v11 = vadd.f32 %v5812_v27, %v3335_v8 }
 0x410   : > { %vm3595_vm15 = vcmp.gt.f32.partialorder %v3467_v11, 0.0  ;;  %v3723_v7 = vmul.f32 0.2, %v3467_v11 }
 0x411   : > { %v2330_v10 = vpop.f32.mrf.mxu2  ;;  %v1079_v14 = vpop.f32.mrf.mxu0 }
 0x412   : > { %v3851_v12 = vsel %vm3595_vm15, %v3467_v11, %v3723_v7  ;;  %v2484_v15 = vadd.f32 %v2330_v10, %v1606_v9  ;;  %v3182_v13 = vpop.f32.mrf.mxu3  ;;  %v1608_v16 = vpop.f32.mrf.mxu1 }
 0x413   : > { %3980 = vst.msk [vmem:[%s4790_s17 + $0x370] sm:$0xff] %vm3869_vm3, %v3851_v12  ;;  %v1609_v19 = vadd.f32 %v1608_v16, %v1079_v14 }
 0x414   : > { %v3336_v17 = vadd.f32 %v3182_v13, %v2484_v15 }
 0x416   : > { %v3468_v18 = vadd.f32 %v5812_v27, %v3336_v17 }
 0x418   : > { %vm3596_vm1 = vcmp.gt.f32.partialorder %v3468_v18, 0.0  ;;  %v3724_v22 = vmul.f32 0.2, %v3468_v18 }
 0x419   : > { %v2333_v20 = vpop.f32.mrf.mxu2  ;;  %v1081_v25 = vpop.f32.mrf.mxu0 }
 0x41a   : > { %v3852_v2 = vsel %vm3596_vm1, %v3468_v18, %v3724_v22  ;;  %v2485_v21 = vadd.f32 %v2333_v20, %v1609_v19  ;;  %v3185_v23 = vpop.f32.mrf.mxu3  ;;  %v1610_v26 = vpop.f32.mrf.mxu1 }
 0x41b   : > { %3981 = vst.msk [vmem:[%s4790_s17 + $0x378] sm:$0xff] %vm3869_vm3, %v3852_v2  ;;  %v1611_v31 = vadd.f32 %v1610_v26, %v1081_v25 }
 0x41c   : > { %v3337_v28 = vadd.f32 %v3185_v23, %v2485_v21 }
 0x41e   : > { %v3469_v29 = vadd.f32 %v5812_v27, %v3337_v28 }
 0x420   : > { %vm3597_vm0 = vcmp.gt.f32.partialorder %v3469_v29, 0.0  ;;  %v3725_v30 = vmul.f32 0.2, %v3469_v29 }
 0x421   : > { %v2335_v34 = vpop.f32.mrf.mxu2  ;;  %v1084_v36 = vpop.f32.mrf.mxu0 }
 0x422   : > { %v3853_v32 = vsel %vm3597_vm0, %v3469_v29, %v3725_v30  ;;  %v2486_v33 = vadd.f32 %v2335_v34, %v1611_v31  ;;  %v3187_v35 = vpop.f32.mrf.mxu3  ;;  %v1613_v24 = vpop.f32.mrf.mxu1 }
 0x423   : > { %3982 = vst.msk [vmem:[%s4790_s17 + $0x380] sm:$0xff] %vm3869_vm3, %v3853_v32  ;;  %v1614_v40 = vadd.f32 %v1613_v24, %v1084_v36 }
 0x424   : > { %v3338_v37 = vadd.f32 %v3187_v35, %v2486_v33 }
 0x426   : > { %v3470_v38 = vadd.f32 %v5812_v27, %v3338_v37 }
 0x428   : > { %vm3598_vm2 = vcmp.gt.f32.partialorder %v3470_v38, 0.0  ;;  %v3726_v41 = vmul.f32 0.2, %v3470_v38 }
 0x429   : > { %v2338_v42 = vpop.f32.mrf.mxu2  ;;  %v1086_v45 = vpop.f32.mrf.mxu0 }
 0x42a   : > { %v3854_v43 = vsel %vm3598_vm2, %v3470_v38, %v3726_v41  ;;  %v2487_v44 = vadd.f32 %v2338_v42, %v1614_v40  ;;  %v3190_v46 = vpop.f32.mrf.mxu3  ;;  %v1615_v49 = vpop.f32.mrf.mxu1 }
 0x42b   : > { %3983 = vst.msk [vmem:[%s4790_s17 + $0x388] sm:$0xff] %vm3869_vm3, %v3854_v43  ;;  %v1616_v53 = vadd.f32 %v1615_v49, %v1086_v45 }
 0x42c   : > { %v3339_v47 = vadd.f32 %v3190_v46, %v2487_v44 }
 0x42e   : > { %v3471_v48 = vadd.f32 %v5812_v27, %v3339_v47 }
 0x430   : > { %vm3599_vm4 = vcmp.gt.f32.partialorder %v3471_v48, 0.0  ;;  %v3727_v50 = vmul.f32 0.2, %v3471_v48 }
 0x431   : > { %v2340_v51 = vpop.f32.mrf.mxu2  ;;  %v1089_v56 = vpop.f32.mrf.mxu0 }
 0x432   : > { %v3855_v52 = vsel %vm3599_vm4, %v3471_v48, %v3727_v50  ;;  %v2488_v54 = vadd.f32 %v2340_v51, %v1616_v53  ;;  %v3192_v55 = vpop.f32.mrf.mxu3  ;;  %v1618_v57 = vpop.f32.mrf.mxu1 }
 0x433   : > { %3984 = vst.msk [vmem:[%s4790_s17 + $0x390] sm:$0xff] %vm3869_vm3, %v3855_v52  ;;  %v1619_v59 = vadd.f32 %v1618_v57, %v1089_v56 }
 0x434   : > { %v3340_v60 = vadd.f32 %v3192_v55, %v2488_v54 }
 0x436   : > { %v3472_v58 = vadd.f32 %v5812_v27, %v3340_v60 }
 0x438   : > { %vm3600_vm5 = vcmp.gt.f32.partialorder %v3472_v58, 0.0  ;;  %v3728_v61 = vmul.f32 0.2, %v3472_v58 }
 0x439   : > { %v2343_v0 = vpop.f32.mrf.mxu2  ;;  %v1091_v39 = vpop.f32.mrf.mxu0 }
 0x43a   : > { %v3856_v62 = vsel %vm3600_vm5, %v3472_v58, %v3728_v61  ;;  %v2489_v63 = vadd.f32 %v2343_v0, %v1619_v59  ;;  %v3195_v1 = vpop.f32.mrf.mxu3  ;;  %v1620_v3 = vpop.f32.mrf.mxu1 }
 0x43b   : > { %3985 = vst.msk [vmem:[%s4790_s17 + $0x398] sm:$0xff] %vm3869_vm3, %v3856_v62  ;;  %v1621_v8 = vadd.f32 %v1620_v3, %v1091_v39 }
 0x43c   : > { %v3341_v4 = vadd.f32 %v3195_v1, %v2489_v63 }
 0x43e   : > { %v3473_v5 = vadd.f32 %v5812_v27, %v3341_v4 }
 0x440   : > { %vm3601_vm6 = vcmp.gt.f32.partialorder %v3473_v5, 0.0  ;;  %v3729_v6 = vmul.f32 0.2, %v3473_v5 }
 0x441   : > { %v2345_v11 = vpop.f32.mrf.mxu2  ;;  %v1094_v12 = vpop.f32.mrf.mxu0 }
 0x442   : > { %v3857_v7 = vsel %vm3601_vm6, %v3473_v5, %v3729_v6  ;;  %v2490_v9 = vadd.f32 %v2345_v11, %v1621_v8  ;;  %v3197_v10 = vpop.f32.mrf.mxu3  ;;  %v1623_v15 = vpop.f32.mrf.mxu1 }
 0x443   : > { %3986 = vst.msk [vmem:[%s4790_s17 + $0x3a0] sm:$0xff] %vm3869_vm3, %v3857_v7  ;;  %v1624_v16 = vadd.f32 %v1623_v15, %v1094_v12 }
 0x444   : > { %v3342_v13 = vadd.f32 %v3197_v10, %v2490_v9 }
 0x446   : > { %v3474_v14 = vadd.f32 %v5812_v27, %v3342_v13 }
 0x448   : > { %vm3602_vm7 = vcmp.gt.f32.partialorder %v3474_v14, 0.0  ;;  %v3730_v17 = vmul.f32 0.2, %v3474_v14 }
 0x449   : > { %v2348_v18 = vpop.f32.mrf.mxu2  ;;  %v1096_v2 = vpop.f32.mrf.mxu0 }
 0x44a   : > { %v3858_v19 = vsel %vm3602_vm7, %v3474_v14, %v3730_v17  ;;  %v2491_v22 = vadd.f32 %v2348_v18, %v1624_v16  ;;  %v3200_v20 = vpop.f32.mrf.mxu3  ;;  %v1625_v21 = vpop.f32.mrf.mxu1 }
 0x44b   : > { %3987 = vst.msk [vmem:[%s4790_s17 + $0x3a8] sm:$0xff] %vm3869_vm3, %v3858_v19  ;;  %v1626_v28 = vadd.f32 %v1625_v21, %v1096_v2 }
 0x44c   : > { %v3343_v23 = vadd.f32 %v3200_v20, %v2491_v22 }
 0x44e   : > { %v3475_v25 = vadd.f32 %v5812_v27, %v3343_v23 }
 0x450   : > { %vm3603_vm8 = vcmp.gt.f32.partialorder %v3475_v25, 0.0  ;;  %v3731_v26 = vmul.f32 0.2, %v3475_v25 }
 0x451   : > { %v2350_v29 = vpop.f32.mrf.mxu2  ;;  %v1099_v32 = vpop.f32.mrf.mxu0 }
 0x452   : > { %v3859_v30 = vsel %vm3603_vm8, %v3475_v25, %v3731_v26  ;;  %v2492_v31 = vadd.f32 %v2350_v29, %v1626_v28  ;;  %v3202_v34 = vpop.f32.mrf.mxu3  ;;  %v1628_v33 = vpop.f32.mrf.mxu1 }
 0x453   : > { %3988 = vst.msk [vmem:[%s4790_s17 + $0x3b0] sm:$0xff] %vm3869_vm3, %v3859_v30  ;;  %v1629_v24 = vadd.f32 %v1628_v33, %v1099_v32 }
 0x454   : > { %v3344_v35 = vadd.f32 %v3202_v34, %v2492_v31 }
 0x456   : > { %v3476_v36 = vadd.f32 %v5812_v27, %v3344_v35 }
 0x458   : > { %vm3604_vm9 = vcmp.gt.f32.partialorder %v3476_v36, 0.0  ;;  %v3732_v37 = vmul.f32 0.2, %v3476_v36 }
 0x459   : > { %v2353_v38 = vpop.f32.mrf.mxu2  ;;  %v1101_v43 = vpop.f32.mrf.mxu0 }
 0x45a   : > { %v3860_v40 = vsel %vm3604_vm9, %v3476_v36, %v3732_v37  ;;  %v2493_v41 = vadd.f32 %v2353_v38, %v1629_v24  ;;  %v3205_v42 = vpop.f32.mrf.mxu3  ;;  %v1630_v44 = vpop.f32.mrf.mxu1 }
 0x45b   : > { %3989 = vst.msk [vmem:[%s4790_s17 + $0x3b8] sm:$0xff] %vm3869_vm3, %v3860_v40  ;;  %v1631_v47 = vadd.f32 %v1630_v44, %v1101_v43 }
 0x45c   : > { %v3345_v46 = vadd.f32 %v3205_v42, %v2493_v41 }
 0x45e   : > { %v3477_v45 = vadd.f32 %v5812_v27, %v3345_v46 }
 0x460   : > { %vm3605_vm10 = vcmp.gt.f32.partialorder %v3477_v45, 0.0  ;;  %v3733_v49 = vmul.f32 0.2, %v3477_v45 }
 0x461   : > { %v2355_v48 = vpop.f32.mrf.mxu2  ;;  %v1104_v52 = vpop.f32.mrf.mxu0 }
 0x462   : > { %v3861_v50 = vsel %vm3605_vm10, %v3477_v45, %v3733_v49  ;;  %v2494_v53 = vadd.f32 %v2355_v48, %v1631_v47  ;;  %v3207_v51 = vpop.f32.mrf.mxu3  ;;  %v1633_v54 = vpop.f32.mrf.mxu1 }
 0x463   : > { %3990 = vst.msk [vmem:[%s4790_s17 + $0x3c0] sm:$0xff] %vm3869_vm3, %v3861_v50  ;;  %v1634_v57 = vadd.f32 %v1633_v54, %v1104_v52 }
 0x464   : > { %v3346_v55 = vadd.f32 %v3207_v51, %v2494_v53 }
 0x466   : > { %v3478_v56 = vadd.f32 %v5812_v27, %v3346_v55 }
 0x468   : > { %vm3606_vm11 = vcmp.gt.f32.partialorder %v3478_v56, 0.0  ;;  %v3734_v60 = vmul.f32 0.2, %v3478_v56 }
 0x469   : > { %v2358_v58 = vpop.f32.mrf.mxu2  ;;  %v1106_v62 = vpop.f32.mrf.mxu0 }
 0x46a   : > { %v3862_v59 = vsel %vm3606_vm11, %v3478_v56, %v3734_v60  ;;  %v2495_v61 = vadd.f32 %v2358_v58, %v1634_v57  ;;  %v3210_v0 = vpop.f32.mrf.mxu3  ;;  %v1635_v63 = vpop.f32.mrf.mxu1 }
 0x46b   : > { %3991 = vst.msk [vmem:[%s4790_s17 + $0x3c8] sm:$0xff] %vm3869_vm3, %v3862_v59  ;;  %v1636_v4 = vadd.f32 %v1635_v63, %v1106_v62 }
 0x46c   : > { %v3347_v1 = vadd.f32 %v3210_v0, %v2495_v61 }
 0x46e   : > { %v3479_v39 = vadd.f32 %v5812_v27, %v3347_v1 }
 0x470   : > { %vm3607_vm12 = vcmp.gt.f32.partialorder %v3479_v39, 0.0  ;;  %v3735_v3 = vmul.f32 0.2, %v3479_v39 }
 0x471   : > { %v2360_v5 = vpop.f32.mrf.mxu2  ;;  %v1109_v7 = vpop.f32.mrf.mxu0 }
 0x472   : > { %v3863_v6 = vsel %vm3607_vm12, %v3479_v39, %v3735_v3  ;;  %v2496_v8 = vadd.f32 %v2360_v5, %v1636_v4  ;;  %v3212_v11 = vpop.f32.mrf.mxu3  ;;  %v1638_v9 = vpop.f32.mrf.mxu1 }
 0x473   : > { %3992 = vst.msk [vmem:[%s4790_s17 + $0x3d0] sm:$0xff] %vm3869_vm3, %v3863_v6  ;;  %v1639_v15 = vadd.f32 %v1638_v9, %v1109_v7 }
 0x474   : > { %v3348_v10 = vadd.f32 %v3212_v11, %v2496_v8 }
 0x476   : > { %v3480_v12 = vadd.f32 %v5812_v27, %v3348_v10 }
 0x478   : > { %vm3608_vm13 = vcmp.gt.f32.partialorder %v3480_v12, 0.0  ;;  %v3736_v13 = vmul.f32 0.2, %v3480_v12 }
 0x479   : > { %v2363_v14 = vpop.f32.mrf.mxu2  ;;  %v1111_v19 = vpop.f32.mrf.mxu0 }
 0x47a   : > { %v3864_v16 = vsel %vm3608_vm13, %v3480_v12, %v3736_v13  ;;  %v2497_v17 = vadd.f32 %v2363_v14, %v1639_v15  ;;  %v3215_v18 = vpop.f32.mrf.mxu3  ;;  %v1640_v22 = vpop.f32.mrf.mxu1 }
 0x47b   : > { %3993 = vst.msk [vmem:[%s4790_s17 + $0x3d8] sm:$0xff] %vm3869_vm3, %v3864_v16  ;;  %v1641_v23 = vadd.f32 %v1640_v22, %v1111_v19 }
 0x47c   : > { %v3349_v20 = vadd.f32 %v3215_v18, %v2497_v17 }
 0x47e   : > { %v3481_v2 = vadd.f32 %v5812_v27, %v3349_v20 }
 0x480   : > { %vm3609_vm14 = vcmp.gt.f32.partialorder %v3481_v2, 0.0  ;;  %v3737_v21 = vmul.f32 0.2, %v3481_v2 }
 0x481   : > { %v2365_v25 = vpop.f32.mrf.mxu2  ;;  %v1114_v30 = vpop.f32.mrf.mxu0 }
 0x482   : > { %v3865_v26 = vsel %vm3609_vm14, %v3481_v2, %v3737_v21  ;;  %v2498_v28 = vadd.f32 %v2365_v25, %v1641_v23  ;;  %v3217_v29 = vpop.f32.mrf.mxu3  ;;  %v1643_v31 = vpop.f32.mrf.mxu1 }
 0x483   : > { %3994 = vst.msk [vmem:[%s4790_s17 + $0x3e0] sm:$0xff] %vm3869_vm3, %v3865_v26  ;;  %v1644_v33 = vadd.f32 %v1643_v31, %v1114_v30 }
 0x484   : > { %v3350_v34 = vadd.f32 %v3217_v29, %v2498_v28 }
 0x486   : > { %v3482_v32 = vadd.f32 %v5812_v27, %v3350_v34 }
 0x488   : > { %vm3610_vm15 = vcmp.gt.f32.partialorder %v3482_v32, 0.0  ;;  %v3738_v35 = vmul.f32 0.2, %v3482_v32 }
 0x489   : > { %v2368_v36 = vpop.f32.mrf.mxu2  ;;  %v1116_v41 = vpop.f32.mrf.mxu0 }
 0x48a   : > { %v3866_v24 = vsel %vm3610_vm15, %v3482_v32, %v3738_v35  ;;  %v2499_v37 = vadd.f32 %v2368_v36, %v1644_v33  ;;  %v3220_v38 = vpop.f32.mrf.mxu3  ;;  %v1645_v42 = vpop.f32.mrf.mxu1 }
 0x48b   : > { %3995 = vst.msk [vmem:[%s4790_s17 + $0x3e8] sm:$0xff] %vm3869_vm3, %v3866_v24  ;;  %v1646_v46 = vadd.f32 %v1645_v42, %v1116_v41 }
 0x48c   : > { %v3351_v40 = vadd.f32 %v3220_v38, %v2499_v37 }
 0x48e   : > { %v3483_v43 = vadd.f32 %v5812_v27, %v3351_v40 }
 0x490   : > { %vm3611_vm1 = vcmp.gt.f32.partialorder %v3483_v43, 0.0  ;;  %v3739_v44 = vmul.f32 0.2, %v3483_v43 }
 0x491   : > { %v2370_v45 = vpop.f32.mrf.mxu2 }
 0x492   : > { %v3867_v49 = vsel %vm3611_vm1, %v3483_v43, %v3739_v44  ;;  %v2500_v47 = vadd.f32 %v2370_v45, %v1646_v46  ;;  %v3222_v48 = vpop.f32.mrf.mxu3 }
 0x493   : > { %3996 = vst.msk [vmem:[%s4790_s17 + $0x3f0] sm:$0xff] %vm3869_vm3, %v3867_v49 }
 0x494   : > { %v3352_v50 = vadd.f32 %v3222_v48, %v2500_v47 }
 0x496   : > { %v3484_v53 = vadd.f32 %v5812_v27, %v3352_v50 }
 0x498   : > { %vm3612_vm0 = vcmp.gt.f32.partialorder %v3484_v53, 0.0  ;;  %v3740_v51 = vmul.f32 0.2, %v3484_v53 }
 0x49a   : > { %v3868_v52 = vsel %vm3612_vm0, %v3484_v53, %v3740_v51 }
 0x49b   : > { %3997 = vst.msk [vmem:[%s4790_s17 + $0x3f8] sm:$0xff] %vm3869_vm3, %v3868_v52 }
 0x49c PF: > { %s14_s15 = sadd.s32 1, %s4621_s15  }
 0x49d   : > { %p11_p4 = scmp.ge.s32.totalorder %s14_s15, 4  }
 0x49f   :  { %13 = sbr.rel (!%p11_p4) target bundleno = 1 (0x1), region = 70 }

// kernel: discriminator_forward.5
= control target key start
LH: loop header
LB: loop body
LE: loop exit
PB: predicated region body
PF: predicated region fallthrough
CT: control target
= control target key end

     0   :  { %s1825_s15 = smov 0   ;;  %s2557_s0 = inlined_call_operand.vmem [shape: f32[2,17,17,32], index: 0, kind: input, shape index: {}]   ;;  %s2558_s1 = inlined_call_operand.vmem [shape: bf16[4,32,16], index: 1, kind: input, shape index: {}]   ;;  %s2559_s2 = inlined_call_operand.vmem [shape: f32[1,16], index: 2, kind: input, shape index: {}]   ;;  %s2560_s3 = inlined_call_operand.vmem [shape: f32[1,16], index: 3, kind: input, shape index: {}]   ;;  %s2561_s4 = inlined_call_operand.vmem [shape: f32[2,256,16], index: 4, kind: output, shape index: {}]  }
   0x1 LB: > { %s1584_s16 = sadd.s32 4294967295, %s1797_s15   ;;  %p1588_p0 = scmp.ge.s32.totalorder %s1797_s15, 1  ;;  %s1797_s15 = sphi %s1825_s15, %s14_s15  }
   0x2   : > { %p162_p1 = scmp.lt.s32.totalorder %s1797_s15, 3 }
   0x4   : > { %p163_p2 = pnand %p1588_p0, %p162_p1 }
   0x6   : > { %166 = sbr.rel (%p163_p2) target bundleno = 500 (0x1f4), region = 36 }
   0xb   : > { %v1770_v0 = vld [vmem:[%s2558_s1 + $0x18] sm:$0xff]  ;;  %v1768_v1 = vld [vmem:[%s2558_s1 + $0x8] sm:$0xff]  ;;  %p188_p3 = scmp.lt.s32.totalorder %s1584_s16, 1  ;;  %v1769_v4 = vld [vmem:[%s2558_s1 + $0x10] sm:$0xff]  ;;  %vm316_vm0 = vcmask 261120   ;;  %vm1072_vm1 = vcmask 130048  }
   0xc   : > { %v1772_v2 = vld [vmem:[%s2558_s1 + $0x28] sm:$0xff]  ;;  %v1774_v3 = vld [vmem:[%s2558_s1 + $0x38] sm:$0xff]  ;;  %371 = vmatpush.bf16.msra.mxu0 %v1770_v0  ;;  %520 = vmatpush.bf16.msra.mxu1 %v1768_v1  ;;  %v1767_v5 = vld [vmem:[%s2558_s1] sm:$0xff] }
   0xd   : > { %s2575_s16 = smov (!%p188_p3, %s1584_s16), 1  ;;  %723 = vmatpush.bf16.msra.mxu2 %v1772_v2  ;;  %957 = vmatpush.bf16.msra.mxu3 %v1774_v3  ;;  %v1771_v6 = vld [vmem:[%s2558_s1 + $0x20] sm:$0xff]  ;;  %v1773_v7 = vld [vmem:[%s2558_s1 + $0x30] sm:$0xff] }
   0xe   : > { %s1775_s7 = smul.u32 408, %s2575_s16  ;;  %s1766_s17 = sshll.u32 %s2575_s16, 8 }
   0xf   : > { %s2427_s19 = scalar_lea.vmem %s2561_s4, %s1766_s17 }
  0x10   : > { %372 = vmatpush.bf16.msra.mxu0 %v1769_v4  ;;  %521 = vmatpush.bf16.msra.mxu1 %v1767_v5  ;;  %s1863_s10 = scalar_lea.vmem %s2557_s0, %s1775_s7 }
  0x11   : > { %724 = vmatpush.bf16.msra.mxu2 %v1771_v6  ;;  %958 = vmatpush.bf16.msra.mxu3 %v1773_v7  ;;  %v251_v8 = vld [vmem:[%s1863_s10 + $0x1] sm:$0xff]  ;;  %v252_v9 = vld [vmem:[%s1863_s10 + $0x9] sm:$0xff]  ;;  %v1644_v13 = vld [vmem:[%s1863_s10 + $0x18] sm:$0xff] }
  0x12   : > { %v199_v10 = vld [vmem:[%s1863_s10] sm:$0xff]  ;;  %v283_v11 = vpack.c.bf16 %v252_v9, %v251_v8  ;;  %v200_v12 = vld [vmem:[%s1863_s10 + $0x8] sm:$0xff]  ;;  %v1646_v20 = vld [vmem:[%s1863_s10 + $0x30] sm:$0xff] }
  0x13   : > { %v1645_v14 = vld [vmem:[%s1863_s10 + $0x20] sm:$0xff]  ;;  %v231_v15 = vpack.c.bf16 %v200_v12, %v199_v10  ;;  %v1647_v21 = vld [vmem:[%s1863_s10 + $0x38] sm:$0xff]  ;;  %v1648_v26 = vld [vmem:[%s1863_s10 + $0x48] sm:$0xff] }
  0x14   : > { %v636_v16 = vpack.c.bf16 %v1645_v14, %v1644_v13  ;;  %v1704_v17 = vld [vmem:[%s1863_s10 + $0x19] sm:$0xff]  ;;  %v1705_v18 = vld [vmem:[%s1863_s10 + $0x21] sm:$0xff]  ;;  %1604 = vmatmul.msk.bf16.vlgmr.msra.gmra.mxu0 %vm316_vm0, %v283_v11  ;;  %v1706_v22 = vld [vmem:[%s1863_s10 + $0x31] sm:$0xff]  ;;  %v637_v24 = vpack.c.bf16 %v1647_v21, %v1646_v20 }
  0x15   : > { %v870_v19 = vpack.c.bf16 %v1705_v18, %v1704_v17  ;;  %1628 = vmatmul.msk.bf16.vlgmr.msra.gmra.mxu1 %vm316_vm0, %v231_v15  ;;  %v1707_v23 = vld [vmem:[%s1863_s10 + $0x39] sm:$0xff]  ;;  %v1649_v27 = vld [vmem:[%s1863_s10 + $0x50] sm:$0xff]  ;;  %v1651_v33 = vld [vmem:[%s1863_s10 + $0x68] sm:$0xff] }
  0x16   : > { %1688 = vmatmul.msk.bf16.vlgmr.msra.gmra.mxu2 %vm316_vm0, %v636_v16  ;;  %v871_v25 = vpack.c.bf16 %v1707_v23, %v1706_v22  ;;  %v1708_v28 = vld [vmem:[%s1863_s10 + $0x49] sm:$0xff]  ;;  %v1709_v29 = vld [vmem:[%s1863_s10 + $0x51] sm:$0xff]  ;;  %v638_v30 = vpack.c.bf16 %v1649_v27, %v1648_v26  ;;  %v1650_v32 = vld [vmem:[%s1863_s10 + $0x60] sm:$0xff] }
  0x17   : > { %1748 = vmatmul.msk.bf16.vlgmr.msra.gmra.mxu3 %vm316_vm0, %v870_v19  ;;  %v872_v31 = vpack.c.bf16 %v1709_v29, %v1708_v28  ;;  %v1710_v34 = vld [vmem:[%s1863_s10 + $0x61] sm:$0xff]  ;;  %v1711_v35 = vld [vmem:[%s1863_s10 + $0x69] sm:$0xff]  ;;  %v639_v36 = vpack.c.bf16 %v1651_v33, %v1650_v32  ;;  %v1652_v38 = vld [vmem:[%s1863_s10 + $0x78] sm:$0xff] }
  0x18   : > { %v873_v37 = vpack.c.bf16 %v1711_v35, %v1710_v34  ;;  %v1653_v39 = vld [vmem:[%s1863_s10 + $0x80] sm:$0xff]  ;;  %v1654_v44 = vld [vmem:[%s1863_s10 + $0x90] sm:$0xff]  ;;  %v1655_v45 = vld [vmem:[%s1863_s10 + $0x98] sm:$0xff] }
  0x19   : > { %v1712_v40 = vld [vmem:[%s1863_s10 + $0x79] sm:$0xff]  ;;  %v1713_v41 = vld [vmem:[%s1863_s10 + $0x81] sm:$0xff]  ;;  %v640_v42 = vpack.c.bf16 %v1653_v39, %v1652_v38  ;;  %v1714_v46 = vld [vmem:[%s1863_s10 + $0x91] sm:$0xff]  ;;  %v641_v48 = vpack.c.bf16 %v1655_v45, %v1654_v44 }
  0x1a   : > { %v874_v43 = vpack.c.bf16 %v1713_v41, %v1712_v40  ;;  %v1715_v47 = vld [vmem:[%s1863_s10 + $0x99] sm:$0xff]  ;;  %v1656_v50 = vld [vmem:[%s1863_s10 + $0xa8] sm:$0xff]  ;;  %v1657_v51 = vld [vmem:[%s1863_s10 + $0xb0] sm:$0xff] }
  0x1b   : > { %v875_v49 = vpack.c.bf16 %v1715_v47, %v1714_v46  ;;  %v1716_v52 = vld [vmem:[%s1863_s10 + $0xa9] sm:$0xff]  ;;  %v1717_v53 = vld [vmem:[%s1863_s10 + $0xb1] sm:$0xff]  ;;  %v642_v54 = vpack.c.bf16 %v1657_v51, %v1656_v50  ;;  %v1658_v56 = vld [vmem:[%s1863_s10 + $0xc0] sm:$0xff] }
  0x1c   : > { %v876_v55 = vpack.c.bf16 %v1717_v53, %v1716_v52  ;;  %v1659_v57 = vld [vmem:[%s1863_s10 + $0xc8] sm:$0xff]  ;;  %v1660_v62 = vld [vmem:[%s1863_s10 + $0xd8] sm:$0xff]  ;;  %v1661_v63 = vld [vmem:[%s1863_s10 + $0xe0] sm:$0xff] }
  0x1d   : > { %v1718_v58 = vld [vmem:[%s1863_s10 + $0xc1] sm:$0xff]  ;;  %v1719_v59 = vld [vmem:[%s1863_s10 + $0xc9] sm:$0xff]  ;;  %v643_v60 = vpack.c.bf16 %v1659_v57, %v1658_v56  ;;  %v1720_v0 = vld [vmem:[%s1863_s10 + $0xd9] sm:$0xff]  ;;  %v644_v3 = vpack.c.bf16 %v1661_v63, %v1660_v62 }
  0x1e   : > { %v877_v61 = vpack.c.bf16 %v1719_v59, %v1718_v58  ;;  %v1721_v1 = vld [vmem:[%s1863_s10 + $0xe1] sm:$0xff]  ;;  %v1662_v14 = vld [vmem:[%s1863_s10 + $0xf0] sm:$0xff]  ;;  %v1663_v15 = vld [vmem:[%s1863_s10 + $0xf8] sm:$0xff] }
  0x1f   : > { %v878_v5 = vpack.c.bf16 %v1721_v1, %v1720_v0  ;;  %v1723_v17 = vld [vmem:[%s1863_s10 + $0xf9] sm:$0xff]  ;;  %v645_v22 = vpack.c.bf16 %v1663_v15, %v1662_v14  ;;  %v1664_v34 = vld [vmem:[%s1863_s10 + $0x108] sm:$0xff]  ;;  %v1665_v35 = vld [vmem:[%s1863_s10 + $0x110] sm:$0xff] }
  0x20   : > { %v1726_v56 = vld [vmem:[%s1863_s10 + $0x121] sm:$0xff]  ;;  %v1727_v57 = vld [vmem:[%s1863_s10 + $0x129] sm:$0xff] }
  0x21   : > { %v881_v0 = vpack.c.bf16 %v1727_v57, %v1726_v56  ;;  %v1729_v14 = vld [vmem:[%s1863_s10 + $0x141] sm:$0xff]  ;;  %v1673_v56 = vld [vmem:[%s1863_s10 + $0x170] sm:$0xff] }
  0x22   : > { %v1732_v57 = vld [vmem:[%s1863_s10 + $0x169] sm:$0xff] }
  0x24   : > { %1605 = vmatmul.msk.bf16.gmra.mxu0 %vm316_vm0, %v870_v19 }
  0x25   : > { %1629 = vmatmul.msk.bf16.gmra.mxu1 %vm316_vm0, %v636_v16  ;;  %v1722_v16 = vld [vmem:[%s1863_s10 + $0xf1] sm:$0xff] }
  0x26   : > { %1689 = vmatmul.msk.bf16.gmra.mxu2 %vm316_vm0, %v637_v24 }
  0x27   : > { %1749 = vmatmul.msk.bf16.gmra.mxu3 %vm316_vm0, %v871_v25 }
  0x34   : > { %1606 = vmatmul.msk.bf16.gmra.mxu0 %vm316_vm0, %v871_v25 }
  0x35   : > { %1630 = vmatmul.msk.bf16.gmra.mxu1 %vm316_vm0, %v637_v24  ;;  %v879_v24 = vpack.c.bf16 %v1723_v17, %v1722_v16 }
  0x36   : > { %1690 = vmatmul.msk.bf16.gmra.mxu2 %vm316_vm0, %v638_v30 }
  0x37   : > { %1750 = vmatmul.msk.bf16.gmra.mxu3 %vm316_vm0, %v872_v31 }
  0x44   : > { %1607 = vmatmul.msk.bf16.gmra.mxu0 %vm316_vm0, %v872_v31 }
  0x45   : > { %1631 = vmatmul.msk.bf16.gmra.mxu1 %vm316_vm0, %v638_v30 }
  0x46   : > { %1691 = vmatmul.msk.bf16.gmra.mxu2 %vm316_vm0, %v639_v36 }
  0x47   : > { %1751 = vmatmul.msk.bf16.gmra.mxu3 %vm316_vm0, %v873_v37 }
  0x54   : > { %1608 = vmatmul.msk.bf16.gmra.mxu0 %vm316_vm0, %v873_v37  ;;  %v1725_v37 = vld [vmem:[%s1863_s10 + $0x111] sm:$0xff] }
  0x55   : > { %1632 = vmatmul.msk.bf16.gmra.mxu1 %vm316_vm0, %v639_v36  ;;  %v1724_v36 = vld [vmem:[%s1863_s10 + $0x109] sm:$0xff] }
  0x56   : > { %1692 = vmatmul.msk.bf16.gmra.mxu2 %vm316_vm0, %v640_v42  ;;  %v880_v44 = vpack.c.bf16 %v1725_v37, %v1724_v36  ;;  %v1731_v36 = vld [vmem:[%s1863_s10 + $0x159] sm:$0xff] }
  0x57   : > { %1752 = vmatmul.msk.bf16.gmra.mxu3 %vm316_vm0, %v874_v43 }
  0x64   : > { %1609 = vmatmul.msk.bf16.gmra.mxu0 %vm316_vm0, %v874_v43 }
  0x65   : > { %1633 = vmatmul.msk.bf16.gmra.mxu1 %vm316_vm0, %v640_v42  ;;  %v646_v42 = vpack.c.bf16 %v1665_v35, %v1664_v34  ;;  %v1671_v34 = vld [vmem:[%s1863_s10 + $0x158] sm:$0xff] }
  0x66   : > { %1693 = vmatmul.msk.bf16.gmra.mxu2 %vm316_vm0, %v641_v48  ;;  %v1730_v35 = vld [vmem:[%s1863_s10 + $0x151] sm:$0xff] }
  0x67   : > { %1753 = vmatmul.msk.bf16.gmra.mxu3 %vm316_vm0, %v875_v49 }
  0x74   : > { %1610 = vmatmul.msk.bf16.gmra.mxu0 %vm316_vm0, %v875_v49 }
  0x75   : > { %1634 = vmatmul.msk.bf16.gmra.mxu1 %vm316_vm0, %v641_v48 }
  0x76   : > { %1694 = vmatmul.msk.bf16.gmra.mxu2 %vm316_vm0, %v642_v54 }
  0x77   : > { %1754 = vmatmul.msk.bf16.gmra.mxu3 %vm316_vm0, %v876_v55 }
  0x84   : > { %1611 = vmatmul.msk.bf16.gmra.mxu0 %vm316_vm0, %v876_v55  ;;  %v1667_v55 = vld [vmem:[%s1863_s10 + $0x128] sm:$0xff] }
  0x85   : > { %1635 = vmatmul.msk.bf16.gmra.mxu1 %vm316_vm0, %v642_v54  ;;  %v1666_v54 = vld [vmem:[%s1863_s10 + $0x120] sm:$0xff] }
  0x86   : > { %1695 = vmatmul.msk.bf16.gmra.mxu2 %vm316_vm0, %v643_v60  ;;  %v647_v62 = vpack.c.bf16 %v1667_v55, %v1666_v54  ;;  %v1672_v55 = vld [vmem:[%s1863_s10 + $0x168] sm:$0xff] }
  0x87   : > { %1755 = vmatmul.msk.bf16.gmra.mxu3 %vm316_vm0, %v877_v61 }
  0x91   : > { %v374_v2 = vpop.f32.mrf.mxu0 }
  0x92   : > { %v523_v4 = vpop.f32.mrf.mxu1 }
  0x93   : > { %v524_v6 = vadd.f32 %v523_v4, %v374_v2 }
  0x94   : > { %1612 = vmatmul.msk.bf16.gmra.mxu0 %vm316_vm0, %v877_v61 }
  0x95   : > { %1636 = vmatmul.msk.bf16.gmra.mxu1 %vm316_vm0, %v643_v60 }
  0x96   : > { %1696 = vmatmul.msk.bf16.gmra.mxu2 %vm316_vm0, %v644_v3 }
  0x97   : > { %1756 = vmatmul.msk.bf16.gmra.mxu3 %vm316_vm0, %v878_v5 }
  0x99   : > { %v726_v7 = vpop.f32.mrf.mxu2  ;;  %v376_v10 = vpop.f32.mrf.mxu0 }
  0x9a   : > { %v806_v8 = vadd.f32 %v726_v7, %v524_v6  ;;  %v960_v9 = vpop.f32.mrf.mxu3  ;;  %v525_v11 = vpop.f32.mrf.mxu1 }
  0x9b   : > { %v526_v13 = vadd.f32 %v525_v11, %v376_v10  ;;  %v1668_v10 = vld [vmem:[%s1863_s10 + $0x138] sm:$0xff]  ;;  %v1669_v11 = vld [vmem:[%s1863_s10 + $0x140] sm:$0xff] }
  0x9c   : > { %v1941_v12 = vadd.f32 %v960_v9, %v806_v8 }
  0xa1   : > { %v728_v18 = vpop.f32.mrf.mxu2  ;;  %v379_v21 = vpop.f32.mrf.mxu0 }
  0xa2   : > { %v807_v19 = vadd.f32 %v728_v18, %v526_v13  ;;  %v962_v20 = vpop.f32.mrf.mxu3  ;;  %v528_v23 = vpop.f32.mrf.mxu1  ;;  %v1728_v13 = vld [vmem:[%s1863_s10 + $0x139] sm:$0xff] }
  0xa3   : > { %v529_v26 = vadd.f32 %v528_v23, %v379_v21  ;;  %v882_v21 = vpack.c.bf16 %v1729_v14, %v1728_v13  ;;  %v1674_v14 = vld [vmem:[%s1863_s10 + $0x180] sm:$0xff] }
  0xa4   : > { %v1947_v25 = vadd.f32 %v962_v20, %v807_v19  ;;  %1613 = vmatmul.msk.bf16.gmra.mxu0 %vm316_vm0, %v878_v5  ;;  %v648_v19 = vpack.c.bf16 %v1669_v11, %v1668_v10 }
  0xa5   : > { %1637 = vmatmul.msk.bf16.gmra.mxu1 %vm316_vm0, %v644_v3 }
  0xa6   : > { %1697 = vmatmul.msk.bf16.gmra.mxu2 %vm316_vm0, %v645_v22 }
  0xa7   : > { %1757 = vmatmul.msk.bf16.gmra.mxu3 %vm316_vm0, %v879_v24 }
  0xa9   : > { %v731_v27 = vpop.f32.mrf.mxu2  ;;  %v381_v30 = vpop.f32.mrf.mxu0 }
  0xaa   : > { %v808_v28 = vadd.f32 %v731_v27, %v529_v26  ;;  %v965_v29 = vpop.f32.mrf.mxu3  ;;  %v530_v31 = vpop.f32.mrf.mxu1 }
  0xab   : > { %v531_v33 = vadd.f32 %v530_v31, %v381_v30 }
  0xac   : > { %v1953_v32 = vadd.f32 %v965_v29, %v808_v28 }
  0xb1   : > { %v733_v38 = vpop.f32.mrf.mxu2  ;;  %v384_v41 = vpop.f32.mrf.mxu0 }
  0xb2   : > { %v809_v39 = vadd.f32 %v733_v38, %v531_v33  ;;  %v967_v40 = vpop.f32.mrf.mxu3  ;;  %v533_v43 = vpop.f32.mrf.mxu1  ;;  %v1670_v33 = vld [vmem:[%s1863_s10 + $0x150] sm:$0xff] }
  0xb3   : > { %v534_v46 = vadd.f32 %v533_v43, %v384_v41  ;;  %v649_v41 = vpack.c.bf16 %v1671_v34, %v1670_v33  ;;  %v883_v43 = vpack.c.bf16 %v1731_v36, %v1730_v35 }
  0xb4   : > { %v1959_v45 = vadd.f32 %v967_v40, %v809_v39  ;;  %1614 = vmatmul.msk.bf16.gmra.mxu0 %vm316_vm0, %v879_v24 }
  0xb5   : > { %1638 = vmatmul.msk.bf16.gmra.mxu1 %vm316_vm0, %v645_v22 }
  0xb6   : > { %1698 = vmatmul.msk.bf16.gmra.mxu2 %vm316_vm0, %v646_v42 }
  0xb7   : > { %1758 = vmatmul.msk.bf16.gmra.mxu3 %vm316_vm0, %v880_v44 }
  0xb9   : > { %v736_v47 = vpop.f32.mrf.mxu2  ;;  %v386_v50 = vpop.f32.mrf.mxu0 }
  0xba   : > { %v810_v48 = vadd.f32 %v736_v47, %v534_v46  ;;  %v970_v49 = vpop.f32.mrf.mxu3  ;;  %v535_v51 = vpop.f32.mrf.mxu1 }
  0xbb   : > { %v536_v53 = vadd.f32 %v535_v51, %v386_v50 }
  0xbc   : > { %v1965_v52 = vadd.f32 %v970_v49, %v810_v48 }
  0xc1   : > { %v738_v58 = vpop.f32.mrf.mxu2  ;;  %v389_v61 = vpop.f32.mrf.mxu0 }
  0xc2   : > { %v811_v59 = vadd.f32 %v738_v58, %v536_v53  ;;  %v972_v60 = vpop.f32.mrf.mxu3  ;;  %v538_v63 = vpop.f32.mrf.mxu1  ;;  %v1733_v58 = vld [vmem:[%s1863_s10 + $0x171] sm:$0xff] }
  0xc3   : > { %v539_v2 = vadd.f32 %v538_v63, %v389_v61  ;;  %v650_v63 = vpack.c.bf16 %v1673_v56, %v1672_v55 }
  0xc4   : > { %v1971_v1 = vadd.f32 %v972_v60, %v811_v59  ;;  %1615 = vmatmul.msk.bf16.gmra.mxu0 %vm316_vm0, %v880_v44 }
  0xc5   : > { %1639 = vmatmul.msk.bf16.gmra.mxu1 %vm316_vm0, %v646_v42 }
  0xc6   : > { %1699 = vmatmul.msk.bf16.gmra.mxu2 %vm316_vm0, %v647_v62 }
  0xc7   : > { %1759 = vmatmul.msk.bf16.gmra.mxu3 %vm316_vm0, %v881_v0 }
  0xc9   : > { %v741_v3 = vpop.f32.mrf.mxu2  ;;  %v391_v6 = vpop.f32.mrf.mxu0 }
  0xca   : > { %v812_v4 = vadd.f32 %v741_v3, %v539_v2  ;;  %v975_v5 = vpop.f32.mrf.mxu3  ;;  %v540_v7 = vpop.f32.mrf.mxu1  ;;  %v884_v2 = vpack.c.bf16 %v1733_v58, %v1732_v57 }
  0xcb   : > { %v541_v9 = vadd.f32 %v540_v7, %v391_v6 }
  0xcc   : > { %v1977_v8 = vadd.f32 %v975_v5, %v812_v4 }
  0xd1   : > { %v743_v15 = vpop.f32.mrf.mxu2  ;;  %v394_v18 = vpop.f32.mrf.mxu0 }
  0xd2   : > { %v813_v16 = vadd.f32 %v743_v15, %v541_v9  ;;  %v977_v17 = vpop.f32.mrf.mxu3  ;;  %v543_v20 = vpop.f32.mrf.mxu1  ;;  %v1675_v15 = vld [vmem:[%s1863_s10 + $0x188] sm:$0xff] }
  0xd3   : > { %v544_v23 = vadd.f32 %v543_v20, %v394_v18 }
  0xd4   : > { %v1983_v22 = vadd.f32 %v977_v17, %v813_v16  ;;  %1616 = vmatmul.msk.bf16.gmra.mxu0 %vm316_vm0, %v881_v0  ;;  %v1734_v16 = vld [vmem:[%s1863_s10 + $0x181] sm:$0xff]  ;;  %v1735_v17 = vld [vmem:[%s1863_s10 + $0x189] sm:$0xff] }
  0xd5   : > { %1640 = vmatmul.msk.bf16.gmra.mxu1 %vm316_vm0, %v647_v62 }
  0xd6   : > { %1700 = vmatmul.msk.bf16.gmra.mxu2 %vm316_vm0, %v648_v19 }
  0xd7   : > { %1760 = vmatmul.msk.bf16.gmra.mxu3 %vm316_vm0, %v882_v21 }
  0xd9   : > { %v746_v24 = vpop.f32.mrf.mxu2  ;;  %v396_v28 = vpop.f32.mrf.mxu0 }
  0xda   : > { %v814_v26 = vadd.f32 %v746_v24, %v544_v23  ;;  %v980_v27 = vpop.f32.mrf.mxu3  ;;  %v545_v29 = vpop.f32.mrf.mxu1  ;;  %v651_v23 = vpack.c.bf16 %v1675_v15, %v1674_v14 }
  0xdb   : > { %v546_v31 = vadd.f32 %v545_v29, %v396_v28 }
  0xdc   : > { %v1989_v30 = vadd.f32 %v980_v27, %v814_v26  ;;  %v885_v26 = vpack.c.bf16 %v1735_v17, %v1734_v16 }
  0xe1   : > { %v748_v37 = vpop.f32.mrf.mxu2  ;;  %v399_v40 = vpop.f32.mrf.mxu0 }
  0xe2   : > { %v815_v38 = vadd.f32 %v748_v37, %v546_v31  ;;  %v982_v39 = vpop.f32.mrf.mxu3  ;;  %v548_v42 = vpop.f32.mrf.mxu1 }
  0xe3   : > { %v549_v46 = vadd.f32 %v548_v42, %v399_v40 }
  0xe4   : > { %v1995_v44 = vadd.f32 %v982_v39, %v815_v38  ;;  %1617 = vmatmul.msk.bf16.gmra.mxu0 %vm316_vm0, %v882_v21 }
  0xe5   : > { %1641 = vmatmul.msk.bf16.gmra.mxu1 %vm316_vm0, %v648_v19 }
  0xe6   : > { %1701 = vmatmul.msk.bf16.gmra.mxu2 %vm316_vm0, %v649_v41 }
  0xe7   : > { %1761 = vmatmul.msk.bf16.gmra.mxu3 %vm316_vm0, %v883_v43 }
  0xe9   : > { %v751_v47 = vpop.f32.mrf.mxu2  ;;  %v401_v50 = vpop.f32.mrf.mxu0 }
  0xea   : > { %v816_v48 = vadd.f32 %v751_v47, %v549_v46  ;;  %v985_v49 = vpop.f32.mrf.mxu3  ;;  %v550_v51 = vpop.f32.mrf.mxu1 }
  0xeb   : > { %v551_v54 = vadd.f32 %v550_v51, %v401_v50 }
  0xec   : > { %v2001_v53 = vadd.f32 %v985_v49, %v816_v48 }
  0xf1   : > { %v753_v59 = vpop.f32.mrf.mxu2  ;;  %v404_v62 = vpop.f32.mrf.mxu0 }
  0xf2   : > { %v817_v60 = vadd.f32 %v753_v59, %v551_v54  ;;  %v987_v61 = vpop.f32.mrf.mxu3  ;;  %v553_v0 = vpop.f32.mrf.mxu1 }
  0xf3   : > { %v554_v4 = vadd.f32 %v553_v0, %v404_v62 }
  0xf4   : > { %v2007_v3 = vadd.f32 %v987_v61, %v817_v60  ;;  %1618 = vmatmul.msk.bf16.gmra.mxu0 %vm316_vm0, %v883_v43 }
  0xf5   : > { %1642 = vmatmul.msk.bf16.gmra.mxu1 %vm316_vm0, %v649_v41 }
  0xf6   : > { %2566 = vst [vmem:[#allocation2_spill] sm:$0xff] %v2007_v3  ;;  %1702 = vmatmul.msk.bf16.gmra.mxu2 %vm316_vm0, %v650_v63 }
  0xf7   : > { %1762 = vmatmul.msk.bf16.gmra.mxu3 %vm316_vm0, %v884_v2 }
  0xf9   : > { %v756_v5 = vpop.f32.mrf.mxu2  ;;  %v406_v9 = vpop.f32.mrf.mxu0 }
  0xfa   : > { %v818_v6 = vadd.f32 %v756_v5, %v554_v4  ;;  %v990_v7 = vpop.f32.mrf.mxu3  ;;  %v555_v10 = vpop.f32.mrf.mxu1 }
  0xfb   : > { %v556_v13 = vadd.f32 %v555_v10, %v406_v9 }
  0xfc   : > { %v2013_v11 = vadd.f32 %v990_v7, %v818_v6 }
 0x101   : > { %v758_v18 = vpop.f32.mrf.mxu2  ;;  %v409_v21 = vpop.f32.mrf.mxu0 }
 0x102   : > { %v819_v19 = vadd.f32 %v758_v18, %v556_v13  ;;  %v992_v20 = vpop.f32.mrf.mxu3  ;;  %v558_v24 = vpop.f32.mrf.mxu1 }
 0x103   : > { %v559_v28 = vadd.f32 %v558_v24, %v409_v21 }
 0x104   : > { %v2019_v27 = vadd.f32 %v992_v20, %v819_v19  ;;  %1619 = vmatmul.msk.bf16.gmra.mxu0 %vm316_vm0, %v884_v2 }
 0x105   : > { %1643 = vmatmul.msk.bf16.gmra.mxu1 %vm316_vm0, %v650_v63 }
 0x106   : > { %2567 = vst [vmem:[#allocation3_spill] sm:$0xff] %v2019_v27  ;;  %1703 = vmatmul.msk.bf16.gmra.mxu2 %vm316_vm0, %v651_v23 }
 0x107   : > { %1763 = vmatmul.msk.bf16.gmra.mxu3 %vm316_vm0, %v885_v26 }
 0x109   : > { %v761_v29 = vpop.f32.mrf.mxu2  ;;  %v411_v34 = vpop.f32.mrf.mxu0 }
 0x10a   : > { %v820_v31 = vadd.f32 %v761_v29, %v559_v28  ;;  %v995_v33 = vpop.f32.mrf.mxu3  ;;  %v560_v35 = vpop.f32.mrf.mxu1 }
 0x10b   : > { %v561_v37 = vadd.f32 %v560_v35, %v411_v34 }
 0x10c   : > { %v2025_v36 = vadd.f32 %v995_v33, %v820_v31 }
 0x10e   : > { %2568 = vst [vmem:[#allocation4_spill] sm:$0xff] %v2025_v36 }
 0x111   : > { %v763_v38 = vpop.f32.mrf.mxu2  ;;  %v414_v41 = vpop.f32.mrf.mxu0 }
 0x112   : > { %v821_v39 = vadd.f32 %v763_v38, %v561_v37  ;;  %v997_v40 = vpop.f32.mrf.mxu3  ;;  %v563_v42 = vpop.f32.mrf.mxu1 }
 0x113   : > { %v564_v46 = vadd.f32 %v563_v42, %v414_v41  ;;  %v1151_v41 = vmul.f32 %v1947_v25, %v1947_v25 }
 0x114   : > { %v2027_v43 = vadd.f32 %v997_v40, %v821_v39 }
 0x116   : > { %2569 = vst [vmem:[#allocation5_spill] sm:$0xff] %v2027_v43 }
 0x119   : > { %v766_v47 = vpop.f32.mrf.mxu2  ;;  %v416_v50 = vpop.f32.mrf.mxu0 }
 0x11a   : > { %v822_v48 = vadd.f32 %v766_v47, %v564_v46  ;;  %v1000_v49 = vpop.f32.mrf.mxu3  ;;  %v565_v51 = vpop.f32.mrf.mxu1  ;;  %v1150_v46 = vmul.f32 %v1941_v12, %v1941_v12  ;;  %v1152_v47 = vmul.f32 %v1953_v32, %v1953_v32 }
 0x11b   : > { %v566_v55 = vadd.f32 %v565_v51, %v416_v50  ;;  %v1153_v50 = vmul.f32 %v1959_v45, %v1959_v45  ;;  %v1073_v51 = vsel %vm1072_vm1, %v1941_v12, 0.0 }
 0x11c   : > { %v2029_v54 = vadd.f32 %v1000_v49, %v822_v48  ;;  %v1074_v48 = vsel %vm1072_vm1, %v1947_v25, 0.0  ;;  %v1183_v49 = vsel %vm1072_vm1, %v1151_v41, 0.0  ;;  %v1157_v41 = vmul.f32 %v1983_v22, %v1983_v22 }
 0x121   : > { %v768_v56 = vpop.f32.mrf.mxu2  ;;  %v419_v59 = vpop.f32.mrf.mxu0 }
 0x122   : > { %v823_v57 = vadd.f32 %v768_v56, %v566_v55  ;;  %v1002_v58 = vpop.f32.mrf.mxu3  ;;  %v568_v60 = vpop.f32.mrf.mxu1  ;;  %v1182_v55 = vsel %vm1072_vm1, %v1150_v46, 0.0  ;;  %v1076_v56 = vsel %vm1072_vm1, %v1953_v32, 0.0 }
 0x123   : > { %v569_v62 = vadd.f32 %v568_v60, %v419_v59  ;;  %v1075_v60 = vadd.f32 %v1074_v48, %v1073_v51  ;;  %v1084_v48 = vsel %vm1072_vm1, %v1977_v8, 0.0 }
 0x124   : > { %v2031_v61 = vadd.f32 %v1002_v58, %v823_v57  ;;  %v1185_v57 = vsel %vm1072_vm1, %v1152_v47, 0.0  ;;  %v1154_v58 = vmul.f32 %v1965_v52, %v1965_v52 }
 0x129   : > { %v771_v63 = vpop.f32.mrf.mxu2  ;;  %v421_v4 = vpop.f32.mrf.mxu0 }
 0x12a   : > { %v824_v0 = vadd.f32 %v771_v63, %v569_v62  ;;  %v1005_v2 = vpop.f32.mrf.mxu3  ;;  %v570_v5 = vpop.f32.mrf.mxu1  ;;  %v1184_v62 = vadd.f32 %v1183_v49, %v1182_v55 }
 0x12b   : > { %v571_v7 = vadd.f32 %v570_v5, %v421_v4  ;;  %v1187_v4 = vsel %vm1072_vm1, %v1153_v50, 0.0  ;;  %v1155_v5 = vmul.f32 %v1971_v1, %v1971_v1  ;;  %v1158_v50 = vmul.f32 %v1989_v30, %v1989_v30 }
 0x12c   : > { %v2033_v6 = vadd.f32 %v1005_v2, %v824_v0  ;;  %v1078_v2 = vsel %vm1072_vm1, %v1959_v45, 0.0 }
 0x131   : > { %v773_v9 = vpop.f32.mrf.mxu2  ;;  %v424_v14 = vpop.f32.mrf.mxu0 }
 0x132   : > { %v825_v10 = vadd.f32 %v773_v9, %v571_v7  ;;  %v1007_v13 = vpop.f32.mrf.mxu3  ;;  %v573_v15 = vpop.f32.mrf.mxu1  ;;  %v1077_v9 = vadd.f32 %v1076_v56, %v1075_v60  ;;  %v1086_v60 = vsel %vm1072_vm1, %v1983_v22, 0.0 }
 0x133   : > { %v574_v17 = vadd.f32 %v573_v15, %v424_v14  ;;  %v1189_v14 = vsel %vm1072_vm1, %v1154_v58, 0.0  ;;  %v1156_v15 = vmul.f32 %v1977_v8, %v1977_v8 }
 0x134   : > { %v2035_v16 = vadd.f32 %v1007_v13, %v825_v10  ;;  %v1186_v10 = vadd.f32 %v1185_v57, %v1184_v62  ;;  %v1080_v13 = vsel %vm1072_vm1, %v1965_v52, 0.0  ;;  %v1195_v62 = vsel %vm1072_vm1, %v1157_v41, 0.0 }
 0x135   : > { %v1193_v49 = vsel %vm1072_vm1, %v1156_v15, 0.0 }
 0x139   : > { %v776_v18 = vpop.f32.mrf.mxu2  ;;  %v2037_v21 = vpop.f32.mrf.mxu0 }
 0x13a   : > { %v826_v19 = vadd.f32 %v776_v18, %v574_v17  ;;  %v1010_v20 = vpop.f32.mrf.mxu3  ;;  %v2039_v23 = vpop.f32.mrf.mxu1  ;;  %v1079_v17 = vadd.f32 %v1078_v2, %v1077_v9  ;;  %v1188_v18 = vadd.f32 %v1187_v4, %v1186_v10  ;;  %v1159_v2 = vmul.f32 %v1995_v44, %v1995_v44 }
 0x13b   : > { %v1088_v10 = vsel %vm1072_vm1, %v1989_v30, 0.0 }
 0x13c   : > { %v2041_v24 = vadd.f32 %v1010_v20, %v826_v19  ;;  %v1082_v19 = vsel %vm1072_vm1, %v1971_v1, 0.0  ;;  %v1191_v20 = vsel %vm1072_vm1, %v1155_v5, 0.0  ;;  %v1081_v46 = vadd.f32 %v1080_v13, %v1079_v17 }
 0x13d   : > { %v1190_v47 = vadd.f32 %v1189_v14, %v1188_v18  ;;  %v1197_v13 = vsel %vm1072_vm1, %v1158_v50, 0.0  ;;  %v1160_v14 = vmul.f32 %v2001_v53, %v2001_v53  ;;  %v1090_v18 = vsel %vm1072_vm1, %v1995_v44, 0.0 }
 0x13e   : > { %v1083_v55 = vadd.f32 %v1082_v19, %v1081_v46  ;;  %v1199_v19 = vsel %vm1072_vm1, %v1159_v2, 0.0  ;;  %v1094_v2 = vsel %vm1072_vm1, %v2007_v3, 0.0 }
 0x13f   : > { %v1192_v56 = vadd.f32 %v1191_v20, %v1190_v47  ;;  %v1161_v20 = vmul.f32 %v2007_v3, %v2007_v3  ;;  %v1092_v47 = vsel %vm1072_vm1, %v2001_v53, 0.0  ;;  %v1165_v3 = vmul.f32 %v2027_v43, %v2027_v43 }
 0x140   : > { %v1085_v5 = vadd.f32 %v1084_v48, %v1083_v55  ;;  %v1201_v48 = vsel %vm1072_vm1, %v1160_v14, 0.0 }
 0x141   : > { %v2043_v26 = vpop.f32.mrf.mxu2  ;;  %v2047_v29 = vpop.f32.mrf.mxu0  ;;  %v1194_v9 = vadd.f32 %v1193_v49, %v1192_v56  ;;  %v1162_v49 = vmul.f32 %v2013_v11, %v2013_v11 }
 0x142   : > { %v2045_v28 = vpop.f32.mrf.mxu3  ;;  %v2049_v31 = vpop.f32.mrf.mxu1  ;;  %v1087_v15 = vadd.f32 %v1086_v60, %v1085_v5  ;;  %v1203_v5 = vsel %vm1072_vm1, %v1161_v20, 0.0  ;;  %v1098_v20 = vsel %vm1072_vm1, %v2019_v27, 0.0 }
 0x143   : > { %v1196_v17 = vadd.f32 %v1195_v62, %v1194_v9  ;;  %v1163_v9 = vmul.f32 %v2019_v27, %v2019_v27  ;;  %v1168_v27 = vmul.f32 %v2033_v6, %v2033_v6 }
 0x144   : > { %v1089_v41 = vadd.f32 %v1088_v10, %v1087_v15  ;;  %v1096_v15 = vsel %vm1072_vm1, %v2013_v11, 0.0 }
 0x145   : > { %v1198_v46 = vadd.f32 %v1197_v13, %v1196_v17  ;;  %v1205_v17 = vsel %vm1072_vm1, %v1162_v49, 0.0 }
 0x146   : > { %v1091_v55 = vadd.f32 %v1090_v18, %v1089_v41  ;;  %v1164_v18 = vmul.f32 %v2025_v36, %v2025_v36 }
 0x147   : > { %v1200_v56 = vadd.f32 %v1199_v19, %v1198_v46  ;;  %v1207_v46 = vsel %vm1072_vm1, %v1163_v9, 0.0 }
 0x148   : > { %v1093_v13 = vadd.f32 %v1092_v47, %v1091_v55  ;;  %v1100_v55 = vsel %vm1072_vm1, %v2025_v36, 0.0  ;;  %v1209_v49 = vsel %vm1072_vm1, %v1164_v18, 0.0  ;;  %v1167_v18 = vmul.f32 %v2031_v61, %v2031_v61 }
 0x149   : > { %v2051_v33 = vpop.f32.mrf.mxu2  ;;  %v2055_v35 = vpop.f32.mrf.mxu0  ;;  %v1202_v14 = vadd.f32 %v1201_v48, %v1200_v56  ;;  %v1166_v56 = vmul.f32 %v2029_v54, %v2029_v54 }
 0x14a   : > { %v2053_v34 = vpop.f32.mrf.mxu3  ;;  %v2057_v37 = vpop.f32.mrf.mxu1  ;;  %v1095_v19 = vadd.f32 %v1094_v2, %v1093_v13  ;;  %v576_v2 = vadd.f32 %v2039_v23, %v2037_v21  ;;  %v579_v21 = vadd.f32 %v2049_v31, %v2047_v29 }
 0x14b   : > { %v1204_v41 = vadd.f32 %v1203_v5, %v1202_v14  ;;  %v1102_v14 = vsel %vm1072_vm1, %v2027_v43, 0.0 }
 0x14c   : > { %v1097_v47 = vadd.f32 %v1096_v15, %v1095_v19  ;;  %v1211_v19 = vsel %vm1072_vm1, %v1165_v3, 0.0  ;;  %v1106_v3 = vsel %vm1072_vm1, %v2031_v61, 0.0  ;;  %v828_v31 = vadd.f32 %v2051_v33, %v579_v21 }
 0x14d   : > { %v1206_v48 = vadd.f32 %v1205_v17, %v1204_v41  ;;  %v827_v41 = vadd.f32 %v2043_v26, %v576_v2  ;;  %v1215_v26 = vsel %vm1072_vm1, %v1167_v18, 0.0  ;;  %v1217_v33 = vsel %vm1072_vm1, %v1168_v27, 0.0 }
 0x14e   : > { %v1099_v13 = vadd.f32 %v1098_v20, %v1097_v47  ;;  %v1213_v47 = vsel %vm1072_vm1, %v1166_v56, 0.0  ;;  %v1110_v18 = vsel %vm1072_vm1, %v2035_v16, 0.0 }
 0x14f   : > { %v1208_v9 = vadd.f32 %v1207_v46, %v1206_v48  ;;  %v1104_v46 = vsel %vm1072_vm1, %v2029_v54, 0.0  ;;  %v2193_v29 = vadd.f32 %v2045_v28, %v827_v41 }
 0x150   : > { %v1101_v36 = vadd.f32 %v1100_v55, %v1099_v13  ;;  %v581_v55 = vadd.f32 %v2057_v37, %v2055_v35  ;;  %v1108_v13 = vsel %vm1072_vm1, %v2033_v6, 0.0  ;;  %v1170_v35 = vmul.f32 %v2041_v24, %v2041_v24 }
 0x151   : > { %v2059_v38 = vpop.f32.mrf.mxu2  ;;  %v2063_v40 = vpop.f32.mrf.mxu0  ;;  %v1210_v20 = vadd.f32 %v1209_v49, %v1208_v9 }
 0x152   : > { %v2061_v39 = vpop.f32.mrf.mxu3  ;;  %v2067_v42 = vpop.f32.mrf.mxu1  ;;  %v1103_v48 = vadd.f32 %v1102_v14, %v1101_v36  ;;  %v1169_v36 = vmul.f32 %v2035_v16, %v2035_v16  ;;  %v829_v9 = vadd.f32 %v2059_v38, %v581_v55 }
 0x153   : > { %v1212_v43 = vadd.f32 %v1211_v19, %v1210_v20  ;;  %v584_v2 = vadd.f32 %v2067_v42, %v2063_v40  ;;  %v1171_v40 = vmul.f32 %v2193_v29, %v2193_v29  ;;  %v2213_v42 = vadd.f32 %v2053_v34, %v828_v31 }
 0x154   : > { %v1105_v49 = vadd.f32 %v1104_v46, %v1103_v48  ;;  %v1219_v27 = vsel %vm1072_vm1, %v1169_v36, 0.0  ;;  %v2222_v48 = vadd.f32 %v2061_v39, %v829_v9  ;;  %v1114_v31 = vsel %vm1072_vm1, %v2193_v29, 0.0 }
 0x155   : > { %v1214_v56 = vadd.f32 %v1213_v47, %v1212_v43  ;;  %v1116_v9 = vsel %vm1072_vm1, %v2213_v42, 0.0 }
 0x156   : > { %v1107_v14 = vadd.f32 %v1106_v3, %v1105_v49  ;;  %v1173_v36 = vmul.f32 %v2222_v48, %v2222_v48 }
 0x157   : > { %v1216_v19 = vadd.f32 %v1215_v26, %v1214_v56  ;;  %v1112_v26 = vsel %vm1072_vm1, %v2041_v24, 0.0 }
 0x158   : > { %v1109_v21 = vadd.f32 %v1108_v13, %v1107_v14 }
 0x159   : > { %v2086_v59 = vpop.f32.mrf.mxu2  ;;  %v2090_v0 = vpop.f32.mrf.mxu0  ;;  %v1218_v47 = vadd.f32 %v1217_v33, %v1216_v19 }
 0x15a   : > { %v2088_v63 = vpop.f32.mrf.mxu3  ;;  %v2097_v7 = vpop.f32.mrf.mxu1  ;;  %v830_v20 = vadd.f32 %v2086_v59, %v584_v2  ;;  %v1111_v34 = vadd.f32 %v1110_v18, %v1109_v21  ;;  %v1223_v59 = vsel %vm1072_vm1, %v1171_v40, 0.0 }
 0x15b   : > { %v586_v38 = vadd.f32 %v2097_v7, %v2090_v0  ;;  %v1221_v0 = vsel %vm1072_vm1, %v1170_v35, 0.0  ;;  %v1220_v7 = vadd.f32 %v1219_v27, %v1218_v47 }
 0x15c   : > { %v2234_v39 = vadd.f32 %v2088_v63, %v830_v20  ;;  %v1113_v49 = vadd.f32 %v1112_v26, %v1111_v34 }
 0x15d   : > { %v1222_v56 = vadd.f32 %v1221_v0, %v1220_v7  ;;  %v1799_v7 = vmov 256.0  }
 0x15e   : > { %1787 = vrcp.f32 %v1799_v7 }
 0x15f   : > { %v1224_v19 = vadd.f32 %v1223_v59, %v1222_v56 }
 0x161   : > { %v2114_v51 = vpop.f32.mrf.mxu2  ;;  %v2118_v58 = vpop.f32.mrf.mxu0 }
 0x162   : > { %v2116_v57 = vpop.f32.mrf.mxu3  ;;  %v2125_v4 = vpop.f32.mrf.mxu1  ;;  %v831_v3 = vadd.f32 %v2114_v51, %v586_v38  ;;  %v1120_v38 = vsel %vm1072_vm1, %v2234_v39, 0.0 }
 0x163   : > { %v589_v46 = vadd.f32 %v2125_v4, %v2118_v58  ;;  %v1172_v58 = vmul.f32 %v2213_v42, %v2213_v42 }
 0x164   : > { %v2242_v2 = vadd.f32 %v2116_v57, %v831_v3  ;;  %v1174_v57 = vmul.f32 %v2234_v39, %v2234_v39 }
 0x166   : > { %v1175_v21 = vmul.f32 %v2242_v2, %v2242_v2 }
 0x168   : > { %v1231_v0 = vsel %vm1072_vm1, %v1175_v21, 0.0 }
 0x169   : > { %v2142_v50 = vpop.f32.mrf.mxu2  ;;  %v2146_v62 = vpop.f32.mrf.mxu0 }
 0x16a   : > { %v2144_v60 = vpop.f32.mrf.mxu3  ;;  %v2153_v10 = vpop.f32.mrf.mxu1  ;;  %v832_v51 = vadd.f32 %v2142_v50, %v589_v46  ;;  %v1115_v50 = vadd.f32 %v1114_v31, %v1113_v49 }
 0x16b   : > { %v591_v4 = vadd.f32 %v2153_v10, %v2146_v62  ;;  %v1225_v62 = vsel %vm1072_vm1, %v1172_v58, 0.0  ;;  %v1118_v10 = vsel %vm1072_vm1, %v2222_v48, 0.0 }
 0x16c   : > { %v2253_v33 = vadd.f32 %v2144_v60, %v832_v51  ;;  %v1117_v40 = vadd.f32 %v1116_v9, %v1115_v50  ;;  %v1226_v47 = vadd.f32 %v1225_v62, %v1224_v19  ;;  %v1229_v60 = vsel %vm1072_vm1, %v1174_v57, 0.0 }
 0x16e   : > { %v1119_v3 = vadd.f32 %v1118_v10, %v1117_v40  ;;  %v1124_v31 = vsel %vm1072_vm1, %v2253_v33, 0.0 }
 0x170   : > { %v1121_v26 = vadd.f32 %v1120_v38, %v1119_v3 }
 0x171   : > { %v2172_v5 = vpop.f32.mrf.mxu2  ;;  %v444_v17 = vpop.f32.mrf.mxu0 }
 0x172   : > { %v2176_v15 = vpop.f32.mrf.mxu3  ;;  %v593_v23 = vpop.f32.mrf.mxu1  ;;  %v833_v63 = vadd.f32 %v2172_v5, %v591_v4  ;;  %v1227_v5 = vsel %vm1072_vm1, %v1173_v36, 0.0 }
 0x173   : > { %v594_v55 = vadd.f32 %v593_v23, %v444_v17  ;;  %v1228_v34 = vadd.f32 %v1227_v5, %v1226_v47 }
 0x174   : > { %v2261_v27 = vadd.f32 %v2176_v15, %v833_v63 }
 0x176   : > { %v1177_v59 = vmul.f32 %v2261_v27, %v2261_v27  ;;  %v1126_v56 = vsel %vm1072_vm1, %v2261_v27, 0.0 }
 0x179   : > { %v796_v28 = vpop.f32.mrf.mxu2  ;;  %v446_v37 = vpop.f32.mrf.mxu0 }
 0x17a   : > { %v1030_v43 = vpop.f32.mrf.mxu3  ;;  %v595_v41 = vpop.f32.mrf.mxu1  ;;  %v834_v35 = vadd.f32 %v796_v28, %v594_v55  ;;  %v1122_v28 = vsel %vm1072_vm1, %v2242_v2, 0.0  ;;  %v1230_v55 = vadd.f32 %v1229_v60, %v1228_v34 }
 0x17b   : > { %v596_v18 = vadd.f32 %v595_v41, %v446_v37  ;;  %v1176_v37 = vmul.f32 %v2253_v33, %v2253_v33 }
 0x17c   : > { %v2268_v41 = vadd.f32 %v1030_v43, %v834_v35  ;;  %v1123_v43 = vadd.f32 %v1122_v28, %v1121_v26  ;;  %v1232_v9 = vadd.f32 %v1231_v0, %v1230_v55 }
 0x17d   : > { %v1233_v49 = vsel %vm1072_vm1, %v1176_v37, 0.0 }
 0x17e   : > { %v1178_v36 = vmul.f32 %v2268_v41, %v2268_v41  ;;  %v1125_v63 = vadd.f32 %v1124_v31, %v1123_v43  ;;  %v1128_v62 = vsel %vm1072_vm1, %v2268_v41, 0.0 }
 0x180   : > { %v1127_v57 = vadd.f32 %v1126_v56, %v1125_v63  ;;  %v1237_v35 = vsel %vm1072_vm1, %v1178_v36, 0.0 }
 0x181   : > { %v798_v13 = vpop.f32.mrf.mxu2  ;;  %v449_v17 = vpop.f32.mrf.mxu0 }
 0x182   : > { %v1032_v14 = vpop.f32.mrf.mxu3  ;;  %v598_v23 = vpop.f32.mrf.mxu1  ;;  %v835_v20 = vadd.f32 %v798_v13, %v596_v18  ;;  %v1129_v21 = vadd.f32 %v1128_v62, %v1127_v57 }
 0x183   : > { %v599_v46 = vadd.f32 %v598_v23, %v449_v17  ;;  %v1788_v17 = vpop.eup %1787  ;;  %v1234_v23 = vadd.f32 %v1233_v49, %v1232_v9 }
 0x184   : > { %v2275_v58 = vadd.f32 %v1032_v14, %v835_v20  ;;  %v1235_v14 = vsel %vm1072_vm1, %v1177_v59, 0.0  ;;  %v1143_v60 = vmul.f32 256.0, %v1788_v17  ;;  %vm1147_vm2 = vweird.f32 %v1788_v17 }
 0x185   : > { %v1236_v38 = vadd.f32 %v1235_v14, %v1234_v23 }
 0x186   : > { %v1179_v10 = vmul.f32 %v2275_v58, %v2275_v58  ;;  %v1130_v18 = vsel %vm1072_vm1, %v2275_v58, 0.0  ;;  %v1144_v59 = vsub.f32 1.0, %v1143_v60 }
 0x187   : > { %v1238_v28 = vadd.f32 %v1237_v35, %v1236_v38  ;;  %v1131_v37 = vadd.f32 %v1130_v18, %v1129_v21 }
 0x188   : > { %v1145_v36 = vmul.f32 %v1788_v17, %v1144_v59 }
 0x189   : > { %v801_v15 = vpop.f32.mrf.mxu2  ;;  %v451_v50 = vpop.f32.mrf.mxu0 }
 0x18a   : > { %v836_v51 = vadd.f32 %v801_v15, %v599_v46  ;;  %v1035_v4 = vpop.f32.mrf.mxu3  ;;  %v600_v19 = vpop.f32.mrf.mxu1  ;;  %v1239_v46 = vsel %vm1072_vm1, %v1179_v10, 0.0  ;;  %v1146_v14 = vadd.f32 %v1788_v17, %v1145_v36 }
 0x18b   : > { %v601_v5 = vadd.f32 %v600_v19, %v451_v50  ;;  %v1240_v15 = vadd.f32 %v1239_v46, %v1238_v28 }
 0x18c   : > { %v2282_v13 = vadd.f32 %v1035_v4, %v836_v51  ;;  %v1148_v35 = vsel %vm1147_vm2, %v1788_v17, %v1146_v14 }
 0x18e   : > { %v1180_v40 = vmul.f32 %v2282_v13, %v2282_v13  ;;  %v1132_v47 = vsel %vm1072_vm1, %v2282_v13, 0.0 }
 0x18f   : > { %v1133_v7 = vadd.f32 %v1132_v47, %v1131_v37 }
 0x190   : > { %v1241_v26 = vsel %vm1072_vm1, %v1180_v40, 0.0 }
 0x191   : > { %v803_v20 = vpop.f32.mrf.mxu2  ;;  %v1242_v4 = vadd.f32 %v1241_v26, %v1240_v15 }
 0x192   : > { %v837_v3 = vadd.f32 %v803_v20, %v601_v5  ;;  %v1037_v34 = vpop.f32.mrf.mxu3 }
 0x194   : > { %v2298_v0 = vadd.f32 %v1037_v34, %v837_v3 }
 0x196   : > { %v1134_v31 = vsel %vm1072_vm1, %v2298_v0, 0.0  ;;  %v1181_v51 = vmul.f32 %v2298_v0, %v2298_v0 }
 0x197   : > { %v1135_v55 = vadd.f32 %v1134_v31, %v1133_v7 }
 0x198   : > { %v1243_v43 = vsel %vm1072_vm1, %v1181_v51, 0.0 }
 0x199   : > { %v1136_v49 = vrot.slane %v1135_v55, 4  ;;  %v1244_v56 = vadd.f32 %v1243_v43, %v1242_v4 }
 0x19b   : > { %v1137_v9 = vadd.f32 %v1136_v49, %v1135_v55  ;;  %v1245_v63 = vrot.slane %v1244_v56, 4  ;;  %v2571_v55 = vld [vmem:[#allocation3_spill] sm:$0xff] }
 0x19d   : > { %v1138_v50 = vrot.slane %v1137_v9, 2  ;;  %v1246_v19 = vadd.f32 %v1245_v63, %v1244_v56 }
 0x19f   : > { %v1139_v62 = vadd.f32 %v1138_v50, %v1137_v9  ;;  %v1247_v10 = vrot.slane %v1246_v19, 2 }
 0x1a1   : > { %v1140_v23 = vrot.slane %v1139_v62, 1  ;;  %v1248_v57 = vadd.f32 %v1247_v10, %v1246_v19 }
 0x1a3   : > { %v1141_v18 = vadd.f32 %v1140_v23, %v1139_v62  ;;  %v1249_v40 = vrot.slane %v1248_v57, 1 }
 0x1a5   : > { %v2305_v5 = vmul.f32 %v1148_v35, %v1141_v18  ;;  %v1250_v38 = vadd.f32 %v1249_v40, %v1248_v57 }
 0x1a7   : > { %v1251_v21 = vmul.f32 %v1250_v38, %v1148_v35  ;;  %v1252_v20 = vmul.f32 %v2305_v5, %v2305_v5  ;;  %v1265_v17 = vsub.f32 %v1941_v12, %v2305_v5  ;;  %v1266_v26 = vsub.f32 %v1947_v25, %v2305_v5 }
 0x1a8   : > { %v1267_v15 = vsub.f32 %v1953_v32, %v2305_v5  ;;  %v1268_v7 = vsub.f32 %v1959_v45, %v2305_v5  ;;  %v1269_v31 = vsub.f32 %v1965_v52, %v2305_v5  ;;  %v1270_v59 = vsub.f32 %v1971_v1, %v2305_v5  ;;  %v2570_v52 = vld [vmem:[#allocation2_spill] sm:$0xff] }
 0x1a9   : > { %v1253_v46 = vsub.f32 %v1251_v21, %v1252_v20  ;;  %v1271_v51 = vsub.f32 %v1977_v8, %v2305_v5  ;;  %v1272_v12 = vsub.f32 %v1983_v22, %v2305_v5  ;;  %v1273_v25 = vsub.f32 %v1989_v30, %v2305_v5  ;;  %v2572_v22 = vld [vmem:[#allocation4_spill] sm:$0xff]  ;;  %v2573_v30 = vld [vmem:[#allocation5_spill] sm:$0xff] }
 0x1aa   : > { %v1274_v32 = vsub.f32 %v1995_v44, %v2305_v5  ;;  %v1275_v45 = vsub.f32 %v2001_v53, %v2305_v5  ;;  %v1276_v1 = vsub.f32 %v2570_v52, %v2305_v5  ;;  %v1277_v8 = vsub.f32 %v2013_v11, %v2305_v5 }
 0x1ab   : > { %v1254_v47 = vadd.f32 1e-05, %v1253_v46  ;;  %v1278_v43 = vsub.f32 %v2571_v55, %v2305_v5  ;;  %v1279_v49 = vsub.f32 %v2572_v22, %v2305_v5  ;;  %v1280_v56 = vsub.f32 %v2573_v30, %v2305_v5 }
 0x1ac   : > { %v1281_v44 = vsub.f32 %v2029_v54, %v2305_v5  ;;  %v1282_v53 = vsub.f32 %v2031_v61, %v2305_v5  ;;  %v1283_v11 = vsub.f32 %v2033_v6, %v2305_v5  ;;  %v1284_v36 = vsub.f32 %v2035_v16, %v2305_v5 }
 0x1ad   : > { %1789 = vrsqrt.f32 %v1254_v47  ;;  %vm1261_vm4 = vweird.f32 %v1254_v47  ;;  %v1285_v63 = vsub.f32 %v2041_v24, %v2305_v5  ;;  %v1286_v50 = vsub.f32 %v2193_v29, %v2305_v5 }
 0x1ae   : > { %v1287_v19 = vsub.f32 %v2213_v42, %v2305_v5  ;;  %v1288_v54 = vsub.f32 %v2222_v48, %v2305_v5  ;;  %v1289_v61 = vsub.f32 %v2234_v39, %v2305_v5  ;;  %v1290_v6 = vsub.f32 %v2242_v2, %v2305_v5 }
 0x1af   : > { %v1291_v16 = vsub.f32 %v2253_v33, %v2305_v5  ;;  %v1292_v24 = vsub.f32 %v2261_v27, %v2305_v5  ;;  %v1293_v29 = vsub.f32 %v2268_v41, %v2305_v5  ;;  %v1294_v42 = vsub.f32 %v2275_v58, %v2305_v5 }
 0x1b0   : > { %v1295_v48 = vsub.f32 %v2282_v13, %v2305_v5  ;;  %v1296_v39 = vsub.f32 %v2298_v0, %v2305_v5  ;;  %v1785_v0 = vld [vmem:[%s2559_s2] ss:$0 sm:$0xff] }
 0x1b3   : > { %v1790_v3 = vpop.eup %1789 }
 0x1b4   : > { %v1256_v60 = vmul.f32 %v1790_v3, %v1254_v47  ;;  %vm1262_vm3 = vweird.f32 %v1790_v3 }
 0x1b5   : > { %vm1263_vm5 = vmor %vm1261_vm4, %vm1262_vm3 }
 0x1b6   : > { %v1257_v28 = vmul.f32 %v1790_v3, %v1256_v60 }
 0x1b8   : > { %v1258_v37 = vmul.f32 0.5, %v1257_v28 }
 0x1ba   : > { %v1259_v34 = vsub.f32 1.5, %v1258_v37 }
 0x1bc   : > { %v1260_v4 = vmul.f32 %v1790_v3, %v1259_v34 }
 0x1be   : > { %v1264_v9 = vsel %vm1263_vm5, %v1790_v3, %v1260_v4 }
 0x1bf   : > { %v1297_v14 = vmul.f32 %v1265_v17, %v1264_v9  ;;  %v1298_v2 = vmul.f32 %v1266_v26, %v1264_v9  ;;  %v1299_v62 = vmul.f32 %v1267_v15, %v1264_v9  ;;  %v1300_v10 = vmul.f32 %v1268_v7, %v1264_v9 }
 0x1c0   : > { %v1301_v33 = vmul.f32 %v1269_v31, %v1264_v9  ;;  %v1302_v23 = vmul.f32 %v1270_v59, %v1264_v9  ;;  %v1303_v57 = vmul.f32 %v1271_v51, %v1264_v9  ;;  %v1304_v27 = vmul.f32 %v1272_v12, %v1264_v9 }
 0x1c1   : > { %v1305_v35 = vmul.f32 %v1273_v25, %v1264_v9  ;;  %v1306_v18 = vmul.f32 %v1274_v32, %v1264_v9  ;;  %v1307_v41 = vmul.f32 %v1275_v45, %v1264_v9  ;;  %v1308_v40 = vmul.f32 %v1276_v1, %v1264_v9  ;;  %v2379_v32 = vld [vmem:[%s2560_s3] ss:$0 sm:$0xff] }
 0x1c2   : > { %v1309_v38 = vmul.f32 %v1277_v8, %v1264_v9  ;;  %v1310_v58 = vmul.f32 %v1278_v43, %v1264_v9  ;;  %v1311_v21 = vmul.f32 %v1279_v49, %v1264_v9  ;;  %v1312_v20 = vmul.f32 %v1280_v56, %v1264_v9 }
 0x1c3   : > { %v1313_v13 = vmul.f32 %v1281_v44, %v1264_v9  ;;  %v1314_v46 = vmul.f32 %v1282_v53, %v1264_v9  ;;  %v1315_v47 = vmul.f32 %v1283_v11, %v1264_v9  ;;  %v1316_v5 = vmul.f32 %v1284_v36, %v1264_v9 }
 0x1c4   : > { %v1317_v3 = vmul.f32 %v1285_v63, %v1264_v9  ;;  %v1318_v60 = vmul.f32 %v1286_v50, %v1264_v9  ;;  %v1319_v28 = vmul.f32 %v1287_v19, %v1264_v9  ;;  %v1320_v37 = vmul.f32 %v1288_v54, %v1264_v9 }
 0x1c5   : > { %v1321_v34 = vmul.f32 %v1289_v61, %v1264_v9  ;;  %v1322_v17 = vmul.f32 %v1290_v6, %v1264_v9  ;;  %v1323_v26 = vmul.f32 %v1291_v16, %v1264_v9  ;;  %v1324_v15 = vmul.f32 %v1292_v24, %v1264_v9 }
 0x1c6   : > { %v1325_v7 = vmul.f32 %v1293_v29, %v1264_v9  ;;  %v1326_v31 = vmul.f32 %v1294_v42, %v1264_v9  ;;  %v1327_v59 = vmul.f32 %v1295_v48, %v1264_v9  ;;  %v1328_v51 = vmul.f32 %v1296_v39, %v1264_v9 }
 0x1c7   : > { %v1333_v4 = vmul.f32 %v1785_v0, %v1297_v14  ;;  %v1334_v12 = vmul.f32 %v1785_v0, %v1298_v2  ;;  %v1335_v25 = vmul.f32 %v1785_v0, %v1299_v62  ;;  %v1336_v45 = vmul.f32 %v1785_v0, %v1300_v10 }
 0x1c8   : > { %v1337_v52 = vmul.f32 %v1785_v0, %v1301_v33  ;;  %v1338_v1 = vmul.f32 %v1785_v0, %v1302_v23  ;;  %v1339_v8 = vmul.f32 %v1785_v0, %v1303_v57  ;;  %v1340_v55 = vmul.f32 %v1785_v0, %v1304_v27 }
 0x1c9   : > { %v1341_v43 = vmul.f32 %v1785_v0, %v1305_v35  ;;  %v1342_v22 = vmul.f32 %v1785_v0, %v1306_v18  ;;  %v1343_v49 = vmul.f32 %v1785_v0, %v1307_v41  ;;  %v1344_v30 = vmul.f32 %v1785_v0, %v1308_v40 }
 0x1ca   : > { %v1345_v56 = vmul.f32 %v1785_v0, %v1309_v38  ;;  %v1346_v44 = vmul.f32 %v1785_v0, %v1310_v58  ;;  %v1347_v53 = vmul.f32 %v1785_v0, %v1311_v21  ;;  %v2381_v11 = vmul.f32 %v1785_v0, %v1312_v20 }
 0x1cb   : > { %v2383_v36 = vmul.f32 %v1785_v0, %v1313_v13  ;;  %v2385_v9 = vmul.f32 %v1785_v0, %v1314_v46  ;;  %v1369_v63 = vadd.f32 %v2379_v32, %v1333_v4  ;;  %v2388_v50 = vmul.f32 %v1785_v0, %v1315_v47 }
 0x1cc   : > { %v2390_v19 = vmul.f32 %v1785_v0, %v1316_v5  ;;  %v2392_v54 = vmul.f32 %v1785_v0, %v1317_v3  ;;  %v1370_v61 = vadd.f32 %v2379_v32, %v1334_v12  ;;  %v2395_v6 = vmul.f32 %v1785_v0, %v1318_v60 }
 0x1cd   : > { %v2397_v16 = vmul.f32 %v1785_v0, %v1319_v28  ;;  %v2399_v24 = vmul.f32 %v1785_v0, %v1320_v37  ;;  %v1371_v29 = vadd.f32 %v2379_v32, %v1335_v25  ;;  %v2402_v42 = vmul.f32 %v1785_v0, %v1321_v34 }
 0x1ce   : > { %v2404_v48 = vmul.f32 %v1785_v0, %v1322_v17  ;;  %v2406_v39 = vmul.f32 %v1785_v0, %v1323_v26  ;;  %v1372_v14 = vadd.f32 %v2379_v32, %v1336_v45  ;;  %v2409_v2 = vmul.f32 %v1785_v0, %v1324_v15 }
 0x1cf   : > { %v2411_v62 = vmul.f32 %v1785_v0, %v1325_v7  ;;  %v1373_v10 = vadd.f32 %v2379_v32, %v1337_v52  ;;  %v1433_v33 = vmul.f32 0.2, %v1369_v63  ;;  %v2415_v23 = vmul.f32 %v1785_v0, %v1326_v31 }
 0x1d0   : > { %v1374_v57 = vadd.f32 %v2379_v32, %v1338_v1  ;;  %vm1401_vm6 = vcmp.gt.f32.partialorder %v1369_v63, 0.0  ;;  %v1434_v27 = vmul.f32 0.2, %v1370_v61  ;;  %v2418_v35 = vmul.f32 %v1785_v0, %v1327_v59 }
 0x1d1   : > { %v1375_v18 = vadd.f32 %v2379_v32, %v1339_v8  ;;  %vm1402_vm7 = vcmp.gt.f32.partialorder %v1370_v61, 0.0  ;;  %v1435_v41 = vmul.f32 0.2, %v1371_v29  ;;  %v2421_v40 = vmul.f32 %v1785_v0, %v1328_v51 }
 0x1d2   : > { %v1376_v38 = vadd.f32 %v2379_v32, %v1340_v55  ;;  %vm1403_vm8 = vcmp.gt.f32.partialorder %v1371_v29, 0.0  ;;  %v1436_v58 = vmul.f32 0.2, %v1372_v14  ;;  %v1377_v21 = vadd.f32 %v2379_v32, %v1341_v43 }
 0x1d3   : > { %vm1404_vm9 = vcmp.gt.f32.partialorder %v1372_v14, 0.0  ;;  %v1437_v20 = vmul.f32 0.2, %v1373_v10  ;;  %v1465_v13 = vsel %vm1401_vm6, %v1369_v63, %v1433_v33  ;;  %v1378_v46 = vadd.f32 %v2379_v32, %v1342_v22 }
 0x1d4   : > { %vm1405_vm10 = vcmp.gt.f32.partialorder %v1373_v10, 0.0  ;;  %v1438_v47 = vmul.f32 0.2, %v1374_v57  ;;  %v1466_v0 = vsel %vm1402_vm7, %v1370_v61, %v1434_v27  ;;  %v1379_v5 = vadd.f32 %v2379_v32, %v1343_v49  ;;  %1497 = vst.msk [vmem:[%s2427_s19] sm:$0xff] %vm1072_vm1, %v1465_v13 }
 0x1d5   : > { %vm1406_vm11 = vcmp.gt.f32.partialorder %v1374_v57, 0.0  ;;  %v1439_v3 = vmul.f32 0.2, %v1375_v18  ;;  %v1467_v60 = vsel %vm1403_vm8, %v1371_v29, %v1435_v41  ;;  %v1380_v28 = vadd.f32 %v2379_v32, %v1344_v30  ;;  %1498 = vst.msk [vmem:[%s2427_s19 + $0x8] sm:$0xff] %vm1072_vm1, %v1466_v0 }
 0x1d6   : > { %vm1407_vm12 = vcmp.gt.f32.partialorder %v1375_v18, 0.0  ;;  %v1440_v37 = vmul.f32 0.2, %v1376_v38  ;;  %v1468_v34 = vsel %vm1404_vm9, %v1372_v14, %v1436_v58  ;;  %v1381_v17 = vadd.f32 %v2379_v32, %v1345_v56  ;;  %1499 = vst.msk [vmem:[%s2427_s19 + $0x10] sm:$0xff] %vm1072_vm1, %v1467_v60 }
 0x1d7   : > { %vm1408_vm13 = vcmp.gt.f32.partialorder %v1376_v38, 0.0  ;;  %v1441_v26 = vmul.f32 0.2, %v1377_v21  ;;  %v1469_v15 = vsel %vm1405_vm10, %v1373_v10, %v1437_v20  ;;  %v1382_v7 = vadd.f32 %v2379_v32, %v1346_v44  ;;  %1500 = vst.msk [vmem:[%s2427_s19 + $0x18] sm:$0xff] %vm1072_vm1, %v1468_v34 }
 0x1d8   : > { %vm1409_vm14 = vcmp.gt.f32.partialorder %v1377_v21, 0.0  ;;  %v1442_v31 = vmul.f32 0.2, %v1378_v46  ;;  %v1470_v59 = vsel %vm1406_vm11, %v1374_v57, %v1438_v47  ;;  %v1383_v51 = vadd.f32 %v2379_v32, %v1347_v53  ;;  %1501 = vst.msk [vmem:[%s2427_s19 + $0x20] sm:$0xff] %vm1072_vm1, %v1469_v15 }
 0x1d9   : > { %vm1410_vm15 = vcmp.gt.f32.partialorder %v1378_v46, 0.0  ;;  %v1443_v4 = vmul.f32 0.2, %v1379_v5  ;;  %v1471_v12 = vsel %vm1407_vm12, %v1375_v18, %v1439_v3  ;;  %v1384_v25 = vadd.f32 %v2379_v32, %v2381_v11  ;;  %1502 = vst.msk [vmem:[%s2427_s19 + $0x28] sm:$0xff] %vm1072_vm1, %v1470_v59 }
 0x1da   : > { %vm1411_vm0 = vcmp.gt.f32.partialorder %v1379_v5, 0.0  ;;  %v1444_v45 = vmul.f32 0.2, %v1380_v28  ;;  %v1472_v52 = vsel %vm1408_vm13, %v1376_v38, %v1440_v37  ;;  %v1385_v1 = vadd.f32 %v2379_v32, %v2383_v36  ;;  %1503 = vst.msk [vmem:[%s2427_s19 + $0x30] sm:$0xff] %vm1072_vm1, %v1471_v12 }
 0x1db   : > { %vm1412_vm2 = vcmp.gt.f32.partialorder %v1380_v28, 0.0  ;;  %v1445_v8 = vmul.f32 0.2, %v1381_v17  ;;  %v1473_v55 = vsel %vm1409_vm14, %v1377_v21, %v1441_v26  ;;  %v1386_v43 = vadd.f32 %v2379_v32, %v2385_v9  ;;  %1504 = vst.msk [vmem:[%s2427_s19 + $0x38] sm:$0xff] %vm1072_vm1, %v1472_v52 }
 0x1dc   : > { %vm1413_vm3 = vcmp.gt.f32.partialorder %v1381_v17, 0.0  ;;  %v1446_v22 = vmul.f32 0.2, %v1382_v7  ;;  %v1474_v49 = vsel %vm1410_vm15, %v1378_v46, %v1442_v31  ;;  %v1387_v30 = vadd.f32 %v2379_v32, %v2388_v50  ;;  %1505 = vst.msk [vmem:[%s2427_s19 + $0x40] sm:$0xff] %vm1072_vm1, %v1473_v55 }
 0x1dd   : > { %vm1414_vm4 = vcmp.gt.f32.partialorder %v1382_v7, 0.0  ;;  %v1447_v56 = vmul.f32 0.2, %v1383_v51  ;;  %v1475_v44 = vsel %vm1411_vm0, %v1379_v5, %v1443_v4  ;;  %v1388_v53 = vadd.f32 %v2379_v32, %v2390_v19  ;;  %1506 = vst.msk [vmem:[%s2427_s19 + $0x48] sm:$0xff] %vm1072_vm1, %v1474_v49 }
 0x1de   : > { %vm1415_vm5 = vcmp.gt.f32.partialorder %v1383_v51, 0.0  ;;  %v1448_v11 = vmul.f32 0.2, %v1384_v25  ;;  %v1476_v36 = vsel %vm1412_vm2, %v1380_v28, %v1444_v45  ;;  %v1389_v9 = vadd.f32 %v2379_v32, %v2392_v54  ;;  %1507 = vst.msk [vmem:[%s2427_s19 + $0x50] sm:$0xff] %vm1072_vm1, %v1475_v44 }
 0x1df   : > { %vm1416_vm6 = vcmp.gt.f32.partialorder %v1384_v25, 0.0  ;;  %v1449_v63 = vmul.f32 0.2, %v1385_v1  ;;  %v1477_v50 = vsel %vm1413_vm3, %v1381_v17, %v1445_v8  ;;  %v1390_v19 = vadd.f32 %v2379_v32, %v2395_v6  ;;  %1508 = vst.msk [vmem:[%s2427_s19 + $0x58] sm:$0xff] %vm1072_vm1, %v1476_v36 }
 0x1e0   : > { %vm1417_vm7 = vcmp.gt.f32.partialorder %v1385_v1, 0.0  ;;  %v1450_v61 = vmul.f32 0.2, %v1386_v43  ;;  %v1478_v29 = vsel %vm1414_vm4, %v1382_v7, %v1446_v22  ;;  %v1391_v54 = vadd.f32 %v2379_v32, %v2397_v16  ;;  %1509 = vst.msk [vmem:[%s2427_s19 + $0x60] sm:$0xff] %vm1072_vm1, %v1477_v50 }
 0x1e1   : > { %vm1418_vm8 = vcmp.gt.f32.partialorder %v1386_v43, 0.0  ;;  %v1451_v14 = vmul.f32 0.2, %v1387_v30  ;;  %v1479_v10 = vsel %vm1415_vm5, %v1383_v51, %v1447_v56  ;;  %v1392_v6 = vadd.f32 %v2379_v32, %v2399_v24  ;;  %1510 = vst.msk [vmem:[%s2427_s19 + $0x68] sm:$0xff] %vm1072_vm1, %v1478_v29 }
 0x1e2   : > { %vm1419_vm9 = vcmp.gt.f32.partialorder %v1387_v30, 0.0  ;;  %v1452_v33 = vmul.f32 0.2, %v1388_v53  ;;  %v1480_v57 = vsel %vm1416_vm6, %v1384_v25, %v1448_v11  ;;  %v1393_v16 = vadd.f32 %v2379_v32, %v2402_v42  ;;  %1511 = vst.msk [vmem:[%s2427_s19 + $0x70] sm:$0xff] %vm1072_vm1, %v1479_v10 }
 0x1e3   : > { %vm1420_vm10 = vcmp.gt.f32.partialorder %v1388_v53, 0.0  ;;  %v1453_v27 = vmul.f32 0.2, %v1389_v9  ;;  %v1481_v18 = vsel %vm1417_vm7, %v1385_v1, %v1449_v63  ;;  %v1394_v24 = vadd.f32 %v2379_v32, %v2404_v48  ;;  %1512 = vst.msk [vmem:[%s2427_s19 + $0x78] sm:$0xff] %vm1072_vm1, %v1480_v57 }
 0x1e4   : > { %vm1421_vm11 = vcmp.gt.f32.partialorder %v1389_v9, 0.0  ;;  %v1454_v41 = vmul.f32 0.2, %v1390_v19  ;;  %v1482_v38 = vsel %vm1418_vm8, %v1386_v43, %v1450_v61  ;;  %v1395_v42 = vadd.f32 %v2379_v32, %v2406_v39  ;;  %1513 = vst.msk [vmem:[%s2427_s19 + $0x80] sm:$0xff] %vm1072_vm1, %v1481_v18 }
 0x1e5   : > { %vm1422_vm12 = vcmp.gt.f32.partialorder %v1390_v19, 0.0  ;;  %v1455_v58 = vmul.f32 0.2, %v1391_v54  ;;  %v1483_v21 = vsel %vm1419_vm9, %v1387_v30, %v1451_v14  ;;  %v1396_v48 = vadd.f32 %v2379_v32, %v2409_v2  ;;  %1514 = vst.msk [vmem:[%s2427_s19 + $0x88] sm:$0xff] %vm1072_vm1, %v1482_v38 }
 0x1e6   : > { %vm1423_vm13 = vcmp.gt.f32.partialorder %v1391_v54, 0.0  ;;  %v1456_v20 = vmul.f32 0.2, %v1392_v6  ;;  %v1484_v13 = vsel %vm1420_vm10, %v1388_v53, %v1452_v33  ;;  %v1397_v39 = vadd.f32 %v2379_v32, %v2411_v62  ;;  %1515 = vst.msk [vmem:[%s2427_s19 + $0x90] sm:$0xff] %vm1072_vm1, %v1483_v21 }
 0x1e7   : > { %vm1424_vm14 = vcmp.gt.f32.partialorder %v1392_v6, 0.0  ;;  %v1457_v46 = vmul.f32 0.2, %v1393_v16  ;;  %v1485_v47 = vsel %vm1421_vm11, %v1389_v9, %v1453_v27  ;;  %v1398_v2 = vadd.f32 %v2379_v32, %v2415_v23  ;;  %1516 = vst.msk [vmem:[%s2427_s19 + $0x98] sm:$0xff] %vm1072_vm1, %v1484_v13 }
 0x1e8   : > { %vm1425_vm15 = vcmp.gt.f32.partialorder %v1393_v16, 0.0  ;;  %v1458_v0 = vmul.f32 0.2, %v1394_v24  ;;  %v1486_v5 = vsel %vm1422_vm12, %v1390_v19, %v1454_v41  ;;  %v1399_v62 = vadd.f32 %v2379_v32, %v2418_v35  ;;  %1517 = vst.msk [vmem:[%s2427_s19 + $0xa0] sm:$0xff] %vm1072_vm1, %v1485_v47 }
 0x1e9   : > { %vm1426_vm0 = vcmp.gt.f32.partialorder %v1394_v24, 0.0  ;;  %v1459_v3 = vmul.f32 0.2, %v1395_v42  ;;  %v1487_v60 = vsel %vm1423_vm13, %v1391_v54, %v1455_v58  ;;  %v1400_v23 = vadd.f32 %v2379_v32, %v2421_v40  ;;  %1518 = vst.msk [vmem:[%s2427_s19 + $0xa8] sm:$0xff] %vm1072_vm1, %v1486_v5 }
 0x1ea   : > { %vm1427_vm2 = vcmp.gt.f32.partialorder %v1395_v42, 0.0  ;;  %v1460_v28 = vmul.f32 0.2, %v1396_v48  ;;  %v1488_v37 = vsel %vm1424_vm14, %v1392_v6, %v1456_v20  ;;  %vm1428_vm3 = vcmp.gt.f32.partialorder %v1396_v48, 0.0  ;;  %1519 = vst.msk [vmem:[%s2427_s19 + $0xb0] sm:$0xff] %vm1072_vm1, %v1487_v60 }
 0x1eb   : > { %v1461_v35 = vmul.f32 0.2, %v1397_v39  ;;  %v1489_v34 = vsel %vm1425_vm15, %v1393_v16, %v1457_v46  ;;  %vm1429_vm4 = vcmp.gt.f32.partialorder %v1397_v39, 0.0  ;;  %v1462_v17 = vmul.f32 0.2, %v1398_v2  ;;  %1520 = vst.msk [vmem:[%s2427_s19 + $0xb8] sm:$0xff] %vm1072_vm1, %v1488_v37 }
 0x1ec   : > { %v1490_v26 = vsel %vm1426_vm0, %v1394_v24, %v1458_v0  ;;  %vm1430_vm5 = vcmp.gt.f32.partialorder %v1398_v2, 0.0  ;;  %v1463_v32 = vmul.f32 0.2, %v1399_v62  ;;  %v1491_v40 = vsel %vm1427_vm2, %v1395_v42, %v1459_v3  ;;  %1521 = vst.msk [vmem:[%s2427_s19 + $0xc0] sm:$0xff] %vm1072_vm1, %v1489_v34 }
 0x1ed   : > { %vm1431_vm6 = vcmp.gt.f32.partialorder %v1399_v62, 0.0  ;;  %v1464_v15 = vmul.f32 0.2, %v1400_v23  ;;  %v1492_v7 = vsel %vm1428_vm3, %v1396_v48, %v1460_v28  ;;  %vm1432_vm7 = vcmp.gt.f32.partialorder %v1400_v23, 0.0  ;;  %1522 = vst.msk [vmem:[%s2427_s19 + $0xc8] sm:$0xff] %vm1072_vm1, %v1490_v26 }
 0x1ee   : > { %v1493_v31 = vsel %vm1429_vm4, %v1397_v39, %v1461_v35  ;;  %v1494_v59 = vsel %vm1430_vm5, %v1398_v2, %v1462_v17  ;;  %1523 = vst.msk [vmem:[%s2427_s19 + $0xd0] sm:$0xff] %vm1072_vm1, %v1491_v40  ;;  %v1495_v51 = vsel %vm1431_vm6, %v1399_v62, %v1463_v32 }
 0x1ef   : > { %1524 = vst.msk [vmem:[%s2427_s19 + $0xd8] sm:$0xff] %vm1072_vm1, %v1492_v7  ;;  %v1496_v4 = vsel %vm1432_vm7, %v1400_v23, %v1464_v15 }
 0x1f0   : > { %1525 = vst.msk [vmem:[%s2427_s19 + $0xe0] sm:$0xff] %vm1072_vm1, %v1493_v31 }
 0x1f1   : > { %1526 = vst.msk [vmem:[%s2427_s19 + $0xe8] sm:$0xff] %vm1072_vm1, %v1494_v59 }
 0x1f2   : > { %1527 = vst.msk [vmem:[%s2427_s19 + $0xf0] sm:$0xff] %vm1072_vm1, %v1495_v51 }
 0x1f3   : > { %1528 = vst.msk [vmem:[%s2427_s19 + $0xf8] sm:$0xff] %vm1072_vm1, %v1496_v4 }
 0x1f4 PF: > { %s14_s15 = sadd.s32 1, %s1797_s15  }
 0x1f5   : > { %p11_p4 = scmp.ge.s32.totalorder %s14_s15, 4  }
 0x1f7   :  { %13 = sbr.rel (!%p11_p4) target bundleno = 1 (0x1), region = 70 }

// kernel: discriminator_forward.6
= control target key start
LH: loop header
LB: loop body
LE: loop exit
PB: predicated region body
PF: predicated region fallthrough
CT: control target
= control target key end

     0   :  { %s957_s15 = smov 0   ;;  %s1137_s0 = inlined_call_operand.vmem [shape: f32[2,9,9,64], index: 0, kind: input, shape index: {}]   ;;  %s1138_s1 = inlined_call_operand.vmem [shape: bf16[4,64,32], index: 1, kind: input, shape index: {}]   ;;  %s1139_s2 = inlined_call_operand.vmem [shape: f32[1,32], index: 2, kind: input, shape index: {}]   ;;  %s1140_s3 = inlined_call_operand.vmem [shape: f32[1,32], index: 3, kind: input, shape index: {}]   ;;  %s1141_s4 = inlined_call_operand.vmem [shape: f32[2,64,32], index: 4, kind: output, shape index: {}]  }
   0x1 LB: > { %s760_s16 = sadd.s32 4294967295, %s929_s15   ;;  %p764_p0 = scmp.ge.s32.totalorder %s929_s15, 1  ;;  %s929_s15 = sphi %s957_s15, %s14_s15  }
   0x2   : > { %p162_p1 = scmp.lt.s32.totalorder %s929_s15, 3 }
   0x4   : > { %p163_p2 = pnand %p764_p0, %p162_p1 }
   0x5   : > { %p188_p3 = scmp.lt.s32.totalorder (!%p163_p2), %s760_s16, 1 }
   0x6   : > { %166 = sbr.rel (%p163_p2) target bundleno = 280 (0x118), region = 36 }
   0xb   : > { %v898_v0 = vld [vmem:[%s1138_s1 + $0x38] sm:$0xff]  ;;  %v897_v4 = vld [vmem:[%s1138_s1 + $0x30] sm:$0xff]  ;;  %s1143_s16 = smov (!%p188_p3, %s760_s16), 1  ;;  %v896_v8 = vld [vmem:[%s1138_s1 + $0x28] sm:$0xff]  ;;  %vm264_vm0 = vcmask 523264   ;;  %vm560_vm1 = vcmask 261120  }
   0xc   : > { %v894_v1 = vld [vmem:[%s1138_s1 + $0x18] sm:$0xff]  ;;  %281 = vmatpush.bf16.msra.mxu0 %v898_v0  ;;  %v893_v5 = vld [vmem:[%s1138_s1 + $0x10] sm:$0xff]  ;;  %s907_s7 = smul.u32 144, %s1143_s16  ;;  %v892_v9 = vld [vmem:[%s1138_s1 + $0x8] sm:$0xff] }
   0xd   : > { %v902_v2 = vld [vmem:[%s1138_s1 + $0x58] sm:$0xff]  ;;  %346 = vmatpush.bf16.msra.mxu1 %v894_v1  ;;  %v901_v6 = vld [vmem:[%s1138_s1 + $0x50] sm:$0xff]  ;;  %v900_v10 = vld [vmem:[%s1138_s1 + $0x48] sm:$0xff] }
   0xe   : > { %v906_v3 = vld [vmem:[%s1138_s1 + $0x78] sm:$0xff]  ;;  %433 = vmatpush.bf16.msra.mxu2 %v902_v2  ;;  %v905_v7 = vld [vmem:[%s1138_s1 + $0x70] sm:$0xff]  ;;  %s1001_s14 = scalar_lea.vmem %s1137_s0, %s907_s7  ;;  %v904_v11 = vld [vmem:[%s1138_s1 + $0x68] sm:$0xff]  ;;  %s890_s7 = sshll.u32 %s1143_s16, 6 }
   0xf   : > { %527 = vmatpush.bf16.msra.mxu3 %v906_v3  ;;  %v895_v12 = vld [vmem:[%s1138_s1 + $0x20] sm:$0xff]  ;;  %v220_v16 = vld [vmem:[%s1001_s14 + $0x11] sm:$0xff]  ;;  %s197_s10 = scalar_lea.vmem %s1141_s4, %s890_s7 }
  0x10   : > { %282 = vmatpush.bf16.msra.mxu0 %v897_v4  ;;  %v891_v13 = vld [vmem:[%s1138_s1] sm:$0xff]  ;;  %v200_v18 = vld [vmem:[%s1001_s14 + $0x10] sm:$0xff] }
  0x11   : > { %347 = vmatpush.bf16.msra.mxu1 %v893_v5  ;;  %v899_v14 = vld [vmem:[%s1138_s1 + $0x40] sm:$0xff]  ;;  %v222_v26 = vld [vmem:[%s1001_s14 + $0x31] sm:$0xff] }
  0x12   : > { %434 = vmatpush.bf16.msra.mxu2 %v901_v6  ;;  %v219_v15 = vld [vmem:[%s1001_s14 + $0x1] sm:$0xff]  ;;  %v202_v27 = vld [vmem:[%s1001_s14 + $0x30] sm:$0xff] }
  0x13   : > { %528 = vmatpush.bf16.msra.mxu3 %v905_v7  ;;  %v199_v17 = vld [vmem:[%s1001_s14] sm:$0xff]  ;;  %v227_v22 = vpack.c.bf16 %v220_v16, %v219_v15  ;;  %v224_v34 = vld [vmem:[%s1001_s14 + $0x51] sm:$0xff] }
  0x14   : > { %283 = vmatpush.bf16.msra.mxu0 %v896_v8  ;;  %v903_v19 = vld [vmem:[%s1138_s1 + $0x60] sm:$0xff]  ;;  %v207_v23 = vpack.c.bf16 %v200_v18, %v199_v17  ;;  %v204_v35 = vld [vmem:[%s1001_s14 + $0x50] sm:$0xff] }
  0x15   : > { %348 = vmatpush.bf16.msra.mxu1 %v892_v9  ;;  %v817_v20 = vld [vmem:[%s1001_s14 + $0x20] sm:$0xff]  ;;  %v226_v42 = vld [vmem:[%s1001_s14 + $0x71] sm:$0xff] }
  0x16   : > { %435 = vmatpush.bf16.msra.mxu2 %v900_v10  ;;  %v853_v21 = vld [vmem:[%s1001_s14 + $0x21] sm:$0xff]  ;;  %v380_v24 = vpack.c.bf16 %v817_v20, %v200_v18  ;;  %v208_v31 = vpack.c.bf16 %v202_v27, %v817_v20  ;;  %v206_v43 = vld [vmem:[%s1001_s14 + $0x70] sm:$0xff] }
  0x17   : > { %529 = vmatpush.bf16.msra.mxu3 %v904_v11  ;;  %v474_v25 = vpack.c.bf16 %v853_v21, %v220_v16  ;;  %v819_v28 = vld [vmem:[%s1001_s14 + $0x40] sm:$0xff]  ;;  %v228_v30 = vpack.c.bf16 %v222_v26, %v853_v21 }
  0x18   : > { %284 = vmatpush.bf16.msra.mxu0 %v895_v12  ;;  %v855_v29 = vld [vmem:[%s1001_s14 + $0x41] sm:$0xff]  ;;  %v381_v32 = vpack.c.bf16 %v819_v28, %v202_v27  ;;  %v209_v39 = vpack.c.bf16 %v204_v35, %v819_v28 }
  0x19   : > { %349 = vmatpush.bf16.msra.mxu1 %v891_v13  ;;  %v475_v33 = vpack.c.bf16 %v855_v29, %v222_v26  ;;  %v821_v36 = vld [vmem:[%s1001_s14 + $0x60] sm:$0xff]  ;;  %v229_v38 = vpack.c.bf16 %v224_v34, %v855_v29 }
  0x1a   : > { %436 = vmatpush.bf16.msra.mxu2 %v899_v14  ;;  %v857_v37 = vld [vmem:[%s1001_s14 + $0x61] sm:$0xff]  ;;  %v382_v40 = vpack.c.bf16 %v821_v36, %v204_v35  ;;  %v210_v47 = vpack.c.bf16 %v206_v43, %v821_v36 }
  0x1b   : > { %530 = vmatpush.bf16.msra.mxu3 %v903_v19  ;;  %792 = vmatmul.msk.bf16.vlgmr.msra.gmra.mxu0 %vm264_vm0, %v227_v22  ;;  %v476_v41 = vpack.c.bf16 %v857_v37, %v224_v34  ;;  %v823_v44 = vld [vmem:[%s1001_s14 + $0x80] sm:$0xff]  ;;  %v230_v46 = vpack.c.bf16 %v226_v42, %v857_v37 }
  0x1c   : > { %812 = vmatmul.msk.bf16.vlgmr.msra.gmra.mxu1 %vm264_vm0, %v207_v23  ;;  %v859_v45 = vld [vmem:[%s1001_s14 + $0x81] sm:$0xff]  ;;  %v383_v48 = vpack.c.bf16 %v823_v44, %v206_v43 }
  0x1d   : > { %848 = vmatmul.msk.bf16.vlgmr.msra.gmra.mxu2 %vm264_vm0, %v380_v24  ;;  %v477_v49 = vpack.c.bf16 %v859_v45, %v226_v42 }
  0x1e   : > { %884 = vmatmul.msk.bf16.vlgmr.msra.gmra.mxu3 %vm264_vm0, %v474_v25 }
  0x2b   : > { %793 = vmatmul.msk.bf16.gmra.mxu0 %vm264_vm0, %v228_v30 }
  0x2c   : > { %813 = vmatmul.msk.bf16.gmra.mxu1 %vm264_vm0, %v208_v31 }
  0x2d   : > { %849 = vmatmul.msk.bf16.gmra.mxu2 %vm264_vm0, %v381_v32 }
  0x2e   : > { %885 = vmatmul.msk.bf16.gmra.mxu3 %vm264_vm0, %v475_v33 }
  0x3b   : > { %794 = vmatmul.msk.bf16.gmra.mxu0 %vm264_vm0, %v229_v38  ;;  %v931_v38 = vmov 64.0  }
  0x3c   : > { %814 = vmatmul.msk.bf16.gmra.mxu1 %vm264_vm0, %v209_v39  ;;  %919 = vrcp.f32 %v931_v38 }
  0x3d   : > { %850 = vmatmul.msk.bf16.gmra.mxu2 %vm264_vm0, %v382_v40 }
  0x3e   : > { %886 = vmatmul.msk.bf16.gmra.mxu3 %vm264_vm0, %v476_v41 }
  0x4b   : > { %795 = vmatmul.msk.bf16.gmra.mxu0 %vm264_vm0, %v230_v46 }
  0x4c   : > { %815 = vmatmul.msk.bf16.gmra.mxu1 %vm264_vm0, %v210_v47 }
  0x4d   : > { %851 = vmatmul.msk.bf16.gmra.mxu2 %vm264_vm0, %v383_v48 }
  0x4e   : > { %887 = vmatmul.msk.bf16.gmra.mxu3 %vm264_vm0, %v477_v49 }
  0x98   : > { %v286_v50 = vpop.f32.mrf.mxu0 }
  0x99   : > { %v351_v51 = vpop.f32.mrf.mxu1 }
  0x9a   : > { %v352_v8 = vadd.f32 %v351_v51, %v286_v50 }
  0xa0   : > { %v438_v52 = vpop.f32.mrf.mxu2  ;;  %v288_v54 = vpop.f32.mrf.mxu0 }
  0xa1   : > { %v532_v53 = vpop.f32.mrf.mxu3  ;;  %v353_v55 = vpop.f32.mrf.mxu1  ;;  %v458_v12 = vadd.f32 %v438_v52, %v352_v8 }
  0xa2   : > { %v354_v9 = vadd.f32 %v353_v55, %v288_v54 }
  0xa3   : > { %v1057_v20 = vadd.f32 %v532_v53, %v458_v12 }
  0xa5   : > { %v590_v30 = vmul.f32 %v1057_v20, %v1057_v20  ;;  %v561_v34 = vsel %vm560_vm1, %v1057_v20, 0.0 }
  0xa7   : > { %v598_v43 = vsel %vm560_vm1, %v590_v30, 0.0 }
  0xa8   : > { %v440_v56 = vpop.f32.mrf.mxu2  ;;  %v291_v58 = vpop.f32.mrf.mxu0 }
  0xa9   : > { %v534_v57 = vpop.f32.mrf.mxu3  ;;  %v356_v59 = vpop.f32.mrf.mxu1  ;;  %v459_v11 = vadd.f32 %v440_v56, %v354_v9 }
  0xaa   : > { %v357_v10 = vadd.f32 %v356_v59, %v291_v58  ;;  %v920_v56 = vpop.eup %919 }
  0xab   : > { %v1055_v16 = vadd.f32 %v534_v57, %v459_v11  ;;  %vm587_vm2 = vweird.f32 %v920_v56 }
  0xad   : > { %v591_v26 = vmul.f32 %v1055_v16, %v1055_v16  ;;  %v562_v31 = vsel %vm560_vm1, %v1055_v16, 0.0 }
  0xae   : > { %v563_v44 = vadd.f32 %v562_v31, %v561_v34 }
  0xaf   : > { %v599_v35 = vsel %vm560_vm1, %v591_v26, 0.0 }
  0xb0   : > { %v443_v60 = vpop.f32.mrf.mxu2  ;;  %v293_v62 = vpop.f32.mrf.mxu0  ;;  %v600_v49 = vadd.f32 %v599_v35, %v598_v43 }
  0xb1   : > { %v537_v61 = vpop.f32.mrf.mxu3  ;;  %v358_v63 = vpop.f32.mrf.mxu1  ;;  %v460_v13 = vadd.f32 %v443_v60, %v357_v10 }
  0xb2   : > { %v359_v14 = vadd.f32 %v358_v63, %v293_v62 }
  0xb3   : > { %v1059_v23 = vadd.f32 %v537_v61, %v460_v13 }
  0xb5   : > { %v592_v32 = vmul.f32 %v1059_v23, %v1059_v23  ;;  %v564_v39 = vsel %vm560_vm1, %v1059_v23, 0.0 }
  0xb6   : > { %v565_v50 = vadd.f32 %v564_v39, %v563_v44 }
  0xb7   : > { %v601_v45 = vsel %vm560_vm1, %v592_v32, 0.0 }
  0xb8   : > { %v445_v0 = vpop.f32.mrf.mxu2  ;;  %v296_v2 = vpop.f32.mrf.mxu0  ;;  %v602_v57 = vadd.f32 %v601_v45, %v600_v49 }
  0xb9   : > { %v539_v1 = vpop.f32.mrf.mxu3  ;;  %v361_v3 = vpop.f32.mrf.mxu1  ;;  %v461_v19 = vadd.f32 %v445_v0, %v359_v14 }
  0xba   : > { %v362_v15 = vadd.f32 %v361_v3, %v296_v2 }
  0xbb   : > { %v1063_v27 = vadd.f32 %v539_v1, %v461_v19 }
  0xbd   : > { %v593_v40 = vmul.f32 %v1063_v27, %v1063_v27  ;;  %v566_v46 = vsel %vm560_vm1, %v1063_v27, 0.0 }
  0xbe   : > { %v567_v58 = vadd.f32 %v566_v46, %v565_v50 }
  0xbf   : > { %v603_v53 = vsel %vm560_vm1, %v593_v40, 0.0 }
  0xc0   : > { %v448_v4 = vpop.f32.mrf.mxu2  ;;  %v298_v6 = vpop.f32.mrf.mxu0  ;;  %v604_v63 = vadd.f32 %v603_v53, %v602_v57 }
  0xc1   : > { %v542_v5 = vpop.f32.mrf.mxu3  ;;  %v363_v7 = vpop.f32.mrf.mxu1  ;;  %v462_v24 = vadd.f32 %v448_v4, %v362_v15 }
  0xc2   : > { %v364_v25 = vadd.f32 %v363_v7, %v298_v6 }
  0xc3   : > { %v1071_v33 = vadd.f32 %v542_v5, %v462_v24  ;;  %v583_v5 = vmul.f32 64.0, %v920_v56 }
  0xc5   : > { %v594_v47 = vmul.f32 %v1071_v33, %v1071_v33  ;;  %v568_v54 = vsel %vm560_vm1, %v1071_v33, 0.0  ;;  %v584_v14 = vsub.f32 1.0, %v583_v5 }
  0xc6   : > { %v569_v0 = vadd.f32 %v568_v54, %v567_v58  ;;  %v917_v58 = vld [vmem:[%s1139_s2] ss:$0 sm:$0xff] }
  0xc7   : > { %v605_v59 = vsel %vm560_vm1, %v594_v47, 0.0  ;;  %v585_v24 = vmul.f32 %v920_v56, %v584_v14 }
  0xc8   : > { %v450_v17 = vpop.f32.mrf.mxu2  ;;  %v301_v21 = vpop.f32.mrf.mxu0  ;;  %v606_v6 = vadd.f32 %v605_v59, %v604_v63 }
  0xc9   : > { %v544_v18 = vpop.f32.mrf.mxu3  ;;  %v366_v22 = vpop.f32.mrf.mxu1  ;;  %v463_v28 = vadd.f32 %v450_v17, %v364_v25  ;;  %v586_v30 = vadd.f32 %v920_v56, %v585_v24 }
  0xca   : > { %v367_v29 = vadd.f32 %v366_v22, %v301_v21 }
  0xcb   : > { %v1080_v41 = vadd.f32 %v544_v18, %v463_v28 }
  0xcd   : > { %v595_v55 = vmul.f32 %v1080_v41, %v1080_v41  ;;  %v570_v60 = vsel %vm560_vm1, %v1080_v41, 0.0 }
  0xce   : > { %v571_v7 = vadd.f32 %v570_v60, %v569_v0 }
  0xcf   : > { %v607_v2 = vsel %vm560_vm1, %v595_v55, 0.0 }
  0xd0   : > { %v453_v36 = vpop.f32.mrf.mxu2  ;;  %v303_v51 = vpop.f32.mrf.mxu0  ;;  %v608_v11 = vadd.f32 %v607_v2, %v606_v6 }
  0xd1   : > { %v547_v37 = vpop.f32.mrf.mxu3  ;;  %v464_v42 = vadd.f32 %v453_v36, %v367_v29  ;;  %v368_v52 = vpop.f32.mrf.mxu1  ;;  %v588_v36 = vsel %vm587_vm2, %v920_v56, %v586_v30 }
  0xd2   : > { %v369_v62 = vadd.f32 %v368_v52, %v303_v51 }
  0xd3   : > { %v1088_v48 = vadd.f32 %v547_v37, %v464_v42 }
  0xd5   : > { %v596_v61 = vmul.f32 %v1088_v48, %v1088_v48  ;;  %v572_v3 = vsel %vm560_vm1, %v1088_v48, 0.0 }
  0xd6   : > { %v573_v12 = vadd.f32 %v572_v3, %v571_v7 }
  0xd7   : > { %v609_v9 = vsel %vm560_vm1, %v596_v61, 0.0 }
  0xd8   : > { %v455_v1 = vpop.f32.mrf.mxu2  ;;  %v610_v17 = vadd.f32 %v609_v9, %v608_v11 }
  0xd9   : > { %v465_v4 = vadd.f32 %v455_v1, %v369_v62  ;;  %v549_v8 = vpop.f32.mrf.mxu3 }
  0xdb   : > { %v559_v10 = vadd.f32 %v549_v8, %v465_v4 }
  0xdd   : > { %v574_v13 = vsel %vm560_vm1, %v559_v10, 0.0  ;;  %v597_v15 = vmul.f32 %v559_v10, %v559_v10 }
  0xde   : > { %v575_v18 = vadd.f32 %v574_v13, %v573_v12 }
  0xdf   : > { %v611_v19 = vsel %vm560_vm1, %v597_v15, 0.0 }
  0xe0   : > { %v576_v21 = vrot.slane %v575_v18, 4  ;;  %v612_v22 = vadd.f32 %v611_v19, %v610_v17 }
  0xe2   : > { %v577_v25 = vadd.f32 %v576_v21, %v575_v18  ;;  %v613_v26 = vrot.slane %v612_v22, 4 }
  0xe4   : > { %v578_v28 = vrot.slane %v577_v25, 2  ;;  %v614_v29 = vadd.f32 %v613_v26, %v612_v22 }
  0xe6   : > { %v579_v31 = vadd.f32 %v578_v28, %v577_v25  ;;  %v615_v32 = vrot.slane %v614_v29, 2 }
  0xe8   : > { %v580_v34 = vrot.slane %v579_v31, 1  ;;  %v616_v35 = vadd.f32 %v615_v32, %v614_v29 }
  0xea   : > { %v581_v37 = vadd.f32 %v580_v34, %v579_v31  ;;  %v617_v38 = vrot.slane %v616_v35, 1 }
  0xec   : > { %v589_v39 = vmul.f32 %v588_v36, %v581_v37  ;;  %v618_v40 = vadd.f32 %v617_v38, %v616_v35 }
  0xee   : > { %v619_v42 = vmul.f32 %v618_v40, %v588_v36  ;;  %v620_v43 = vmul.f32 %v589_v39, %v589_v39  ;;  %v633_v53 = vsub.f32 %v1057_v20, %v589_v39  ;;  %v634_v54 = vsub.f32 %v1055_v16, %v589_v39 }
  0xef   : > { %v635_v55 = vsub.f32 %v1059_v23, %v589_v39  ;;  %v636_v56 = vsub.f32 %v1063_v27, %v589_v39  ;;  %v637_v57 = vsub.f32 %v1071_v33, %v589_v39  ;;  %v638_v60 = vsub.f32 %v1080_v41, %v589_v39  ;;  %v918_v23 = vld [vmem:[%s1140_s3] ss:$0 sm:$0xff] }
  0xf0   : > { %v621_v44 = vsub.f32 %v619_v42, %v620_v43  ;;  %v639_v61 = vsub.f32 %v1088_v48, %v589_v39  ;;  %v640_v62 = vsub.f32 %v559_v10, %v589_v39 }
  0xf2   : > { %v622_v45 = vadd.f32 1e-05, %v621_v44 }
  0xf4   : > { %921 = vrsqrt.f32 %v622_v45  ;;  %vm629_vm4 = vweird.f32 %v622_v45 }
  0xfa   : > { %v922_v46 = vpop.eup %921 }
  0xfb   : > { %v624_v47 = vmul.f32 %v922_v46, %v622_v45  ;;  %vm630_vm3 = vweird.f32 %v922_v46 }
  0xfc   : > { %vm631_vm5 = vmor %vm629_vm4, %vm630_vm3 }
  0xfd   : > { %v625_v49 = vmul.f32 %v922_v46, %v624_v47 }
  0xff   : > { %v626_v50 = vmul.f32 0.5, %v625_v49 }
 0x101   : > { %v627_v51 = vsub.f32 1.5, %v626_v50 }
 0x103   : > { %v628_v52 = vmul.f32 %v922_v46, %v627_v51 }
 0x105   : > { %v632_v59 = vsel %vm631_vm5, %v922_v46, %v628_v52 }
 0x106   : > { %v641_v20 = vmul.f32 %v633_v53, %v632_v59  ;;  %v642_v63 = vmul.f32 %v634_v54, %v632_v59  ;;  %v643_v0 = vmul.f32 %v635_v55, %v632_v59  ;;  %v644_v16 = vmul.f32 %v636_v56, %v632_v59 }
 0x107   : > { %v645_v27 = vmul.f32 %v637_v57, %v632_v59  ;;  %v646_v33 = vmul.f32 %v638_v60, %v632_v59  ;;  %v647_v1 = vmul.f32 %v639_v61, %v632_v59  ;;  %v648_v2 = vmul.f32 %v640_v62, %v632_v59 }
 0x108   : > { %v653_v3 = vmul.f32 %v917_v58, %v641_v20  ;;  %v654_v4 = vmul.f32 %v917_v58, %v642_v63  ;;  %v655_v5 = vmul.f32 %v917_v58, %v643_v0  ;;  %v656_v41 = vmul.f32 %v917_v58, %v644_v16 }
 0x109   : > { %v657_v6 = vmul.f32 %v917_v58, %v645_v27  ;;  %v658_v48 = vmul.f32 %v917_v58, %v646_v33  ;;  %v659_v7 = vmul.f32 %v917_v58, %v647_v1  ;;  %v660_v8 = vmul.f32 %v917_v58, %v648_v2 }
 0x10a   : > { %v665_v9 = vadd.f32 %v918_v23, %v653_v3  ;;  %v666_v10 = vadd.f32 %v918_v23, %v654_v4  ;;  %v667_v11 = vadd.f32 %v918_v23, %v655_v5  ;;  %v668_v12 = vadd.f32 %v918_v23, %v656_v41 }
 0x10b   : > { %v669_v13 = vadd.f32 %v918_v23, %v657_v6  ;;  %v670_v14 = vadd.f32 %v918_v23, %v658_v48  ;;  %v671_v15 = vadd.f32 %v918_v23, %v659_v7  ;;  %v672_v17 = vadd.f32 %v918_v23, %v660_v8 }
 0x10c   : > { %vm673_vm6 = vcmp.gt.f32.partialorder %v665_v9, 0.0  ;;  %vm674_vm7 = vcmp.gt.f32.partialorder %v666_v10, 0.0  ;;  %vm675_vm8 = vcmp.gt.f32.partialorder %v667_v11, 0.0  ;;  %vm676_vm9 = vcmp.gt.f32.partialorder %v668_v12, 0.0 }
 0x10d   : > { %vm677_vm10 = vcmp.gt.f32.partialorder %v669_v13, 0.0  ;;  %v681_v18 = vmul.f32 0.2, %v665_v9  ;;  %v682_v19 = vmul.f32 0.2, %v666_v10  ;;  %vm678_vm11 = vcmp.gt.f32.partialorder %v670_v14, 0.0 }
 0x10e   : > { %v683_v21 = vmul.f32 0.2, %v667_v11  ;;  %v684_v22 = vmul.f32 0.2, %v668_v12  ;;  %v685_v24 = vmul.f32 0.2, %v669_v13 }
 0x10f   : > { %v686_v25 = vmul.f32 0.2, %v670_v14  ;;  %v687_v26 = vmul.f32 0.2, %v671_v15  ;;  %v689_v28 = vsel %vm673_vm6, %v665_v9, %v681_v18  ;;  %v690_v29 = vsel %vm674_vm7, %v666_v10, %v682_v19 }
 0x110   : > { %vm679_vm12 = vcmp.gt.f32.partialorder %v671_v15, 0.0  ;;  %v688_v30 = vmul.f32 0.2, %v672_v17  ;;  %v691_v31 = vsel %vm675_vm8, %v667_v11, %v683_v21  ;;  %v692_v32 = vsel %vm676_vm9, %v668_v12, %v684_v22  ;;  %697 = vst.msk [vmem:[%s197_s10] sm:$0xff] %vm560_vm1, %v689_v28 }
 0x111   : > { %vm680_vm13 = vcmp.gt.f32.partialorder %v672_v17, 0.0  ;;  %v693_v34 = vsel %vm677_vm10, %v669_v13, %v685_v24  ;;  %698 = vst.msk [vmem:[%s197_s10 + $0x8] sm:$0xff] %vm560_vm1, %v690_v29  ;;  %v694_v35 = vsel %vm678_vm11, %v670_v14, %v686_v25  ;;  %v695_v36 = vsel %vm679_vm12, %v671_v15, %v687_v26 }
 0x112   : > { %699 = vst.msk [vmem:[%s197_s10 + $0x10] sm:$0xff] %vm560_vm1, %v691_v31  ;;  %v696_v37 = vsel %vm680_vm13, %v672_v17, %v688_v30 }
 0x113   : > { %700 = vst.msk [vmem:[%s197_s10 + $0x18] sm:$0xff] %vm560_vm1, %v692_v32 }
 0x114   : > { %701 = vst.msk [vmem:[%s197_s10 + $0x20] sm:$0xff] %vm560_vm1, %v693_v34 }
 0x115   : > { %702 = vst.msk [vmem:[%s197_s10 + $0x28] sm:$0xff] %vm560_vm1, %v694_v35 }
 0x116   : > { %703 = vst.msk [vmem:[%s197_s10 + $0x30] sm:$0xff] %vm560_vm1, %v695_v36 }
 0x117   : > { %704 = vst.msk [vmem:[%s197_s10 + $0x38] sm:$0xff] %vm560_vm1, %v696_v37 }
 0x118 PF: > { %s14_s15 = sadd.s32 1, %s929_s15  }
 0x119   : > { %p11_p4 = scmp.ge.s32.totalorder %s14_s15, 4  }
 0x11b   :  { %13 = sbr.rel (!%p11_p4) target bundleno = 1 (0x1), region = 70 }

// kernel: discriminator_forward.7
= control target key start
LH: loop header
LB: loop body
LE: loop exit
PB: predicated region body
PF: predicated region fallthrough
CT: control target
= control target key end

     0   :  { %s1282_s23 = smov 0   ;;  %s1661_s0 = inlined_call_operand.vmem [shape: f32[2,5,5,128], index: 0, kind: input, shape index: {}]   ;;  %s1662_s1 = inlined_call_operand.vmem [shape: bf16[4,128,64], index: 1, kind: input, shape index: {}]   ;;  %s1663_s2 = inlined_call_operand.vmem [shape: f32[1,64], index: 2, kind: input, shape index: {}]   ;;  %s1664_s3 = inlined_call_operand.vmem [shape: f32[1,64], index: 3, kind: input, shape index: {}]   ;;  %s1665_s4 = inlined_call_operand.vmem [shape: f32[4,4,64], index: 4, kind: input, shape index: {}]   ;;  %s1666_s5 = inlined_call_operand.<no memory space> [shape: f32[1,1], index: 5, kind: input, shape index: {}]   ;;  %s1667_s6 = inlined_call_operand.vmem [shape: f32[2,1,1], index: 6, kind: output, shape index: {}]  }
   0x1   :  { %v11_v0 = vstv %s1666_s5 }
   0x2   :  { %12 = vst [vmem:[#allocation2] sm:$0x1] %v11_v0 }
   0x3 LB: > { %s984_s24 = sadd.s32 4294967295, %s1241_s23   ;;  %p988_p0 = scmp.ge.s32.totalorder %s1241_s23, 1  ;;  %s1241_s23 = sphi %s1282_s23, %s18_s23  }
   0x4   : > { %p214_p1 = scmp.lt.s32.totalorder %s1241_s23, 3 }
   0x6   : > { %p215_p2 = pnand %p988_p0, %p214_p1 }
   0x7   : > { %p242_p3 = scmp.lt.s32.totalorder (!%p215_p2), %s984_s24, 1 }
   0x8   : > { %218 = sbr.rel (%p215_p2) target bundleno = 528 (0x210), region = 44 }
   0xd   : > { %v1293_v1 = vld [vmem:[%s1662_s1 + $0x78] sm:$0xff]  ;;  %v1315_v5 = vld [vmem:[%s1662_s1 + $0x70] sm:$0xff]  ;;  %v1339_v9 = vld [vmem:[%s1662_s1 + $0x68] sm:$0xff]  ;;  %s1669_s24 = smov (!%p242_p3, %s984_s24), 1  ;;  %vm749_vm0 = vcmask 519168   ;;  %vm935_vm9 = vcmask 0  }
   0xe   : > { %v1298_v2 = vld [vmem:[%s1662_s1 + $0x38] sm:$0xff]  ;;  %335 = vmatpush.bf16.msra.mxu0 %v1293_v1  ;;  %v1320_v6 = vld [vmem:[%s1662_s1 + $0x30] sm:$0xff]  ;;  %v1344_v10 = vld [vmem:[%s1662_s1 + $0x28] sm:$0xff]  ;;  %s1211_s5 = smul.u32 40, %s1669_s24  ;;  %s249_s17 = scalar_lea.vmem %s1667_s6, %s1669_s24 }
   0xf   : > { %v1303_v3 = vld [vmem:[%s1662_s1 + $0xb8] sm:$0xff]  ;;  %396 = vmatpush.bf16.msra.mxu1 %v1298_v2  ;;  %v1327_v7 = vld [vmem:[%s1662_s1 + $0xb0] sm:$0xff]  ;;  %v1351_v11 = vld [vmem:[%s1662_s1 + $0xa8] sm:$0xff] }
  0x10   : > { %v1308_v4 = vld [vmem:[%s1662_s1 + $0xf8] sm:$0xff]  ;;  %477 = vmatpush.bf16.msra.mxu2 %v1303_v3  ;;  %v1332_v8 = vld [vmem:[%s1662_s1 + $0xf0] sm:$0xff]  ;;  %v1356_v12 = vld [vmem:[%s1662_s1 + $0xe8] sm:$0xff]  ;;  %s1464_s13 = scalar_lea.vmem %s1661_s0, %s1211_s5 }
  0x11   : > { %558 = vmatpush.bf16.msra.mxu3 %v1308_v4  ;;  %v1363_v13 = vld [vmem:[%s1662_s1 + $0x60] sm:$0xff]  ;;  %v1389_v17 = vld [vmem:[%s1662_s1 + $0x58] sm:$0xff]  ;;  %v1417_v21 = vld [vmem:[%s1662_s1 + $0x50] sm:$0xff] }
  0x12   : > { %336 = vmatpush.bf16.msra.mxu0 %v1315_v5  ;;  %v1368_v14 = vld [vmem:[%s1662_s1 + $0x20] sm:$0xff]  ;;  %v1394_v18 = vld [vmem:[%s1662_s1 + $0x18] sm:$0xff]  ;;  %v1422_v22 = vld [vmem:[%s1662_s1 + $0x10] sm:$0xff] }
  0x13   : > { %397 = vmatpush.bf16.msra.mxu1 %v1320_v6  ;;  %v1375_v15 = vld [vmem:[%s1662_s1 + $0xa0] sm:$0xff]  ;;  %v1401_v19 = vld [vmem:[%s1662_s1 + $0x98] sm:$0xff]  ;;  %v1429_v23 = vld [vmem:[%s1662_s1 + $0x90] sm:$0xff] }
  0x14   : > { %478 = vmatpush.bf16.msra.mxu2 %v1327_v7  ;;  %v1380_v16 = vld [vmem:[%s1662_s1 + $0xe0] sm:$0xff]  ;;  %v1406_v20 = vld [vmem:[%s1662_s1 + $0xd8] sm:$0xff]  ;;  %v1434_v24 = vld [vmem:[%s1662_s1 + $0xd0] sm:$0xff] }
  0x15   : > { %559 = vmatpush.bf16.msra.mxu3 %v1332_v8  ;;  %v1442_v25 = vld [vmem:[%s1662_s1 + $0x48] sm:$0xff]  ;;  %v1471_v29 = vld [vmem:[%s1662_s1 + $0x40] sm:$0xff]  ;;  %v1168_v41 = vld [vmem:[%s1464_s13 + $0x10] sm:$0xf] }
  0x16   : > { %337 = vmatpush.bf16.msra.mxu0 %v1339_v9  ;;  %v1447_v26 = vld [vmem:[%s1662_s1 + $0x8] sm:$0xff]  ;;  %v1476_v30 = vld [vmem:[%s1662_s1] sm:$0xff]  ;;  %v1169_v42 = vld [vmem:[%s1464_s13 + $0x11] sm:$0xf]  ;;  %v600_v43 = vpack.c.bf16 %v1168_v41, %v1168_v41 }
  0x17   : > { %398 = vmatpush.bf16.msra.mxu1 %v1344_v10  ;;  %v1454_v27 = vld [vmem:[%s1662_s1 + $0x88] sm:$0xff]  ;;  %v1481_v31 = vld [vmem:[%s1662_s1 + $0x80] sm:$0xff]  ;;  %v616_v44 = vpack.c.bf16 %v1169_v42, %v1169_v42  ;;  %v1170_v45 = vld [vmem:[%s1464_s13 + $0x18] sm:$0xf] }
  0x18   : > { %479 = vmatpush.bf16.msra.mxu2 %v1351_v11  ;;  %v1459_v28 = vld [vmem:[%s1662_s1 + $0xc8] sm:$0xff]  ;;  %v1488_v32 = vld [vmem:[%s1662_s1 + $0xc0] sm:$0xff]  ;;  %v1171_v46 = vld [vmem:[%s1464_s13 + $0x19] sm:$0xf]  ;;  %v659_v47 = vpack.c.bf16 %v1170_v45, %v1170_v45 }
  0x19   : > { %560 = vmatpush.bf16.msra.mxu3 %v1356_v12  ;;  %v1070_v33 = vld [vmem:[%s1464_s13 + $0x8] sm:$0xf]  ;;  %v268_v35 = vld [vmem:[%s1464_s13 + $0x1] sm:$0xf]  ;;  %v675_v48 = vpack.c.bf16 %v1171_v46, %v1171_v46 }
  0x1a   : > { %338 = vmatpush.bf16.msra.mxu0 %v1363_v13  ;;  %v1119_v34 = vld [vmem:[%s1464_s13 + $0x9] sm:$0xf]  ;;  %v250_v36 = vld [vmem:[%s1464_s13] sm:$0xf]  ;;  %v411_v37 = vpack.c.bf16 %v1070_v33, %v1070_v33  ;;  %v269_v39 = vpack.c.bf16 %v268_v35, %v268_v35 }
  0x1b   : > { %399 = vmatpush.bf16.msra.mxu1 %v1368_v14  ;;  %v492_v38 = vpack.c.bf16 %v1119_v34, %v1119_v34  ;;  %v251_v40 = vpack.c.bf16 %v250_v36, %v250_v36  ;;  %v1172_v49 = vld [vmem:[%s1464_s13 + $0x20] sm:$0xf]  ;;  %v1243_v36 = vmov 16.0  }
  0x1c   : > { %480 = vmatpush.bf16.msra.mxu2 %v1375_v15  ;;  %v1173_v50 = vld [vmem:[%s1464_s13 + $0x21] sm:$0xf]  ;;  %v718_v51 = vpack.c.bf16 %v1172_v49, %v1172_v49  ;;  %1231 = vrcp.f32 %v1243_v36 }
  0x1d   : > { %561 = vmatpush.bf16.msra.mxu3 %v1380_v16  ;;  %v734_v52 = vpack.c.bf16 %v1173_v50, %v1173_v50 }
  0x1e   : > { %339 = vmatpush.bf16.msra.mxu0 %v1389_v17 }
  0x1f   : > { %400 = vmatpush.bf16.msra.mxu1 %v1394_v18 }
  0x20   : > { %481 = vmatpush.bf16.msra.mxu2 %v1401_v19 }
  0x21   : > { %562 = vmatpush.bf16.msra.mxu3 %v1406_v20 }
  0x22   : > { %340 = vmatpush.bf16.msra.mxu0 %v1417_v21 }
  0x23   : > { %401 = vmatpush.bf16.msra.mxu1 %v1422_v22 }
  0x24   : > { %482 = vmatpush.bf16.msra.mxu2 %v1429_v23 }
  0x25   : > { %563 = vmatpush.bf16.msra.mxu3 %v1434_v24 }
  0x26   : > { %341 = vmatpush.bf16.msra.mxu0 %v1442_v25 }
  0x27   : > { %402 = vmatpush.bf16.msra.mxu1 %v1447_v26 }
  0x28   : > { %483 = vmatpush.bf16.msra.mxu2 %v1454_v27 }
  0x29   : > { %564 = vmatpush.bf16.msra.mxu3 %v1459_v28 }
  0x2a   : > { %342 = vmatpush.bf16.msra.mxu0 %v1471_v29 }
  0x2b   : > { %403 = vmatpush.bf16.msra.mxu1 %v1476_v30 }
  0x2c   : > { %484 = vmatpush.bf16.msra.mxu2 %v1481_v31 }
  0x2d   : > { %565 = vmatpush.bf16.msra.mxu3 %v1488_v32  ;;  %343 = vmatmul.bf16.vlgmr.msra.gmra.mxu0 %v269_v39 }
  0x2e   : > { %572 = vmatpush.bf16.msrb.mxu0 %v1293_v1  ;;  %404 = vmatmul.bf16.vlgmr.msra.gmra.mxu1 %v251_v40 }
  0x2f   : > { %585 = vmatpush.bf16.msrb.mxu1 %v1298_v2  ;;  %485 = vmatmul.bf16.vlgmr.msra.gmra.mxu2 %v411_v37 }
  0x30   : > { %601 = vmatpush.bf16.msrb.mxu2 %v1303_v3  ;;  %566 = vmatmul.bf16.vlgmr.msra.gmra.mxu3 %v492_v38 }
  0x31   : > { %617 = vmatpush.bf16.msrb.mxu3 %v1308_v4 }
  0x32   : > { %573 = vmatpush.bf16.msrb.mxu0 %v1315_v5 }
  0x33   : > { %586 = vmatpush.bf16.msrb.mxu1 %v1320_v6 }
  0x34   : > { %602 = vmatpush.bf16.msrb.mxu2 %v1327_v7 }
  0x35   : > { %618 = vmatpush.bf16.msrb.mxu3 %v1332_v8 }
  0x36   : > { %574 = vmatpush.bf16.msrb.mxu0 %v1339_v9 }
  0x37   : > { %587 = vmatpush.bf16.msrb.mxu1 %v1344_v10 }
  0x38   : > { %603 = vmatpush.bf16.msrb.mxu2 %v1351_v11 }
  0x39   : > { %619 = vmatpush.bf16.msrb.mxu3 %v1356_v12 }
  0x3a   : > { %575 = vmatpush.bf16.msrb.mxu0 %v1363_v13 }
  0x3b   : > { %588 = vmatpush.bf16.msrb.mxu1 %v1368_v14 }
  0x3c   : > { %604 = vmatpush.bf16.msrb.mxu2 %v1375_v15 }
  0x3d   : > { %620 = vmatpush.bf16.msrb.mxu3 %v1380_v16 }
  0x3e   : > { %576 = vmatpush.bf16.msrb.mxu0 %v1389_v17 }
  0x3f   : > { %589 = vmatpush.bf16.msrb.mxu1 %v1394_v18 }
  0x40   : > { %605 = vmatpush.bf16.msrb.mxu2 %v1401_v19 }
  0x41   : > { %621 = vmatpush.bf16.msrb.mxu3 %v1406_v20 }
  0x42   : > { %577 = vmatpush.bf16.msrb.mxu0 %v1417_v21 }
  0x43   : > { %590 = vmatpush.bf16.msrb.mxu1 %v1422_v22 }
  0x44   : > { %606 = vmatpush.bf16.msrb.mxu2 %v1429_v23 }
  0x45   : > { %622 = vmatpush.bf16.msrb.mxu3 %v1434_v24 }
  0x46   : > { %578 = vmatpush.bf16.msrb.mxu0 %v1442_v25 }
  0x47   : > { %591 = vmatpush.bf16.msrb.mxu1 %v1447_v26 }
  0x48   : > { %607 = vmatpush.bf16.msrb.mxu2 %v1454_v27 }
  0x49   : > { %623 = vmatpush.bf16.msrb.mxu3 %v1459_v28 }
  0x4a   : > { %579 = vmatpush.bf16.msrb.mxu0 %v1471_v29 }
  0x4b   : > { %592 = vmatpush.bf16.msrb.mxu1 %v1476_v30 }
  0x4c   : > { %608 = vmatpush.bf16.msrb.mxu2 %v1481_v31 }
  0x4d   : > { %624 = vmatpush.bf16.msrb.mxu3 %v1488_v32  ;;  %580 = vmatmul.bf16.vlgmr.msrb.gmra.mxu0 %v492_v38 }
  0x4e   : > { %631 = vmatpush.bf16.msra.mxu0 %v1293_v1  ;;  %593 = vmatmul.bf16.vlgmr.msrb.gmra.mxu1 %v411_v37 }
  0x4f   : > { %644 = vmatpush.bf16.msra.mxu1 %v1298_v2  ;;  %609 = vmatmul.bf16.vlgmr.msrb.gmra.mxu2 %v600_v43 }
  0x50   : > { %660 = vmatpush.bf16.msra.mxu2 %v1303_v3  ;;  %625 = vmatmul.bf16.vlgmr.msrb.gmra.mxu3 %v616_v44 }
  0x51   : > { %676 = vmatpush.bf16.msra.mxu3 %v1308_v4 }
  0x52   : > { %632 = vmatpush.bf16.msra.mxu0 %v1315_v5 }
  0x53   : > { %645 = vmatpush.bf16.msra.mxu1 %v1320_v6 }
  0x54   : > { %661 = vmatpush.bf16.msra.mxu2 %v1327_v7 }
  0x55   : > { %677 = vmatpush.bf16.msra.mxu3 %v1332_v8 }
  0x56   : > { %633 = vmatpush.bf16.msra.mxu0 %v1339_v9 }
  0x57   : > { %646 = vmatpush.bf16.msra.mxu1 %v1344_v10 }
  0x58   : > { %662 = vmatpush.bf16.msra.mxu2 %v1351_v11 }
  0x59   : > { %678 = vmatpush.bf16.msra.mxu3 %v1356_v12 }
  0x5a   : > { %634 = vmatpush.bf16.msra.mxu0 %v1363_v13 }
  0x5b   : > { %647 = vmatpush.bf16.msra.mxu1 %v1368_v14 }
  0x5c   : > { %663 = vmatpush.bf16.msra.mxu2 %v1375_v15 }
  0x5d   : > { %679 = vmatpush.bf16.msra.mxu3 %v1380_v16 }
  0x5e   : > { %635 = vmatpush.bf16.msra.mxu0 %v1389_v17 }
  0x5f   : > { %648 = vmatpush.bf16.msra.mxu1 %v1394_v18 }
  0x60   : > { %664 = vmatpush.bf16.msra.mxu2 %v1401_v19 }
  0x61   : > { %680 = vmatpush.bf16.msra.mxu3 %v1406_v20 }
  0x62   : > { %636 = vmatpush.bf16.msra.mxu0 %v1417_v21 }
  0x63   : > { %649 = vmatpush.bf16.msra.mxu1 %v1422_v22 }
  0x64   : > { %665 = vmatpush.bf16.msra.mxu2 %v1429_v23 }
  0x65   : > { %681 = vmatpush.bf16.msra.mxu3 %v1434_v24 }
  0x66   : > { %637 = vmatpush.bf16.msra.mxu0 %v1442_v25 }
  0x67   : > { %650 = vmatpush.bf16.msra.mxu1 %v1447_v26 }
  0x68   : > { %666 = vmatpush.bf16.msra.mxu2 %v1454_v27 }
  0x69   : > { %682 = vmatpush.bf16.msra.mxu3 %v1459_v28 }
  0x6a   : > { %638 = vmatpush.bf16.msra.mxu0 %v1471_v29 }
  0x6b   : > { %651 = vmatpush.bf16.msra.mxu1 %v1476_v30 }
  0x6c   : > { %667 = vmatpush.bf16.msra.mxu2 %v1481_v31 }
  0x6d   : > { %683 = vmatpush.bf16.msra.mxu3 %v1488_v32  ;;  %639 = vmatmul.bf16.vlgmr.msra.gmra.mxu0 %v616_v44 }
  0x6e   : > { %690 = vmatpush.bf16.msrb.mxu0 %v1293_v1  ;;  %652 = vmatmul.bf16.vlgmr.msra.gmra.mxu1 %v600_v43 }
  0x6f   : > { %703 = vmatpush.bf16.msrb.mxu1 %v1298_v2  ;;  %668 = vmatmul.bf16.vlgmr.msra.gmra.mxu2 %v659_v47 }
  0x70   : > { %719 = vmatpush.bf16.msrb.mxu2 %v1303_v3  ;;  %684 = vmatmul.bf16.vlgmr.msra.gmra.mxu3 %v675_v48 }
  0x71   : > { %735 = vmatpush.bf16.msrb.mxu3 %v1308_v4 }
  0x72   : > { %691 = vmatpush.bf16.msrb.mxu0 %v1315_v5 }
  0x73   : > { %704 = vmatpush.bf16.msrb.mxu1 %v1320_v6 }
  0x74   : > { %720 = vmatpush.bf16.msrb.mxu2 %v1327_v7 }
  0x75   : > { %736 = vmatpush.bf16.msrb.mxu3 %v1332_v8 }
  0x76   : > { %692 = vmatpush.bf16.msrb.mxu0 %v1339_v9 }
  0x77   : > { %705 = vmatpush.bf16.msrb.mxu1 %v1344_v10 }
  0x78   : > { %721 = vmatpush.bf16.msrb.mxu2 %v1351_v11 }
  0x79   : > { %737 = vmatpush.bf16.msrb.mxu3 %v1356_v12 }
  0x7a   : > { %693 = vmatpush.bf16.msrb.mxu0 %v1363_v13 }
  0x7b   : > { %706 = vmatpush.bf16.msrb.mxu1 %v1368_v14 }
  0x7c   : > { %722 = vmatpush.bf16.msrb.mxu2 %v1375_v15 }
  0x7d   : > { %738 = vmatpush.bf16.msrb.mxu3 %v1380_v16 }
  0x7e   : > { %694 = vmatpush.bf16.msrb.mxu0 %v1389_v17 }
  0x7f   : > { %707 = vmatpush.bf16.msrb.mxu1 %v1394_v18 }
  0x80   : > { %723 = vmatpush.bf16.msrb.mxu2 %v1401_v19 }
  0x81   : > { %739 = vmatpush.bf16.msrb.mxu3 %v1406_v20 }
  0x82   : > { %695 = vmatpush.bf16.msrb.mxu0 %v1417_v21 }
  0x83   : > { %708 = vmatpush.bf16.msrb.mxu1 %v1422_v22 }
  0x84   : > { %724 = vmatpush.bf16.msrb.mxu2 %v1429_v23 }
  0x85   : > { %740 = vmatpush.bf16.msrb.mxu3 %v1434_v24 }
  0x86   : > { %696 = vmatpush.bf16.msrb.mxu0 %v1442_v25 }
  0x87   : > { %709 = vmatpush.bf16.msrb.mxu1 %v1447_v26 }
  0x88   : > { %725 = vmatpush.bf16.msrb.mxu2 %v1454_v27 }
  0x89   : > { %741 = vmatpush.bf16.msrb.mxu3 %v1459_v28 }
  0x8a   : > { %697 = vmatpush.bf16.msrb.mxu0 %v1471_v29 }
  0x8b   : > { %710 = vmatpush.bf16.msrb.mxu1 %v1476_v30 }
  0x8c   : > { %726 = vmatpush.bf16.msrb.mxu2 %v1481_v31 }
  0x8d   : > { %742 = vmatpush.bf16.msrb.mxu3 %v1488_v32  ;;  %698 = vmatmul.bf16.vlgmr.msrb.gmra.mxu0 %v675_v48 }
  0x8e   : > { %711 = vmatmul.bf16.vlgmr.msrb.gmra.mxu1 %v659_v47  ;;  %v1232_v47 = vpop.eup %1231 }
  0x8f   : > { %727 = vmatmul.bf16.vlgmr.msrb.gmra.mxu2 %v718_v51  ;;  %vm821_vm1 = vweird.f32 %v1232_v47 }
  0x90   : > { %743 = vmatmul.bf16.vlgmr.msrb.gmra.mxu3 %v734_v52 }
  0xaa   : > { %v344_v53 = vpop.f32.mrf.mxu0 }
  0xab   : > { %v405_v54 = vpop.f32.mrf.mxu1 }
  0xac   : > { %v406_v55 = vadd.f32 %v405_v54, %v344_v53 }
  0xb2   : > { %v486_v56 = vpop.f32.mrf.mxu2  ;;  %v346_v60 = vpop.f32.mrf.mxu0 }
  0xb3   : > { %v567_v57 = vpop.f32.mrf.mxu3  ;;  %v490_v58 = vadd.f32 %v486_v56, %v406_v55  ;;  %v407_v61 = vpop.f32.mrf.mxu1 }
  0xb5   : > { %v1600_v59 = vadd.f32 %v567_v57, %v490_v58  ;;  %v817_v57 = vmul.f32 16.0, %v1232_v47 }
  0xb7   : > { %v757_v22 = vmul.f32 %v1600_v59, %v1600_v59  ;;  %v750_v26 = vsel %vm749_vm0, %v1600_v59, 0.0 }
  0xb8   : > { %v751_v31 = vrot.slane %v750_v26, 4 }
  0xb9   : > { %v758_v27 = vsel %vm749_vm0, %v757_v22, 0.0 }
  0xba   : > { %v488_v62 = vpop.f32.mrf.mxu2  ;;  %v759_v33 = vrot.slane %v758_v27, 4  ;;  %v752_v41 = vadd.f32 %v751_v31, %v750_v26 }
  0xbb   : > { %v569_v63 = vpop.f32.mrf.mxu3 }
  0xbc   : > { %v760_v42 = vadd.f32 %v759_v33, %v758_v27  ;;  %v753_v49 = vrot.slane %v752_v41, 2 }
  0xbe   : > { %v761_v50 = vrot.slane %v760_v42, 2  ;;  %v754_v62 = vadd.f32 %v753_v49, %v752_v41 }
  0xca   : > { %v581_v0 = vpop.f32.mrf.mxu0 }
  0xcb   : > { %v594_v1 = vpop.f32.mrf.mxu1 }
  0xcc   : > { %v595_v12 = vadd.f32 %v594_v1, %v581_v0  ;;  %v762_v0 = vadd.f32 %v761_v50, %v760_v42 }
  0xd2   : > { %v610_v2 = vpop.f32.mrf.mxu2  ;;  %v583_v4 = vpop.f32.mrf.mxu0 }
  0xd3   : > { %v626_v3 = vpop.f32.mrf.mxu3  ;;  %v596_v5 = vpop.f32.mrf.mxu1  ;;  %v614_v16 = vadd.f32 %v610_v2, %v595_v12 }
  0xd5   : > { %v1602_v20 = vadd.f32 %v626_v3, %v614_v16 }
  0xd7   : > { %v773_v23 = vmul.f32 %v1602_v20, %v1602_v20  ;;  %v765_v24 = vsel %vm749_vm0, %v1602_v20, 0.0 }
  0xd8   : > { %v766_v28 = vrot.slane %v765_v24, 4 }
  0xd9   : > { %v774_v29 = vsel %vm749_vm0, %v773_v23, 0.0 }
  0xda   : > { %v612_v6 = vpop.f32.mrf.mxu2  ;;  %v775_v34 = vrot.slane %v774_v29, 4  ;;  %v767_v37 = vadd.f32 %v766_v28, %v765_v24 }
  0xdb   : > { %v628_v7 = vpop.f32.mrf.mxu3  ;;  %v818_v6 = vsub.f32 1.0, %v817_v57 }
  0xdc   : > { %v776_v43 = vadd.f32 %v775_v34, %v774_v29  ;;  %v768_v45 = vrot.slane %v767_v37, 2 }
  0xde   : > { %v777_v51 = vrot.slane %v776_v43, 2  ;;  %v769_v55 = vadd.f32 %v768_v45, %v767_v37 }
  0xe0   : > { %v778_v1 = vadd.f32 %v777_v51, %v776_v43  ;;  %v770_v3 = vrot.slane %v769_v55, 1 }
  0xea   : > { %v640_v8 = vpop.f32.mrf.mxu0 }
  0xeb   : > { %v653_v9 = vpop.f32.mrf.mxu1 }
  0xec   : > { %v654_v15 = vadd.f32 %v653_v9, %v640_v8  ;;  %v755_v9 = vrot.slane %v754_v62, 1 }
  0xf2   : > { %v669_v10 = vpop.f32.mrf.mxu2  ;;  %v642_v13 = vpop.f32.mrf.mxu0 }
  0xf3   : > { %v685_v11 = vpop.f32.mrf.mxu3  ;;  %v655_v14 = vpop.f32.mrf.mxu1  ;;  %v673_v19 = vadd.f32 %v669_v10, %v654_v15 }
  0xf5   : > { %v1604_v21 = vadd.f32 %v685_v11, %v673_v19  ;;  %v779_v11 = vrot.slane %v778_v1, 1  ;;  %v819_v19 = vmul.f32 %v1232_v47, %v818_v6 }
  0xf7   : > { %v790_v25 = vmul.f32 %v1604_v21, %v1604_v21  ;;  %v782_v30 = vsel %vm749_vm0, %v1604_v21, 0.0  ;;  %v780_v26 = vadd.f32 %v779_v11, %v778_v1  ;;  %v1230_v1 = vld [vmem:[%s1664_s3] ss:$0 sm:$0xff]  ;;  %v1176_v11 = vld [vmem:[%s1665_s4 + $0xc] sm:$0xf] }
  0xf8   : > { %v783_v35 = vrot.slane %v782_v30, 4 }
  0xf9   : > { %v791_v32 = vsel %vm749_vm0, %v790_v25, 0.0  ;;  %v756_v25 = vadd.f32 %v755_v9, %v754_v62 }
  0xfa   : > { %v671_v17 = vpop.f32.mrf.mxu2  ;;  %v792_v40 = vrot.slane %v791_v32, 4  ;;  %v784_v44 = vadd.f32 %v783_v35, %v782_v30 }
  0xfb   : > { %v687_v18 = vpop.f32.mrf.mxu3  ;;  %v763_v17 = vrot.slane %v762_v0, 1 }
  0xfc   : > { %v793_v48 = vadd.f32 %v792_v40, %v791_v32  ;;  %v785_v52 = vrot.slane %v784_v44, 2  ;;  %v771_v18 = vadd.f32 %v770_v3, %v769_v55  ;;  %v820_v32 = vadd.f32 %v1232_v47, %v819_v19 }
  0xfd   : > { %v764_v30 = vadd.f32 %v763_v17, %v762_v0 }
  0xfe   : > { %v794_v61 = vrot.slane %v793_v48, 2  ;;  %v786_v2 = vadd.f32 %v785_v52, %v784_v44  ;;  %v772_v31 = vadd.f32 %v771_v18, %v756_v25  ;;  %v822_v40 = vsel %vm821_vm1, %v1232_v47, %v820_v32  ;;  %v1229_v47 = vld [vmem:[%s1663_s2] ss:$0 sm:$0xff] }
  0xff   : > { %v781_v36 = vadd.f32 %v780_v26, %v764_v30 }
 0x100   : > { %v795_v7 = vadd.f32 %v794_v61, %v793_v48  ;;  %v787_v12 = vrot.slane %v786_v2, 1 }
 0x102   : > { %v796_v22 = vrot.slane %v795_v7, 1  ;;  %v788_v27 = vadd.f32 %v787_v12, %v786_v2  ;;  %v1174_v12 = vld [vmem:[%s1665_s4 + $0x4] sm:$0xf] }
 0x104   : > { %v797_v33 = vadd.f32 %v796_v22, %v795_v7  ;;  %v789_v37 = vadd.f32 %v788_v27, %v772_v31 }
 0x106   : > { %v798_v41 = vadd.f32 %v797_v33, %v781_v36 }
 0x10a   : > { %v699_v38 = vpop.f32.mrf.mxu0 }
 0x10b   : > { %v712_v39 = vpop.f32.mrf.mxu1 }
 0x10c   : > { %v713_v46 = vadd.f32 %v712_v39, %v699_v38 }
 0x112   : > { %v728_v53 = vpop.f32.mrf.mxu2  ;;  %v701_v58 = vpop.f32.mrf.mxu0 }
 0x113   : > { %v744_v54 = vpop.f32.mrf.mxu3  ;;  %v732_v56 = vadd.f32 %v728_v53, %v713_v46  ;;  %v714_v60 = vpop.f32.mrf.mxu1 }
 0x115   : > { %v1621_v63 = vadd.f32 %v744_v54, %v732_v56 }
 0x117   : > { %v799_v4 = vsel %vm749_vm0, %v1621_v63, 0.0  ;;  %v807_v5 = vmul.f32 %v1621_v63, %v1621_v63 }
 0x118   : > { %v800_v8 = vrot.slane %v799_v4, 4 }
 0x119   : > { %v808_v10 = vsel %vm749_vm0, %v807_v5, 0.0 }
 0x11a   : > { %v801_v13 = vadd.f32 %v800_v8, %v799_v4  ;;  %v809_v14 = vrot.slane %v808_v10, 4  ;;  %v730_v15 = vpop.f32.mrf.mxu2 }
 0x11b   : > { %v746_v16 = vpop.f32.mrf.mxu3 }
 0x11c   : > { %v802_v23 = vrot.slane %v801_v13, 2  ;;  %v810_v24 = vadd.f32 %v809_v14, %v808_v10  ;;  %v853_v10 = vld [vmem:[%s1665_s4] sm:$0xf] }
 0x11e   : > { %v803_v28 = vadd.f32 %v802_v23, %v801_v13  ;;  %v811_v29 = vrot.slane %v810_v24, 2 }
 0x120   : > { %v804_v34 = vrot.slane %v803_v28, 1  ;;  %v812_v35 = vadd.f32 %v811_v29, %v810_v24 }
 0x122   : > { %v805_v38 = vadd.f32 %v804_v34, %v803_v28  ;;  %v813_v39 = vrot.slane %v812_v35, 1 }
 0x124   : > { %v806_v42 = vadd.f32 %v805_v38, %v789_v37  ;;  %v814_v43 = vadd.f32 %v813_v39, %v812_v35 }
 0x126   : > { %v815_v44 = vadd.f32 %v814_v43, %v798_v41  ;;  %v823_v45 = vmul.f32 %v822_v40, %v806_v42 }
 0x128   : > { %v824_v46 = vmul.f32 %v822_v40, %v815_v44  ;;  %v825_v48 = vmul.f32 %v823_v45, %v823_v45  ;;  %v911_v57 = vsub.f32 %v1621_v63, %v823_v45  ;;  %v889_v58 = vsub.f32 %v1604_v21, %v823_v45 }
 0x129   : > { %v840_v60 = vsub.f32 %v1600_v59, %v823_v45  ;;  %v867_v61 = vsub.f32 %v1602_v20, %v823_v45  ;;  %v1175_v59 = vld [vmem:[%s1665_s4 + $0x8] sm:$0xf] }
 0x12a   : > { %v826_v49 = vsub.f32 %v824_v46, %v825_v48 }
 0x12c   : > { %v827_v50 = vadd.f32 1e-05, %v826_v49 }
 0x12e   : > { %1233 = vrsqrt.f32 %v827_v50  ;;  %vm834_vm3 = vweird.f32 %v827_v50 }
 0x134   : > { %v1234_v51 = vpop.eup %1233 }
 0x135   : > { %v829_v52 = vmul.f32 %v1234_v51, %v827_v50  ;;  %vm835_vm2 = vweird.f32 %v1234_v51 }
 0x136   : > { %vm836_vm4 = vmor %vm834_vm3, %vm835_vm2 }
 0x137   : > { %v830_v53 = vmul.f32 %v1234_v51, %v829_v52 }
 0x139   : > { %v831_v54 = vmul.f32 0.5, %v830_v53 }
 0x13b   : > { %v832_v55 = vsub.f32 1.5, %v831_v54 }
 0x13d   : > { %v833_v56 = vmul.f32 %v1234_v51, %v832_v55 }
 0x13f   : > { %v837_v62 = vsel %vm836_vm4, %v1234_v51, %v833_v56 }
 0x140   : > { %v912_v0 = vmul.f32 %v911_v57, %v837_v62  ;;  %v890_v2 = vmul.f32 %v889_v58, %v837_v62  ;;  %v841_v3 = vmul.f32 %v840_v60, %v837_v62  ;;  %v868_v4 = vmul.f32 %v867_v61, %v837_v62 }
 0x142   : > { %v913_v5 = vmul.f32 %v1229_v47, %v912_v0  ;;  %v891_v6 = vmul.f32 %v1229_v47, %v890_v2  ;;  %v845_v7 = vmul.f32 %v1229_v47, %v841_v3  ;;  %v869_v8 = vmul.f32 %v1229_v47, %v868_v4  ;;  %v933_v3 = vld [vmem:[#allocation2] sm:$0x1] }
 0x144   : > { %v892_v63 = vadd.f32 %v1230_v1, %v891_v6  ;;  %v849_v21 = vadd.f32 %v1230_v1, %v845_v7  ;;  %v914_v20 = vadd.f32 %v1230_v1, %v913_v5  ;;  %v870_v9 = vadd.f32 %v1230_v1, %v869_v8 }
 0x146   : > { %vm893_vm5 = vcmp.gt.f32.partialorder %v892_v63, 0.0  ;;  %v894_v13 = vmul.f32 0.2, %v892_v63  ;;  %vm850_vm6 = vcmp.gt.f32.partialorder %v849_v21, 0.0  ;;  %v851_v14 = vmul.f32 0.2, %v849_v21 }
 0x147   : > { %vm915_vm7 = vcmp.gt.f32.partialorder %v914_v20, 0.0  ;;  %v916_v15 = vmul.f32 0.2, %v914_v20  ;;  %vm871_vm8 = vcmp.gt.f32.partialorder %v870_v9, 0.0  ;;  %v872_v16 = vmul.f32 0.2, %v870_v9 }
 0x148   : > { %v895_v17 = vsel %vm893_vm5, %v892_v63, %v894_v13  ;;  %v852_v18 = vsel %vm850_vm6, %v849_v21, %v851_v14 }
 0x149   : > { %v898_v19 = vmul.f32 %v1175_v59, %v895_v17  ;;  %v854_v22 = vmul.f32 %v853_v10, %v852_v18  ;;  %v917_v23 = vsel %vm915_vm7, %v914_v20, %v916_v15  ;;  %v873_v24 = vsel %vm871_vm8, %v870_v9, %v872_v16 }
 0x14a   : > { %v920_v25 = vmul.f32 %v1176_v11, %v917_v23  ;;  %v876_v26 = vmul.f32 %v1174_v12, %v873_v24 }
 0x14b   : > { %v899_v27 = vsel %vm749_vm0, %v898_v19, 0.0  ;;  %v855_v28 = vsel %vm749_vm0, %v854_v22, 0.0 }
 0x14c   : > { %900 = vadd.xlane.f32.xlu1 %v899_v27  ;;  %856 = vadd.xlane.f32.xlu0 %v855_v28  ;;  %v921_v29 = vsel %vm749_vm0, %v920_v25, 0.0  ;;  %v877_v30 = vsel %vm749_vm0, %v876_v26, 0.0 }
 0x154   : > { %922 = vadd.xlane.f32.xlu1 %v921_v29  ;;  %878 = vadd.xlane.f32.xlu0 %v877_v30 }
 0x1bf   : > { %v901_v31 = vpop.xlane.xlu1 %900  ;;  %v857_v32 = vpop.xlane.xlu0 %856 }
 0x1c0   : > { %v902_v33 = vrot.slane %v901_v31, 4  ;;  %v858_v34 = vrot.slane %v857_v32, 4 }
 0x1c2   : > { %v859_v35 = vadd.f32 %v858_v34, %v857_v32  ;;  %v903_v36 = vadd.f32 %v902_v33, %v901_v31 }
 0x1c4   : > { %v860_v37 = vrot.slane %v859_v35, 2  ;;  %v904_v39 = vrot.slane %v903_v36, 2 }
 0x1c6   : > { %v861_v38 = vadd.f32 %v860_v37, %v859_v35  ;;  %v905_v49 = vadd.f32 %v904_v39, %v903_v36 }
 0x1c7   : > { %v923_v40 = vpop.xlane.xlu1 %922  ;;  %v879_v41 = vpop.xlane.xlu0 %878 }
 0x1c8   : > { %v924_v42 = vrot.slane %v923_v40, 4  ;;  %v880_v43 = vrot.slane %v879_v41, 4  ;;  %v862_v44 = vrot.slane %v861_v38, 1  ;;  %v906_v54 = vrot.slane %v905_v49, 1 }
 0x1ca   : > { %v925_v45 = vadd.f32 %v924_v42, %v923_v40  ;;  %v881_v46 = vadd.f32 %v880_v43, %v879_v41  ;;  %v863_v48 = vadd.f32 %v862_v44, %v861_v38  ;;  %v907_v58 = vadd.f32 %v906_v54, %v905_v49 }
 0x1cc   : > { %v926_v50 = vrot.slane %v925_v45, 2  ;;  %v882_v51 = vrot.slane %v881_v46, 2  ;;  %1212 = vpush %v863_v48 }
 0x1ce   : > { %v927_v52 = vadd.f32 %v926_v50, %v925_v45  ;;  %v883_v53 = vadd.f32 %v882_v51, %v881_v46 }
 0x1d0   : > { %v884_v55 = vrot.slane %v883_v53, 1  ;;  %v928_v56 = vrot.slane %v927_v52, 1 }
 0x1d2   : > { %v885_v47 = vadd.f32 %v884_v55, %v883_v53  ;;  %v929_v57 = vadd.f32 %v928_v56, %v927_v52 }
 0x1d4   : > { %1214 = vpush %v885_v47 }
 0x1d5   : > { %1216 = vpush %v907_v58 }
 0x1d6   : > { %1218 = vpush %v929_v57 }
 0x1fd   : > { %s1213_s11 = spop %1212 }
 0x1fe   : > { %v865_v60 = vstv %s1213_s11 }
 0x205   : > { %s1215_s12 = spop %1214 }
 0x206   : > { %v887_v61 = vstv %s1215_s12  ;;  %s1217_s13 = spop %1216 }
 0x207   : > { %v888_v62 = vadd.f32 %v887_v61, %v865_v60  ;;  %s1219_s14 = spop %1218  ;;  %v909_v0 = vstv %s1217_s13 }
 0x208   : > { %v931_v2 = vstv %s1219_s14 }
 0x209   : > { %v910_v1 = vadd.f32 %v909_v0, %v888_v62 }
 0x20b   : > { %v932_v4 = vadd.f32 %v931_v2, %v910_v1 }
 0x20d   : > { %v934_v5 = vadd.f32 %v933_v3, %v932_v4 }
 0x20f   : > { %936 = vst.msk [vmem:[%s249_s17] sm:$0x1] %vm935_vm9, %v934_v5 }
 0x210 PF: > { %s18_s23 = sadd.s32 1, %s1241_s23  }
 0x211   : > { %p15_p4 = scmp.ge.s32.totalorder %s18_s23, 4  }
 0x213   :  { %17 = sbr.rel (!%p15_p4) target bundleno = 3 (0x3), region = 84 }

</bundles_post_ra>
